<compile_context>
chip_gen: v7x
topology: tpu7x:2x2x1
jax: 0.10.0
libtpu: 0.0.40
codegen_flags: <defaults>
</compile_context>

<pallas_src>
import functools

import jax
import jax.numpy as jnp
from jax import lax
from jax.experimental import pallas as pl
from jax.experimental.pallas import tpu as pltpu  # noqa: F401  (no scratch / compiler params needed)

# ----------------------------- configuration -----------------------------
PATCH = 16          # patch size (module default)
IMG = 32            # image side -> 2x2 = 4 patches
CHANS = 3
EMB = 32            # embed dim
HEADS = 4
HEAD_DIM = EMB // HEADS
LAYERS = 3
MLP_HIDDEN = 4 * EMB
SEQ = 1 + (IMG // PATCH) ** 2      # cls token + patches = 5
HEAD_FUSION = "min"                # PyTorch module default


def _gelu(x):
    # tanh-approx GELU; identical formula in kernel and pure-JAX reference.
    c = 0.7978845608028654  # sqrt(2/pi)
    return 0.5 * x * (1.0 + jnp.tanh(c * (x + 0.044715 * x * x * x)))


def _layernorm(x, g, b, eps=1e-6):
    mu = jnp.mean(x, axis=-1, keepdims=True)
    var = jnp.mean((x - mu) ** 2, axis=-1, keepdims=True)
    return (x - mu) * lax.rsqrt(var + eps) * g + b


# ---------------- fully fused encoder + rollout Pallas kernel ----------------
def _encoder_rollout_kernel(tok_ref,
                            ln1_g_ref, ln1_b_ref, qkv_w_ref, qkv_b_ref,
                            proj_w_ref, proj_b_ref,
                            ln2_g_ref, ln2_b_ref,
                            fc1_w_ref, fc1_b_ref, fc2_w_ref, fc2_b_ref,
                            rollout_ref, *, layers, heads, head_dim,
                            head_fusion):
    """Grid-less fused kernel: all encoder layers + attention rollout.

    tok_ref     : (B, S, E) embedded tokens
    weights     : stacked over the layer axis ([L, ...]), whole-array VMEM
    rollout_ref : (B, S, S) output, R_L = N_L @ ... @ N_1
    """
    B, S, E = tok_ref.shape
    scale = 1.0 / (head_dim ** 0.5)

    def linear(x, w, b):
        # (B,S,Din) @ (Din,Dout) + (Dout,) via a batched matmul (MXU-friendly,
        # no sublane-merging reshape needed).
        wb = jnp.broadcast_to(w, (B,) + w.shape)
        return jnp.einsum("bsi,bio->bso", x, wb,
                          preferred_element_type=jnp.float32) + b

    # identity matrix, hoisted out of the layer loop
    rows = lax.broadcasted_iota(jnp.int32, (S, S), 0)
    cols = lax.broadcasted_iota(jnp.int32, (S, S), 1)
    eye = (rows == cols).astype(jnp.float32)

    tok = tok_ref[...]
    rollout = None                                   # R_0 = I implicitly

    for l in range(layers):                          # static unroll (3 layers)
        # ------------------ attention sub-block ------------------
        h = _layernorm(tok, ln1_g_ref[l], ln1_b_ref[l])
        qkv = linear(h, qkv_w_ref[l], qkv_b_ref[l])  # (B, S, 3E), packed/lane-dense

        fused = None
        ctx_heads = []
        for hh in range(heads):                      # static unroll over heads
            lo = hh * head_dim
            q = qkv[:, :, lo:lo + head_dim] * scale
            k = qkv[:, :, E + lo:E + lo + head_dim]
            v = qkv[:, :, 2 * E + lo:2 * E + lo + head_dim]
            s = jnp.einsum("bqd,bkd->bqk", q, k,
                           preferred_element_type=jnp.float32)
            m = jnp.max(s, axis=-1, keepdims=True)
            p = jnp.exp(s - m)
            # softmax denominator via EUP reciprocal (separate VLIW slot)
            a = p * pl.reciprocal(jnp.sum(p, axis=-1, keepdims=True),
                                  approx=True)
            ctx_heads.append(jnp.einsum("bqk,bkd->bqd", a, v,
                                        preferred_element_type=jnp.float32))
            if fused is None:
                fused = a
            elif head_fusion == "min":
                fused = jnp.minimum(fused, a)
            elif head_fusion == "max":
                fused = jnp.maximum(fused, a)
            elif head_fusion == "mean":
                fused = fused + a
            else:
                raise ValueError(f"Invalid head fusion method: {head_fusion}")
        if head_fusion == "mean":
            fused = fused * (1.0 / heads)

        ctx = jnp.concatenate(ctx_heads, axis=-1)            # (B, S, E) lane-dense
        tok = tok + linear(ctx, proj_w_ref[l], proj_b_ref[l])

        # ------------------ MLP sub-block ------------------
        h2 = _layernorm(tok, ln2_g_ref[l], ln2_b_ref[l])
        tok = tok + linear(_gelu(linear(h2, fc1_w_ref[l], fc1_b_ref[l])),
                           fc2_w_ref[l], fc2_b_ref[l])

        # ------------------ rollout update: R_l = N_l @ R_{l-1} ------------------
        norm = (fused + eye) * 0.5
        norm = norm / jnp.sum(norm, axis=-1, keepdims=True)  # exact: rows sum to 1
        if rollout is None:
            rollout = norm
        else:
            rollout = jnp.einsum("bij,bjk->bik", norm, rollout,
                                 preferred_element_type=jnp.float32)

    rollout_ref[...] = rollout


def _full_spec(shape):
    # whole-array block, single grid-less invocation
    return pl.BlockSpec(shape, lambda: (0,) * len(shape))


def encoder_rollout_pallas(tok, params, head_fusion=HEAD_FUSION):
    """tok: [B,S,E] embedded tokens -> full attention rollout [B,S,S]."""
    if head_fusion not in ("min", "max", "mean"):
        raise ValueError(f"Invalid head fusion method: {head_fusion}")
    B, S, E = tok.shape
    weights = (params["ln1_g"], params["ln1_b"], params["qkv_w"], params["qkv_b"],
               params["proj_w"], params["proj_b"], params["ln2_g"], params["ln2_b"],
               params["fc1_w"], params["fc1_b"], params["fc2_w"], params["fc2_b"])
    kernel = functools.partial(_encoder_rollout_kernel,
                               layers=LAYERS, heads=HEADS, head_dim=HEAD_DIM,
                               head_fusion=head_fusion)
    return pl.pallas_call(
        kernel,
        out_shape=jax.ShapeDtypeStruct((B, S, S), jnp.float32),
        in_specs=[_full_spec(tok.shape)] + [_full_spec(w.shape) for w in weights],
        out_specs=_full_spec((B, S, S)),
    )(tok, *weights)


# ------------------------- deterministic parameters -------------------------
def init_params(key):
    def nrm(k, shape, scale=0.02):
        return scale * jax.random.normal(k, shape, jnp.float32)

    ks = iter(jax.random.split(key, 16))
    return {
        "patch_w": nrm(next(ks), (CHANS * PATCH * PATCH, EMB)),
        "patch_b": jnp.zeros((EMB,), jnp.float32),
        "cls": nrm(next(ks), (1, EMB)),
        "pos": nrm(next(ks), (SEQ, EMB)),
        # per-layer weights stacked over a leading layer axis
        "ln1_g": jnp.ones((LAYERS, EMB), jnp.float32),
        "ln1_b": jnp.zeros((LAYERS, EMB), jnp.float32),
        "qkv_w": nrm(next(ks), (LAYERS, EMB, 3 * EMB)),
        "qkv_b": jnp.zeros((LAYERS, 3 * EMB), jnp.float32),
        "proj_w": nrm(next(ks), (LAYERS, EMB, EMB)),
        "proj_b": jnp.zeros((LAYERS, EMB), jnp.float32),
        "ln2_g": jnp.ones((LAYERS, EMB), jnp.float32),
        "ln2_b": jnp.zeros((LAYERS, EMB), jnp.float32),
        "fc1_w": nrm(next(ks), (LAYERS, EMB, MLP_HIDDEN)),
        "fc1_b": jnp.zeros((LAYERS, MLP_HIDDEN), jnp.float32),
        "fc2_w": nrm(next(ks), (LAYERS, MLP_HIDDEN, EMB)),
        "fc2_b": jnp.zeros((LAYERS, EMB), jnp.float32),
    }


# ------------------------------ embedding glue ------------------------------
def _embed(x_nchw, params):
    B, C, H, W = x_nchw.shape
    nh, nw = H // PATCH, W // PATCH
    # patchify (equivalent to Conv2d(kernel=stride=PATCH) on NCHW input)
    patches = x_nchw.reshape(B, C, nh, PATCH, nw, PATCH)
    patches = patches.transpose(0, 2, 4, 1, 3, 5).reshape(B, nh * nw, C * PATCH * PATCH)
    tok = patches @ params["patch_w"] + params["patch_b"]            # [B, N, E]
    cls = jnp.broadcast_to(params["cls"], (B, 1, EMB))
    return jnp.concatenate([cls, tok], axis=1) + params["pos"]       # [B, S, E]


# --------------------------------- forwards ---------------------------------
def forward_pallas(x_nchw, params, head_fusion=HEAD_FUSION):
    """AttentionRollout.forward: image -> [B, S] cls-row attention rollout."""
    tok = _embed(x_nchw, params)
    rollout = encoder_rollout_pallas(tok, params, head_fusion=head_fusion)
    return rollout[:, 0, :]                                          # cls row


def forward_reference(x_nchw, params, head_fusion=HEAD_FUSION):
    """Pure-JAX reference: encoder attention maps + reversed rollout chain."""
    B = x_nchw.shape[0]
    tok = _embed(x_nchw, params)
    attn_maps = []
    for l in range(LAYERS):
        h = _layernorm(tok, params["ln1_g"][l], params["ln1_b"][l])
        qkv = h @ params["qkv_w"][l] + params["qkv_b"][l]            # [B, S, 3E]
        qkv = qkv.reshape(B, SEQ, 3, HEADS, HEAD_DIM).transpose(2, 0, 3, 1, 4)
        q, k, v = qkv[0], qkv[1], qkv[2]                             # [B, H, S, Dh]
        s = jnp.einsum("bhqd,bhkd->bhqk", q, k) / (HEAD_DIM ** 0.5)
        a = jax.nn.softmax(s, axis=-1)
        attn_maps.append(a)
        ctx = jnp.einsum("bhqk,bhkd->bhqd", a, v)
        ctx = ctx.transpose(0, 2, 1, 3).reshape(B, SEQ, EMB)
        tok = tok + ctx @ params["proj_w"][l] + params["proj_b"][l]
        h2 = _layernorm(tok, params["ln2_g"][l], params["ln2_b"][l])
        tok = tok + _gelu(h2 @ params["fc1_w"][l] + params["fc1_b"][l]) \
            @ params["fc2_w"][l] + params["fc2_b"][l]

    rollout = None
    for a in reversed(attn_maps):                                    # as in the module
        if head_fusion == "mean":
            fused = a.mean(axis=1)
        elif head_fusion == "max":
            fused = a.max(axis=1)
        elif head_fusion == "min":
            fused = a.min(axis=1)
        else:
            raise ValueError(f"Invalid head fusion method: {head_fusion}")
        eye = jnp.eye(a.shape[-1], dtype=jnp.float32)
        n = (fused + eye) / 2
        n = n / n.sum(axis=-1, keepdims=True)
        rollout = n if rollout is None else rollout @ n
    return rollout[:, 0, :]


# ---------------------------------- main ----------------------------------
if __name__ == "__main__":
    key = jax.random.PRNGKey(0)
    kx, kp = jax.random.split(key)
    x = jax.random.normal(kx, (2, CHANS, IMG, IMG), jnp.float32)     # NCHW
    params = init_params(kp)

    with jax.default_matmul_precision("float32"):
        out = jax.block_until_ready(jax.jit(forward_pallas)(x, params))
        ref = jax.block_until_ready(jax.jit(forward_reference)(x, params))

    assert out.shape == (2, SEQ), out.shape
    assert bool(jnp.all(jnp.isfinite(out)))
    # tolerance covers approx EUP reciprocal in softmax + MXU-vs-XLA rounding
    assert jnp.allclose(out, ref, rtol=1e-2, atol=2e-3), (out, ref)
    # rollout rows sum to 1 (products of row-stochastic matrices)
    assert jnp.allclose(out.sum(axis=-1), jnp.ones((2,), jnp.float32), atol=1e-3)

    print("KERNEL_OK")
</pallas_src>

<mosaic_0001>
module attributes {stable_mosaic.version = 11 : i64} {
  func.func @_encoder_rollout_kernel(%arg0: memref<2x5x32xf32, #tpu.memory_space<vmem>>, %arg1: memref<3x32xf32, #tpu.memory_space<vmem>>, %arg2: memref<3x32xf32, #tpu.memory_space<vmem>>, %arg3: memref<3x32x96xf32, #tpu.memory_space<vmem>>, %arg4: memref<3x96xf32, #tpu.memory_space<vmem>>, %arg5: memref<3x32x32xf32, #tpu.memory_space<vmem>>, %arg6: memref<3x32xf32, #tpu.memory_space<vmem>>, %arg7: memref<3x32xf32, #tpu.memory_space<vmem>>, %arg8: memref<3x32xf32, #tpu.memory_space<vmem>>, %arg9: memref<3x32x128xf32, #tpu.memory_space<vmem>>, %arg10: memref<3x128xf32, #tpu.memory_space<vmem>>, %arg11: memref<3x128x32xf32, #tpu.memory_space<vmem>>, %arg12: memref<3x32xf32, #tpu.memory_space<vmem>>, %arg13: memref<2x5x5xf32, #tpu.memory_space<vmem>>) attributes {dimension_semantics = [], scalar_prefetch = 0 : i64, scratch_operands = 0 : i64, tpu.core_type = #tpu.core_type<tc>} {
    %0 = tpu.iota {dimensions = array<i32: 0>} : vector<5x5xi32>
    %1 = tpu.iota {dimensions = array<i32: 1>} : vector<5x5xi32>
    %2 = arith.cmpi eq, %0, %1 : vector<5x5xi32>
    %3 = arith.extui %2 : vector<5x5xi1> to vector<5x5xi32>
    %4 = arith.sitofp %3 : vector<5x5xi32> to vector<5x5xf32>
    %c0 = arith.constant 0 : index
    %c0_0 = arith.constant 0 : index
    %c0_1 = arith.constant 0 : index
    %5 = vector.load %arg0[%c0, %c0_0, %c0_1] : memref<2x5x32xf32, #tpu.memory_space<vmem>>, vector<2x5x32xf32>
    %c0_2 = arith.constant 0 : index
    %c0_3 = arith.constant 0 : index
    %6 = vector.load %arg1[%c0_2, %c0_3] : memref<3x32xf32, #tpu.memory_space<vmem>>, vector<1x32xf32>
    %7 = vector.shape_cast %6 : vector<1x32xf32> to vector<32xf32>
    %c0_4 = arith.constant 0 : index
    %c0_5 = arith.constant 0 : index
    %8 = vector.load %arg2[%c0_4, %c0_5] : memref<3x32xf32, #tpu.memory_space<vmem>>, vector<1x32xf32>
    %9 = vector.shape_cast %8 : vector<1x32xf32> to vector<32xf32>
    %cst = arith.constant dense<0.000000e+00> : vector<2x5xf32>
    %10 = vector.multi_reduction <add>, %5, %cst [2] : vector<2x5x32xf32> to vector<2x5xf32>
    %11 = vector.shape_cast %10 : vector<2x5xf32> to vector<2x5x1xf32>
    %cst_6 = arith.constant 3.200000e+01 : f32
    %12 = vector.broadcast %cst_6 : f32 to vector<2x5x1xf32>
    %13 = arith.divf %11, %12 : vector<2x5x1xf32>
    %14 = vector.broadcast %13 : vector<2x5x1xf32> to vector<2x5x32xf32>
    %15 = arith.subf %5, %14 : vector<2x5x32xf32>
    %16 = arith.mulf %15, %15 : vector<2x5x32xf32>
    %cst_7 = arith.constant dense<0.000000e+00> : vector<2x5xf32>
    %17 = vector.multi_reduction <add>, %16, %cst_7 [2] : vector<2x5x32xf32> to vector<2x5xf32>
    %18 = vector.shape_cast %17 : vector<2x5xf32> to vector<2x5x1xf32>
    %cst_8 = arith.constant 3.200000e+01 : f32
    %19 = vector.broadcast %cst_8 : f32 to vector<2x5x1xf32>
    %20 = arith.divf %18, %19 : vector<2x5x1xf32>
    %21 = vector.broadcast %13 : vector<2x5x1xf32> to vector<2x5x32xf32>
    %22 = arith.subf %5, %21 : vector<2x5x32xf32>
    %cst_9 = arith.constant 9.99999997E-7 : f32
    %23 = vector.broadcast %cst_9 : f32 to vector<2x5x1xf32>
    %24 = arith.addf %20, %23 : vector<2x5x1xf32>
    %25 = math.rsqrt %24 : vector<2x5x1xf32>
    %26 = vector.broadcast %25 : vector<2x5x1xf32> to vector<2x5x32xf32>
    %27 = arith.mulf %22, %26 : vector<2x5x32xf32>
    %28 = vector.shape_cast %7 : vector<32xf32> to vector<1x1x32xf32>
    %29 = vector.broadcast %28 : vector<1x1x32xf32> to vector<2x5x32xf32>
    %30 = arith.mulf %27, %29 : vector<2x5x32xf32>
    %31 = vector.shape_cast %9 : vector<32xf32> to vector<1x1x32xf32>
    %32 = vector.broadcast %31 : vector<1x1x32xf32> to vector<2x5x32xf32>
    %33 = arith.addf %30, %32 : vector<2x5x32xf32>
    %c0_10 = arith.constant 0 : index
    %c0_11 = arith.constant 0 : index
    %c0_12 = arith.constant 0 : index
    %34 = vector.load %arg3[%c0_10, %c0_11, %c0_12] : memref<3x32x96xf32, #tpu.memory_space<vmem>>, vector<1x32x96xf32>
    %35 = vector.shape_cast %34 : vector<1x32x96xf32> to vector<32x96xf32>
    %c0_13 = arith.constant 0 : index
    %c0_14 = arith.constant 0 : index
    %36 = vector.load %arg4[%c0_13, %c0_14] : memref<3x96xf32, #tpu.memory_space<vmem>>, vector<1x96xf32>
    %37 = vector.shape_cast %36 : vector<1x96xf32> to vector<96xf32>
    %38 = vector.shape_cast %35 : vector<32x96xf32> to vector<1x32x96xf32>
    %39 = vector.broadcast %38 : vector<1x32x96xf32> to vector<2x32x96xf32>
    "tpu.trace_start"() <{level = 10 : i32, message = "bsi,bio->bso"}> : () -> ()
    %cst_15 = arith.constant dense<0.000000e+00> : vector<2x5x96xf32>
    %40 = tpu.matmul %33, %39, %cst_15 {dimension_numbers = #tpu.dot_dimension_numbers<[2], [1], [1], [2], [0, 0, 0, 1, 1, 2], [0], [0]>, precision = #tpu.contract_precision<fp32>} : vector<2x5x32xf32>, vector<2x32x96xf32>, vector<2x5x96xf32> -> vector<2x5x96xf32>
    "tpu.trace_stop"() : () -> ()
    %41 = vector.shape_cast %37 : vector<96xf32> to vector<1x1x96xf32>
    %42 = vector.broadcast %41 : vector<1x1x96xf32> to vector<2x5x96xf32>
    %43 = arith.addf %40, %42 : vector<2x5x96xf32>
    %44 = vector.extract_strided_slice %43 {offsets = [0, 0, 0], sizes = [2, 5, 8], strides = [1, 1, 1]} : vector<2x5x96xf32> to vector<2x5x8xf32>
    %cst_16 = arith.constant 0.353553385 : f32
    %45 = vector.broadcast %cst_16 : f32 to vector<2x5x8xf32>
    %46 = arith.mulf %44, %45 : vector<2x5x8xf32>
    %47 = vector.extract_strided_slice %43 {offsets = [0, 0, 32], sizes = [2, 5, 8], strides = [1, 1, 1]} : vector<2x5x96xf32> to vector<2x5x8xf32>
    %48 = vector.extract_strided_slice %43 {offsets = [0, 0, 64], sizes = [2, 5, 8], strides = [1, 1, 1]} : vector<2x5x96xf32> to vector<2x5x8xf32>
    "tpu.trace_start"() <{level = 10 : i32, message = "bqd,bkd->bqk"}> : () -> ()
    %cst_17 = arith.constant dense<0.000000e+00> : vector<2x5x5xf32>
    %49 = tpu.matmul %46, %47, %cst_17 {dimension_numbers = #tpu.dot_dimension_numbers<[2], [2], [1], [1], [0, 0, 0, 1, 1, 1], [0], [0]>, precision = #tpu.contract_precision<fp32>} : vector<2x5x8xf32>, vector<2x5x8xf32>, vector<2x5x5xf32> -> vector<2x5x5xf32>
    "tpu.trace_stop"() : () -> ()
    %cst_18 = arith.constant dense<0xFF800000> : vector<2x5xf32>
    %50 = vector.multi_reduction <maximumf>, %49, %cst_18 [2] : vector<2x5x5xf32> to vector<2x5xf32>
    %51 = vector.shape_cast %50 : vector<2x5xf32> to vector<2x5x1xf32>
    %52 = vector.broadcast %51 : vector<2x5x1xf32> to vector<2x5x5xf32>
    %53 = arith.subf %49, %52 : vector<2x5x5xf32>
    %54 = math.exp %53 : vector<2x5x5xf32>
    %cst_19 = arith.constant dense<0.000000e+00> : vector<2x5xf32>
    %55 = vector.multi_reduction <add>, %54, %cst_19 [2] : vector<2x5x5xf32> to vector<2x5xf32>
    %56 = vector.shape_cast %55 : vector<2x5xf32> to vector<2x5x1xf32>
    %57 = tpu.reciprocal %56 {approx = true} : vector<2x5x1xf32> -> vector<2x5x1xf32>
    %58 = vector.broadcast %57 : vector<2x5x1xf32> to vector<2x5x5xf32>
    %59 = arith.mulf %54, %58 : vector<2x5x5xf32>
    "tpu.trace_start"() <{level = 10 : i32, message = "bqk,bkd->bqd"}> : () -> ()
    %cst_20 = arith.constant dense<0.000000e+00> : vector<2x5x8xf32>
    %60 = tpu.matmul %59, %48, %cst_20 {dimension_numbers = #tpu.dot_dimension_numbers<[2], [1], [1], [2], [0, 0, 0, 1, 1, 2], [0], [0]>, precision = #tpu.contract_precision<fp32>} : vector<2x5x5xf32>, vector<2x5x8xf32>, vector<2x5x8xf32> -> vector<2x5x8xf32>
    "tpu.trace_stop"() : () -> ()
    %61 = vector.extract_strided_slice %43 {offsets = [0, 0, 8], sizes = [2, 5, 8], strides = [1, 1, 1]} : vector<2x5x96xf32> to vector<2x5x8xf32>
    %cst_21 = arith.constant 0.353553385 : f32
    %62 = vector.broadcast %cst_21 : f32 to vector<2x5x8xf32>
    %63 = arith.mulf %61, %62 : vector<2x5x8xf32>
    %64 = vector.extract_strided_slice %43 {offsets = [0, 0, 40], sizes = [2, 5, 8], strides = [1, 1, 1]} : vector<2x5x96xf32> to vector<2x5x8xf32>
    %65 = vector.extract_strided_slice %43 {offsets = [0, 0, 72], sizes = [2, 5, 8], strides = [1, 1, 1]} : vector<2x5x96xf32> to vector<2x5x8xf32>
    "tpu.trace_start"() <{level = 10 : i32, message = "bqd,bkd->bqk"}> : () -> ()
    %cst_22 = arith.constant dense<0.000000e+00> : vector<2x5x5xf32>
    %66 = tpu.matmul %63, %64, %cst_22 {dimension_numbers = #tpu.dot_dimension_numbers<[2], [2], [1], [1], [0, 0, 0, 1, 1, 1], [0], [0]>, precision = #tpu.contract_precision<fp32>} : vector<2x5x8xf32>, vector<2x5x8xf32>, vector<2x5x5xf32> -> vector<2x5x5xf32>
    "tpu.trace_stop"() : () -> ()
    %cst_23 = arith.constant dense<0xFF800000> : vector<2x5xf32>
    %67 = vector.multi_reduction <maximumf>, %66, %cst_23 [2] : vector<2x5x5xf32> to vector<2x5xf32>
    %68 = vector.shape_cast %67 : vector<2x5xf32> to vector<2x5x1xf32>
    %69 = vector.broadcast %68 : vector<2x5x1xf32> to vector<2x5x5xf32>
    %70 = arith.subf %66, %69 : vector<2x5x5xf32>
    %71 = math.exp %70 : vector<2x5x5xf32>
    %cst_24 = arith.constant dense<0.000000e+00> : vector<2x5xf32>
    %72 = vector.multi_reduction <add>, %71, %cst_24 [2] : vector<2x5x5xf32> to vector<2x5xf32>
    %73 = vector.shape_cast %72 : vector<2x5xf32> to vector<2x5x1xf32>
    %74 = tpu.reciprocal %73 {approx = true} : vector<2x5x1xf32> -> vector<2x5x1xf32>
    %75 = vector.broadcast %74 : vector<2x5x1xf32> to vector<2x5x5xf32>
    %76 = arith.mulf %71, %75 : vector<2x5x5xf32>
    "tpu.trace_start"() <{level = 10 : i32, message = "bqk,bkd->bqd"}> : () -> ()
    %cst_25 = arith.constant dense<0.000000e+00> : vector<2x5x8xf32>
    %77 = tpu.matmul %76, %65, %cst_25 {dimension_numbers = #tpu.dot_dimension_numbers<[2], [1], [1], [2], [0, 0, 0, 1, 1, 2], [0], [0]>, precision = #tpu.contract_precision<fp32>} : vector<2x5x5xf32>, vector<2x5x8xf32>, vector<2x5x8xf32> -> vector<2x5x8xf32>
    "tpu.trace_stop"() : () -> ()
    %78 = arith.minimumf %59, %76 : vector<2x5x5xf32>
    %79 = vector.extract_strided_slice %43 {offsets = [0, 0, 16], sizes = [2, 5, 8], strides = [1, 1, 1]} : vector<2x5x96xf32> to vector<2x5x8xf32>
    %cst_26 = arith.constant 0.353553385 : f32
    %80 = vector.broadcast %cst_26 : f32 to vector<2x5x8xf32>
    %81 = arith.mulf %79, %80 : vector<2x5x8xf32>
    %82 = vector.extract_strided_slice %43 {offsets = [0, 0, 48], sizes = [2, 5, 8], strides = [1, 1, 1]} : vector<2x5x96xf32> to vector<2x5x8xf32>
    %83 = vector.extract_strided_slice %43 {offsets = [0, 0, 80], sizes = [2, 5, 8], strides = [1, 1, 1]} : vector<2x5x96xf32> to vector<2x5x8xf32>
    "tpu.trace_start"() <{level = 10 : i32, message = "bqd,bkd->bqk"}> : () -> ()
    %cst_27 = arith.constant dense<0.000000e+00> : vector<2x5x5xf32>
    %84 = tpu.matmul %81, %82, %cst_27 {dimension_numbers = #tpu.dot_dimension_numbers<[2], [2], [1], [1], [0, 0, 0, 1, 1, 1], [0], [0]>, precision = #tpu.contract_precision<fp32>} : vector<2x5x8xf32>, vector<2x5x8xf32>, vector<2x5x5xf32> -> vector<2x5x5xf32>
    "tpu.trace_stop"() : () -> ()
    %cst_28 = arith.constant dense<0xFF800000> : vector<2x5xf32>
    %85 = vector.multi_reduction <maximumf>, %84, %cst_28 [2] : vector<2x5x5xf32> to vector<2x5xf32>
    %86 = vector.shape_cast %85 : vector<2x5xf32> to vector<2x5x1xf32>
    %87 = vector.broadcast %86 : vector<2x5x1xf32> to vector<2x5x5xf32>
    %88 = arith.subf %84, %87 : vector<2x5x5xf32>
    %89 = math.exp %88 : vector<2x5x5xf32>
    %cst_29 = arith.constant dense<0.000000e+00> : vector<2x5xf32>
    %90 = vector.multi_reduction <add>, %89, %cst_29 [2] : vector<2x5x5xf32> to vector<2x5xf32>
    %91 = vector.shape_cast %90 : vector<2x5xf32> to vector<2x5x1xf32>
    %92 = tpu.reciprocal %91 {approx = true} : vector<2x5x1xf32> -> vector<2x5x1xf32>
    %93 = vector.broadcast %92 : vector<2x5x1xf32> to vector<2x5x5xf32>
    %94 = arith.mulf %89, %93 : vector<2x5x5xf32>
    "tpu.trace_start"() <{level = 10 : i32, message = "bqk,bkd->bqd"}> : () -> ()
    %cst_30 = arith.constant dense<0.000000e+00> : vector<2x5x8xf32>
    %95 = tpu.matmul %94, %83, %cst_30 {dimension_numbers = #tpu.dot_dimension_numbers<[2], [1], [1], [2], [0, 0, 0, 1, 1, 2], [0], [0]>, precision = #tpu.contract_precision<fp32>} : vector<2x5x5xf32>, vector<2x5x8xf32>, vector<2x5x8xf32> -> vector<2x5x8xf32>
    "tpu.trace_stop"() : () -> ()
    %96 = arith.minimumf %78, %94 : vector<2x5x5xf32>
    %97 = vector.extract_strided_slice %43 {offsets = [0, 0, 24], sizes = [2, 5, 8], strides = [1, 1, 1]} : vector<2x5x96xf32> to vector<2x5x8xf32>
    %cst_31 = arith.constant 0.353553385 : f32
    %98 = vector.broadcast %cst_31 : f32 to vector<2x5x8xf32>
    %99 = arith.mulf %97, %98 : vector<2x5x8xf32>
    %100 = vector.extract_strided_slice %43 {offsets = [0, 0, 56], sizes = [2, 5, 8], strides = [1, 1, 1]} : vector<2x5x96xf32> to vector<2x5x8xf32>
    %101 = vector.extract_strided_slice %43 {offsets = [0, 0, 88], sizes = [2, 5, 8], strides = [1, 1, 1]} : vector<2x5x96xf32> to vector<2x5x8xf32>
    "tpu.trace_start"() <{level = 10 : i32, message = "bqd,bkd->bqk"}> : () -> ()
    %cst_32 = arith.constant dense<0.000000e+00> : vector<2x5x5xf32>
    %102 = tpu.matmul %99, %100, %cst_32 {dimension_numbers = #tpu.dot_dimension_numbers<[2], [2], [1], [1], [0, 0, 0, 1, 1, 1], [0], [0]>, precision = #tpu.contract_precision<fp32>} : vector<2x5x8xf32>, vector<2x5x8xf32>, vector<2x5x5xf32> -> vector<2x5x5xf32>
    "tpu.trace_stop"() : () -> ()
    %cst_33 = arith.constant dense<0xFF800000> : vector<2x5xf32>
    %103 = vector.multi_reduction <maximumf>, %102, %cst_33 [2] : vector<2x5x5xf32> to vector<2x5xf32>
    %104 = vector.shape_cast %103 : vector<2x5xf32> to vector<2x5x1xf32>
    %105 = vector.broadcast %104 : vector<2x5x1xf32> to vector<2x5x5xf32>
    %106 = arith.subf %102, %105 : vector<2x5x5xf32>
    %107 = math.exp %106 : vector<2x5x5xf32>
    %cst_34 = arith.constant dense<0.000000e+00> : vector<2x5xf32>
    %108 = vector.multi_reduction <add>, %107, %cst_34 [2] : vector<2x5x5xf32> to vector<2x5xf32>
    %109 = vector.shape_cast %108 : vector<2x5xf32> to vector<2x5x1xf32>
    %110 = tpu.reciprocal %109 {approx = true} : vector<2x5x1xf32> -> vector<2x5x1xf32>
    %111 = vector.broadcast %110 : vector<2x5x1xf32> to vector<2x5x5xf32>
    %112 = arith.mulf %107, %111 : vector<2x5x5xf32>
    "tpu.trace_start"() <{level = 10 : i32, message = "bqk,bkd->bqd"}> : () -> ()
    %cst_35 = arith.constant dense<0.000000e+00> : vector<2x5x8xf32>
    %113 = tpu.matmul %112, %101, %cst_35 {dimension_numbers = #tpu.dot_dimension_numbers<[2], [1], [1], [2], [0, 0, 0, 1, 1, 2], [0], [0]>, precision = #tpu.contract_precision<fp32>} : vector<2x5x5xf32>, vector<2x5x8xf32>, vector<2x5x8xf32> -> vector<2x5x8xf32>
    "tpu.trace_stop"() : () -> ()
    %114 = arith.minimumf %96, %112 : vector<2x5x5xf32>
    %115 = tpu.concatenate %60, %77, %95, %113 in 2 : vector<2x5x8xf32>, vector<2x5x8xf32>, vector<2x5x8xf32>, vector<2x5x8xf32> -> vector<2x5x32xf32>
    %c0_36 = arith.constant 0 : index
    %c0_37 = arith.constant 0 : index
    %c0_38 = arith.constant 0 : index
    %116 = vector.load %arg5[%c0_36, %c0_37, %c0_38] : memref<3x32x32xf32, #tpu.memory_space<vmem>>, vector<1x32x32xf32>
    %117 = vector.shape_cast %116 : vector<1x32x32xf32> to vector<32x32xf32>
    %c0_39 = arith.constant 0 : index
    %c0_40 = arith.constant 0 : index
    %118 = vector.load %arg6[%c0_39, %c0_40] : memref<3x32xf32, #tpu.memory_space<vmem>>, vector<1x32xf32>
    %119 = vector.shape_cast %118 : vector<1x32xf32> to vector<32xf32>
    %120 = vector.shape_cast %117 : vector<32x32xf32> to vector<1x32x32xf32>
    %121 = vector.broadcast %120 : vector<1x32x32xf32> to vector<2x32x32xf32>
    "tpu.trace_start"() <{level = 10 : i32, message = "bsi,bio->bso"}> : () -> ()
    %cst_41 = arith.constant dense<0.000000e+00> : vector<2x5x32xf32>
    %122 = tpu.matmul %115, %121, %cst_41 {dimension_numbers = #tpu.dot_dimension_numbers<[2], [1], [1], [2], [0, 0, 0, 1, 1, 2], [0], [0]>, precision = #tpu.contract_precision<fp32>} : vector<2x5x32xf32>, vector<2x32x32xf32>, vector<2x5x32xf32> -> vector<2x5x32xf32>
    "tpu.trace_stop"() : () -> ()
    %123 = vector.shape_cast %119 : vector<32xf32> to vector<1x1x32xf32>
    %124 = vector.broadcast %123 : vector<1x1x32xf32> to vector<2x5x32xf32>
    %125 = arith.addf %122, %124 : vector<2x5x32xf32>
    %126 = arith.addf %5, %125 : vector<2x5x32xf32>
    %c0_42 = arith.constant 0 : index
    %c0_43 = arith.constant 0 : index
    %127 = vector.load %arg7[%c0_42, %c0_43] : memref<3x32xf32, #tpu.memory_space<vmem>>, vector<1x32xf32>
    %128 = vector.shape_cast %127 : vector<1x32xf32> to vector<32xf32>
    %c0_44 = arith.constant 0 : index
    %c0_45 = arith.constant 0 : index
    %129 = vector.load %arg8[%c0_44, %c0_45] : memref<3x32xf32, #tpu.memory_space<vmem>>, vector<1x32xf32>
    %130 = vector.shape_cast %129 : vector<1x32xf32> to vector<32xf32>
    %cst_46 = arith.constant dense<0.000000e+00> : vector<2x5xf32>
    %131 = vector.multi_reduction <add>, %126, %cst_46 [2] : vector<2x5x32xf32> to vector<2x5xf32>
    %132 = vector.shape_cast %131 : vector<2x5xf32> to vector<2x5x1xf32>
    %cst_47 = arith.constant 3.200000e+01 : f32
    %133 = vector.broadcast %cst_47 : f32 to vector<2x5x1xf32>
    %134 = arith.divf %132, %133 : vector<2x5x1xf32>
    %135 = vector.broadcast %134 : vector<2x5x1xf32> to vector<2x5x32xf32>
    %136 = arith.subf %126, %135 : vector<2x5x32xf32>
    %137 = arith.mulf %136, %136 : vector<2x5x32xf32>
    %cst_48 = arith.constant dense<0.000000e+00> : vector<2x5xf32>
    %138 = vector.multi_reduction <add>, %137, %cst_48 [2] : vector<2x5x32xf32> to vector<2x5xf32>
    %139 = vector.shape_cast %138 : vector<2x5xf32> to vector<2x5x1xf32>
    %cst_49 = arith.constant 3.200000e+01 : f32
    %140 = vector.broadcast %cst_49 : f32 to vector<2x5x1xf32>
    %141 = arith.divf %139, %140 : vector<2x5x1xf32>
    %142 = vector.broadcast %134 : vector<2x5x1xf32> to vector<2x5x32xf32>
    %143 = arith.subf %126, %142 : vector<2x5x32xf32>
    %cst_50 = arith.constant 9.99999997E-7 : f32
    %144 = vector.broadcast %cst_50 : f32 to vector<2x5x1xf32>
    %145 = arith.addf %141, %144 : vector<2x5x1xf32>
    %146 = math.rsqrt %145 : vector<2x5x1xf32>
    %147 = vector.broadcast %146 : vector<2x5x1xf32> to vector<2x5x32xf32>
    %148 = arith.mulf %143, %147 : vector<2x5x32xf32>
    %149 = vector.shape_cast %128 : vector<32xf32> to vector<1x1x32xf32>
    %150 = vector.broadcast %149 : vector<1x1x32xf32> to vector<2x5x32xf32>
    %151 = arith.mulf %148, %150 : vector<2x5x32xf32>
    %152 = vector.shape_cast %130 : vector<32xf32> to vector<1x1x32xf32>
    %153 = vector.broadcast %152 : vector<1x1x32xf32> to vector<2x5x32xf32>
    %154 = arith.addf %151, %153 : vector<2x5x32xf32>
    %c0_51 = arith.constant 0 : index
    %c0_52 = arith.constant 0 : index
    %c0_53 = arith.constant 0 : index
    %155 = vector.load %arg9[%c0_51, %c0_52, %c0_53] : memref<3x32x128xf32, #tpu.memory_space<vmem>>, vector<1x32x128xf32>
    %156 = vector.shape_cast %155 : vector<1x32x128xf32> to vector<32x128xf32>
    %c0_54 = arith.constant 0 : index
    %c0_55 = arith.constant 0 : index
    %157 = vector.load %arg10[%c0_54, %c0_55] : memref<3x128xf32, #tpu.memory_space<vmem>>, vector<1x128xf32>
    %158 = vector.shape_cast %157 : vector<1x128xf32> to vector<128xf32>
    %159 = vector.shape_cast %156 : vector<32x128xf32> to vector<1x32x128xf32>
    %160 = vector.broadcast %159 : vector<1x32x128xf32> to vector<2x32x128xf32>
    "tpu.trace_start"() <{level = 10 : i32, message = "bsi,bio->bso"}> : () -> ()
    %cst_56 = arith.constant dense<0.000000e+00> : vector<2x5x128xf32>
    %161 = tpu.matmul %154, %160, %cst_56 {dimension_numbers = #tpu.dot_dimension_numbers<[2], [1], [1], [2], [0, 0, 0, 1, 1, 2], [0], [0]>, precision = #tpu.contract_precision<fp32>} : vector<2x5x32xf32>, vector<2x32x128xf32>, vector<2x5x128xf32> -> vector<2x5x128xf32>
    "tpu.trace_stop"() : () -> ()
    %162 = vector.shape_cast %158 : vector<128xf32> to vector<1x1x128xf32>
    %163 = vector.broadcast %162 : vector<1x1x128xf32> to vector<2x5x128xf32>
    %164 = arith.addf %161, %163 : vector<2x5x128xf32>
    %cst_57 = arith.constant 5.000000e-01 : f32
    %165 = vector.broadcast %cst_57 : f32 to vector<2x5x128xf32>
    %166 = arith.mulf %165, %164 : vector<2x5x128xf32>
    %cst_58 = arith.constant 4.471500e-02 : f32
    %167 = vector.broadcast %cst_58 : f32 to vector<2x5x128xf32>
    %168 = arith.mulf %167, %164 : vector<2x5x128xf32>
    %169 = arith.mulf %168, %164 : vector<2x5x128xf32>
    %170 = arith.mulf %169, %164 : vector<2x5x128xf32>
    %171 = arith.addf %164, %170 : vector<2x5x128xf32>
    %cst_59 = arith.constant 0.797884583 : f32
    %172 = vector.broadcast %cst_59 : f32 to vector<2x5x128xf32>
    %173 = arith.mulf %172, %171 : vector<2x5x128xf32>
    %174 = math.tanh %173 : vector<2x5x128xf32>
    %cst_60 = arith.constant 1.000000e+00 : f32
    %175 = vector.broadcast %cst_60 : f32 to vector<2x5x128xf32>
    %176 = arith.addf %175, %174 : vector<2x5x128xf32>
    %177 = arith.mulf %166, %176 : vector<2x5x128xf32>
    %c0_61 = arith.constant 0 : index
    %c0_62 = arith.constant 0 : index
    %c0_63 = arith.constant 0 : index
    %178 = vector.load %arg11[%c0_61, %c0_62, %c0_63] : memref<3x128x32xf32, #tpu.memory_space<vmem>>, vector<1x128x32xf32>
    %179 = vector.shape_cast %178 : vector<1x128x32xf32> to vector<128x32xf32>
    %c0_64 = arith.constant 0 : index
    %c0_65 = arith.constant 0 : index
    %180 = vector.load %arg12[%c0_64, %c0_65] : memref<3x32xf32, #tpu.memory_space<vmem>>, vector<1x32xf32>
    %181 = vector.shape_cast %180 : vector<1x32xf32> to vector<32xf32>
    %182 = vector.shape_cast %179 : vector<128x32xf32> to vector<1x128x32xf32>
    %183 = vector.broadcast %182 : vector<1x128x32xf32> to vector<2x128x32xf32>
    "tpu.trace_start"() <{level = 10 : i32, message = "bsi,bio->bso"}> : () -> ()
    %cst_66 = arith.constant dense<0.000000e+00> : vector<2x5x32xf32>
    %184 = tpu.matmul %177, %183, %cst_66 {dimension_numbers = #tpu.dot_dimension_numbers<[2], [1], [1], [2], [0, 0, 0, 1, 1, 2], [0], [0]>, precision = #tpu.contract_precision<fp32>} : vector<2x5x128xf32>, vector<2x128x32xf32>, vector<2x5x32xf32> -> vector<2x5x32xf32>
    "tpu.trace_stop"() : () -> ()
    %185 = vector.shape_cast %181 : vector<32xf32> to vector<1x1x32xf32>
    %186 = vector.broadcast %185 : vector<1x1x32xf32> to vector<2x5x32xf32>
    %187 = arith.addf %184, %186 : vector<2x5x32xf32>
    %188 = arith.addf %126, %187 : vector<2x5x32xf32>
    %189 = vector.shape_cast %4 : vector<5x5xf32> to vector<1x5x5xf32>
    %190 = vector.broadcast %189 : vector<1x5x5xf32> to vector<2x5x5xf32>
    %191 = arith.addf %114, %190 : vector<2x5x5xf32>
    %cst_67 = arith.constant 5.000000e-01 : f32
    %192 = vector.broadcast %cst_67 : f32 to vector<2x5x5xf32>
    %193 = arith.mulf %191, %192 : vector<2x5x5xf32>
    %cst_68 = arith.constant dense<0.000000e+00> : vector<2x5xf32>
    %194 = vector.multi_reduction <add>, %193, %cst_68 [2] : vector<2x5x5xf32> to vector<2x5xf32>
    %195 = vector.shape_cast %194 : vector<2x5xf32> to vector<2x5x1xf32>
    %196 = vector.broadcast %195 : vector<2x5x1xf32> to vector<2x5x5xf32>
    %197 = arith.divf %193, %196 : vector<2x5x5xf32>
    %c1 = arith.constant 1 : index
    %c0_69 = arith.constant 0 : index
    %198 = vector.load %arg1[%c1, %c0_69] : memref<3x32xf32, #tpu.memory_space<vmem>>, vector<1x32xf32>
    %199 = vector.shape_cast %198 : vector<1x32xf32> to vector<32xf32>
    %c1_70 = arith.constant 1 : index
    %c0_71 = arith.constant 0 : index
    %200 = vector.load %arg2[%c1_70, %c0_71] : memref<3x32xf32, #tpu.memory_space<vmem>>, vector<1x32xf32>
    %201 = vector.shape_cast %200 : vector<1x32xf32> to vector<32xf32>
    %cst_72 = arith.constant dense<0.000000e+00> : vector<2x5xf32>
    %202 = vector.multi_reduction <add>, %188, %cst_72 [2] : vector<2x5x32xf32> to vector<2x5xf32>
    %203 = vector.shape_cast %202 : vector<2x5xf32> to vector<2x5x1xf32>
    %cst_73 = arith.constant 3.200000e+01 : f32
    %204 = vector.broadcast %cst_73 : f32 to vector<2x5x1xf32>
    %205 = arith.divf %203, %204 : vector<2x5x1xf32>
    %206 = vector.broadcast %205 : vector<2x5x1xf32> to vector<2x5x32xf32>
    %207 = arith.subf %188, %206 : vector<2x5x32xf32>
    %208 = arith.mulf %207, %207 : vector<2x5x32xf32>
    %cst_74 = arith.constant dense<0.000000e+00> : vector<2x5xf32>
    %209 = vector.multi_reduction <add>, %208, %cst_74 [2] : vector<2x5x32xf32> to vector<2x5xf32>
    %210 = vector.shape_cast %209 : vector<2x5xf32> to vector<2x5x1xf32>
    %cst_75 = arith.constant 3.200000e+01 : f32
    %211 = vector.broadcast %cst_75 : f32 to vector<2x5x1xf32>
    %212 = arith.divf %210, %211 : vector<2x5x1xf32>
    %213 = vector.broadcast %205 : vector<2x5x1xf32> to vector<2x5x32xf32>
    %214 = arith.subf %188, %213 : vector<2x5x32xf32>
    %cst_76 = arith.constant 9.99999997E-7 : f32
    %215 = vector.broadcast %cst_76 : f32 to vector<2x5x1xf32>
    %216 = arith.addf %212, %215 : vector<2x5x1xf32>
    %217 = math.rsqrt %216 : vector<2x5x1xf32>
    %218 = vector.broadcast %217 : vector<2x5x1xf32> to vector<2x5x32xf32>
    %219 = arith.mulf %214, %218 : vector<2x5x32xf32>
    %220 = vector.shape_cast %199 : vector<32xf32> to vector<1x1x32xf32>
    %221 = vector.broadcast %220 : vector<1x1x32xf32> to vector<2x5x32xf32>
    %222 = arith.mulf %219, %221 : vector<2x5x32xf32>
    %223 = vector.shape_cast %201 : vector<32xf32> to vector<1x1x32xf32>
    %224 = vector.broadcast %223 : vector<1x1x32xf32> to vector<2x5x32xf32>
    %225 = arith.addf %222, %224 : vector<2x5x32xf32>
    %c1_77 = arith.constant 1 : index
    %c0_78 = arith.constant 0 : index
    %c0_79 = arith.constant 0 : index
    %226 = vector.load %arg3[%c1_77, %c0_78, %c0_79] : memref<3x32x96xf32, #tpu.memory_space<vmem>>, vector<1x32x96xf32>
    %227 = vector.shape_cast %226 : vector<1x32x96xf32> to vector<32x96xf32>
    %c1_80 = arith.constant 1 : index
    %c0_81 = arith.constant 0 : index
    %228 = vector.load %arg4[%c1_80, %c0_81] : memref<3x96xf32, #tpu.memory_space<vmem>>, vector<1x96xf32>
    %229 = vector.shape_cast %228 : vector<1x96xf32> to vector<96xf32>
    %230 = vector.shape_cast %227 : vector<32x96xf32> to vector<1x32x96xf32>
    %231 = vector.broadcast %230 : vector<1x32x96xf32> to vector<2x32x96xf32>
    "tpu.trace_start"() <{level = 10 : i32, message = "bsi,bio->bso"}> : () -> ()
    %cst_82 = arith.constant dense<0.000000e+00> : vector<2x5x96xf32>
    %232 = tpu.matmul %225, %231, %cst_82 {dimension_numbers = #tpu.dot_dimension_numbers<[2], [1], [1], [2], [0, 0, 0, 1, 1, 2], [0], [0]>, precision = #tpu.contract_precision<fp32>} : vector<2x5x32xf32>, vector<2x32x96xf32>, vector<2x5x96xf32> -> vector<2x5x96xf32>
    "tpu.trace_stop"() : () -> ()
    %233 = vector.shape_cast %229 : vector<96xf32> to vector<1x1x96xf32>
    %234 = vector.broadcast %233 : vector<1x1x96xf32> to vector<2x5x96xf32>
    %235 = arith.addf %232, %234 : vector<2x5x96xf32>
    %236 = vector.extract_strided_slice %235 {offsets = [0, 0, 0], sizes = [2, 5, 8], strides = [1, 1, 1]} : vector<2x5x96xf32> to vector<2x5x8xf32>
    %cst_83 = arith.constant 0.353553385 : f32
    %237 = vector.broadcast %cst_83 : f32 to vector<2x5x8xf32>
    %238 = arith.mulf %236, %237 : vector<2x5x8xf32>
    %239 = vector.extract_strided_slice %235 {offsets = [0, 0, 32], sizes = [2, 5, 8], strides = [1, 1, 1]} : vector<2x5x96xf32> to vector<2x5x8xf32>
    %240 = vector.extract_strided_slice %235 {offsets = [0, 0, 64], sizes = [2, 5, 8], strides = [1, 1, 1]} : vector<2x5x96xf32> to vector<2x5x8xf32>
    "tpu.trace_start"() <{level = 10 : i32, message = "bqd,bkd->bqk"}> : () -> ()
    %cst_84 = arith.constant dense<0.000000e+00> : vector<2x5x5xf32>
    %241 = tpu.matmul %238, %239, %cst_84 {dimension_numbers = #tpu.dot_dimension_numbers<[2], [2], [1], [1], [0, 0, 0, 1, 1, 1], [0], [0]>, precision = #tpu.contract_precision<fp32>} : vector<2x5x8xf32>, vector<2x5x8xf32>, vector<2x5x5xf32> -> vector<2x5x5xf32>
    "tpu.trace_stop"() : () -> ()
    %cst_85 = arith.constant dense<0xFF800000> : vector<2x5xf32>
    %242 = vector.multi_reduction <maximumf>, %241, %cst_85 [2] : vector<2x5x5xf32> to vector<2x5xf32>
    %243 = vector.shape_cast %242 : vector<2x5xf32> to vector<2x5x1xf32>
    %244 = vector.broadcast %243 : vector<2x5x1xf32> to vector<2x5x5xf32>
    %245 = arith.subf %241, %244 : vector<2x5x5xf32>
    %246 = math.exp %245 : vector<2x5x5xf32>
    %cst_86 = arith.constant dense<0.000000e+00> : vector<2x5xf32>
    %247 = vector.multi_reduction <add>, %246, %cst_86 [2] : vector<2x5x5xf32> to vector<2x5xf32>
    %248 = vector.shape_cast %247 : vector<2x5xf32> to vector<2x5x1xf32>
    %249 = tpu.reciprocal %248 {approx = true} : vector<2x5x1xf32> -> vector<2x5x1xf32>
    %250 = vector.broadcast %249 : vector<2x5x1xf32> to vector<2x5x5xf32>
    %251 = arith.mulf %246, %250 : vector<2x5x5xf32>
    "tpu.trace_start"() <{level = 10 : i32, message = "bqk,bkd->bqd"}> : () -> ()
    %cst_87 = arith.constant dense<0.000000e+00> : vector<2x5x8xf32>
    %252 = tpu.matmul %251, %240, %cst_87 {dimension_numbers = #tpu.dot_dimension_numbers<[2], [1], [1], [2], [0, 0, 0, 1, 1, 2], [0], [0]>, precision = #tpu.contract_precision<fp32>} : vector<2x5x5xf32>, vector<2x5x8xf32>, vector<2x5x8xf32> -> vector<2x5x8xf32>
    "tpu.trace_stop"() : () -> ()
    %253 = vector.extract_strided_slice %235 {offsets = [0, 0, 8], sizes = [2, 5, 8], strides = [1, 1, 1]} : vector<2x5x96xf32> to vector<2x5x8xf32>
    %cst_88 = arith.constant 0.353553385 : f32
    %254 = vector.broadcast %cst_88 : f32 to vector<2x5x8xf32>
    %255 = arith.mulf %253, %254 : vector<2x5x8xf32>
    %256 = vector.extract_strided_slice %235 {offsets = [0, 0, 40], sizes = [2, 5, 8], strides = [1, 1, 1]} : vector<2x5x96xf32> to vector<2x5x8xf32>
    %257 = vector.extract_strided_slice %235 {offsets = [0, 0, 72], sizes = [2, 5, 8], strides = [1, 1, 1]} : vector<2x5x96xf32> to vector<2x5x8xf32>
    "tpu.trace_start"() <{level = 10 : i32, message = "bqd,bkd->bqk"}> : () -> ()
    %cst_89 = arith.constant dense<0.000000e+00> : vector<2x5x5xf32>
    %258 = tpu.matmul %255, %256, %cst_89 {dimension_numbers = #tpu.dot_dimension_numbers<[2], [2], [1], [1], [0, 0, 0, 1, 1, 1], [0], [0]>, precision = #tpu.contract_precision<fp32>} : vector<2x5x8xf32>, vector<2x5x8xf32>, vector<2x5x5xf32> -> vector<2x5x5xf32>
    "tpu.trace_stop"() : () -> ()
    %cst_90 = arith.constant dense<0xFF800000> : vector<2x5xf32>
    %259 = vector.multi_reduction <maximumf>, %258, %cst_90 [2] : vector<2x5x5xf32> to vector<2x5xf32>
    %260 = vector.shape_cast %259 : vector<2x5xf32> to vector<2x5x1xf32>
    %261 = vector.broadcast %260 : vector<2x5x1xf32> to vector<2x5x5xf32>
    %262 = arith.subf %258, %261 : vector<2x5x5xf32>
    %263 = math.exp %262 : vector<2x5x5xf32>
    %cst_91 = arith.constant dense<0.000000e+00> : vector<2x5xf32>
    %264 = vector.multi_reduction <add>, %263, %cst_91 [2] : vector<2x5x5xf32> to vector<2x5xf32>
    %265 = vector.shape_cast %264 : vector<2x5xf32> to vector<2x5x1xf32>
    %266 = tpu.reciprocal %265 {approx = true} : vector<2x5x1xf32> -> vector<2x5x1xf32>
    %267 = vector.broadcast %266 : vector<2x5x1xf32> to vector<2x5x5xf32>
    %268 = arith.mulf %263, %267 : vector<2x5x5xf32>
    "tpu.trace_start"() <{level = 10 : i32, message = "bqk,bkd->bqd"}> : () -> ()
    %cst_92 = arith.constant dense<0.000000e+00> : vector<2x5x8xf32>
    %269 = tpu.matmul %268, %257, %cst_92 {dimension_numbers = #tpu.dot_dimension_numbers<[2], [1], [1], [2], [0, 0, 0, 1, 1, 2], [0], [0]>, precision = #tpu.contract_precision<fp32>} : vector<2x5x5xf32>, vector<2x5x8xf32>, vector<2x5x8xf32> -> vector<2x5x8xf32>
    "tpu.trace_stop"() : () -> ()
    %270 = arith.minimumf %251, %268 : vector<2x5x5xf32>
    %271 = vector.extract_strided_slice %235 {offsets = [0, 0, 16], sizes = [2, 5, 8], strides = [1, 1, 1]} : vector<2x5x96xf32> to vector<2x5x8xf32>
    %cst_93 = arith.constant 0.353553385 : f32
    %272 = vector.broadcast %cst_93 : f32 to vector<2x5x8xf32>
    %273 = arith.mulf %271, %272 : vector<2x5x8xf32>
    %274 = vector.extract_strided_slice %235 {offsets = [0, 0, 48], sizes = [2, 5, 8], strides = [1, 1, 1]} : vector<2x5x96xf32> to vector<2x5x8xf32>
    %275 = vector.extract_strided_slice %235 {offsets = [0, 0, 80], sizes = [2, 5, 8], strides = [1, 1, 1]} : vector<2x5x96xf32> to vector<2x5x8xf32>
    "tpu.trace_start"() <{level = 10 : i32, message = "bqd,bkd->bqk"}> : () -> ()
    %cst_94 = arith.constant dense<0.000000e+00> : vector<2x5x5xf32>
    %276 = tpu.matmul %273, %274, %cst_94 {dimension_numbers = #tpu.dot_dimension_numbers<[2], [2], [1], [1], [0, 0, 0, 1, 1, 1], [0], [0]>, precision = #tpu.contract_precision<fp32>} : vector<2x5x8xf32>, vector<2x5x8xf32>, vector<2x5x5xf32> -> vector<2x5x5xf32>
    "tpu.trace_stop"() : () -> ()
    %cst_95 = arith.constant dense<0xFF800000> : vector<2x5xf32>
    %277 = vector.multi_reduction <maximumf>, %276, %cst_95 [2] : vector<2x5x5xf32> to vector<2x5xf32>
    %278 = vector.shape_cast %277 : vector<2x5xf32> to vector<2x5x1xf32>
    %279 = vector.broadcast %278 : vector<2x5x1xf32> to vector<2x5x5xf32>
    %280 = arith.subf %276, %279 : vector<2x5x5xf32>
    %281 = math.exp %280 : vector<2x5x5xf32>
    %cst_96 = arith.constant dense<0.000000e+00> : vector<2x5xf32>
    %282 = vector.multi_reduction <add>, %281, %cst_96 [2] : vector<2x5x5xf32> to vector<2x5xf32>
    %283 = vector.shape_cast %282 : vector<2x5xf32> to vector<2x5x1xf32>
    %284 = tpu.reciprocal %283 {approx = true} : vector<2x5x1xf32> -> vector<2x5x1xf32>
    %285 = vector.broadcast %284 : vector<2x5x1xf32> to vector<2x5x5xf32>
    %286 = arith.mulf %281, %285 : vector<2x5x5xf32>
    "tpu.trace_start"() <{level = 10 : i32, message = "bqk,bkd->bqd"}> : () -> ()
    %cst_97 = arith.constant dense<0.000000e+00> : vector<2x5x8xf32>
    %287 = tpu.matmul %286, %275, %cst_97 {dimension_numbers = #tpu.dot_dimension_numbers<[2], [1], [1], [2], [0, 0, 0, 1, 1, 2], [0], [0]>, precision = #tpu.contract_precision<fp32>} : vector<2x5x5xf32>, vector<2x5x8xf32>, vector<2x5x8xf32> -> vector<2x5x8xf32>
    "tpu.trace_stop"() : () -> ()
    %288 = arith.minimumf %270, %286 : vector<2x5x5xf32>
    %289 = vector.extract_strided_slice %235 {offsets = [0, 0, 24], sizes = [2, 5, 8], strides = [1, 1, 1]} : vector<2x5x96xf32> to vector<2x5x8xf32>
    %cst_98 = arith.constant 0.353553385 : f32
    %290 = vector.broadcast %cst_98 : f32 to vector<2x5x8xf32>
    %291 = arith.mulf %289, %290 : vector<2x5x8xf32>
    %292 = vector.extract_strided_slice %235 {offsets = [0, 0, 56], sizes = [2, 5, 8], strides = [1, 1, 1]} : vector<2x5x96xf32> to vector<2x5x8xf32>
    %293 = vector.extract_strided_slice %235 {offsets = [0, 0, 88], sizes = [2, 5, 8], strides = [1, 1, 1]} : vector<2x5x96xf32> to vector<2x5x8xf32>
    "tpu.trace_start"() <{level = 10 : i32, message = "bqd,bkd->bqk"}> : () -> ()
    %cst_99 = arith.constant dense<0.000000e+00> : vector<2x5x5xf32>
    %294 = tpu.matmul %291, %292, %cst_99 {dimension_numbers = #tpu.dot_dimension_numbers<[2], [2], [1], [1], [0, 0, 0, 1, 1, 1], [0], [0]>, precision = #tpu.contract_precision<fp32>} : vector<2x5x8xf32>, vector<2x5x8xf32>, vector<2x5x5xf32> -> vector<2x5x5xf32>
    "tpu.trace_stop"() : () -> ()
    %cst_100 = arith.constant dense<0xFF800000> : vector<2x5xf32>
    %295 = vector.multi_reduction <maximumf>, %294, %cst_100 [2] : vector<2x5x5xf32> to vector<2x5xf32>
    %296 = vector.shape_cast %295 : vector<2x5xf32> to vector<2x5x1xf32>
    %297 = vector.broadcast %296 : vector<2x5x1xf32> to vector<2x5x5xf32>
    %298 = arith.subf %294, %297 : vector<2x5x5xf32>
    %299 = math.exp %298 : vector<2x5x5xf32>
    %cst_101 = arith.constant dense<0.000000e+00> : vector<2x5xf32>
    %300 = vector.multi_reduction <add>, %299, %cst_101 [2] : vector<2x5x5xf32> to vector<2x5xf32>
    %301 = vector.shape_cast %300 : vector<2x5xf32> to vector<2x5x1xf32>
    %302 = tpu.reciprocal %301 {approx = true} : vector<2x5x1xf32> -> vector<2x5x1xf32>
    %303 = vector.broadcast %302 : vector<2x5x1xf32> to vector<2x5x5xf32>
    %304 = arith.mulf %299, %303 : vector<2x5x5xf32>
    "tpu.trace_start"() <{level = 10 : i32, message = "bqk,bkd->bqd"}> : () -> ()
    %cst_102 = arith.constant dense<0.000000e+00> : vector<2x5x8xf32>
    %305 = tpu.matmul %304, %293, %cst_102 {dimension_numbers = #tpu.dot_dimension_numbers<[2], [1], [1], [2], [0, 0, 0, 1, 1, 2], [0], [0]>, precision = #tpu.contract_precision<fp32>} : vector<2x5x5xf32>, vector<2x5x8xf32>, vector<2x5x8xf32> -> vector<2x5x8xf32>
    "tpu.trace_stop"() : () -> ()
    %306 = arith.minimumf %288, %304 : vector<2x5x5xf32>
    %307 = tpu.concatenate %252, %269, %287, %305 in 2 : vector<2x5x8xf32>, vector<2x5x8xf32>, vector<2x5x8xf32>, vector<2x5x8xf32> -> vector<2x5x32xf32>
    %c1_103 = arith.constant 1 : index
    %c0_104 = arith.constant 0 : index
    %c0_105 = arith.constant 0 : index
    %308 = vector.load %arg5[%c1_103, %c0_104, %c0_105] : memref<3x32x32xf32, #tpu.memory_space<vmem>>, vector<1x32x32xf32>
    %309 = vector.shape_cast %308 : vector<1x32x32xf32> to vector<32x32xf32>
    %c1_106 = arith.constant 1 : index
    %c0_107 = arith.constant 0 : index
    %310 = vector.load %arg6[%c1_106, %c0_107] : memref<3x32xf32, #tpu.memory_space<vmem>>, vector<1x32xf32>
    %311 = vector.shape_cast %310 : vector<1x32xf32> to vector<32xf32>
    %312 = vector.shape_cast %309 : vector<32x32xf32> to vector<1x32x32xf32>
    %313 = vector.broadcast %312 : vector<1x32x32xf32> to vector<2x32x32xf32>
    "tpu.trace_start"() <{level = 10 : i32, message = "bsi,bio->bso"}> : () -> ()
    %cst_108 = arith.constant dense<0.000000e+00> : vector<2x5x32xf32>
    %314 = tpu.matmul %307, %313, %cst_108 {dimension_numbers = #tpu.dot_dimension_numbers<[2], [1], [1], [2], [0, 0, 0, 1, 1, 2], [0], [0]>, precision = #tpu.contract_precision<fp32>} : vector<2x5x32xf32>, vector<2x32x32xf32>, vector<2x5x32xf32> -> vector<2x5x32xf32>
    "tpu.trace_stop"() : () -> ()
    %315 = vector.shape_cast %311 : vector<32xf32> to vector<1x1x32xf32>
    %316 = vector.broadcast %315 : vector<1x1x32xf32> to vector<2x5x32xf32>
    %317 = arith.addf %314, %316 : vector<2x5x32xf32>
    %318 = arith.addf %188, %317 : vector<2x5x32xf32>
    %c1_109 = arith.constant 1 : index
    %c0_110 = arith.constant 0 : index
    %319 = vector.load %arg7[%c1_109, %c0_110] : memref<3x32xf32, #tpu.memory_space<vmem>>, vector<1x32xf32>
    %320 = vector.shape_cast %319 : vector<1x32xf32> to vector<32xf32>
    %c1_111 = arith.constant 1 : index
    %c0_112 = arith.constant 0 : index
    %321 = vector.load %arg8[%c1_111, %c0_112] : memref<3x32xf32, #tpu.memory_space<vmem>>, vector<1x32xf32>
    %322 = vector.shape_cast %321 : vector<1x32xf32> to vector<32xf32>
    %cst_113 = arith.constant dense<0.000000e+00> : vector<2x5xf32>
    %323 = vector.multi_reduction <add>, %318, %cst_113 [2] : vector<2x5x32xf32> to vector<2x5xf32>
    %324 = vector.shape_cast %323 : vector<2x5xf32> to vector<2x5x1xf32>
    %cst_114 = arith.constant 3.200000e+01 : f32
    %325 = vector.broadcast %cst_114 : f32 to vector<2x5x1xf32>
    %326 = arith.divf %324, %325 : vector<2x5x1xf32>
    %327 = vector.broadcast %326 : vector<2x5x1xf32> to vector<2x5x32xf32>
    %328 = arith.subf %318, %327 : vector<2x5x32xf32>
    %329 = arith.mulf %328, %328 : vector<2x5x32xf32>
    %cst_115 = arith.constant dense<0.000000e+00> : vector<2x5xf32>
    %330 = vector.multi_reduction <add>, %329, %cst_115 [2] : vector<2x5x32xf32> to vector<2x5xf32>
    %331 = vector.shape_cast %330 : vector<2x5xf32> to vector<2x5x1xf32>
    %cst_116 = arith.constant 3.200000e+01 : f32
    %332 = vector.broadcast %cst_116 : f32 to vector<2x5x1xf32>
    %333 = arith.divf %331, %332 : vector<2x5x1xf32>
    %334 = vector.broadcast %326 : vector<2x5x1xf32> to vector<2x5x32xf32>
    %335 = arith.subf %318, %334 : vector<2x5x32xf32>
    %cst_117 = arith.constant 9.99999997E-7 : f32
    %336 = vector.broadcast %cst_117 : f32 to vector<2x5x1xf32>
    %337 = arith.addf %333, %336 : vector<2x5x1xf32>
    %338 = math.rsqrt %337 : vector<2x5x1xf32>
    %339 = vector.broadcast %338 : vector<2x5x1xf32> to vector<2x5x32xf32>
    %340 = arith.mulf %335, %339 : vector<2x5x32xf32>
    %341 = vector.shape_cast %320 : vector<32xf32> to vector<1x1x32xf32>
    %342 = vector.broadcast %341 : vector<1x1x32xf32> to vector<2x5x32xf32>
    %343 = arith.mulf %340, %342 : vector<2x5x32xf32>
    %344 = vector.shape_cast %322 : vector<32xf32> to vector<1x1x32xf32>
    %345 = vector.broadcast %344 : vector<1x1x32xf32> to vector<2x5x32xf32>
    %346 = arith.addf %343, %345 : vector<2x5x32xf32>
    %c1_118 = arith.constant 1 : index
    %c0_119 = arith.constant 0 : index
    %c0_120 = arith.constant 0 : index
    %347 = vector.load %arg9[%c1_118, %c0_119, %c0_120] : memref<3x32x128xf32, #tpu.memory_space<vmem>>, vector<1x32x128xf32>
    %348 = vector.shape_cast %347 : vector<1x32x128xf32> to vector<32x128xf32>
    %c1_121 = arith.constant 1 : index
    %c0_122 = arith.constant 0 : index
    %349 = vector.load %arg10[%c1_121, %c0_122] : memref<3x128xf32, #tpu.memory_space<vmem>>, vector<1x128xf32>
    %350 = vector.shape_cast %349 : vector<1x128xf32> to vector<128xf32>
    %351 = vector.shape_cast %348 : vector<32x128xf32> to vector<1x32x128xf32>
    %352 = vector.broadcast %351 : vector<1x32x128xf32> to vector<2x32x128xf32>
    "tpu.trace_start"() <{level = 10 : i32, message = "bsi,bio->bso"}> : () -> ()
    %cst_123 = arith.constant dense<0.000000e+00> : vector<2x5x128xf32>
    %353 = tpu.matmul %346, %352, %cst_123 {dimension_numbers = #tpu.dot_dimension_numbers<[2], [1], [1], [2], [0, 0, 0, 1, 1, 2], [0], [0]>, precision = #tpu.contract_precision<fp32>} : vector<2x5x32xf32>, vector<2x32x128xf32>, vector<2x5x128xf32> -> vector<2x5x128xf32>
    "tpu.trace_stop"() : () -> ()
    %354 = vector.shape_cast %350 : vector<128xf32> to vector<1x1x128xf32>
    %355 = vector.broadcast %354 : vector<1x1x128xf32> to vector<2x5x128xf32>
    %356 = arith.addf %353, %355 : vector<2x5x128xf32>
    %cst_124 = arith.constant 5.000000e-01 : f32
    %357 = vector.broadcast %cst_124 : f32 to vector<2x5x128xf32>
    %358 = arith.mulf %357, %356 : vector<2x5x128xf32>
    %cst_125 = arith.constant 4.471500e-02 : f32
    %359 = vector.broadcast %cst_125 : f32 to vector<2x5x128xf32>
    %360 = arith.mulf %359, %356 : vector<2x5x128xf32>
    %361 = arith.mulf %360, %356 : vector<2x5x128xf32>
    %362 = arith.mulf %361, %356 : vector<2x5x128xf32>
    %363 = arith.addf %356, %362 : vector<2x5x128xf32>
    %cst_126 = arith.constant 0.797884583 : f32
    %364 = vector.broadcast %cst_126 : f32 to vector<2x5x128xf32>
    %365 = arith.mulf %364, %363 : vector<2x5x128xf32>
    %366 = math.tanh %365 : vector<2x5x128xf32>
    %cst_127 = arith.constant 1.000000e+00 : f32
    %367 = vector.broadcast %cst_127 : f32 to vector<2x5x128xf32>
    %368 = arith.addf %367, %366 : vector<2x5x128xf32>
    %369 = arith.mulf %358, %368 : vector<2x5x128xf32>
    %c1_128 = arith.constant 1 : index
    %c0_129 = arith.constant 0 : index
    %c0_130 = arith.constant 0 : index
    %370 = vector.load %arg11[%c1_128, %c0_129, %c0_130] : memref<3x128x32xf32, #tpu.memory_space<vmem>>, vector<1x128x32xf32>
    %371 = vector.shape_cast %370 : vector<1x128x32xf32> to vector<128x32xf32>
    %c1_131 = arith.constant 1 : index
    %c0_132 = arith.constant 0 : index
    %372 = vector.load %arg12[%c1_131, %c0_132] : memref<3x32xf32, #tpu.memory_space<vmem>>, vector<1x32xf32>
    %373 = vector.shape_cast %372 : vector<1x32xf32> to vector<32xf32>
    %374 = vector.shape_cast %371 : vector<128x32xf32> to vector<1x128x32xf32>
    %375 = vector.broadcast %374 : vector<1x128x32xf32> to vector<2x128x32xf32>
    "tpu.trace_start"() <{level = 10 : i32, message = "bsi,bio->bso"}> : () -> ()
    %cst_133 = arith.constant dense<0.000000e+00> : vector<2x5x32xf32>
    %376 = tpu.matmul %369, %375, %cst_133 {dimension_numbers = #tpu.dot_dimension_numbers<[2], [1], [1], [2], [0, 0, 0, 1, 1, 2], [0], [0]>, precision = #tpu.contract_precision<fp32>} : vector<2x5x128xf32>, vector<2x128x32xf32>, vector<2x5x32xf32> -> vector<2x5x32xf32>
    "tpu.trace_stop"() : () -> ()
    %377 = vector.shape_cast %373 : vector<32xf32> to vector<1x1x32xf32>
    %378 = vector.broadcast %377 : vector<1x1x32xf32> to vector<2x5x32xf32>
    %379 = arith.addf %376, %378 : vector<2x5x32xf32>
    %380 = arith.addf %318, %379 : vector<2x5x32xf32>
    %381 = vector.shape_cast %4 : vector<5x5xf32> to vector<1x5x5xf32>
    %382 = vector.broadcast %381 : vector<1x5x5xf32> to vector<2x5x5xf32>
    %383 = arith.addf %306, %382 : vector<2x5x5xf32>
    %cst_134 = arith.constant 5.000000e-01 : f32
    %384 = vector.broadcast %cst_134 : f32 to vector<2x5x5xf32>
    %385 = arith.mulf %383, %384 : vector<2x5x5xf32>
    %cst_135 = arith.constant dense<0.000000e+00> : vector<2x5xf32>
    %386 = vector.multi_reduction <add>, %385, %cst_135 [2] : vector<2x5x5xf32> to vector<2x5xf32>
    %387 = vector.shape_cast %386 : vector<2x5xf32> to vector<2x5x1xf32>
    %388 = vector.broadcast %387 : vector<2x5x1xf32> to vector<2x5x5xf32>
    %389 = arith.divf %385, %388 : vector<2x5x5xf32>
    "tpu.trace_start"() <{level = 10 : i32, message = "bij,bjk->bik"}> : () -> ()
    %cst_136 = arith.constant dense<0.000000e+00> : vector<2x5x5xf32>
    %390 = tpu.matmul %389, %197, %cst_136 {dimension_numbers = #tpu.dot_dimension_numbers<[2], [1], [1], [2], [0, 0, 0, 1, 1, 2], [0], [0]>, precision = #tpu.contract_precision<fp32>} : vector<2x5x5xf32>, vector<2x5x5xf32>, vector<2x5x5xf32> -> vector<2x5x5xf32>
    "tpu.trace_stop"() : () -> ()
    %c2 = arith.constant 2 : index
    %c0_137 = arith.constant 0 : index
    %391 = vector.load %arg1[%c2, %c0_137] : memref<3x32xf32, #tpu.memory_space<vmem>>, vector<1x32xf32>
    %392 = vector.shape_cast %391 : vector<1x32xf32> to vector<32xf32>
    %c2_138 = arith.constant 2 : index
    %c0_139 = arith.constant 0 : index
    %393 = vector.load %arg2[%c2_138, %c0_139] : memref<3x32xf32, #tpu.memory_space<vmem>>, vector<1x32xf32>
    %394 = vector.shape_cast %393 : vector<1x32xf32> to vector<32xf32>
    %cst_140 = arith.constant dense<0.000000e+00> : vector<2x5xf32>
    %395 = vector.multi_reduction <add>, %380, %cst_140 [2] : vector<2x5x32xf32> to vector<2x5xf32>
    %396 = vector.shape_cast %395 : vector<2x5xf32> to vector<2x5x1xf32>
    %cst_141 = arith.constant 3.200000e+01 : f32
    %397 = vector.broadcast %cst_141 : f32 to vector<2x5x1xf32>
    %398 = arith.divf %396, %397 : vector<2x5x1xf32>
    %399 = vector.broadcast %398 : vector<2x5x1xf32> to vector<2x5x32xf32>
    %400 = arith.subf %380, %399 : vector<2x5x32xf32>
    %401 = arith.mulf %400, %400 : vector<2x5x32xf32>
    %cst_142 = arith.constant dense<0.000000e+00> : vector<2x5xf32>
    %402 = vector.multi_reduction <add>, %401, %cst_142 [2] : vector<2x5x32xf32> to vector<2x5xf32>
    %403 = vector.shape_cast %402 : vector<2x5xf32> to vector<2x5x1xf32>
    %cst_143 = arith.constant 3.200000e+01 : f32
    %404 = vector.broadcast %cst_143 : f32 to vector<2x5x1xf32>
    %405 = arith.divf %403, %404 : vector<2x5x1xf32>
    %406 = vector.broadcast %398 : vector<2x5x1xf32> to vector<2x5x32xf32>
    %407 = arith.subf %380, %406 : vector<2x5x32xf32>
    %cst_144 = arith.constant 9.99999997E-7 : f32
    %408 = vector.broadcast %cst_144 : f32 to vector<2x5x1xf32>
    %409 = arith.addf %405, %408 : vector<2x5x1xf32>
    %410 = math.rsqrt %409 : vector<2x5x1xf32>
    %411 = vector.broadcast %410 : vector<2x5x1xf32> to vector<2x5x32xf32>
    %412 = arith.mulf %407, %411 : vector<2x5x32xf32>
    %413 = vector.shape_cast %392 : vector<32xf32> to vector<1x1x32xf32>
    %414 = vector.broadcast %413 : vector<1x1x32xf32> to vector<2x5x32xf32>
    %415 = arith.mulf %412, %414 : vector<2x5x32xf32>
    %416 = vector.shape_cast %394 : vector<32xf32> to vector<1x1x32xf32>
    %417 = vector.broadcast %416 : vector<1x1x32xf32> to vector<2x5x32xf32>
    %418 = arith.addf %415, %417 : vector<2x5x32xf32>
    %c2_145 = arith.constant 2 : index
    %c0_146 = arith.constant 0 : index
    %c0_147 = arith.constant 0 : index
    %419 = vector.load %arg3[%c2_145, %c0_146, %c0_147] : memref<3x32x96xf32, #tpu.memory_space<vmem>>, vector<1x32x96xf32>
    %420 = vector.shape_cast %419 : vector<1x32x96xf32> to vector<32x96xf32>
    %c2_148 = arith.constant 2 : index
    %c0_149 = arith.constant 0 : index
    %421 = vector.load %arg4[%c2_148, %c0_149] : memref<3x96xf32, #tpu.memory_space<vmem>>, vector<1x96xf32>
    %422 = vector.shape_cast %421 : vector<1x96xf32> to vector<96xf32>
    %423 = vector.shape_cast %420 : vector<32x96xf32> to vector<1x32x96xf32>
    %424 = vector.broadcast %423 : vector<1x32x96xf32> to vector<2x32x96xf32>
    "tpu.trace_start"() <{level = 10 : i32, message = "bsi,bio->bso"}> : () -> ()
    %cst_150 = arith.constant dense<0.000000e+00> : vector<2x5x96xf32>
    %425 = tpu.matmul %418, %424, %cst_150 {dimension_numbers = #tpu.dot_dimension_numbers<[2], [1], [1], [2], [0, 0, 0, 1, 1, 2], [0], [0]>, precision = #tpu.contract_precision<fp32>} : vector<2x5x32xf32>, vector<2x32x96xf32>, vector<2x5x96xf32> -> vector<2x5x96xf32>
    "tpu.trace_stop"() : () -> ()
    %426 = vector.shape_cast %422 : vector<96xf32> to vector<1x1x96xf32>
    %427 = vector.broadcast %426 : vector<1x1x96xf32> to vector<2x5x96xf32>
    %428 = arith.addf %425, %427 : vector<2x5x96xf32>
    %429 = vector.extract_strided_slice %428 {offsets = [0, 0, 0], sizes = [2, 5, 8], strides = [1, 1, 1]} : vector<2x5x96xf32> to vector<2x5x8xf32>
    %cst_151 = arith.constant 0.353553385 : f32
    %430 = vector.broadcast %cst_151 : f32 to vector<2x5x8xf32>
    %431 = arith.mulf %429, %430 : vector<2x5x8xf32>
    %432 = vector.extract_strided_slice %428 {offsets = [0, 0, 32], sizes = [2, 5, 8], strides = [1, 1, 1]} : vector<2x5x96xf32> to vector<2x5x8xf32>
    "tpu.trace_start"() <{level = 10 : i32, message = "bqd,bkd->bqk"}> : () -> ()
    %cst_152 = arith.constant dense<0.000000e+00> : vector<2x5x5xf32>
    %433 = tpu.matmul %431, %432, %cst_152 {dimension_numbers = #tpu.dot_dimension_numbers<[2], [2], [1], [1], [0, 0, 0, 1, 1, 1], [0], [0]>, precision = #tpu.contract_precision<fp32>} : vector<2x5x8xf32>, vector<2x5x8xf32>, vector<2x5x5xf32> -> vector<2x5x5xf32>
    "tpu.trace_stop"() : () -> ()
    %cst_153 = arith.constant dense<0xFF800000> : vector<2x5xf32>
    %434 = vector.multi_reduction <maximumf>, %433, %cst_153 [2] : vector<2x5x5xf32> to vector<2x5xf32>
    %435 = vector.shape_cast %434 : vector<2x5xf32> to vector<2x5x1xf32>
    %436 = vector.broadcast %435 : vector<2x5x1xf32> to vector<2x5x5xf32>
    %437 = arith.subf %433, %436 : vector<2x5x5xf32>
    %438 = math.exp %437 : vector<2x5x5xf32>
    %cst_154 = arith.constant dense<0.000000e+00> : vector<2x5xf32>
    %439 = vector.multi_reduction <add>, %438, %cst_154 [2] : vector<2x5x5xf32> to vector<2x5xf32>
    %440 = vector.shape_cast %439 : vector<2x5xf32> to vector<2x5x1xf32>
    %441 = tpu.reciprocal %440 {approx = true} : vector<2x5x1xf32> -> vector<2x5x1xf32>
    %442 = vector.broadcast %441 : vector<2x5x1xf32> to vector<2x5x5xf32>
    %443 = arith.mulf %438, %442 : vector<2x5x5xf32>
    %444 = vector.extract_strided_slice %428 {offsets = [0, 0, 8], sizes = [2, 5, 8], strides = [1, 1, 1]} : vector<2x5x96xf32> to vector<2x5x8xf32>
    %cst_155 = arith.constant 0.353553385 : f32
    %445 = vector.broadcast %cst_155 : f32 to vector<2x5x8xf32>
    %446 = arith.mulf %444, %445 : vector<2x5x8xf32>
    %447 = vector.extract_strided_slice %428 {offsets = [0, 0, 40], sizes = [2, 5, 8], strides = [1, 1, 1]} : vector<2x5x96xf32> to vector<2x5x8xf32>
    "tpu.trace_start"() <{level = 10 : i32, message = "bqd,bkd->bqk"}> : () -> ()
    %cst_156 = arith.constant dense<0.000000e+00> : vector<2x5x5xf32>
    %448 = tpu.matmul %446, %447, %cst_156 {dimension_numbers = #tpu.dot_dimension_numbers<[2], [2], [1], [1], [0, 0, 0, 1, 1, 1], [0], [0]>, precision = #tpu.contract_precision<fp32>} : vector<2x5x8xf32>, vector<2x5x8xf32>, vector<2x5x5xf32> -> vector<2x5x5xf32>
    "tpu.trace_stop"() : () -> ()
    %cst_157 = arith.constant dense<0xFF800000> : vector<2x5xf32>
    %449 = vector.multi_reduction <maximumf>, %448, %cst_157 [2] : vector<2x5x5xf32> to vector<2x5xf32>
    %450 = vector.shape_cast %449 : vector<2x5xf32> to vector<2x5x1xf32>
    %451 = vector.broadcast %450 : vector<2x5x1xf32> to vector<2x5x5xf32>
    %452 = arith.subf %448, %451 : vector<2x5x5xf32>
    %453 = math.exp %452 : vector<2x5x5xf32>
    %cst_158 = arith.constant dense<0.000000e+00> : vector<2x5xf32>
    %454 = vector.multi_reduction <add>, %453, %cst_158 [2] : vector<2x5x5xf32> to vector<2x5xf32>
    %455 = vector.shape_cast %454 : vector<2x5xf32> to vector<2x5x1xf32>
    %456 = tpu.reciprocal %455 {approx = true} : vector<2x5x1xf32> -> vector<2x5x1xf32>
    %457 = vector.broadcast %456 : vector<2x5x1xf32> to vector<2x5x5xf32>
    %458 = arith.mulf %453, %457 : vector<2x5x5xf32>
    %459 = arith.minimumf %443, %458 : vector<2x5x5xf32>
    %460 = vector.extract_strided_slice %428 {offsets = [0, 0, 16], sizes = [2, 5, 8], strides = [1, 1, 1]} : vector<2x5x96xf32> to vector<2x5x8xf32>
    %cst_159 = arith.constant 0.353553385 : f32
    %461 = vector.broadcast %cst_159 : f32 to vector<2x5x8xf32>
    %462 = arith.mulf %460, %461 : vector<2x5x8xf32>
    %463 = vector.extract_strided_slice %428 {offsets = [0, 0, 48], sizes = [2, 5, 8], strides = [1, 1, 1]} : vector<2x5x96xf32> to vector<2x5x8xf32>
    "tpu.trace_start"() <{level = 10 : i32, message = "bqd,bkd->bqk"}> : () -> ()
    %cst_160 = arith.constant dense<0.000000e+00> : vector<2x5x5xf32>
    %464 = tpu.matmul %462, %463, %cst_160 {dimension_numbers = #tpu.dot_dimension_numbers<[2], [2], [1], [1], [0, 0, 0, 1, 1, 1], [0], [0]>, precision = #tpu.contract_precision<fp32>} : vector<2x5x8xf32>, vector<2x5x8xf32>, vector<2x5x5xf32> -> vector<2x5x5xf32>
    "tpu.trace_stop"() : () -> ()
    %cst_161 = arith.constant dense<0xFF800000> : vector<2x5xf32>
    %465 = vector.multi_reduction <maximumf>, %464, %cst_161 [2] : vector<2x5x5xf32> to vector<2x5xf32>
    %466 = vector.shape_cast %465 : vector<2x5xf32> to vector<2x5x1xf32>
    %467 = vector.broadcast %466 : vector<2x5x1xf32> to vector<2x5x5xf32>
    %468 = arith.subf %464, %467 : vector<2x5x5xf32>
    %469 = math.exp %468 : vector<2x5x5xf32>
    %cst_162 = arith.constant dense<0.000000e+00> : vector<2x5xf32>
    %470 = vector.multi_reduction <add>, %469, %cst_162 [2] : vector<2x5x5xf32> to vector<2x5xf32>
    %471 = vector.shape_cast %470 : vector<2x5xf32> to vector<2x5x1xf32>
    %472 = tpu.reciprocal %471 {approx = true} : vector<2x5x1xf32> -> vector<2x5x1xf32>
    %473 = vector.broadcast %472 : vector<2x5x1xf32> to vector<2x5x5xf32>
    %474 = arith.mulf %469, %473 : vector<2x5x5xf32>
    %475 = arith.minimumf %459, %474 : vector<2x5x5xf32>
    %476 = vector.extract_strided_slice %428 {offsets = [0, 0, 24], sizes = [2, 5, 8], strides = [1, 1, 1]} : vector<2x5x96xf32> to vector<2x5x8xf32>
    %cst_163 = arith.constant 0.353553385 : f32
    %477 = vector.broadcast %cst_163 : f32 to vector<2x5x8xf32>
    %478 = arith.mulf %476, %477 : vector<2x5x8xf32>
    %479 = vector.extract_strided_slice %428 {offsets = [0, 0, 56], sizes = [2, 5, 8], strides = [1, 1, 1]} : vector<2x5x96xf32> to vector<2x5x8xf32>
    "tpu.trace_start"() <{level = 10 : i32, message = "bqd,bkd->bqk"}> : () -> ()
    %cst_164 = arith.constant dense<0.000000e+00> : vector<2x5x5xf32>
    %480 = tpu.matmul %478, %479, %cst_164 {dimension_numbers = #tpu.dot_dimension_numbers<[2], [2], [1], [1], [0, 0, 0, 1, 1, 1], [0], [0]>, precision = #tpu.contract_precision<fp32>} : vector<2x5x8xf32>, vector<2x5x8xf32>, vector<2x5x5xf32> -> vector<2x5x5xf32>
    "tpu.trace_stop"() : () -> ()
    %cst_165 = arith.constant dense<0xFF800000> : vector<2x5xf32>
    %481 = vector.multi_reduction <maximumf>, %480, %cst_165 [2] : vector<2x5x5xf32> to vector<2x5xf32>
    %482 = vector.shape_cast %481 : vector<2x5xf32> to vector<2x5x1xf32>
    %483 = vector.broadcast %482 : vector<2x5x1xf32> to vector<2x5x5xf32>
    %484 = arith.subf %480, %483 : vector<2x5x5xf32>
    %485 = math.exp %484 : vector<2x5x5xf32>
    %cst_166 = arith.constant dense<0.000000e+00> : vector<2x5xf32>
    %486 = vector.multi_reduction <add>, %485, %cst_166 [2] : vector<2x5x5xf32> to vector<2x5xf32>
    %487 = vector.shape_cast %486 : vector<2x5xf32> to vector<2x5x1xf32>
    %488 = tpu.reciprocal %487 {approx = true} : vector<2x5x1xf32> -> vector<2x5x1xf32>
    %489 = vector.broadcast %488 : vector<2x5x1xf32> to vector<2x5x5xf32>
    %490 = arith.mulf %485, %489 : vector<2x5x5xf32>
    %491 = arith.minimumf %475, %490 : vector<2x5x5xf32>
    %492 = vector.shape_cast %4 : vector<5x5xf32> to vector<1x5x5xf32>
    %493 = vector.broadcast %492 : vector<1x5x5xf32> to vector<2x5x5xf32>
    %494 = arith.addf %491, %493 : vector<2x5x5xf32>
    %cst_167 = arith.constant 5.000000e-01 : f32
    %495 = vector.broadcast %cst_167 : f32 to vector<2x5x5xf32>
    %496 = arith.mulf %494, %495 : vector<2x5x5xf32>
    %cst_168 = arith.constant dense<0.000000e+00> : vector<2x5xf32>
    %497 = vector.multi_reduction <add>, %496, %cst_168 [2] : vector<2x5x5xf32> to vector<2x5xf32>
    %498 = vector.shape_cast %497 : vector<2x5xf32> to vector<2x5x1xf32>
    %499 = vector.broadcast %498 : vector<2x5x1xf32> to vector<2x5x5xf32>
    %500 = arith.divf %496, %499 : vector<2x5x5xf32>
    "tpu.trace_start"() <{level = 10 : i32, message = "bij,bjk->bik"}> : () -> ()
    %cst_169 = arith.constant dense<0.000000e+00> : vector<2x5x5xf32>
    %501 = tpu.matmul %500, %390, %cst_169 {dimension_numbers = #tpu.dot_dimension_numbers<[2], [1], [1], [2], [0, 0, 0, 1, 1, 2], [0], [0]>, precision = #tpu.contract_precision<fp32>} : vector<2x5x5xf32>, vector<2x5x5xf32>, vector<2x5x5xf32> -> vector<2x5x5xf32>
    "tpu.trace_stop"() : () -> ()
    %c0_170 = arith.constant 0 : index
    %c0_171 = arith.constant 0 : index
    %c0_172 = arith.constant 0 : index
    %502 = vector.load %arg13[%c0_170, %c0_171, %c0_172] : memref<2x5x5xf32, #tpu.memory_space<vmem>>, vector<2x5x5xf32>
    tpu.vector_store %arg13[%c0_170, %c0_171, %c0_172], %501 {strides = array<i32>} : memref<2x5x5xf32, #tpu.memory_space<vmem>>, vector<2x5x5xf32>,
    return
  }
}

</mosaic_0001>

<bundles_post_ra>
// kernel: forward_pallas.1
= control target key start
LH: loop header
LB: loop body
LE: loop exit
PB: predicated region body
PF: predicated region fallthrough
CT: control target
= control target key end

     0   :  { %vm55_vm0 = vcmask 258048   ;;  %v40148_v14 = vmov 0.0|0.0   ;;  %vm36438_vm1 = vmmov 0   ;;  %v40150_v22 = vmov 0.0   ;;  %s36440_s26 = smov 96   ;;  %s36441_s27 = smov 64   ;;  %s40093_s0 = inlined_call_operand.vmem [shape: f32[2,5,32], index: 0, kind: input, shape index: {}]   ;;  %s40094_s3 = inlined_call_operand.vmem [shape: f32[3,32,96], index: 3, kind: input, shape index: {}]   ;;  %s40095_s1 = inlined_call_operand.vmem [shape: f32[3,32], index: 1, kind: input, shape index: {}]   ;;  %s40096_s2 = inlined_call_operand.vmem [shape: f32[3,32], index: 2, kind: input, shape index: {}]   ;;  %s40097_s4 = inlined_call_operand.vmem [shape: f32[3,96], index: 4, kind: input, shape index: {}]   ;;  %s40098_s5 = inlined_call_operand.vmem [shape: f32[3,32,32], index: 5, kind: input, shape index: {}]   ;;  %s40099_s6 = inlined_call_operand.vmem [shape: f32[3,32], index: 6, kind: input, shape index: {}]   ;;  %s40100_s9 = inlined_call_operand.vmem [shape: f32[3,32,128], index: 9, kind: input, shape index: {}]   ;;  %s40101_s7 = inlined_call_operand.vmem [shape: f32[3,32], index: 7, kind: input, shape index: {}]   ;;  %s40102_s8 = inlined_call_operand.vmem [shape: f32[3,32], index: 8, kind: input, shape index: {}]   ;;  %s40103_s11 = inlined_call_operand.vmem [shape: f32[3,128,32], index: 11, kind: input, shape index: {}]   ;;  %s40104_s10 = inlined_call_operand.vmem [shape: f32[3,128], index: 10, kind: input, shape index: {}]   ;;  %s40105_s12 = inlined_call_operand.vmem [shape: f32[3,32], index: 12, kind: input, shape index: {}]   ;;  %s40106_s13 = inlined_call_operand.vmem [shape: f32[2,5,5], index: 13, kind: output, shape index: {}]  }
   0x1   :  { %v52_v0 = vld [vmem:[%s40093_s0 + $0x8] sm:$0x1f]  ;;  %v51_v1 = vld [vmem:[%s40093_s0] sm:$0x1f]  ;;  %34652 = vmatprep.subr.bf16.mxu0 %v40148_v14  ;;  %34688 = vmatprep.subr.bf16.mxu1 %v40148_v14  ;;  %v97_v17 = vld [vmem:[%s40094_s3 + $0x10] sm:$0xff]  ;;  %vm104_vm2 = vcmask 261120  }
   0x2   :  { %v59_v2 = vsel %vm55_vm0, %v52_v0, 0.0  ;;  %v56_v3 = vsel %vm55_vm0, %v51_v1, 0.0  ;;  %v95_v15 = vld [vmem:[%s40094_s3] sm:$0xff]  ;;  %v96_v16 = vld [vmem:[%s40094_s3 + $0x8] sm:$0xff]  ;;  %v98_v20 = vld [vmem:[%s40094_s3 + $0x18] sm:$0xff]  ;;  %v115_v21 = vand.u32 4294901760, %v97_v17  ;;  %31576 = vmatprep.mubr.msk.f32.mxu0 %vm36438_vm1, %v40150_v22  ;;  %31642 = vmatprep.mubr.msk.f32.mxu1 %vm36438_vm1, %v40150_v22 }
   0x3   :  { %60 = vadd.xlane.f32.xlu1 %v59_v2  ;;  %57 = vadd.xlane.f32.xlu0 %v56_v3  ;;  %v109_v18 = vand.u32 4294901760, %v95_v15  ;;  %v112_v19 = vand.u32 4294901760, %v96_v16  ;;  %v118_v23 = vand.u32 4294901760, %v98_v20  ;;  %v30161_v55 = vld [vmem:[%s40095_s1] ss:$0 sm:$0xff]  ;;  %vm1086_vm3 = vcmask 64512  }
   0x4   :  { %v203_v32 = vsub.f32 %v97_v17, %v115_v21  ;;  %v30162_v59 = vld [vmem:[%s40096_s2] ss:$0 sm:$0xff]  ;;  %vm1992_vm4 = vcmask 36864   ;;  %s36442_s28 = smov 88   ;;  %vm2021_vm5 = vcmask 1044480   ;;  %s36443_s29 = smov 120  }
   0x5   :  { %v36560_v24 = vpack.c.bf16 %v112_v19, %v109_v18  ;;  %v36564_v25 = vpack.c.bf16 %v118_v23, %v115_v21  ;;  %v189_v26 = vsub.f32 %v95_v15, %v109_v18  ;;  %v196_v27 = vsub.f32 %v96_v16, %v112_v19  ;;  %s36444_s30 = smov 112   ;;  %s36445_s14 = smov 56  }
   0x6   :  { %v210_v33 = vsub.f32 %v98_v20, %v118_v23  ;;  %v204_v36 = vand.u32 4294901760, %v203_v32  ;;  %vm2017_vm6 = vcmask 39936   ;;  %s36446_s15 = smov 80   ;;  %s36447_s16 = smov 104   ;;  %vm8463_vm7 = vcmask 130048  }
   0x7   :  { %34654 = vmatpush3.bf16.msra.mxu0 %v36560_v24  ;;  %34690 = vmatpush3.bf16.msra.mxu1 %v36560_v24  ;;  %v190_v28 = vand.u32 4294901760, %v189_v26  ;;  %v197_v29 = vand.u32 4294901760, %v196_v27  ;;  %v34665_v44 = vpack.c.bf16 %v196_v27, %v189_v26  ;;  %s36448_s17 = smov 48   ;;  %s40115_s18 = smov 72   ;;  %vm8466_vm8 = vcmask 195584  }
   0x8   :  { %34655 = vmatprep.subr.bf16.mxu0 %v40148_v14  ;;  %34691 = vmatprep.subr.bf16.mxu1 %v40148_v14  ;;  %v211_v37 = vand.u32 4294901760, %v210_v33  ;;  %v205_v39 = vsub.f32 %v203_v32, %v204_v36  ;;  %v34668_v45 = vpack.c.bf16 %v210_v33, %v203_v32  ;;  %s40113_s19 = smov 40   ;;  %s40111_s20 = smov 8  }
   0x9   :  { %v191_v30 = vsub.f32 %v189_v26, %v190_v28  ;;  %v198_v31 = vsub.f32 %v196_v27, %v197_v29  ;;  %v36572_v46 = vpack.c.bf16 %v197_v29, %v190_v28  ;;  %s40109_s21 = smov 16   ;;  %s40107_s22 = smov 24  }
   0xa   :  { %v212_v40 = vsub.f32 %v210_v33, %v211_v37  ;;  %v206_v41 = vand.u32 4294901760, %v205_v39  ;;  %v36574_v47 = vpack.c.bf16 %v211_v37, %v204_v36 }
   0xb   :  { %34657 = vmatpush3.bf16.msra.mxu0 %v36564_v25  ;;  %34693 = vmatpush3.bf16.msra.mxu1 %v36564_v25  ;;  %v192_v34 = vand.u32 4294901760, %v191_v30  ;;  %v199_v35 = vand.u32 4294901760, %v198_v31 }
   0xc   :  { %34658 = vmatprep.subr.bf16.mxu0 %v40148_v14  ;;  %34694 = vmatprep.subr.bf16.mxu1 %v40148_v14  ;;  %v213_v42 = vand.u32 4294901760, %v212_v40 }
   0xd   :  { %v34659_v38 = vpack.c.bf16 %v199_v35, %v192_v34 }
   0xe   :  { %v34662_v43 = vpack.c.bf16 %v213_v42, %v206_v41 }
  0x90   :  { %v61_v4 = vpop.xlane.xlu1 %60  ;;  %v58_v5 = vpop.xlane.xlu0 %57 }
  0x91   :  { %v64_v6 = vmul.f32 0.03125, %v61_v4  ;;  %v63_v7 = vmul.f32 0.03125, %v58_v5 }
  0x93   :  { %v36532_v8 = vsub.f32 %v52_v0, %v64_v6  ;;  %v36534_v9 = vsub.f32 %v51_v1, %v63_v7 }
  0x95   :  { %v68_v10 = vmul.f32 %v36532_v8, %v36532_v8  ;;  %v67_v11 = vmul.f32 %v36534_v9, %v36534_v9 }
  0x97   :  { %v72_v12 = vsel %vm55_vm0, %v68_v10, 0.0  ;;  %v69_v13 = vsel %vm55_vm0, %v67_v11, 0.0 }
  0x98   :  { %73 = vadd.xlane.f32.xlu1 %v72_v12  ;;  %70 = vadd.xlane.f32.xlu0 %v69_v13  ;;  %v30163_v12 = vld [vmem:[%s40097_s4] ss:$0 sm:$0xff] }
 0x125   :  { %v74_v48 = vpop.xlane.xlu1 %73  ;;  %v71_v49 = vpop.xlane.xlu0 %70 }
 0x126   :  { %v76_v50 = vmul.f32 0.03125, %v74_v48  ;;  %v75_v51 = vmul.f32 0.03125, %v71_v49 }
 0x128   :  { %v78_v52 = vadd.f32 1e-06, %v76_v50  ;;  %v77_v53 = vadd.f32 1e-06, %v75_v51 }
 0x12a   :  { %36299 = vrsqrt.f32 %v78_v52 }
 0x12b   :  { %36301 = vrsqrt.f32 %v77_v53 }
 0x134   :  { %v36300_v54 = vpop.eup %36299 }
 0x135   :  { %v36302_v56 = vpop.eup %36301  ;;  %v82_v57 = vmul.f32 %v36300_v54, %v36532_v8 }
 0x136   :  { %v81_v58 = vmul.f32 %v36302_v56, %v36534_v9 }
 0x137   :  { %v88_v60 = vmul.f32 %v30161_v55, %v82_v57 }
 0x138   :  { %v87_v61 = vmul.f32 %v30161_v55, %v81_v58 }
 0x139   :  { %v94_v62 = vadd.f32 %v30162_v59, %v88_v60 }
 0x13a   :  { %v93_v63 = vadd.f32 %v30162_v59, %v87_v61 }
 0x13b   :  { %v594_v0 = vsel %vm104_vm2, %v94_v62, 0 }
 0x13c   :  { %v106_v1 = vsel %vm104_vm2, %v93_v63, 0  ;;  %v36586_v2 = vand.u32 4294901760, %v594_v0 }
 0x13d   :  { %v36588_v3 = vand.u32 4294901760, %v106_v1 }
 0x13e   :  { %v666_v4 = vsub.f32 %v594_v0, %v36586_v2 }
 0x13f   :  { %v178_v5 = vsub.f32 %v106_v1, %v36588_v3 }
 0x140   :  { %v667_v6 = vand.u32 4294901760, %v666_v4 }
 0x141   :  { %v179_v7 = vand.u32 4294901760, %v178_v5 }
 0x142   :  { %v668_v8 = vsub.f32 %v666_v4, %v667_v6 }
 0x143   :  { %v180_v9 = vsub.f32 %v178_v5, %v179_v7 }
 0x144   :  { %v669_v10 = vand.u32 4294901760, %v668_v8 }
 0x145   :  { %v181_v11 = vand.u32 4294901760, %v180_v9 }
 0x146   :  { %31643 = vmatmul.mubr.f32.vlgmr.msra.gmra.mrb[0].mxu1 %v669_v10 }
 0x147   :  { %31577 = vmatmul.mubr.f32.vlgmr.msra.gmra.mrb[0].mxu0 %v181_v11  ;;  %34696 = vmatpush3.bf16.msra.mxu1 %v34659_v38 }
 0x148   :  { %34660 = vmatpush3.bf16.msra.mxu0 %v34659_v38  ;;  %34697 = vmatprep.subr.bf16.mxu1 %v40148_v14 }
 0x149   :  { %34661 = vmatprep.subr.bf16.mxu0 %v40148_v14  ;;  %31587 = vmatprep.mubr.msk.f32.mxu0 %vm36438_vm1, %v40150_v22 }
 0x14a   :  { %31653 = vmatprep.mubr.msk.f32.mxu1 %vm36438_vm1, %v40150_v22 }
 0x14b   :  { %34699 = vmatpush3.bf16.msra.mxu1 %v34662_v43 }
 0x14c   :  { %34663 = vmatpush3.bf16.msra.mxu0 %v34662_v43  ;;  %34700 = vmatprep.subr.bf16.mxu1 %v40148_v14 }
 0x14d   :  { %34664 = vmatprep.subr.bf16.mxu0 %v40148_v14 }
 0x14e   :  { %31654 = vmatmul.mubr.f32.vlgmr.msra.gmra.mrb[0].mxu1 %v36586_v2 }
 0x14f   :  { %31588 = vmatmul.mubr.f32.vlgmr.msra.gmra.mrb[0].mxu0 %v36588_v3  ;;  %34702 = vmatpush3.bf16.msra.mxu1 %v34665_v44 }
 0x150   :  { %34666 = vmatpush3.bf16.msra.mxu0 %v34665_v44  ;;  %34703 = vmatprep.subr.bf16.mxu1 %v40148_v14 }
 0x151   :  { %34667 = vmatprep.subr.bf16.mxu0 %v40148_v14  ;;  %31598 = vmatprep.mubr.msk.f32.mxu0 %vm36438_vm1, %v40150_v22 }
 0x152   :  { %31664 = vmatprep.mubr.msk.f32.mxu1 %vm36438_vm1, %v40150_v22 }
 0x153   :  { %34705 = vmatpush3.bf16.msra.mxu1 %v34668_v45 }
 0x154   :  { %34669 = vmatpush3.bf16.msra.mxu0 %v34668_v45  ;;  %34706 = vmatprep.subr.bf16.mxu1 %v40148_v14 }
 0x155   :  { %34670 = vmatprep.subr.bf16.mxu0 %v40148_v14 }
 0x156   :  { %31665 = vmatmul.mubr.f32.vlgmr.msra.gmra.mrb[0].mxu1 %v666_v4 }
 0x157   :  { %31599 = vmatmul.mubr.f32.vlgmr.msra.gmra.mrb[0].mxu0 %v178_v5  ;;  %34708 = vmatpush3.bf16.msra.mxu1 %v36560_v24 }
 0x158   :  { %34672 = vmatpush3.bf16.msra.mxu0 %v36560_v24  ;;  %34709 = vmatprep.subr.bf16.mxu1 %v40148_v14 }
 0x159   :  { %34673 = vmatprep.subr.bf16.mxu0 %v40148_v14  ;;  %31609 = vmatprep.mubr.msk.f32.mxu0 %vm36438_vm1, %v40150_v22 }
 0x15a   :  { %31675 = vmatprep.mubr.msk.f32.mxu1 %vm36438_vm1, %v40150_v22 }
 0x15b   :  { %34711 = vmatpush3.bf16.msra.mxu1 %v36564_v25 }
 0x15c   :  { %34675 = vmatpush3.bf16.msra.mxu0 %v36564_v25  ;;  %34712 = vmatprep.subr.bf16.mxu1 %v40148_v14 }
 0x15d   :  { %34676 = vmatprep.subr.bf16.mxu0 %v40148_v14 }
 0x15e   :  { %31676 = vmatmul.mubr.f32.vlgmr.msra.gmra.mrb[0].mxu1 %v667_v6 }
 0x15f   :  { %31610 = vmatmul.mubr.f32.vlgmr.msra.gmra.mrb[0].mxu0 %v179_v7  ;;  %34714 = vmatpush3.bf16.msra.mxu1 %v36572_v46 }
 0x160   :  { %34678 = vmatpush3.bf16.msra.mxu0 %v36572_v46  ;;  %34715 = vmatprep.subr.bf16.mxu1 %v40148_v14 }
 0x161   :  { %34679 = vmatprep.subr.bf16.mxu0 %v40148_v14  ;;  %31620 = vmatprep.mubr.msk.f32.mxu0 %vm36438_vm1, %v40150_v22 }
 0x162   :  { %31686 = vmatprep.mubr.msk.f32.mxu1 %vm36438_vm1, %v40150_v22 }
 0x163   :  { %34717 = vmatpush3.bf16.msra.mxu1 %v36574_v47 }
 0x164   :  { %34681 = vmatpush3.bf16.msra.mxu0 %v36574_v47  ;;  %34718 = vmatprep.subr.bf16.mxu1 %v40148_v14 }
 0x165   :  { %34682 = vmatprep.subr.bf16.mxu0 %v40148_v14 }
 0x166   :  { %31687 = vmatmul.mubr.f32.vlgmr.msra.gmra.mrb[0].mxu1 %v36586_v2 }
 0x167   :  { %31621 = vmatmul.mubr.f32.vlgmr.msra.gmra.mrb[0].mxu0 %v36588_v3  ;;  %34720 = vmatpush3.bf16.msra.mxu1 %v36560_v24 }
 0x168   :  { %34684 = vmatpush3.bf16.msra.mxu0 %v36560_v24  ;;  %34721 = vmatprep.subr.bf16.mxu1 %v40148_v14 }
 0x169   :  { %34685 = vmatprep.subr.bf16.mxu0 %v40148_v14  ;;  %31631 = vmatprep.mubr.msk.f32.mxu0 %vm36438_vm1, %v40150_v22 }
 0x16a   :  { %31697 = vmatprep.mubr.msk.f32.mxu1 %vm36438_vm1, %v40150_v22 }
 0x16b   :  { %34723 = vmatpush3.bf16.msra.mxu1 %v36564_v25 }
 0x16c   :  { %34687 = vmatpush3.bf16.msra.mxu0 %v36564_v25  ;;  %31730 = vmatprep.subr.mxu1 %v40150_v22 }
 0x16d   :  { %31700 = vmatprep.subr.mxu0 %v40150_v22 }
 0x16e   :  { %31698 = vmatmul.mubr.f32.vlgmr.msra.gmra.mrb[0].mxu1 %v36586_v2 }
 0x16f   :  { %31632 = vmatmul.mubr.f32.vlgmr.msra.gmra.mrb[0].mxu0 %v36588_v3  ;;  %31732 = vmatprep.mubr.msk.f32.mxu1 %vm36438_vm1, %v40150_v22 }
 0x170   :  { %31702 = vmatprep.mubr.msk.f32.mxu0 %vm36438_vm1, %v40150_v22 }
 0x241   :  { %v1077_v13 = vpop.f32.mrb[0].mxu1 }
 0x242   :  { %v589_v15 = vpop.f32.mrb[0].mxu0  ;;  %v36657_v16 = vadd.f32 %v30163_v12, %v1077_v13  ;;  %v31699_v17 = vpop.f32.mrb[1].mxu1 }
 0x243   :  { %v36659_v18 = vadd.f32 %v30163_v12, %v589_v15  ;;  %v31633_v19 = vpop.f32.mrb[1].mxu0 }
 0x244   :  { %1539 = vrot.lane.b32.xlu1 %v36657_v16, %s36440_s26  ;;  %v36666_v20 = vmul.f32 0.35355338, %v36657_v16 }
 0x245   :  { %1084 = vrot.lane.b32.xlu0 %v36659_v18, %s36440_s26  ;;  %v36669_v21 = vmul.f32 0.35355338, %v36659_v18 }
 0x246   :  { %v1542_v23 = vsel %vm1086_vm3, %v36666_v20, 0 }
 0x247   :  { %v1088_v24 = vsel %vm1086_vm3, %v36669_v21, 0  ;;  %v36675_v25 = vand.u32 4294901760, %v1542_v23 }
 0x248   :  { %v36677_v26 = vand.u32 4294901760, %v1088_v24 }
 0x249   :  { %v1613_v27 = vsub.f32 %v1542_v23, %v36675_v25 }
 0x24a   :  { %v1159_v28 = vsub.f32 %v1088_v24, %v36677_v26 }
 0x24b   :  { %v1614_v29 = vand.u32 4294901760, %v1613_v27 }
 0x24c   :  { %v1160_v30 = vand.u32 4294901760, %v1159_v28 }
 0x24d   :  { %v1615_v34 = vsub.f32 %v1613_v27, %v1614_v29 }
 0x24e   :  { %v1161_v37 = vsub.f32 %v1159_v28, %v1160_v30 }
 0x24f   :  { %v1616_v41 = vand.u32 4294901760, %v1615_v34 }
 0x250   :  { %v1162_v43 = vand.u32 4294901760, %v1161_v37 }
 0x2b6   :  { %v1540_v31 = vpop.permute.xlu1 %1539 }
 0x2b7   :  { %v1544_v32 = vsel %vm1086_vm3, %v1540_v31, 0  ;;  %v1085_v33 = vpop.permute.xlu0 %1084 }
 0x2b8   :  { %v1547_v35 = vand.u32 4294901760, %v1544_v32  ;;  %v1090_v36 = vsel %vm1086_vm3, %v1085_v33, 0 }
 0x2b9   :  { %v1093_v38 = vand.u32 4294901760, %v1090_v36 }
 0x2ba   :  { %v1624_v39 = vsub.f32 %v1544_v32, %v1547_v35  ;;  %31731 = vmatpush3.xpose.msra.mxu1 %v1547_v35 }
 0x2bb   :  { %v1170_v40 = vsub.f32 %v1090_v36, %v1093_v38  ;;  %31701 = vmatpush3.xpose.msra.mxu0 %v1093_v38  ;;  %31735 = vmatprep.subr.mxu1 %v40150_v22 }
 0x2bc   :  { %v1625_v42 = vand.u32 4294901760, %v1624_v39  ;;  %31705 = vmatprep.subr.mxu0 %v40150_v22 }
 0x2bd   :  { %v1171_v44 = vand.u32 4294901760, %v1170_v40  ;;  %31733 = vmatmul.mubr.f32.vlgmr.msra.gmra.mrb[2].mxu1 %v1616_v41 }
 0x2be   :  { %v1626_v45 = vsub.f32 %v1624_v39, %v1625_v42  ;;  %31703 = vmatmul.mubr.f32.vlgmr.msra.gmra.mrb[2].mxu0 %v1162_v43  ;;  %31737 = vmatprep.mubr.msk.f32.mxu1 %vm36438_vm1, %v40150_v22 }
 0x2bf   :  { %v1172_v46 = vsub.f32 %v1170_v40, %v1171_v44  ;;  %31707 = vmatprep.mubr.msk.f32.mxu0 %vm36438_vm1, %v40150_v22 }
 0x2c0   :  { %v1627_v47 = vand.u32 4294901760, %v1626_v45 }
 0x2c1   :  { %v1173_v48 = vand.u32 4294901760, %v1172_v46 }
 0x2c2   :  { %31736 = vmatpush3.xpose.msra.mxu1 %v1627_v47 }
 0x2c3   :  { %31706 = vmatpush3.xpose.msra.mxu0 %v1173_v48  ;;  %31740 = vmatprep.subr.mxu1 %v40150_v22 }
 0x2c4   :  { %31710 = vmatprep.subr.mxu0 %v40150_v22 }
 0x2c5   :  { %31738 = vmatmul.mubr.f32.vlgmr.msra.gmra.mrb[2].mxu1 %v36675_v25 }
 0x2c6   :  { %31708 = vmatmul.mubr.f32.vlgmr.msra.gmra.mrb[2].mxu0 %v36677_v26  ;;  %31741 = vmatpush3.xpose.msra.mxu1 %v1624_v39 }
 0x2c7   :  { %31711 = vmatpush3.xpose.msra.mxu0 %v1170_v40  ;;  %31712 = vmatprep.mubr.msk.f32.mxu0 %vm36438_vm1, %v40150_v22 }
 0x2c8   :  { %31715 = vmatprep.subr.mxu0 %v40150_v22  ;;  %31742 = vmatprep.mubr.msk.f32.mxu1 %vm36438_vm1, %v40150_v22 }
 0x2c9   :  { %31745 = vmatprep.subr.mxu1 %v40150_v22 }
 0x2cd   :  { %31743 = vmatmul.mubr.f32.vlgmr.msra.gmra.mrb[2].mxu1 %v1613_v27 }
 0x2ce   :  { %31713 = vmatmul.mubr.f32.vlgmr.msra.gmra.mrb[2].mxu0 %v1159_v28  ;;  %31746 = vmatpush3.xpose.msra.mxu1 %v1547_v35 }
 0x2cf   :  { %31716 = vmatpush3.xpose.msra.mxu0 %v1093_v38  ;;  %31717 = vmatprep.mubr.msk.f32.mxu0 %vm36438_vm1, %v40150_v22 }
 0x2d0   :  { %31720 = vmatprep.subr.mxu0 %v40150_v22  ;;  %31747 = vmatprep.mubr.msk.f32.mxu1 %vm36438_vm1, %v40150_v22 }
 0x2d1   :  { %31750 = vmatprep.subr.mxu1 %v40150_v22 }
 0x2d5   :  { %31748 = vmatmul.mubr.f32.vlgmr.msra.gmra.mrb[2].mxu1 %v1614_v29 }
 0x2d6   :  { %31718 = vmatmul.mubr.f32.vlgmr.msra.gmra.mrb[2].mxu0 %v1160_v30  ;;  %31751 = vmatpush3.xpose.msra.mxu1 %v1625_v42 }
 0x2d7   :  { %31721 = vmatpush3.xpose.msra.mxu0 %v1171_v44  ;;  %31722 = vmatprep.mubr.msk.f32.mxu0 %vm36438_vm1, %v40150_v22 }
 0x2d8   :  { %31725 = vmatprep.subr.mxu0 %v40150_v22  ;;  %31752 = vmatprep.mubr.msk.f32.mxu1 %vm36438_vm1, %v40150_v22 }
 0x2d9   :  { %31755 = vmatprep.subr.mxu1 %v40150_v22 }
 0x2dd   :  { %31753 = vmatmul.mubr.f32.vlgmr.msra.gmra.mrb[2].mxu1 %v36675_v25 }
 0x2de   :  { %31723 = vmatmul.mubr.f32.vlgmr.msra.gmra.mrb[2].mxu0 %v36677_v26  ;;  %31756 = vmatpush3.xpose.msra.mxu1 %v1547_v35 }
 0x2df   :  { %31726 = vmatpush3.xpose.msra.mxu0 %v1093_v38  ;;  %31727 = vmatprep.mubr.msk.f32.mxu0 %vm36438_vm1, %v40150_v22 }
 0x2e0   :  { %31757 = vmatprep.mubr.msk.f32.mxu1 %vm36438_vm1, %v40150_v22  ;;  %31760 = vmatprep.subr.mxu0 %v40150_v22 }
 0x2e1   :  { %31790 = vmatprep.subr.mxu1 %v40150_v22 }
 0x2e5   :  { %31758 = vmatmul.mubr.f32.vlgmr.msra.gmra.mrb[2].mxu1 %v36675_v25 }
 0x2e6   :  { %31728 = vmatmul.mubr.f32.vlgmr.msra.gmra.mrb[2].mxu0 %v36677_v26  ;;  %31792 = vmatprep.mubr.msk.f32.mxu1 %vm36438_vm1, %v40150_v22 }
 0x2e7   :  { %31762 = vmatprep.mubr.msk.f32.mxu0 %vm36438_vm1, %v40150_v22 }
 0x3b8   :  { %v1988_v49 = vpop.f32.mrb[2].mxu1 }
 0x3b9   :  { %v1534_v50 = vpop.f32.mrb[2].mxu0  ;;  %v31759_v51 = vpop.f32.mrb[3].mxu1  ;;  %v1996_v62 = vsel %vm1992_vm4, %v1988_v49, -inf }
 0x3ba   :  { %v31729_v52 = vpop.f32.mrb[3].mxu0  ;;  %v1993_v53 = vsel %vm1992_vm4, %v1534_v50, -inf }
 0x3bb   :  { %1994 = vmax.xlane.f32.xlu1 %v1993_v53 }
 0x3cc   :  { %2015 = vrot.lane.b32.xlu1 %v36659_v18, %s36441_s27 }
 0x3d0   :  { %2925 = vrot.lane.b32.xlu1 %v36659_v18, %s36442_s28 }
 0x448   :  { %v1995_v54 = vpop.xlane.xlu1 %1994 }
 0x449   :  { %v1999_v55 = vsub.f32 %v1534_v50, %v1995_v54 }
 0x44b   :  { %v2001_v56 = vmul.f32 1.442695, %v1999_v55 }
 0x44c   :  { %v2016_v57 = vpop.permute.xlu1 %2015 }
 0x44d   :  { %36303 = vpow2.f32 %v2001_v56  ;;  %v2022_v58 = vsel %vm2021_vm5, %v2016_v57, 0 }
 0x44e   :  { %v36731_v59 = vand.u32 4294901760, %v2022_v58 }
 0x450   :  { %31761 = vmatpush3.msra.mxu0 %v36731_v59  ;;  %v2102_v5 = vsub.f32 %v2022_v58, %v36731_v59  ;;  %v2926_v27 = vpop.permute.xlu1 %2925 }
 0x451   :  { %31765 = vmatprep.subr.mxu0 %v40150_v22  ;;  %v2929_v29 = vsel %vm1086_vm3, %v2926_v27, 0 }
 0x452   :  { %v2103_v12 = vand.u32 4294901760, %v2102_v5  ;;  %v2932_v31 = vand.u32 4294901760, %v2929_v29 }
 0x454   :  { %v2104_v19 = vsub.f32 %v2102_v5, %v2103_v12  ;;  %v3009_v33 = vsub.f32 %v2929_v29, %v2932_v31 }
 0x456   :  { %v2105_v26 = vand.u32 4294901760, %v2104_v19  ;;  %v3010_v35 = vand.u32 4294901760, %v3009_v33 }
 0x457   :  { %v36304_v60 = vpop.eup %36303 }
 0x458   :  { %v2005_v61 = vsel %vm1992_vm4, %v36304_v60, 0.0  ;;  %v3011_v37 = vsub.f32 %v3009_v33, %v3010_v35 }
 0x459   :  { %2006 = vadd.xlane.f32.xlu0 %v2005_v61 }
 0x45a   :  { %v3012_v39 = vand.u32 4294901760, %v3011_v37 }
 0x45d   :  { %1997 = vmax.xlane.f32.xlu0 %v1996_v62 }
 0x473   :  { %2923 = vrot.lane.b32.xlu0 %v36669_v21, %s36443_s29 }
 0x477   :  { %2470 = vrot.lane.b32.xlu0 %v36657_v16, %s36441_s27 }
 0x47b   :  { %3377 = vrot.lane.b32.xlu0 %v36666_v20, %s36443_s29 }
 0x47f   :  { %3379 = vrot.lane.b32.xlu0 %v36657_v16, %s36442_s28 }
 0x4e6   :  { %v2007_v63 = vpop.xlane.xlu0 %2006 }
 0x4e7   :  { %36305 = vrcp.f32 %v2007_v63 }
 0x4ea   :  { %v1998_v0 = vpop.xlane.xlu0 %1997 }
 0x4eb   :  { %v2000_v1 = vsub.f32 %v1988_v49, %v1998_v0 }
 0x4ed   :  { %v2003_v2 = vmul.f32 1.442695, %v2000_v1 }
 0x4ee   :  { %v2924_v3 = vpop.permute.xlu0 %2923 }
 0x4ef   :  { %36307 = vpow2.f32 %v2003_v2  ;;  %v2927_v28 = vsel %vm1086_vm3, %v2924_v3, 0 }
 0x4f0   :  { %v2997_v30 = vand.u32 4294901760, %v2927_v28 }
 0x4f1   :  { %v36306_v4 = vpop.eup %36305 }
 0x4f2   :  { %v36746_v6 = vmul.f32 %v36306_v4, %v36304_v60  ;;  %v2471_v7 = vpop.permute.xlu0 %2470  ;;  %v2998_v32 = vsub.f32 %v2927_v28, %v2997_v30 }
 0x4f3   :  { %v36749_v8 = vsel %vm2021_vm5, %v2471_v7, 0 }
 0x4f4   :  { %v36752_v9 = vand.u32 4294901760, %v36749_v8  ;;  %v2019_v10 = vsel %vm2017_vm6, %v36746_v6, 0  ;;  %v2999_v34 = vand.u32 4294901760, %v2998_v32 }
 0x4f5   :  { %v2090_v11 = vand.u32 4294901760, %v2019_v10 }
 0x4f6   :  { %31791 = vmatpush3.msra.mxu1 %v36752_v9  ;;  %v3000_v36 = vsub.f32 %v2998_v32, %v2999_v34  ;;  %v2555_v42 = vsub.f32 %v36749_v8, %v36752_v9  ;;  %v3378_v53 = vpop.permute.xlu0 %3377 }
 0x4f7   :  { %v2091_v13 = vsub.f32 %v2019_v10, %v2090_v11  ;;  %31795 = vmatprep.subr.mxu1 %v40150_v22  ;;  %v3381_v55 = vsel %vm1086_vm3, %v3378_v53, 0 }
 0x4f8   :  { %v3001_v38 = vand.u32 4294901760, %v3000_v36  ;;  %v2556_v46 = vand.u32 4294901760, %v2555_v42  ;;  %v3451_v57 = vand.u32 4294901760, %v3381_v55 }
 0x4f9   :  { %v36758_v15 = vpop.eup %36307  ;;  %v2092_v17 = vand.u32 4294901760, %v2091_v13 }
 0x4fa   :  { %v2008_v23 = vsel %vm1992_vm4, %v36758_v15, 0.0  ;;  %v2557_v49 = vsub.f32 %v2555_v42, %v2556_v46  ;;  %v3380_v54 = vpop.permute.xlu0 %3379 }
 0x4fb   :  { %2009 = vadd.xlane.f32.xlu1 %v2008_v23  ;;  %v2093_v24 = vsub.f32 %v2091_v13, %v2092_v17  ;;  %v3383_v56 = vsel %vm1086_vm3, %v3380_v54, 0 }
 0x4fc   :  { %v2558_v52 = vand.u32 4294901760, %v2557_v49  ;;  %v3386_v58 = vand.u32 4294901760, %v3383_v56 }
 0x4fd   :  { %v2094_v25 = vand.u32 4294901760, %v2093_v24 }
 0x4fe   :  { %v3463_v60 = vsub.f32 %v3383_v56, %v3386_v58 }
 0x4ff   :  { %31763 = vmatmul.mubr.f32.vlgmr.msra.gmra.mrb[4].mxu0 %v2094_v25 }
 0x500   :  { %31766 = vmatpush3.msra.mxu0 %v2105_v26  ;;  %31767 = vmatprep.mubr.msk.f32.mxu0 %vm36438_vm1, %v40150_v22  ;;  %v3464_v62 = vand.u32 4294901760, %v3463_v60 }
 0x501   :  { %31770 = vmatprep.subr.mxu0 %v40150_v22 }
 0x502   :  { %v3465_v0 = vsub.f32 %v3463_v60, %v3464_v62 }
 0x504   :  { %v3466_v2 = vand.u32 4294901760, %v3465_v0 }
 0x507   :  { %31768 = vmatmul.mubr.f32.vlgmr.msra.gmra.mrb[4].mxu0 %v2090_v11 }
 0x508   :  { %31771 = vmatpush3.msra.mxu0 %v2102_v5  ;;  %31772 = vmatprep.mubr.msk.f32.mxu0 %vm36438_vm1, %v40150_v22 }
 0x509   :  { %31775 = vmatprep.subr.mxu0 %v40150_v22 }
 0x50f   :  { %31773 = vmatmul.mubr.f32.vlgmr.msra.gmra.mrb[4].mxu0 %v2091_v13 }
 0x510   :  { %31776 = vmatpush3.msra.mxu0 %v36731_v59  ;;  %31777 = vmatprep.mubr.msk.f32.mxu0 %vm36438_vm1, %v40150_v22 }
 0x511   :  { %31780 = vmatprep.subr.mxu0 %v40150_v22 }
 0x517   :  { %31778 = vmatmul.mubr.f32.vlgmr.msra.gmra.mrb[4].mxu0 %v2092_v17 }
 0x518   :  { %31781 = vmatpush3.msra.mxu0 %v2103_v12  ;;  %31782 = vmatprep.mubr.msk.f32.mxu0 %vm36438_vm1, %v40150_v22 }
 0x519   :  { %31785 = vmatprep.subr.mxu0 %v40150_v22 }
 0x51f   :  { %31783 = vmatmul.mubr.f32.vlgmr.msra.gmra.mrb[4].mxu0 %v2090_v11 }
 0x520   :  { %31786 = vmatpush3.msra.mxu0 %v36731_v59  ;;  %31787 = vmatprep.mubr.msk.f32.mxu0 %vm36438_vm1, %v40150_v22  ;;  %v3452_v59 = vsub.f32 %v3381_v55, %v3451_v57 }
 0x521   :  { %31820 = vmatprep.subr.mxu0 %v40150_v22 }
 0x522   :  { %v3453_v61 = vand.u32 4294901760, %v3452_v59 }
 0x524   :  { %v3454_v63 = vsub.f32 %v3452_v59, %v3453_v61 }
 0x526   :  { %v3455_v1 = vand.u32 4294901760, %v3454_v63 }
 0x527   :  { %31788 = vmatmul.mubr.f32.vlgmr.msra.gmra.mrb[4].mxu0 %v2090_v11 }
 0x528   :  { %31821 = vmatpush3.xpose.msra.mxu0 %v2932_v31  ;;  %31822 = vmatprep.mubr.msk.f32.mxu0 %vm36438_vm1, %v40150_v22 }
 0x529   :  { %31825 = vmatprep.subr.mxu0 %v40150_v22 }
 0x52b   :  { %31823 = vmatmul.mubr.f32.vlgmr.msra.gmra.mrb[6].mxu0 %v3001_v38 }
 0x52c   :  { %31826 = vmatpush3.xpose.msra.mxu0 %v3012_v39  ;;  %31827 = vmatprep.mubr.msk.f32.mxu0 %vm36438_vm1, %v40150_v22 }
 0x52d   :  { %31830 = vmatprep.subr.mxu0 %v40150_v22 }
 0x533   :  { %31828 = vmatmul.mubr.f32.vlgmr.msra.gmra.mrb[6].mxu0 %v2997_v30 }
 0x534   :  { %31831 = vmatpush3.xpose.msra.mxu0 %v3009_v33  ;;  %31832 = vmatprep.mubr.msk.f32.mxu0 %vm36438_vm1, %v40150_v22 }
 0x535   :  { %31835 = vmatprep.subr.mxu0 %v40150_v22 }
 0x53b   :  { %31833 = vmatmul.mubr.f32.vlgmr.msra.gmra.mrb[6].mxu0 %v2998_v32 }
 0x53c   :  { %31836 = vmatpush3.xpose.msra.mxu0 %v2932_v31  ;;  %31837 = vmatprep.mubr.msk.f32.mxu0 %vm36438_vm1, %v40150_v22 }
 0x53d   :  { %31840 = vmatprep.subr.mxu0 %v40150_v22 }
 0x543   :  { %31838 = vmatmul.mubr.f32.vlgmr.msra.gmra.mrb[6].mxu0 %v2999_v34 }
 0x544   :  { %31841 = vmatpush3.xpose.msra.mxu0 %v3010_v35  ;;  %31842 = vmatprep.mubr.msk.f32.mxu0 %vm36438_vm1, %v40150_v22 }
 0x545   :  { %31845 = vmatprep.subr.mxu0 %v40150_v22 }
 0x54b   :  { %31843 = vmatmul.mubr.f32.vlgmr.msra.gmra.mrb[6].mxu0 %v2997_v30 }
 0x54c   :  { %31846 = vmatpush3.xpose.msra.mxu0 %v2932_v31  ;;  %31847 = vmatprep.mubr.msk.f32.mxu0 %vm36438_vm1, %v40150_v22 }
 0x54d   :  { %31880 = vmatprep.subr.mxu0 %v40150_v22 }
 0x553   :  { %31848 = vmatmul.mubr.f32.vlgmr.msra.gmra.mrb[6].mxu0 %v2997_v30 }
 0x554   :  { %31882 = vmatprep.mubr.msk.f32.mxu0 %vm36438_vm1, %v40150_v22 }
 0x588   :  { %v2010_v40 = vpop.xlane.xlu1 %2009 }
 0x589   :  { %36309 = vrcp.f32 %v2010_v40 }
 0x593   :  { %v36310_v41 = vpop.eup %36309 }
 0x594   :  { %v36804_v43 = vmul.f32 %v36310_v41, %v36758_v15 }
 0x596   :  { %v2473_v44 = vsel %vm2017_vm6, %v36804_v43, 0 }
 0x597   :  { %v2543_v45 = vand.u32 4294901760, %v2473_v44 }
 0x599   :  { %v2544_v47 = vsub.f32 %v2473_v44, %v2543_v45 }
 0x59b   :  { %v2545_v48 = vand.u32 4294901760, %v2544_v47 }
 0x59d   :  { %v2546_v50 = vsub.f32 %v2544_v47, %v2545_v48 }
 0x59f   :  { %v2547_v51 = vand.u32 4294901760, %v2546_v50 }
 0x5a1   :  { %31793 = vmatmul.mubr.f32.vlgmr.msra.gmra.mrb[4].mxu1 %v2547_v51 }
 0x5a2   :  { %31796 = vmatpush3.msra.mxu1 %v2558_v52  ;;  %31797 = vmatprep.mubr.msk.f32.mxu1 %vm36438_vm1, %v40150_v22 }
 0x5a3   :  { %31800 = vmatprep.subr.mxu1 %v40150_v22 }
 0x5a9   :  { %31798 = vmatmul.mubr.f32.vlgmr.msra.gmra.mrb[4].mxu1 %v2543_v45 }
 0x5aa   :  { %31801 = vmatpush3.msra.mxu1 %v2555_v42  ;;  %31802 = vmatprep.mubr.msk.f32.mxu1 %vm36438_vm1, %v40150_v22 }
 0x5ab   :  { %31805 = vmatprep.subr.mxu1 %v40150_v22 }
 0x5b1   :  { %31803 = vmatmul.mubr.f32.vlgmr.msra.gmra.mrb[4].mxu1 %v2544_v47 }
 0x5b2   :  { %31806 = vmatpush3.msra.mxu1 %v36752_v9  ;;  %31807 = vmatprep.mubr.msk.f32.mxu1 %vm36438_vm1, %v40150_v22 }
 0x5b3   :  { %31810 = vmatprep.subr.mxu1 %v40150_v22 }
 0x5b9   :  { %31808 = vmatmul.mubr.f32.vlgmr.msra.gmra.mrb[4].mxu1 %v2545_v48 }
 0x5ba   :  { %31811 = vmatpush3.msra.mxu1 %v2556_v46  ;;  %31812 = vmatprep.mubr.msk.f32.mxu1 %vm36438_vm1, %v40150_v22 }
 0x5bb   :  { %31815 = vmatprep.subr.mxu1 %v40150_v22 }
 0x5c1   :  { %31813 = vmatmul.mubr.f32.vlgmr.msra.gmra.mrb[4].mxu1 %v2543_v45 }
 0x5c2   :  { %31816 = vmatpush3.msra.mxu1 %v36752_v9  ;;  %31817 = vmatprep.mubr.msk.f32.mxu1 %vm36438_vm1, %v40150_v22 }
 0x5c3   :  { %31850 = vmatprep.subr.mxu1 %v40150_v22 }
 0x5c9   :  { %31818 = vmatmul.mubr.f32.vlgmr.msra.gmra.mrb[4].mxu1 %v2543_v45 }
 0x5ca   :  { %31851 = vmatpush3.xpose.msra.mxu1 %v3386_v58  ;;  %31852 = vmatprep.mubr.msk.f32.mxu1 %vm36438_vm1, %v40150_v22 }
 0x5cb   :  { %31855 = vmatprep.subr.mxu1 %v40150_v22 }
 0x5cd   :  { %31853 = vmatmul.mubr.f32.vlgmr.msra.gmra.mrb[6].mxu1 %v3455_v1 }
 0x5ce   :  { %31856 = vmatpush3.xpose.msra.mxu1 %v3466_v2  ;;  %31857 = vmatprep.mubr.msk.f32.mxu1 %vm36438_vm1, %v40150_v22 }
 0x5cf   :  { %31860 = vmatprep.subr.mxu1 %v40150_v22 }
 0x5d5   :  { %31858 = vmatmul.mubr.f32.vlgmr.msra.gmra.mrb[6].mxu1 %v3451_v57 }
 0x5d6   :  { %31861 = vmatpush3.xpose.msra.mxu1 %v3463_v60  ;;  %31862 = vmatprep.mubr.msk.f32.mxu1 %vm36438_vm1, %v40150_v22 }
 0x5d7   :  { %31865 = vmatprep.subr.mxu1 %v40150_v22 }
 0x5dd   :  { %31863 = vmatmul.mubr.f32.vlgmr.msra.gmra.mrb[6].mxu1 %v3452_v59 }
 0x5de   :  { %31866 = vmatpush3.xpose.msra.mxu1 %v3386_v58  ;;  %31867 = vmatprep.mubr.msk.f32.mxu1 %vm36438_vm1, %v40150_v22 }
 0x5df   :  { %31870 = vmatprep.subr.mxu1 %v40150_v22 }
 0x5e5   :  { %31868 = vmatmul.mubr.f32.vlgmr.msra.gmra.mrb[6].mxu1 %v3453_v61 }
 0x5e6   :  { %31871 = vmatpush3.xpose.msra.mxu1 %v3464_v62  ;;  %31872 = vmatprep.mubr.msk.f32.mxu1 %vm36438_vm1, %v40150_v22 }
 0x5e7   :  { %31875 = vmatprep.subr.mxu1 %v40150_v22 }
 0x5ed   :  { %31873 = vmatmul.mubr.f32.vlgmr.msra.gmra.mrb[6].mxu1 %v3451_v57 }
 0x5ee   :  { %31876 = vmatpush3.xpose.msra.mxu1 %v3386_v58  ;;  %31877 = vmatprep.mubr.msk.f32.mxu1 %vm36438_vm1, %v40150_v22 }
 0x5ef   :  { %31910 = vmatprep.subr.mxu1 %v40150_v22 }
 0x5f5   :  { %31878 = vmatmul.mubr.f32.vlgmr.msra.gmra.mrb[6].mxu1 %v3451_v57 }
 0x5f6   :  { %31912 = vmatprep.mubr.msk.f32.mxu1 %vm36438_vm1, %v40150_v22 }
 0x5fa   :  { %v36847_v3 = vpop.f32.mrb[4].mxu0 }
 0x5fb   :  { %v31789_v4 = vpop.f32.mrb[5].mxu0 }
 0x626   :  { %v3373_v5 = vpop.f32.mrb[6].mxu0 }
 0x627   :  { %v31849_v7 = vpop.f32.mrb[7].mxu0  ;;  %v3831_v8 = vsel %vm1992_vm4, %v3373_v5, -inf }
 0x628   :  { %3832 = vmax.xlane.f32.xlu0 %v3831_v8 }
 0x63e   :  { %4761 = vrot.lane.b32.xlu0 %v36669_v21, %s36444_s30 }
 0x642   :  { %4306 = vrot.lane.b32.xlu0 %v36657_v16, %s36445_s14 }
 0x646   :  { %5215 = vrot.lane.b32.xlu0 %v36666_v20, %s36444_s30 }
 0x64a   :  { %5217 = vrot.lane.b32.xlu0 %v36657_v16, %s36446_s15 }
 0x69c   :  { %v36858_v9 = vpop.f32.mrb[4].mxu1 }
 0x69d   :  { %v31819_v10 = vpop.f32.mrb[5].mxu1 }
 0x6b5   :  { %v3833_v11 = vpop.xlane.xlu0 %3832 }
 0x6b6   :  { %v3837_v12 = vsub.f32 %v3373_v5, %v3833_v11 }
 0x6b8   :  { %v3839_v15 = vmul.f32 1.442695, %v3837_v12 }
 0x6b9   :  { %v4762_v13 = vpop.permute.xlu0 %4761 }
 0x6ba   :  { %36311 = vpow2.f32 %v3839_v15  ;;  %v4765_v52 = vsel %vm1086_vm3, %v4762_v13, 0 }
 0x6bb   :  { %v4835_v54 = vand.u32 4294901760, %v4765_v52 }
 0x6bd   :  { %v4307_v17 = vpop.permute.xlu0 %4306  ;;  %v4836_v56 = vsub.f32 %v4765_v52, %v4835_v54 }
 0x6be   :  { %v36861_v19 = vsel %vm2021_vm5, %v4307_v17, 0 }
 0x6bf   :  { %v36864_v23 = vand.u32 4294901760, %v36861_v19  ;;  %v4837_v58 = vand.u32 4294901760, %v4836_v56 }
 0x6c1   :  { %31911 = vmatpush3.msra.mxu1 %v36864_v23  ;;  %v4838_v60 = vsub.f32 %v4836_v56, %v4837_v58  ;;  %v4391_v2 = vsub.f32 %v36861_v19, %v36864_v23  ;;  %v5216_v19 = vpop.permute.xlu0 %5215 }
 0x6c2   :  { %31915 = vmatprep.subr.mxu1 %v40150_v22 }
 0x6c3   :  { %v4839_v62 = vand.u32 4294901760, %v4838_v60  ;;  %v4392_v8 = vand.u32 4294901760, %v4391_v2 }
 0x6c4   :  { %v36312_v27 = vpop.eup %36311 }
 0x6c5   :  { %v3843_v28 = vsel %vm1992_vm4, %v36312_v27, 0.0  ;;  %v4393_v12 = vsub.f32 %v4391_v2, %v4392_v8 }
 0x6c7   :  { %v4394_v17 = vand.u32 4294901760, %v4393_v12 }
 0x6c8   :  { %v3827_v24 = vpop.f32.mrb[6].mxu1 }
 0x6c9   :  { %v31879_v25 = vpop.f32.mrb[7].mxu1  ;;  %v3834_v26 = vsel %vm1992_vm4, %v3827_v24, -inf }
 0x6ca   :  { %3835 = vmax.xlane.f32.xlu1 %v3834_v26  ;;  %v5219_v25 = vsel %vm1086_vm3, %v5216_v19, 0 }
 0x6ce   :  { %3844 = vadd.xlane.f32.xlu1 %v3843_v28 }
 0x6df   :  { %3853 = vrot.lane.b32.xlu1 %v36659_v18, %s36445_s14 }
 0x6e3   :  { %4763 = vrot.lane.b32.xlu1 %v36659_v18, %s36446_s15 }
 0x757   :  { %v3836_v29 = vpop.xlane.xlu1 %3835 }
 0x758   :  { %v3838_v30 = vsub.f32 %v3827_v24, %v3836_v29  ;;  %v5218_v24 = vpop.permute.xlu0 %5217 }
 0x759   :  { %v5221_v26 = vsel %vm1086_vm3, %v5218_v24, 0 }
 0x75a   :  { %v3841_v31 = vmul.f32 1.442695, %v3838_v30  ;;  %v5224_v28 = vand.u32 4294901760, %v5221_v26 }
 0x75b   :  { %v3845_v32 = vpop.xlane.xlu1 %3844 }
 0x75c   :  { %36313 = vpow2.f32 %v3841_v31  ;;  %v5301_v30 = vsub.f32 %v5221_v26, %v5224_v28 }
 0x75d   :  { %36315 = vrcp.f32 %v3845_v32 }
 0x75e   :  { %v5302_v32 = vand.u32 4294901760, %v5301_v30 }
 0x75f   :  { %v3854_v33 = vpop.permute.xlu1 %3853 }
 0x760   :  { %v3858_v34 = vsel %vm2021_vm5, %v3854_v33, 0 }
 0x761   :  { %v3861_v35 = vand.u32 4294901760, %v3858_v34 }
 0x763   :  { %31881 = vmatpush3.msra.mxu0 %v3861_v35  ;;  %v3938_v40 = vsub.f32 %v3858_v34, %v3861_v35  ;;  %v4764_v51 = vpop.permute.xlu1 %4763  ;;  %v5303_v34 = vsub.f32 %v5301_v30, %v5302_v32 }
 0x764   :  { %31885 = vmatprep.subr.mxu0 %v40150_v22  ;;  %v4767_v53 = vsel %vm1086_vm3, %v4764_v51, 0 }
 0x765   :  { %v3939_v44 = vand.u32 4294901760, %v3938_v40  ;;  %v4770_v55 = vand.u32 4294901760, %v4767_v53 }
 0x766   :  { %v36876_v36 = vpop.eup %36313 }
 0x767   :  { %v36316_v37 = vpop.eup %36315  ;;  %v3846_v38 = vsel %vm1992_vm4, %v36876_v36, 0.0  ;;  %v3940_v47 = vsub.f32 %v3938_v40, %v3939_v44  ;;  %v4847_v57 = vsub.f32 %v4767_v53, %v4770_v55 }
 0x768   :  { %v36880_v39 = vmul.f32 %v36316_v37, %v36312_v27  ;;  %3847 = vadd.xlane.f32.xlu1 %v3846_v38  ;;  %v5289_v27 = vand.u32 4294901760, %v5219_v25 }
 0x769   :  { %v3941_v50 = vand.u32 4294901760, %v3940_v47  ;;  %v4848_v59 = vand.u32 4294901760, %v4847_v57 }
 0x76a   :  { %v3856_v41 = vsel %vm2017_vm6, %v36880_v39, 0  ;;  %v5290_v29 = vsub.f32 %v5219_v25, %v5289_v27 }
 0x76b   :  { %v3926_v42 = vand.u32 4294901760, %v3856_v41  ;;  %v4849_v61 = vsub.f32 %v4847_v57, %v4848_v59 }
 0x76c   :  { %v5291_v31 = vand.u32 4294901760, %v5290_v29 }
 0x76d   :  { %v3927_v45 = vsub.f32 %v3856_v41, %v3926_v42  ;;  %v4850_v63 = vand.u32 4294901760, %v4849_v61 }
 0x76e   :  { %v5292_v33 = vsub.f32 %v5290_v29, %v5291_v31 }
 0x76f   :  { %v3928_v46 = vand.u32 4294901760, %v3927_v45 }
 0x771   :  { %v3929_v48 = vsub.f32 %v3927_v45, %v3928_v46 }
 0x773   :  { %v3930_v49 = vand.u32 4294901760, %v3929_v48 }
 0x775   :  { %31883 = vmatmul.mubr.f32.vlgmr.msra.gmra.mrb[8].mxu0 %v3930_v49 }
 0x776   :  { %31886 = vmatpush3.msra.mxu0 %v3941_v50  ;;  %31887 = vmatprep.mubr.msk.f32.mxu0 %vm36438_vm1, %v40150_v22 }
 0x777   :  { %31890 = vmatprep.subr.mxu0 %v40150_v22 }
 0x77d   :  { %31888 = vmatmul.mubr.f32.vlgmr.msra.gmra.mrb[8].mxu0 %v3926_v42 }
 0x77e   :  { %31891 = vmatpush3.msra.mxu0 %v3938_v40  ;;  %31892 = vmatprep.mubr.msk.f32.mxu0 %vm36438_vm1, %v40150_v22 }
 0x77f   :  { %31895 = vmatprep.subr.mxu0 %v40150_v22 }
 0x785   :  { %31893 = vmatmul.mubr.f32.vlgmr.msra.gmra.mrb[8].mxu0 %v3927_v45 }
 0x786   :  { %31896 = vmatpush3.msra.mxu0 %v3861_v35  ;;  %31897 = vmatprep.mubr.msk.f32.mxu0 %vm36438_vm1, %v40150_v22 }
 0x787   :  { %31900 = vmatprep.subr.mxu0 %v40150_v22 }
 0x78d   :  { %31898 = vmatmul.mubr.f32.vlgmr.msra.gmra.mrb[8].mxu0 %v3928_v46 }
 0x78e   :  { %31901 = vmatpush3.msra.mxu0 %v3939_v44  ;;  %31902 = vmatprep.mubr.msk.f32.mxu0 %vm36438_vm1, %v40150_v22 }
 0x78f   :  { %31905 = vmatprep.subr.mxu0 %v40150_v22 }
 0x795   :  { %31903 = vmatmul.mubr.f32.vlgmr.msra.gmra.mrb[8].mxu0 %v3926_v42 }
 0x796   :  { %31906 = vmatpush3.msra.mxu0 %v3861_v35  ;;  %31907 = vmatprep.mubr.msk.f32.mxu0 %vm36438_vm1, %v40150_v22  ;;  %v5293_v35 = vand.u32 4294901760, %v5292_v33 }
 0x797   :  { %31940 = vmatprep.subr.mxu0 %v40150_v22 }
 0x79d   :  { %31908 = vmatmul.mubr.f32.vlgmr.msra.gmra.mrb[8].mxu0 %v3926_v42 }
 0x79e   :  { %31941 = vmatpush3.xpose.msra.mxu0 %v4770_v55  ;;  %31942 = vmatprep.mubr.msk.f32.mxu0 %vm36438_vm1, %v40150_v22 }
 0x79f   :  { %31945 = vmatprep.subr.mxu0 %v40150_v22 }
 0x7a1   :  { %31943 = vmatmul.mubr.f32.vlgmr.msra.gmra.mrb[10].mxu0 %v4839_v62 }
 0x7a2   :  { %31946 = vmatpush3.xpose.msra.mxu0 %v4850_v63  ;;  %31947 = vmatprep.mubr.msk.f32.mxu0 %vm36438_vm1, %v40150_v22 }
 0x7a3   :  { %31950 = vmatprep.subr.mxu0 %v40150_v22 }
 0x7a9   :  { %31948 = vmatmul.mubr.f32.vlgmr.msra.gmra.mrb[10].mxu0 %v4835_v54 }
 0x7aa   :  { %31951 = vmatpush3.xpose.msra.mxu0 %v4847_v57  ;;  %31952 = vmatprep.mubr.msk.f32.mxu0 %vm36438_vm1, %v40150_v22 }
 0x7ab   :  { %31955 = vmatprep.subr.mxu0 %v40150_v22 }
 0x7b1   :  { %31953 = vmatmul.mubr.f32.vlgmr.msra.gmra.mrb[10].mxu0 %v4836_v56 }
 0x7b2   :  { %31956 = vmatpush3.xpose.msra.mxu0 %v4770_v55  ;;  %31957 = vmatprep.mubr.msk.f32.mxu0 %vm36438_vm1, %v40150_v22 }
 0x7b3   :  { %31960 = vmatprep.subr.mxu0 %v40150_v22 }
 0x7b9   :  { %31958 = vmatmul.mubr.f32.vlgmr.msra.gmra.mrb[10].mxu0 %v4837_v58 }
 0x7ba   :  { %31961 = vmatpush3.xpose.msra.mxu0 %v4848_v59  ;;  %31962 = vmatprep.mubr.msk.f32.mxu0 %vm36438_vm1, %v40150_v22 }
 0x7bb   :  { %31965 = vmatprep.subr.mxu0 %v40150_v22 }
 0x7c1   :  { %31963 = vmatmul.mubr.f32.vlgmr.msra.gmra.mrb[10].mxu0 %v4835_v54 }
 0x7c2   :  { %31966 = vmatpush3.xpose.msra.mxu0 %v4770_v55  ;;  %31967 = vmatprep.mubr.msk.f32.mxu0 %vm36438_vm1, %v40150_v22 }
 0x7c3   :  { %32000 = vmatprep.subr.mxu0 %v40150_v22 }
 0x7c9   :  { %31968 = vmatmul.mubr.f32.vlgmr.msra.gmra.mrb[10].mxu0 %v4835_v54 }
 0x7ca   :  { %32002 = vmatprep.mubr.msk.f32.mxu0 %vm36438_vm1, %v40150_v22 }
 0x7f5   :  { %v3848_v0 = vpop.xlane.xlu1 %3847 }
 0x7f6   :  { %36317 = vrcp.f32 %v3848_v0 }
 0x800   :  { %v36318_v1 = vpop.eup %36317 }
 0x801   :  { %v36924_v4 = vmul.f32 %v36318_v1, %v36876_v36  ;;  %v5304_v36 = vand.u32 4294901760, %v5303_v34 }
 0x803   :  { %v4309_v5 = vsel %vm2017_vm6, %v36924_v4, 0 }
 0x804   :  { %v4379_v7 = vand.u32 4294901760, %v4309_v5 }
 0x806   :  { %v4380_v10 = vsub.f32 %v4309_v5, %v4379_v7  ;;  %v4759_v5 = vmin.f32 %v36746_v6, %v36880_v39 }
 0x808   :  { %v4381_v11 = vand.u32 4294901760, %v4380_v10 }
 0x80a   :  { %v4382_v13 = vsub.f32 %v4380_v10, %v4381_v11 }
 0x80c   :  { %v4383_v15 = vand.u32 4294901760, %v4382_v13 }
 0x80e   :  { %31913 = vmatmul.mubr.f32.vlgmr.msra.gmra.mrb[8].mxu1 %v4383_v15 }
 0x80f   :  { %31916 = vmatpush3.msra.mxu1 %v4394_v17  ;;  %31917 = vmatprep.mubr.msk.f32.mxu1 %vm36438_vm1, %v40150_v22 }
 0x810   :  { %31920 = vmatprep.subr.mxu1 %v40150_v22 }
 0x816   :  { %31918 = vmatmul.mubr.f32.vlgmr.msra.gmra.mrb[8].mxu1 %v4379_v7 }
 0x817   :  { %31921 = vmatpush3.msra.mxu1 %v4391_v2  ;;  %31922 = vmatprep.mubr.msk.f32.mxu1 %vm36438_vm1, %v40150_v22 }
 0x818   :  { %31925 = vmatprep.subr.mxu1 %v40150_v22 }
 0x81e   :  { %31923 = vmatmul.mubr.f32.vlgmr.msra.gmra.mrb[8].mxu1 %v4380_v10 }
 0x81f   :  { %31926 = vmatpush3.msra.mxu1 %v36864_v23  ;;  %31927 = vmatprep.mubr.msk.f32.mxu1 %vm36438_vm1, %v40150_v22 }
 0x820   :  { %31930 = vmatprep.subr.mxu1 %v40150_v22 }
 0x826   :  { %31928 = vmatmul.mubr.f32.vlgmr.msra.gmra.mrb[8].mxu1 %v4381_v11 }
 0x827   :  { %31931 = vmatpush3.msra.mxu1 %v4392_v8  ;;  %31932 = vmatprep.mubr.msk.f32.mxu1 %vm36438_vm1, %v40150_v22 }
 0x828   :  { %31935 = vmatprep.subr.mxu1 %v40150_v22 }
 0x82e   :  { %31933 = vmatmul.mubr.f32.vlgmr.msra.gmra.mrb[8].mxu1 %v4379_v7 }
 0x82f   :  { %31936 = vmatpush3.msra.mxu1 %v36864_v23  ;;  %31937 = vmatprep.mubr.msk.f32.mxu1 %vm36438_vm1, %v40150_v22 }
 0x830   :  { %31970 = vmatprep.subr.mxu1 %v40150_v22 }
 0x836   :  { %31938 = vmatmul.mubr.f32.vlgmr.msra.gmra.mrb[8].mxu1 %v4379_v7 }
 0x837   :  { %31971 = vmatpush3.xpose.msra.mxu1 %v5224_v28  ;;  %31972 = vmatprep.mubr.msk.f32.mxu1 %vm36438_vm1, %v40150_v22 }
 0x838   :  { %31975 = vmatprep.subr.mxu1 %v40150_v22 }
 0x83a   :  { %31973 = vmatmul.mubr.f32.vlgmr.msra.gmra.mrb[10].mxu1 %v5293_v35 }
 0x83b   :  { %31976 = vmatpush3.xpose.msra.mxu1 %v5304_v36  ;;  %31977 = vmatprep.mubr.msk.f32.mxu1 %vm36438_vm1, %v40150_v22 }
 0x83c   :  { %31980 = vmatprep.subr.mxu1 %v40150_v22 }
 0x842   :  { %31978 = vmatmul.mubr.f32.vlgmr.msra.gmra.mrb[10].mxu1 %v5289_v27 }
 0x843   :  { %31981 = vmatpush3.xpose.msra.mxu1 %v5301_v30  ;;  %31982 = vmatprep.mubr.msk.f32.mxu1 %vm36438_vm1, %v40150_v22 }
 0x844   :  { %31985 = vmatprep.subr.mxu1 %v40150_v22 }
 0x84a   :  { %31983 = vmatmul.mubr.f32.vlgmr.msra.gmra.mrb[10].mxu1 %v5290_v29 }
 0x84b   :  { %31986 = vmatpush3.xpose.msra.mxu1 %v5224_v28  ;;  %31987 = vmatprep.mubr.msk.f32.mxu1 %vm36438_vm1, %v40150_v22 }
 0x84c   :  { %31990 = vmatprep.subr.mxu1 %v40150_v22 }
 0x852   :  { %31988 = vmatmul.mubr.f32.vlgmr.msra.gmra.mrb[10].mxu1 %v5291_v31 }
 0x853   :  { %31991 = vmatpush3.xpose.msra.mxu1 %v5302_v32  ;;  %31992 = vmatprep.mubr.msk.f32.mxu1 %vm36438_vm1, %v40150_v22 }
 0x854   :  { %31995 = vmatprep.subr.mxu1 %v40150_v22 }
 0x85a   :  { %31993 = vmatmul.mubr.f32.vlgmr.msra.gmra.mrb[10].mxu1 %v5289_v27 }
 0x85b   :  { %31996 = vmatpush3.xpose.msra.mxu1 %v5224_v28  ;;  %31997 = vmatprep.mubr.msk.f32.mxu1 %vm36438_vm1, %v40150_v22 }
 0x85c   :  { %32030 = vmatprep.subr.mxu1 %v40150_v22 }
 0x862   :  { %31998 = vmatmul.mubr.f32.vlgmr.msra.gmra.mrb[10].mxu1 %v5289_v27 }
 0x863   :  { %32032 = vmatprep.mubr.msk.f32.mxu1 %vm36438_vm1, %v40150_v22 }
 0x870   :  { %v36967_v23 = vpop.f32.mrb[8].mxu0 }
 0x871   :  { %v31909_v37 = vpop.f32.mrb[9].mxu0 }
 0x89c   :  { %v5211_v38 = vpop.f32.mrb[10].mxu0 }
 0x89d   :  { %v31969_v40 = vpop.f32.mrb[11].mxu0  ;;  %v5669_v41 = vsel %vm1992_vm4, %v5211_v38, -inf }
 0x89e   :  { %5670 = vmax.xlane.f32.xlu0 %v5669_v41  ;;  %v4760_v41 = vmin.f32 %v36804_v43, %v36924_v4 }
 0x8b4   :  { %6599 = vrot.lane.b32.xlu0 %v36669_v21, %s36447_s16 }
 0x8b8   :  { %6144 = vrot.lane.b32.xlu0 %v36657_v16, %s36448_s17 }
 0x8bc   :  { %7053 = vrot.lane.b32.xlu0 %v36666_v20, %s36447_s16 }
 0x8c0   :  { %7055 = vrot.lane.b32.xlu0 %v36657_v16, %s40115_s18 }
 0x909   :  { %v36978_v42 = vpop.f32.mrb[8].mxu1 }
 0x90a   :  { %v31939_v44 = vpop.f32.mrb[9].mxu1 }
 0x92b   :  { %v5671_v45 = vpop.xlane.xlu0 %5670 }
 0x92c   :  { %v5675_v46 = vsub.f32 %v5211_v38, %v5671_v45 }
 0x92e   :  { %v5677_v47 = vmul.f32 1.442695, %v5675_v46 }
 0x92f   :  { %v6600_v48 = vpop.permute.xlu0 %6599 }
 0x930   :  { %36319 = vpow2.f32 %v5677_v47  ;;  %v6603_v39 = vsel %vm1086_vm3, %v6600_v48, 0 }
 0x931   :  { %v6673_v26 = vand.u32 4294901760, %v6603_v39 }
 0x933   :  { %v6145_v21 = vpop.permute.xlu0 %6144  ;;  %v6674_v28 = vsub.f32 %v6603_v39, %v6673_v26 }
 0x934   :  { %v36981_v49 = vsel %vm2021_vm5, %v6145_v21, 0 }
 0x935   :  { %v36984_v50 = vand.u32 4294901760, %v36981_v49  ;;  %v5665_v20 = vpop.f32.mrb[10].mxu1  ;;  %v6675_v30 = vand.u32 4294901760, %v6674_v28 }
 0x936   :  { %v31999_v51 = vpop.f32.mrb[11].mxu1  ;;  %v5672_v52 = vsel %vm1992_vm4, %v5665_v20, -inf }
 0x937   :  { %32031 = vmatpush3.msra.mxu1 %v36984_v50  ;;  %5673 = vmax.xlane.f32.xlu1 %v5672_v52  ;;  %v6676_v32 = vsub.f32 %v6674_v28, %v6675_v30  ;;  %v6229_v38 = vsub.f32 %v36981_v49, %v36984_v50  ;;  %v7054_v43 = vpop.permute.xlu0 %7053 }
 0x938   :  { %32035 = vmatprep.subr.mxu1 %v40150_v22  ;;  %v7057_v49 = vsel %vm1086_vm3, %v7054_v43, 0 }
 0x939   :  { %v6677_v34 = vand.u32 4294901760, %v6676_v32  ;;  %v6230_v47 = vand.u32 4294901760, %v6229_v38 }
 0x93a   :  { %v36320_v53 = vpop.eup %36319 }
 0x93b   :  { %v5681_v54 = vsel %vm1992_vm4, %v36320_v53, 0.0  ;;  %v7056_v4 = vpop.permute.xlu0 %7055 }
 0x93c   :  { %5682 = vadd.xlane.f32.xlu1 %v5681_v54  ;;  %v7059_v54 = vsel %vm1086_vm3, %v7056_v4, 0 }
 0x94d   :  { %5691 = vrot.lane.b32.xlu1 %v36659_v18, %s36448_s17 }
 0x951   :  { %6601 = vrot.lane.b32.xlu1 %v36659_v18, %s40115_s18  ;;  %s40169_s18 = smov 16  }
 0x9c4   :  { %v5674_v55 = vpop.xlane.xlu1 %5673 }
 0x9c5   :  { %v5676_v56 = vsub.f32 %v5665_v20, %v5674_v55  ;;  %v6231_v20 = vsub.f32 %v6229_v38, %v6230_v47  ;;  %v7127_v55 = vand.u32 4294901760, %v7057_v49 }
 0x9c7   :  { %v5679_v57 = vmul.f32 1.442695, %v5676_v56  ;;  %v7062_v56 = vand.u32 4294901760, %v7059_v54 }
 0x9c9   :  { %36321 = vpow2.f32 %v5679_v57  ;;  %v5683_v58 = vpop.xlane.xlu1 %5682  ;;  %v7128_v57 = vsub.f32 %v7057_v49, %v7127_v55 }
 0x9ca   :  { %36323 = vrcp.f32 %v5683_v58  ;;  %v7139_v58 = vsub.f32 %v7059_v54, %v7062_v56 }
 0x9cd   :  { %v5692_v59 = vpop.permute.xlu1 %5691 }
 0x9ce   :  { %v5696_v60 = vsel %vm2021_vm5, %v5692_v59, 0  ;;  %v7129_v59 = vand.u32 4294901760, %v7128_v57 }
 0x9cf   :  { %v5699_v61 = vand.u32 4294901760, %v5696_v60 }
 0x9d1   :  { %32001 = vmatpush3.msra.mxu0 %v5699_v61  ;;  %v5776_v2 = vsub.f32 %v5696_v60, %v5699_v61  ;;  %v6602_v6 = vpop.permute.xlu1 %6601  ;;  %v7140_v60 = vand.u32 4294901760, %v7139_v58 }
 0x9d2   :  { %32005 = vmatprep.subr.mxu0 %v40150_v22  ;;  %v6605_v25 = vsel %vm1086_vm3, %v6602_v6, 0 }
 0x9d3   :  { %v36996_v62 = vpop.eup %36321  ;;  %v5777_v11 = vand.u32 4294901760, %v5776_v2  ;;  %v6608_v27 = vand.u32 4294901760, %v6605_v25 }
 0x9d4   :  { %v36324_v63 = vpop.eup %36323  ;;  %v5684_v0 = vsel %vm1992_vm4, %v36996_v62, 0.0 }
 0x9d5   :  { %v5689_v1 = vmul.f32 %v36324_v63, %v36320_v53  ;;  %5685 = vadd.xlane.f32.xlu1 %v5684_v0  ;;  %v5778_v15 = vsub.f32 %v5776_v2, %v5777_v11  ;;  %v6685_v29 = vsub.f32 %v6605_v25, %v6608_v27  ;;  %v6232_v53 = vand.u32 4294901760, %v6231_v20 }
 0x9d7   :  { %v5694_v7 = vsel %vm2017_vm6, %v5689_v1, 0  ;;  %v37003_v8 = vmin.f32 %v4759_v5, %v5689_v1  ;;  %v5779_v24 = vand.u32 4294901760, %v5778_v15  ;;  %v6686_v31 = vand.u32 4294901760, %v6685_v29 }
 0x9d8   :  { %v5764_v10 = vand.u32 4294901760, %v5694_v7 }
 0x9d9   :  { %v6687_v33 = vsub.f32 %v6685_v29, %v6686_v31 }
 0x9da   :  { %v5765_v12 = vsub.f32 %v5694_v7, %v5764_v10 }
 0x9db   :  { %v6688_v35 = vand.u32 4294901760, %v6687_v33 }
 0x9dc   :  { %v5766_v13 = vand.u32 4294901760, %v5765_v12 }
 0x9de   :  { %v5767_v17 = vsub.f32 %v5765_v12, %v5766_v13 }
 0x9e0   :  { %v5768_v19 = vand.u32 4294901760, %v5767_v17 }
 0x9e2   :  { %32003 = vmatmul.mubr.f32.vlgmr.msra.gmra.mrb[12].mxu0 %v5768_v19 }
 0x9e3   :  { %32006 = vmatpush3.msra.mxu0 %v5779_v24  ;;  %32007 = vmatprep.mubr.msk.f32.mxu0 %vm36438_vm1, %v40150_v22 }
 0x9e4   :  { %32010 = vmatprep.subr.mxu0 %v40150_v22 }
 0x9ea   :  { %32008 = vmatmul.mubr.f32.vlgmr.msra.gmra.mrb[12].mxu0 %v5764_v10 }
 0x9eb   :  { %32011 = vmatpush3.msra.mxu0 %v5776_v2  ;;  %32012 = vmatprep.mubr.msk.f32.mxu0 %vm36438_vm1, %v40150_v22 }
 0x9ec   :  { %32015 = vmatprep.subr.mxu0 %v40150_v22 }
 0x9f2   :  { %32013 = vmatmul.mubr.f32.vlgmr.msra.gmra.mrb[12].mxu0 %v5765_v12 }
 0x9f3   :  { %32016 = vmatpush3.msra.mxu0 %v5699_v61  ;;  %32017 = vmatprep.mubr.msk.f32.mxu0 %vm36438_vm1, %v40150_v22 }
 0x9f4   :  { %32020 = vmatprep.subr.mxu0 %v40150_v22 }
 0x9fa   :  { %32018 = vmatmul.mubr.f32.vlgmr.msra.gmra.mrb[12].mxu0 %v5766_v13 }
 0x9fb   :  { %32021 = vmatpush3.msra.mxu0 %v5777_v11  ;;  %32022 = vmatprep.mubr.msk.f32.mxu0 %vm36438_vm1, %v40150_v22 }
 0x9fc   :  { %32025 = vmatprep.subr.mxu0 %v40150_v22 }
 0xa02   :  { %32023 = vmatmul.mubr.f32.vlgmr.msra.gmra.mrb[12].mxu0 %v5764_v10 }
 0xa03   :  { %32026 = vmatpush3.msra.mxu0 %v5699_v61  ;;  %32027 = vmatprep.mubr.msk.f32.mxu0 %vm36438_vm1, %v40150_v22  ;;  %v7130_v61 = vsub.f32 %v7128_v57, %v7129_v59 }
 0xa04   :  { %32060 = vmatprep.subr.mxu0 %v40150_v22 }
 0xa05   :  { %v7131_v63 = vand.u32 4294901760, %v7130_v61 }
 0xa0a   :  { %32028 = vmatmul.mubr.f32.vlgmr.msra.gmra.mrb[12].mxu0 %v5764_v10 }
 0xa0b   :  { %32061 = vmatpush3.xpose.msra.mxu0 %v6608_v27  ;;  %32062 = vmatprep.mubr.msk.f32.mxu0 %vm36438_vm1, %v40150_v22 }
 0xa0c   :  { %32065 = vmatprep.subr.mxu0 %v40150_v22 }
 0xa0e   :  { %32063 = vmatmul.mubr.f32.vlgmr.msra.gmra.mrb[14].mxu0 %v6677_v34 }
 0xa0f   :  { %32066 = vmatpush3.xpose.msra.mxu0 %v6688_v35  ;;  %32067 = vmatprep.mubr.msk.f32.mxu0 %vm36438_vm1, %v40150_v22 }
 0xa10   :  { %32070 = vmatprep.subr.mxu0 %v40150_v22 }
 0xa16   :  { %32068 = vmatmul.mubr.f32.vlgmr.msra.gmra.mrb[14].mxu0 %v6673_v26 }
 0xa17   :  { %32071 = vmatpush3.xpose.msra.mxu0 %v6685_v29  ;;  %32072 = vmatprep.mubr.msk.f32.mxu0 %vm36438_vm1, %v40150_v22 }
 0xa18   :  { %32075 = vmatprep.subr.mxu0 %v40150_v22 }
 0xa1e   :  { %32073 = vmatmul.mubr.f32.vlgmr.msra.gmra.mrb[14].mxu0 %v6674_v28 }
 0xa1f   :  { %32076 = vmatpush3.xpose.msra.mxu0 %v6608_v27  ;;  %32077 = vmatprep.mubr.msk.f32.mxu0 %vm36438_vm1, %v40150_v22 }
 0xa20   :  { %32080 = vmatprep.subr.mxu0 %v40150_v22 }
 0xa26   :  { %32078 = vmatmul.mubr.f32.vlgmr.msra.gmra.mrb[14].mxu0 %v6675_v30 }
 0xa27   :  { %32081 = vmatpush3.xpose.msra.mxu0 %v6686_v31  ;;  %32082 = vmatprep.mubr.msk.f32.mxu0 %vm36438_vm1, %v40150_v22 }
 0xa28   :  { %32085 = vmatprep.subr.mxu0 %v40150_v22 }
 0xa2e   :  { %32083 = vmatmul.mubr.f32.vlgmr.msra.gmra.mrb[14].mxu0 %v6673_v26 }
 0xa2f   :  { %32086 = vmatpush3.xpose.msra.mxu0 %v6608_v27  ;;  %32087 = vmatprep.mubr.msk.f32.mxu0 %vm36438_vm1, %v40150_v22 }
 0xa30   :  { %32120 = vmatprep.subr.mxu0 %v40150_v22 }
 0xa36   :  { %32088 = vmatmul.mubr.f32.vlgmr.msra.gmra.mrb[14].mxu0 %v6673_v26 }
 0xa37   :  { %32122 = vmatprep.mubr.msk.f32.mxu0 %vm36438_vm1, %v40150_v22 }
 0xa62   :  { %v5686_v36 = vpop.xlane.xlu1 %5685 }
 0xa63   :  { %36325 = vrcp.f32 %v5686_v36 }
 0xa6d   :  { %v36326_v37 = vpop.eup %36325 }
 0xa6e   :  { %v5690_v40 = vmul.f32 %v36326_v37, %v36996_v62  ;;  %v7141_v62 = vsub.f32 %v7139_v58, %v7140_v60 }
 0xa70   :  { %v6147_v44 = vsel %vm2017_vm6, %v5690_v40, 0  ;;  %v37048_v45 = vmin.f32 %v4760_v41, %v5690_v40  ;;  %v7142_v0 = vand.u32 4294901760, %v7141_v62  ;;  %v8469_v62 = vld [vmem:[%s40098_s5] sm:$0xff] }
 0xa71   :  { %v6217_v46 = vand.u32 4294901760, %v6147_v44 }
 0xa73   :  { %v6218_v48 = vsub.f32 %v6147_v44, %v6217_v46 }
 0xa75   :  { %v6219_v21 = vand.u32 4294901760, %v6218_v48 }
 0xa77   :  { %v6220_v51 = vsub.f32 %v6218_v48, %v6219_v21 }
 0xa79   :  { %v6221_v52 = vand.u32 4294901760, %v6220_v51 }
 0xa7b   :  { %32033 = vmatmul.mubr.f32.vlgmr.msra.gmra.mrb[12].mxu1 %v6221_v52 }
 0xa7c   :  { %32036 = vmatpush3.msra.mxu1 %v6232_v53  ;;  %32037 = vmatprep.mubr.msk.f32.mxu1 %vm36438_vm1, %v40150_v22 }
 0xa7d   :  { %32040 = vmatprep.subr.mxu1 %v40150_v22 }
 0xa83   :  { %32038 = vmatmul.mubr.f32.vlgmr.msra.gmra.mrb[12].mxu1 %v6217_v46 }
 0xa84   :  { %32041 = vmatpush3.msra.mxu1 %v6229_v38  ;;  %32042 = vmatprep.mubr.msk.f32.mxu1 %vm36438_vm1, %v40150_v22 }
 0xa85   :  { %32045 = vmatprep.subr.mxu1 %v40150_v22 }
 0xa8b   :  { %32043 = vmatmul.mubr.f32.vlgmr.msra.gmra.mrb[12].mxu1 %v6218_v48 }
 0xa8c   :  { %32046 = vmatpush3.msra.mxu1 %v36984_v50  ;;  %32047 = vmatprep.mubr.msk.f32.mxu1 %vm36438_vm1, %v40150_v22 }
 0xa8d   :  { %32050 = vmatprep.subr.mxu1 %v40150_v22 }
 0xa93   :  { %32048 = vmatmul.mubr.f32.vlgmr.msra.gmra.mrb[12].mxu1 %v6219_v21 }
 0xa94   :  { %32051 = vmatpush3.msra.mxu1 %v6230_v47  ;;  %32052 = vmatprep.mubr.msk.f32.mxu1 %vm36438_vm1, %v40150_v22 }
 0xa95   :  { %32055 = vmatprep.subr.mxu1 %v40150_v22 }
 0xa9b   :  { %32053 = vmatmul.mubr.f32.vlgmr.msra.gmra.mrb[12].mxu1 %v6217_v46 }
 0xa9c   :  { %32056 = vmatpush3.msra.mxu1 %v36984_v50  ;;  %32057 = vmatprep.mubr.msk.f32.mxu1 %vm36438_vm1, %v40150_v22 }
 0xa9d   :  { %32090 = vmatprep.subr.mxu1 %v40150_v22 }
 0xaa3   :  { %32058 = vmatmul.mubr.f32.vlgmr.msra.gmra.mrb[12].mxu1 %v6217_v46 }
 0xaa4   :  { %32091 = vmatpush3.xpose.msra.mxu1 %v7062_v56  ;;  %32092 = vmatprep.mubr.msk.f32.mxu1 %vm36438_vm1, %v40150_v22 }
 0xaa5   :  { %32095 = vmatprep.subr.mxu1 %v40150_v22 }
 0xaa7   :  { %32093 = vmatmul.mubr.f32.vlgmr.msra.gmra.mrb[14].mxu1 %v7131_v63  ;;  %v8470_v63 = vld [vmem:[%s40098_s5 + $0x8] sm:$0xff] }
 0xaa8   :  { %32096 = vmatpush3.xpose.msra.mxu1 %v7142_v0  ;;  %32097 = vmatprep.mubr.msk.f32.mxu1 %vm36438_vm1, %v40150_v22  ;;  %v8482_v0 = vand.u32 4294901760, %v8469_v62 }
 0xaa9   :  { %32100 = vmatprep.subr.mxu1 %v40150_v22 }
 0xaaf   :  { %32098 = vmatmul.mubr.f32.vlgmr.msra.gmra.mrb[14].mxu1 %v7127_v55 }
 0xab0   :  { %32101 = vmatpush3.xpose.msra.mxu1 %v7139_v58  ;;  %32102 = vmatprep.mubr.msk.f32.mxu1 %vm36438_vm1, %v40150_v22 }
 0xab1   :  { %32105 = vmatprep.subr.mxu1 %v40150_v22 }
 0xab7   :  { %32103 = vmatmul.mubr.f32.vlgmr.msra.gmra.mrb[14].mxu1 %v7128_v57 }
 0xab8   :  { %32106 = vmatpush3.xpose.msra.mxu1 %v7062_v56  ;;  %32107 = vmatprep.mubr.msk.f32.mxu1 %vm36438_vm1, %v40150_v22 }
 0xab9   :  { %32110 = vmatprep.subr.mxu1 %v40150_v22 }
 0xabf   :  { %32108 = vmatmul.mubr.f32.vlgmr.msra.gmra.mrb[14].mxu1 %v7129_v59 }
 0xac0   :  { %32111 = vmatpush3.xpose.msra.mxu1 %v7140_v60  ;;  %32112 = vmatprep.mubr.msk.f32.mxu1 %vm36438_vm1, %v40150_v22 }
 0xac1   :  { %32115 = vmatprep.subr.mxu1 %v40150_v22 }
 0xac7   :  { %32113 = vmatmul.mubr.f32.vlgmr.msra.gmra.mrb[14].mxu1 %v7127_v55 }
 0xac8   :  { %32116 = vmatpush3.xpose.msra.mxu1 %v7062_v56  ;;  %32117 = vmatprep.mubr.msk.f32.mxu1 %vm36438_vm1, %v40150_v22 }
 0xac9   :  { %32150 = vmatprep.subr.mxu1 %v40150_v22 }
 0xacf   :  { %32118 = vmatmul.mubr.f32.vlgmr.msra.gmra.mrb[14].mxu1 %v7127_v55 }
 0xad0   :  { %32152 = vmatprep.mubr.msk.f32.mxu1 %vm36438_vm1, %v40150_v22 }
 0xadd   :  { %v6140_v50 = vpop.f32.mrb[12].mxu0 }
 0xade   :  { %v32029_v1 = vpop.f32.mrb[13].mxu0 }
 0xadf   :  { %v37149_v1 = vsub.f32 %v8469_v62, %v8482_v0 }
 0xb09   :  { %v7049_v2 = vpop.f32.mrb[14].mxu0 }
 0xb0a   :  { %v32089_v5 = vpop.f32.mrb[15].mxu0  ;;  %v7507_v7 = vsel %vm1992_vm4, %v7049_v2, -inf }
 0xb0b   :  { %7508 = vmax.xlane.f32.xlu0 %v7507_v7  ;;  %v8563_v5 = vand.u32 4294901760, %v37149_v1 }
 0xb76   :  { %v6593_v10 = vpop.f32.mrb[12].mxu1 }
 0xb77   :  { %v32059_v11 = vpop.f32.mrb[13].mxu1 }
 0xb98   :  { %v7509_v12 = vpop.xlane.xlu0 %7508 }
 0xb99   :  { %v7513_v13 = vsub.f32 %v7049_v2, %v7509_v12 }
 0xb9b   :  { %v7515_v15 = vmul.f32 1.442695, %v7513_v13 }
 0xb9d   :  { %36327 = vpow2.f32 %v7515_v15 }
 0xba2   :  { %v7503_v17 = vpop.f32.mrb[14].mxu1 }
 0xba3   :  { %v32119_v19 = vpop.f32.mrb[15].mxu1  ;;  %v7510_v24 = vsel %vm1992_vm4, %v7503_v17, -inf }
 0xba4   :  { %7511 = vmax.xlane.f32.xlu1 %v7510_v24  ;;  %v8472_v19 = vld [vmem:[%s40098_s5 + $0x18] sm:$0xff] }
 0xba7   :  { %v36328_v6 = vpop.eup %36327 }
 0xba8   :  { %v7519_v39 = vsel %vm1992_vm4, %v36328_v6, 0.0 }
 0xba9   :  { %7520 = vadd.xlane.f32.xlu1 %v7519_v39 }
 0xbba   :  { %7529 = vrot.lane.b32.xlu1 %v36659_v18, %s40113_s19 }
 0xbbe   :  { %8439 = vrot.lane.b32.xlu1 %v36967_v23, %s40111_s20 }
 0xbc2   :  { %8447 = vrot.lane.b32.xlu1 %v6140_v50, %s40109_s21  ;;  %v8485_v50 = vand.u32 4294901760, %v8470_v63 }
 0xbc4   :  { %v37151_v2 = vsub.f32 %v8470_v63, %v8485_v50 }
 0xbc6   :  { %v8570_v7 = vand.u32 4294901760, %v37151_v2 }
 0xbc8   :  { %v8571_v11 = vsub.f32 %v37151_v2, %v8570_v7 }
 0xbca   :  { %v8572_v13 = vand.u32 4294901760, %v8571_v11 }
 0xc31   :  { %v7512_v25 = vpop.xlane.xlu1 %7511 }
 0xc32   :  { %v7514_v26 = vsub.f32 %v7503_v17, %v7512_v25  ;;  %v8471_v17 = vld [vmem:[%s40098_s5 + $0x10] sm:$0xff] }
 0xc33   :  { %v8488_v24 = vand.u32 4294901760, %v8471_v17 }
 0xc34   :  { %v7517_v27 = vmul.f32 1.442695, %v7514_v26 }
 0xc35   :  { %v8576_v39 = vsub.f32 %v8471_v17, %v8488_v24 }
 0xc36   :  { %36329 = vpow2.f32 %v7517_v27  ;;  %v7521_v28 = vpop.xlane.xlu1 %7520 }
 0xc37   :  { %36331 = vrcp.f32 %v7521_v28  ;;  %v8577_v26 = vand.u32 4294901760, %v8576_v39 }
 0xc39   :  { %v8578_v28 = vsub.f32 %v8576_v39, %v8577_v26 }
 0xc3a   :  { %v7530_v29 = vpop.permute.xlu1 %7529 }
 0xc3b   :  { %v7534_v30 = vsel %vm2021_vm5, %v7530_v29, 0 }
 0xc3c   :  { %v7537_v31 = vand.u32 4294901760, %v7534_v30 }
 0xc3e   :  { %32121 = vmatpush3.msra.mxu0 %v7537_v31  ;;  %v7614_v34 = vsub.f32 %v7534_v30, %v7537_v31  ;;  %v8579_v30 = vand.u32 4294901760, %v8578_v28 }
 0xc3f   :  { %32125 = vmatprep.subr.mxu0 %v40150_v22 }
 0xc40   :  { %v36330_v18 = vpop.eup %36329  ;;  %v7615_v38 = vand.u32 4294901760, %v7614_v34 }
 0xc41   :  { %v36332_v32 = vpop.eup %36331  ;;  %v7522_v23 = vsel %vm1992_vm4, %v36330_v18, 0.0 }
 0xc42   :  { %v37100_v33 = vmul.f32 %v36332_v32, %v36328_v6  ;;  %7523 = vadd.xlane.f32.xlu0 %v7522_v23  ;;  %v7616_v44 = vsub.f32 %v7614_v34, %v7615_v38  ;;  %v8491_v6 = vand.u32 4294901760, %v8472_v19  ;;  %v37180_v32 = vpack.c.bf16 %v8485_v50, %v8482_v0 }
 0xc44   :  { %v7532_v35 = vsel %vm2017_vm6, %v37100_v33, 0  ;;  %v7617_v48 = vand.u32 4294901760, %v7616_v44  ;;  %v8583_v25 = vsub.f32 %v8472_v19, %v8491_v6  ;;  %v37184_v23 = vpack.c.bf16 %v8491_v6, %v8488_v24 }
 0xc45   :  { %v7602_v37 = vand.u32 4294901760, %v7532_v35 }
 0xc46   :  { %v8584_v27 = vand.u32 4294901760, %v8583_v25 }
 0xc47   :  { %v7603_v40 = vsub.f32 %v7532_v35, %v7602_v37 }
 0xc48   :  { %v8585_v29 = vsub.f32 %v8583_v25, %v8584_v27 }
 0xc49   :  { %v7604_v41 = vand.u32 4294901760, %v7603_v40 }
 0xc4b   :  { %v7605_v46 = vsub.f32 %v7603_v40, %v7604_v41 }
 0xc4d   :  { %v7606_v47 = vand.u32 4294901760, %v7605_v46 }
 0xc4f   :  { %32123 = vmatmul.mubr.f32.vlgmr.msra.gmra.mrb[16].mxu0 %v7606_v47 }
 0xc50   :  { %32126 = vmatpush3.msra.mxu0 %v7617_v48  ;;  %32127 = vmatprep.mubr.msk.f32.mxu0 %vm36438_vm1, %v40150_v22 }
 0xc51   :  { %32130 = vmatprep.subr.mxu0 %v40150_v22 }
 0xc57   :  { %32128 = vmatmul.mubr.f32.vlgmr.msra.gmra.mrb[16].mxu0 %v7602_v37 }
 0xc58   :  { %32131 = vmatpush3.msra.mxu0 %v7614_v34  ;;  %7982 = vrot.lane.b32.xlu0 %v36657_v16, %s40113_s19 }
 0xc59   :  { %32132 = vmatprep.mubr.msk.f32.mxu0 %vm36438_vm1, %v40150_v22  ;;  %32135 = vmatprep.subr.mxu0 %v40150_v22 }
 0xc5c   :  { %8449 = vrot.lane.b32.xlu0 %v6593_v10, %s40109_s21  ;;  %v8564_v10 = vsub.f32 %v37149_v1, %v8563_v5 }
 0xc5e   :  { %v8565_v12 = vand.u32 4294901760, %v8564_v10 }
 0xc5f   :  { %32133 = vmatmul.mubr.f32.vlgmr.msra.gmra.mrb[16].mxu0 %v7603_v40  ;;  %v8440_v40 = vpop.permute.xlu1 %8439 }
 0xc60   :  { %32136 = vmatpush3.msra.mxu0 %v7537_v31  ;;  %32137 = vmatprep.mubr.msk.f32.mxu0 %vm36438_vm1, %v40150_v22  ;;  %v37167_v15 = vpack.c.bf16 %v8572_v13, %v8565_v12  ;;  %v8461_v44 = vsel %vm1086_vm3, %v36847_v3, %v8440_v40  ;;  %v34737_v3 = vpack.c.bf16 %v37151_v2, %v37149_v1 }
 0xc61   :  { %32140 = vmatprep.subr.mxu0 %v40150_v22 }
 0xc67   :  { %32138 = vmatmul.mubr.f32.vlgmr.msra.gmra.mrb[16].mxu0 %v7604_v41  ;;  %v8448_v41 = vpop.permute.xlu1 %8447 }
 0xc68   :  { %32141 = vmatpush3.msra.mxu0 %v7615_v38  ;;  %32142 = vmatprep.mubr.msk.f32.mxu0 %vm36438_vm1, %v40150_v22  ;;  %v37193_v38 = vpack.c.bf16 %v8584_v27, %v8577_v26  ;;  %v8464_v46 = vsel %vm8463_vm7, %v8461_v44, %v8448_v41 }
 0xc69   :  { %32145 = vmatprep.subr.mxu0 %v40150_v22 }
 0xc6f   :  { %32143 = vmatmul.mubr.f32.vlgmr.msra.gmra.mrb[16].mxu0 %v7602_v37 }
 0xc70   :  { %32146 = vmatpush3.msra.mxu0 %v7537_v31  ;;  %32147 = vmatprep.mubr.msk.f32.mxu0 %vm36438_vm1, %v40150_v22  ;;  %v8586_v31 = vand.u32 4294901760, %v8585_v29 }
 0xc71   :  { %34724 = vmatprep.subr.bf16.mxu0 %v40148_v14 }
 0xc77   :  { %32148 = vmatmul.mubr.f32.vlgmr.msra.gmra.mrb[16].mxu0 %v7602_v37  ;;  %v37189_v37 = vpack.c.bf16 %v8583_v25, %v8576_v39 }
 0xc78   :  { %32188 = vmatprep.mubr.msk.f32.mxu0 %vm36438_vm1, %v40150_v22  ;;  %34726 = vmatpush3.bf16.msra.mxu0 %v37180_v32 }
 0xc79   :  { %34727 = vmatprep.subr.bf16.mxu0 %v40148_v14 }
 0xc7c   :  { %34729 = vmatpush3.bf16.msra.mxu0 %v37184_v23 }
 0xc7d   :  { %34736 = vmatprep.subr.bf16.mxu0 %v40148_v14 }
 0xccf   :  { %v7524_v16 = vpop.xlane.xlu0 %7523 }
 0xcd0   :  { %36333 = vrcp.f32 %v7524_v16 }
 0xcd3   :  { %v7983_v21 = vpop.permute.xlu0 %7982 }
 0xcd4   :  { %v7987_v20 = vsel %vm2021_vm5, %v7983_v21, 0 }
 0xcd5   :  { %v7990_v51 = vand.u32 4294901760, %v7987_v20 }
 0xcd7   :  { %32151 = vmatpush3.msra.mxu1 %v7990_v51  ;;  %v8067_v43 = vsub.f32 %v7987_v20, %v7990_v51 }
 0xcd8   :  { %32155 = vmatprep.subr.mxu1 %v40150_v22 }
 0xcd9   :  { %v8068_v55 = vand.u32 4294901760, %v8067_v43 }
 0xcda   :  { %v36334_v52 = vpop.eup %36333 }
 0xcdb   :  { %v37128_v53 = vmul.f32 %v36334_v52, %v36330_v18  ;;  %v8069_v58 = vsub.f32 %v8067_v43, %v8068_v55  ;;  %v34734_v18 = vpack.c.bf16 %v8586_v31, %v8579_v30  ;;  %v36435_v30 = vld [vmem:[%s40093_s0] sm:$0x1f] }
 0xcdd   :  { %v7985_v4 = vsel %vm2017_vm6, %v37128_v53, 0  ;;  %v8070_v61 = vand.u32 4294901760, %v8069_v58 }
 0xcde   :  { %v8055_v54 = vand.u32 4294901760, %v7985_v4 }
 0xce0   :  { %v8056_v56 = vsub.f32 %v7985_v4, %v8055_v54 }
 0xce2   :  { %v8057_v57 = vand.u32 4294901760, %v8056_v56 }
 0xce4   :  { %v8058_v59 = vsub.f32 %v8056_v56, %v8057_v57 }
 0xce6   :  { %v8059_v60 = vand.u32 4294901760, %v8058_v59 }
 0xce8   :  { %32153 = vmatmul.mubr.f32.vlgmr.msra.gmra.mrb[16].mxu1 %v8059_v60 }
 0xce9   :  { %32156 = vmatpush3.msra.mxu1 %v8070_v61  ;;  %32157 = vmatprep.mubr.msk.f32.mxu1 %vm36438_vm1, %v40150_v22 }
 0xcea   :  { %32160 = vmatprep.subr.mxu1 %v40150_v22 }
 0xcf0   :  { %32158 = vmatmul.mubr.f32.vlgmr.msra.gmra.mrb[16].mxu1 %v8055_v54 }
 0xcf1   :  { %32161 = vmatpush3.msra.mxu1 %v8067_v43  ;;  %32162 = vmatprep.mubr.msk.f32.mxu1 %vm36438_vm1, %v40150_v22  ;;  %v34749_v43 = vpack.c.bf16 %v8570_v7, %v8563_v5  ;;  %v30164_v5 = vld [vmem:[%s40099_s6] ss:$0 sm:$0xff] }
 0xcf2   :  { %32165 = vmatprep.subr.mxu1 %v40150_v22 }
 0xcf8   :  { %32163 = vmatmul.mubr.f32.vlgmr.msra.gmra.mrb[16].mxu1 %v8056_v56 }
 0xcf9   :  { %32166 = vmatpush3.msra.mxu1 %v7990_v51  ;;  %32167 = vmatprep.mubr.msk.f32.mxu1 %vm36438_vm1, %v40150_v22 }
 0xcfa   :  { %32170 = vmatprep.subr.mxu1 %v40150_v22 }
 0xd00   :  { %32168 = vmatmul.mubr.f32.vlgmr.msra.gmra.mrb[16].mxu1 %v8057_v57  ;;  %v8450_v57 = vpop.permute.xlu0 %8449 }
 0xd01   :  { %32171 = vmatpush3.msra.mxu1 %v8068_v55  ;;  %32172 = vmatprep.mubr.msk.f32.mxu1 %vm36438_vm1, %v40150_v22 }
 0xd02   :  { %32175 = vmatprep.subr.mxu1 %v40150_v22 }
 0xd08   :  { %32173 = vmatmul.mubr.f32.vlgmr.msra.gmra.mrb[16].mxu1 %v8055_v54 }
 0xd09   :  { %32176 = vmatpush3.msra.mxu1 %v7990_v51  ;;  %32177 = vmatprep.mubr.msk.f32.mxu1 %vm36438_vm1, %v40150_v22 }
 0xd0a   :  { %34730 = vmatprep.subr.bf16.mxu1 %v40148_v14 }
 0xd10   :  { %32178 = vmatmul.mubr.f32.vlgmr.msra.gmra.mrb[16].mxu1 %v8055_v54 }
 0xd11   :  { %34732 = vmatpush3.bf16.msra.mxu1 %v37167_v15  ;;  %32199 = vmatprep.mubr.msk.f32.mxu1 %vm36438_vm1, %v40150_v22 }
 0xd12   :  { %34733 = vmatprep.subr.bf16.mxu1 %v40148_v14 }
 0xd15   :  { %34735 = vmatpush3.bf16.msra.mxu1 %v34734_v18 }
 0xd16   :  { %34742 = vmatprep.subr.bf16.mxu1 %v40148_v14 }
 0xd4a   :  { %v7978_v34 = vpop.f32.mrb[16].mxu0 }
 0xd4b   :  { %8455 = vrot.lane.b32.xlu1 %v7978_v34, %s40107_s22  ;;  %v32149_v35 = vpop.f32.mrb[17].mxu0 }
 0xd4f   :  { %8441 = vrot.lane.b32.xlu1 %v36978_v42, %s40111_s20 }
 0xdbd   :  { %v8456_v47 = vpop.permute.xlu1 %8455 }
 0xdbe   :  { %v8467_v48 = vsel %vm8466_vm8, %v8464_v46, %v8456_v47 }
 0xdbf   :  { %v8479_v16 = vsel %vm104_vm2, %v8467_v48, 0 }
 0xdc0   :  { %v8550_v21 = vand.u32 4294901760, %v8479_v16 }
 0xdc1   :  { %v8442_v55 = vpop.permute.xlu1 %8441 }
 0xdc2   :  { %v8551_v20 = vsub.f32 %v8479_v16, %v8550_v21  ;;  %32200 = vmatmul.mubr.f32.vlgmr.msra.gmra.mrb[18].mxu1 %v8550_v21  ;;  %v8462_v56 = vsel %vm1086_vm3, %v36858_v9, %v8442_v55 }
 0xdc3   :  { %34744 = vmatpush3.bf16.msra.mxu1 %v37180_v32  ;;  %32221 = vmatprep.mubr.msk.f32.mxu1 %vm36438_vm1, %v40150_v22  ;;  %v8465_v58 = vsel %vm8463_vm7, %v8462_v56, %v8450_v57  ;;  %v36436_v56 = vld [vmem:[%s40093_s0 + $0x8] sm:$0x1f] }
 0xdc4   :  { %34745 = vmatprep.subr.bf16.mxu1 %v40148_v14  ;;  %v8552_v42 = vand.u32 4294901760, %v8551_v20 }
 0xdc6   :  { %v8553_v51 = vsub.f32 %v8551_v20, %v8552_v42 }
 0xdc7   :  { %34747 = vmatpush3.bf16.msra.mxu1 %v37184_v23 }
 0xdc8   :  { %34754 = vmatprep.subr.bf16.mxu1 %v40148_v14  ;;  %v8554_v52 = vand.u32 4294901760, %v8553_v51 }
 0xdca   :  { %32222 = vmatmul.mubr.f32.vlgmr.msra.gmra.mrb[20].mxu1 %v8552_v42  ;;  %32189 = vmatmul.mubr.f32.vlgmr.msra.gmra.mrb[18].mxu0 %v8554_v52 }
 0xdcb   :  { %34738 = vmatpush3.bf16.msra.mxu0 %v34737_v3  ;;  %34756 = vmatpush3.bf16.msra.mxu1 %v37180_v32 }
 0xdcc   :  { %34739 = vmatprep.subr.bf16.mxu0 %v40148_v14  ;;  %34757 = vmatprep.subr.bf16.mxu1 %v40148_v14 }
 0xdcd   :  { %32210 = vmatprep.mubr.msk.f32.mxu0 %vm36438_vm1, %v40150_v22  ;;  %32243 = vmatprep.mubr.msk.f32.mxu1 %vm36438_vm1, %v40150_v22 }
 0xdcf   :  { %34741 = vmatpush3.bf16.msra.mxu0 %v37189_v37  ;;  %34759 = vmatpush3.bf16.msra.mxu1 %v37184_v23 }
 0xdd0   :  { %34748 = vmatprep.subr.bf16.mxu0 %v40148_v14  ;;  %34766 = vmatprep.subr.bf16.mxu1 %v40148_v14 }
 0xdd2   :  { %32211 = vmatmul.mubr.f32.vlgmr.msra.gmra.mrb[20].mxu0 %v8551_v20  ;;  %32244 = vmatmul.mubr.f32.vlgmr.msra.gmra.mrb[22].mxu1 %v8550_v21 }
 0xdd3   :  { %34750 = vmatpush3.bf16.msra.mxu0 %v34749_v43  ;;  %32232 = vmatprep.mubr.msk.f32.mxu0 %vm36438_vm1, %v40150_v22 }
 0xdd4   :  { %34751 = vmatprep.subr.bf16.mxu0 %v40148_v14  ;;  %34768 = vmatpush3.bf16.msra.mxu1 %v37167_v15 }
 0xdd5   :  { %34769 = vmatprep.subr.bf16.mxu1 %v40148_v14  ;;  %32265 = vmatprep.mubr.msk.f32.mxu1 %vm36438_vm1, %v40150_v22 }
 0xdd7   :  { %34753 = vmatpush3.bf16.msra.mxu0 %v37193_v38 }
 0xdd8   :  { %34771 = vmatpush3.bf16.msra.mxu1 %v34734_v18  ;;  %34760 = vmatprep.subr.bf16.mxu0 %v40148_v14 }
 0xdd9   :  { %34778 = vmatprep.subr.bf16.mxu1 %v40148_v14 }
 0xdda   :  { %32233 = vmatmul.mubr.f32.vlgmr.msra.gmra.mrb[22].mxu0 %v8550_v21 }
 0xddb   :  { %34762 = vmatpush3.bf16.msra.mxu0 %v37180_v32  ;;  %32254 = vmatprep.mubr.msk.f32.mxu0 %vm36438_vm1, %v40150_v22 }
 0xddc   :  { %34763 = vmatprep.subr.bf16.mxu0 %v40148_v14 }
 0xddf   :  { %34765 = vmatpush3.bf16.msra.mxu0 %v37184_v23 }
 0xde0   :  { %34772 = vmatprep.subr.bf16.mxu0 %v40148_v14 }
 0xde3   :  { %v8431_v4 = vpop.f32.mrb[16].mxu1 }
 0xde4   :  { %v32179_v54 = vpop.f32.mrb[17].mxu1  ;;  %8457 = vrot.lane.b32.xlu1 %v8431_v4, %s40107_s22 }
 0xe56   :  { %v8458_v59 = vpop.permute.xlu1 %8457 }
 0xe57   :  { %v8468_v60 = vsel %vm8466_vm8, %v8465_v58, %v8458_v59  ;;  %v9496_v59 = vld [vmem:[%s40100_s9] sm:$0xff] }
 0xe58   :  { %v8967_v61 = vsel %vm104_vm2, %v8468_v60, 0  ;;  %v9497_v60 = vld [vmem:[%s40100_s9 + $0x8] sm:$0xff] }
 0xe59   :  { %v9038_v62 = vand.u32 4294901760, %v8967_v61 }
 0xe5b   :  { %v9039_v63 = vsub.f32 %v8967_v61, %v9038_v62  ;;  %32266 = vmatmul.mubr.f32.vlgmr.msra.gmra.mrb[24].mxu1 %v9038_v62  ;;  %v9498_v61 = vld [vmem:[%s40100_s9 + $0x10] sm:$0xff] }
 0xe5c   :  { %34780 = vmatpush3.bf16.msra.mxu1 %v37180_v32  ;;  %32287 = vmatprep.mubr.msk.f32.mxu1 %vm36438_vm1, %v40150_v22 }
 0xe5d   :  { %34781 = vmatprep.subr.bf16.mxu1 %v40148_v14  ;;  %v9040_v0 = vand.u32 4294901760, %v9039_v63 }
 0xe5f   :  { %v9041_v9 = vsub.f32 %v9039_v63, %v9040_v0 }
 0xe60   :  { %34783 = vmatpush3.bf16.msra.mxu1 %v37184_v23 }
 0xe61   :  { %34790 = vmatprep.subr.bf16.mxu1 %v40148_v14  ;;  %v9042_v50 = vand.u32 4294901760, %v9041_v9  ;;  %v9515_v9 = vand.u32 4294901760, %v9498_v61 }
 0xe63   :  { %32288 = vmatmul.mubr.f32.vlgmr.msra.gmra.mrb[26].mxu1 %v9040_v0  ;;  %32255 = vmatmul.mubr.f32.vlgmr.msra.gmra.mrb[24].mxu0 %v9042_v50  ;;  %v9499_v0 = vld [vmem:[%s40100_s9 + $0x18] sm:$0xff] }
 0xe64   :  { %34774 = vmatpush3.bf16.msra.mxu0 %v34737_v3  ;;  %34792 = vmatpush3.bf16.msra.mxu1 %v37180_v32  ;;  %v9518_v50 = vand.u32 4294901760, %v9499_v0 }
 0xe65   :  { %34775 = vmatprep.subr.bf16.mxu0 %v40148_v14  ;;  %34793 = vmatprep.subr.bf16.mxu1 %v40148_v14 }
 0xe66   :  { %32276 = vmatprep.mubr.msk.f32.mxu0 %vm36438_vm1, %v40150_v22  ;;  %32309 = vmatprep.mubr.msk.f32.mxu1 %vm36438_vm1, %v40150_v22 }
 0xe68   :  { %34777 = vmatpush3.bf16.msra.mxu0 %v37189_v37  ;;  %34795 = vmatpush3.bf16.msra.mxu1 %v37184_v23 }
 0xe69   :  { %34784 = vmatprep.subr.bf16.mxu0 %v40148_v14  ;;  %34832 = vmatprep.subr.bf16.mxu1 %v40148_v14 }
 0xe6b   :  { %32277 = vmatmul.mubr.f32.vlgmr.msra.gmra.mrb[26].mxu0 %v9039_v63  ;;  %32310 = vmatmul.mubr.f32.vlgmr.msra.gmra.mrb[28].mxu1 %v9038_v62  ;;  %v9512_v63 = vand.u32 4294901760, %v9497_v60 }
 0xe6c   :  { %34786 = vmatpush3.bf16.msra.mxu0 %v34749_v43  ;;  %32298 = vmatprep.mubr.msk.f32.mxu0 %vm36438_vm1, %v40150_v22 }
 0xe6d   :  { %34787 = vmatprep.subr.bf16.mxu0 %v40148_v14  ;;  %32386 = vmatprep.mubr.msk.f32.mxu1 %vm36438_vm1, %v40150_v22 }
 0xe70   :  { %34789 = vmatpush3.bf16.msra.mxu0 %v37193_v38 }
 0xe71   :  { %34796 = vmatprep.subr.bf16.mxu0 %v40148_v14 }
 0xe73   :  { %32299 = vmatmul.mubr.f32.vlgmr.msra.gmra.mrb[28].mxu0 %v9038_v62  ;;  %v9509_v62 = vand.u32 4294901760, %v9496_v59 }
 0xe74   :  { %32320 = vmatprep.mubr.msk.f32.mxu0 %vm36438_vm1, %v40150_v22 }
 0xe95   :  { %v8647_v1 = vpop.f32.mrb[18].mxu1 }
 0xe96   :  { %v32201_v2 = vpop.f32.mrb[19].mxu1 }
 0xe97   :  { %v37309_v2 = vpack.c.bf16 %v9518_v50, %v9515_v9 }
 0xe9d   :  { %v8804_v7 = vpop.f32.mrb[20].mxu1  ;;  %v8556_v10 = vpop.f32.mrb[18].mxu0 }
 0xe9e   :  { %v8557_v11 = vadd.f32 %v30164_v5, %v8556_v10  ;;  %v32223_v12 = vpop.f32.mrb[21].mxu1  ;;  %v32190_v13 = vpop.f32.mrb[19].mxu0 }
 0xea0   :  { %v8648_v15 = vadd.f32 %v8647_v1, %v8557_v11  ;;  %v37306_v1 = vpack.c.bf16 %v9512_v63, %v9509_v62 }
 0xea2   :  { %34798 = vmatpush3.bf16.msra.mxu0 %v37306_v1  ;;  %34834 = vmatpush3.bf16.msra.mxu1 %v37306_v1 }
 0xea3   :  { %34799 = vmatprep.subr.bf16.mxu0 %v40148_v14  ;;  %34835 = vmatprep.subr.bf16.mxu1 %v40148_v14 }
 0xea5   :  { %v8727_v17 = vpop.f32.mrb[20].mxu0  ;;  %v8962_v19 = vpop.f32.mrb[22].mxu1 }
 0xea6   :  { %v8728_v24 = vadd.f32 %v8727_v17, %v8648_v15  ;;  %v32212_v6 = vpop.f32.mrb[21].mxu0  ;;  %v32245_v39 = vpop.f32.mrb[23].mxu1  ;;  %34801 = vmatpush3.bf16.msra.mxu0 %v37309_v2  ;;  %v9603_v15 = vsub.f32 %v9498_v61, %v9515_v9  ;;  %v9610_v17 = vsub.f32 %v9499_v0, %v9518_v50  ;;  %34837 = vmatpush3.bf16.msra.mxu1 %v37309_v2  ;;  %v37397_v0 = vld [vmem:[%s40103_s11 + $0x10] sm:$0xff]  ;;  %v37402_v9 = vld [vmem:[%s40103_s11 + $0x18] sm:$0xff] }
 0xea7   :  { %34802 = vmatprep.subr.bf16.mxu0 %v40148_v14  ;;  %34838 = vmatprep.subr.bf16.mxu1 %v40148_v14 }
 0xea8   :  { %v8805_v25 = vadd.f32 %v8804_v7, %v8728_v24  ;;  %v9596_v7 = vsub.f32 %v9497_v60, %v9512_v63  ;;  %v9604_v6 = vand.u32 4294901760, %v9603_v15  ;;  %v9611_v39 = vand.u32 4294901760, %v9610_v17  ;;  %v37390_v60 = vld [vmem:[%s40103_s11 + $0x8] sm:$0xff] }
 0xea9   :  { %v10524_v63 = vand.u32 4294901760, %v37390_v60 }
 0xeaa   :  { %v9597_v11 = vand.u32 4294901760, %v9596_v7 }
 0xeac   :  { %v9598_v13 = vsub.f32 %v9596_v7, %v9597_v11 }
 0xead   :  { %v8887_v26 = vpop.f32.mrb[22].mxu0 }
 0xeae   :  { %v8888_v27 = vadd.f32 %v8887_v26, %v8805_v25  ;;  %v32234_v28 = vpop.f32.mrb[23].mxu0  ;;  %v9599_v24 = vand.u32 4294901760, %v9598_v13  ;;  %v9605_v26 = vsub.f32 %v9603_v15, %v9604_v6  ;;  %v37433_v13 = vld [vmem:[%s40103_s11 + $0x30] sm:$0xff] }
 0xeb0   :  { %v8963_v29 = vadd.f32 %v8962_v19, %v8888_v27  ;;  %v9612_v27 = vsub.f32 %v9610_v17, %v9611_v39  ;;  %v9606_v28 = vand.u32 4294901760, %v9605_v26 }
 0xeb2   :  { %v37277_v31 = vadd.f32 %v36435_v30, %v8963_v29  ;;  %v9613_v29 = vand.u32 4294901760, %v9612_v27 }
 0xeb4   :  { %v9458_v18 = vsel %vm55_vm0, %v37277_v31, 0.0  ;;  %v37320_v30 = vpack.c.bf16 %v9613_v29, %v9606_v28  ;;  %v37456_v28 = vld [vmem:[%s40103_s11 + $0x40] sm:$0xff]  ;;  %v37461_v29 = vld [vmem:[%s40103_s11 + $0x48] sm:$0xff] }
 0xeb5   :  { %9459 = vadd.xlane.f32.xlu0 %v9458_v18 }
 0xf2e   :  { %v9135_v32 = vpop.f32.mrb[24].mxu1 }
 0xf2f   :  { %v32267_v23 = vpop.f32.mrb[25].mxu1 }
 0xf36   :  { %v9292_v34 = vpop.f32.mrb[26].mxu1  ;;  %v9044_v35 = vpop.f32.mrb[24].mxu0 }
 0xf37   :  { %v9045_v37 = vadd.f32 %v30164_v5, %v9044_v35  ;;  %v32289_v38 = vpop.f32.mrb[27].mxu1  ;;  %v32256_v40 = vpop.f32.mrb[25].mxu0  ;;  %v9589_v5 = vsub.f32 %v9496_v59, %v9509_v62  ;;  %v37385_v59 = vld [vmem:[%s40103_s11] sm:$0xff] }
 0xf38   :  { %v10521_v62 = vand.u32 4294901760, %v37385_v59 }
 0xf39   :  { %v9136_v41 = vadd.f32 %v9135_v32, %v9045_v37  ;;  %v9590_v10 = vand.u32 4294901760, %v9589_v5  ;;  %v37322_v18 = vpack.c.bf16 %v9596_v7, %v9589_v5  ;;  %v37324_v32 = vpack.c.bf16 %v9610_v17, %v9603_v15  ;;  %v37438_v15 = vld [vmem:[%s40103_s11 + $0x38] sm:$0xff] }
 0xf3a   :  { %v37408_v50 = vpack.c.bf16 %v10524_v63, %v10521_v62  ;;  %v10530_v7 = vand.u32 4294901760, %v37402_v9 }
 0xf3b   :  { %v9591_v12 = vsub.f32 %v9589_v5, %v9590_v10  ;;  %v37326_v23 = vpack.c.bf16 %v9597_v11, %v9590_v10  ;;  %v10527_v5 = vand.u32 4294901760, %v37397_v0  ;;  %v37416_v10 = vld [vmem:[%s40103_s11 + $0x20] sm:$0xff]  ;;  %v37421_v11 = vld [vmem:[%s40103_s11 + $0x28] sm:$0xff] }
 0xf3c   :  { %v10533_v17 = vand.u32 4294901760, %v37416_v10 }
 0xf3d   :  { %v9592_v19 = vand.u32 4294901760, %v9591_v12  ;;  %v37428_v12 = vpack.c.bf16 %v10530_v7, %v10527_v5 }
 0xf3e   :  { %v9215_v44 = vpop.f32.mrb[26].mxu0  ;;  %v9450_v46 = vpop.f32.mrb[28].mxu1 }
 0xf3f   :  { %v9216_v47 = vadd.f32 %v9215_v44, %v9136_v41  ;;  %v32278_v48 = vpop.f32.mrb[27].mxu0  ;;  %v32311_v16 = vpop.f32.mrb[29].mxu1  ;;  %v37318_v25 = vpack.c.bf16 %v9599_v24, %v9592_v19  ;;  %v10536_v19 = vand.u32 4294901760, %v37421_v11 }
 0xf40   :  { %v37339_v16 = vld [vmem:[%s40101_s7] ss:$0 sm:$0xff] }
 0xf41   :  { %v9293_v21 = vadd.f32 %v9292_v34, %v9216_v47  ;;  %v37328_v34 = vpack.c.bf16 %v9611_v39, %v9604_v6  ;;  %v10539_v6 = vand.u32 4294901760, %v37433_v13  ;;  %v10542_v39 = vand.u32 4294901760, %v37438_v15 }
 0xf42   :  { %v9460_v20 = vpop.xlane.xlu0 %9459  ;;  %v37450_v26 = vpack.c.bf16 %v10536_v19, %v10533_v17 }
 0xf43   :  { %v9464_v42 = vmul.f32 0.03125, %v9460_v20  ;;  %v37345_v20 = vld [vmem:[%s40102_s8] ss:$0 sm:$0xff] }
 0xf45   :  { %v37282_v51 = vsub.f32 %v37277_v31, %v9464_v42 }
 0xf46   :  { %v9375_v3 = vpop.f32.mrb[28].mxu0 }
 0xf47   :  { %v9376_v52 = vadd.f32 %v9375_v3, %v9293_v21  ;;  %v32300_v43 = vpop.f32.mrb[29].mxu0  ;;  %v9468_v4 = vmul.f32 %v37282_v51, %v37282_v51 }
 0xf49   :  { %v9451_v54 = vadd.f32 %v9450_v46, %v9376_v52  ;;  %v9470_v55 = vsel %vm55_vm0, %v9468_v4, 0.0 }
 0xf4a   :  { %9471 = vadd.xlane.f32.xlu1 %v9470_v55 }
 0xf4b   :  { %v37290_v57 = vadd.f32 %v36436_v56, %v9451_v54 }
 0xf4d   :  { %v9461_v58 = vsel %vm55_vm0, %v37290_v57, 0.0 }
 0xf4e   :  { %9462 = vadd.xlane.f32.xlu0 %v9461_v58 }
 0xfd7   :  { %v9472_v35 = vpop.xlane.xlu1 %9471 }
 0xfd8   :  { %v9476_v37 = vmul.f32 0.03125, %v9472_v35  ;;  %v37468_v35 = vpack.c.bf16 %v10542_v39, %v10539_v6 }
 0xfda   :  { %v9478_v38 = vadd.f32 1e-06, %v9476_v37 }
 0xfdb   :  { %v9463_v40 = vpop.xlane.xlu0 %9462 }
 0xfdc   :  { %36335 = vrsqrt.f32 %v9478_v38  ;;  %v9465_v41 = vmul.f32 0.03125, %v9463_v40  ;;  %v10545_v38 = vand.u32 4294901760, %v37456_v28  ;;  %v10548_v40 = vand.u32 4294901760, %v37461_v29 }
 0xfde   :  { %v37331_v44 = vsub.f32 %v37290_v57, %v9465_v41 }
 0xfe0   :  { %v9469_v46 = vmul.f32 %v37331_v44, %v37331_v44 }
 0xfe2   :  { %v9473_v47 = vsel %vm55_vm0, %v9469_v46, 0.0  ;;  %v37483_v46 = vld [vmem:[%s40103_s11 + $0x58] sm:$0xff] }
 0xfe3   :  { %9474 = vadd.xlane.f32.xlu0 %v9473_v47  ;;  %v37486_v47 = vpack.c.bf16 %v10548_v40, %v10545_v38 }
 0xfe6   :  { %v36336_v48 = vpop.eup %36335 }
 0xfe7   :  { %v9482_v21 = vmul.f32 %v36336_v48, %v37282_v51 }
 0xfe9   :  { %v9488_v42 = vmul.f32 %v37339_v16, %v9482_v21 }
 0xfeb   :  { %v9494_v3 = vadd.f32 %v37345_v20, %v9488_v42  ;;  %v37497_v42 = vld [vmem:[%s40103_s11 + $0x60] sm:$0xff] }
 0xfed   :  { %v9506_v52 = vsel %vm104_vm2, %v9494_v3, 0  ;;  %v37502_v3 = vld [vmem:[%s40103_s11 + $0x68] sm:$0xff] }
 0xfee   :  { %v9577_v43 = vand.u32 4294901760, %v9506_v52 }
 0xff0   :  { %v9578_v4 = vsub.f32 %v9506_v52, %v9577_v43 }
 0xff2   :  { %v9579_v54 = vand.u32 4294901760, %v9578_v4 }
 0xff4   :  { %v9580_v55 = vsub.f32 %v9578_v4, %v9579_v54 }
 0xff6   :  { %v9581_v56 = vand.u32 4294901760, %v9580_v55  ;;  %v10560_v55 = vand.u32 4294901760, %v37502_v3 }
 0xff8   :  { %32321 = vmatmul.mubr.f32.vlgmr.msra.gmra.mrb[30].mxu0 %v9581_v56 }
 0xff9   :  { %34804 = vmatpush3.bf16.msra.mxu0 %v37318_v25  ;;  %32331 = vmatprep.mubr.msk.f32.mxu0 %vm36438_vm1, %v40150_v22 }
 0xffa   :  { %34805 = vmatprep.subr.bf16.mxu0 %v40148_v14 }
 0xffd   :  { %34807 = vmatpush3.bf16.msra.mxu0 %v37320_v30 }
 0xffe   :  { %34808 = vmatprep.subr.bf16.mxu0 %v40148_v14 }
0x1000   :  { %32332 = vmatmul.mubr.f32.vlgmr.msra.gmra.mrb[30].mxu0 %v9577_v43 }
0x1001   :  { %34810 = vmatpush3.bf16.msra.mxu0 %v37322_v18  ;;  %32342 = vmatprep.mubr.msk.f32.mxu0 %vm36438_vm1, %v40150_v22 }
0x1002   :  { %34811 = vmatprep.subr.bf16.mxu0 %v40148_v14 }
0x1005   :  { %34813 = vmatpush3.bf16.msra.mxu0 %v37324_v32 }
0x1006   :  { %34814 = vmatprep.subr.bf16.mxu0 %v40148_v14 }
0x1008   :  { %32343 = vmatmul.mubr.f32.vlgmr.msra.gmra.mrb[30].mxu0 %v9578_v4 }
0x1009   :  { %34816 = vmatpush3.bf16.msra.mxu0 %v37306_v1  ;;  %32353 = vmatprep.mubr.msk.f32.mxu0 %vm36438_vm1, %v40150_v22 }
0x100a   :  { %34817 = vmatprep.subr.bf16.mxu0 %v40148_v14 }
0x100d   :  { %34819 = vmatpush3.bf16.msra.mxu0 %v37309_v2 }
0x100e   :  { %34820 = vmatprep.subr.bf16.mxu0 %v40148_v14 }
0x1010   :  { %32354 = vmatmul.mubr.f32.vlgmr.msra.gmra.mrb[30].mxu0 %v9579_v54  ;;  %v10557_v54 = vand.u32 4294901760, %v37497_v42 }
0x1011   :  { %34822 = vmatpush3.bf16.msra.mxu0 %v37326_v23  ;;  %32364 = vmatprep.mubr.msk.f32.mxu0 %vm36438_vm1, %v40150_v22 }
0x1012   :  { %34823 = vmatprep.subr.bf16.mxu0 %v40148_v14 }
0x1015   :  { %34825 = vmatpush3.bf16.msra.mxu0 %v37328_v34 }
0x1016   :  { %34826 = vmatprep.subr.bf16.mxu0 %v40148_v14 }
0x1018   :  { %32365 = vmatmul.mubr.f32.vlgmr.msra.gmra.mrb[30].mxu0 %v9577_v43 }
0x1019   :  { %34828 = vmatpush3.bf16.msra.mxu0 %v37306_v1  ;;  %32375 = vmatprep.mubr.msk.f32.mxu0 %vm36438_vm1, %v40150_v22 }
0x101a   :  { %34829 = vmatprep.subr.bf16.mxu0 %v40148_v14 }
0x101d   :  { %34831 = vmatpush3.bf16.msra.mxu0 %v37309_v2 }
0x101e   :  { %34868 = vmatprep.subr.bf16.mxu0 %v40148_v14 }
0x1020   :  { %32376 = vmatmul.mubr.f32.vlgmr.msra.gmra.mrb[30].mxu0 %v9577_v43 }
0x1021   :  { %32476 = vmatprep.mubr.msk.f32.mxu0 %vm36438_vm1, %v40150_v22  ;;  %34870 = vmatpush3.bf16.msra.mxu0 %v37408_v50 }
0x1022   :  { %34871 = vmatprep.subr.bf16.mxu0 %v40148_v14 }
0x1025   :  { %34873 = vmatpush3.bf16.msra.mxu0 %v37428_v12 }
0x1026   :  { %34874 = vmatprep.subr.bf16.mxu0 %v40148_v14 }
0x1029   :  { %34876 = vmatpush3.bf16.msra.mxu0 %v37450_v26 }
0x102a   :  { %34877 = vmatprep.subr.bf16.mxu0 %v40148_v14 }
0x102d   :  { %34879 = vmatpush3.bf16.msra.mxu0 %v37468_v35 }
0x102e   :  { %34880 = vmatprep.subr.bf16.mxu0 %v40148_v14 }
0x1031   :  { %34882 = vmatpush3.bf16.msra.mxu0 %v37486_v47 }
0x1032   :  { %34883 = vmatprep.subr.bf16.mxu0 %v40148_v14 }
0x1070   :  { %v9475_v51 = vpop.xlane.xlu0 %9474 }
0x1071   :  { %v9477_v58 = vmul.f32 0.03125, %v9475_v51  ;;  %v37512_v51 = vpack.c.bf16 %v10560_v55, %v10557_v54 }
0x1073   :  { %v9479_v61 = vadd.f32 1e-06, %v9477_v58  ;;  %v37517_v58 = vld [vmem:[%s40103_s11 + $0x70] sm:$0xff] }
0x1075   :  { %36337 = vrsqrt.f32 %v9479_v61  ;;  %v37522_v61 = vld [vmem:[%s40103_s11 + $0x78] sm:$0xff] }
0x107f   :  { %v36338_v24 = vpop.eup %36337 }
0x1080   :  { %v9483_v27 = vmul.f32 %v36338_v24, %v37331_v44  ;;  %v37478_v44 = vld [vmem:[%s40103_s11 + $0x50] sm:$0xff] }
0x1081   :  { %v10551_v21 = vand.u32 4294901760, %v37478_v44 }
0x1082   :  { %v9489_v37 = vmul.f32 %v37339_v16, %v9483_v27  ;;  %v10563_v27 = vand.u32 4294901760, %v37517_v58 }
0x1084   :  { %v9495_v41 = vadd.f32 %v37345_v20, %v9489_v37  ;;  %v10554_v20 = vand.u32 4294901760, %v37483_v46  ;;  %v10566_v37 = vand.u32 4294901760, %v37522_v61 }
0x1086   :  { %v9994_v48 = vsel %vm104_vm2, %v9495_v41, 0  ;;  %v37506_v43 = vpack.c.bf16 %v10554_v20, %v10551_v21  ;;  %v37533_v41 = vpack.c.bf16 %v10566_v37, %v10563_v27 }
0x1087   :  { %v37490_v16 = vand.u32 4294901760, %v9994_v48 }
0x1088   :  { %34885 = vmatpush3.bf16.msra.mxu0 %v37506_v43 }
0x1089   :  { %v10066_v52 = vsub.f32 %v9994_v48, %v37490_v16  ;;  %34886 = vmatprep.subr.bf16.mxu0 %v40148_v14  ;;  %v37548_v48 = vsub.f32 %v37402_v9, %v10530_v7  ;;  %v37566_v9 = vsub.f32 %v37421_v11, %v10536_v19  ;;  %v37582_v7 = vsub.f32 %v37438_v15, %v10542_v39 }
0x108a   :  { %v37600_v11 = vsub.f32 %v37390_v60, %v10524_v63  ;;  %v37606_v15 = vsub.f32 %v37461_v29, %v10548_v40  ;;  %v37617_v60 = vsub.f32 %v37478_v44, %v10551_v21  ;;  %v37620_v63 = vsub.f32 %v37483_v46, %v10554_v20 }
0x108b   :  { %v10067_v4 = vand.u32 4294901760, %v10066_v52  ;;  %v37640_v29 = vsub.f32 %v37497_v42, %v10557_v54  ;;  %v37658_v20 = vsub.f32 %v37517_v58, %v10563_v27  ;;  %v37661_v42 = vsub.f32 %v37522_v61, %v10566_v37 }
0x108c   :  { %34888 = vmatpush3.bf16.msra.mxu0 %v37512_v51  ;;  %v37628_v19 = vpack.c.bf16 %v37620_v63, %v37617_v60  ;;  %v40118_v37 = vand.u32 4294901760, %v37606_v15 }
0x108d   :  { %v10068_v56 = vsub.f32 %v10066_v52, %v10067_v4  ;;  %34889 = vmatprep.subr.bf16.mxu0 %v40148_v14 }
0x108f   :  { %v10069_v24 = vand.u32 4294901760, %v10068_v56 }
0x1090   :  { %34891 = vmatpush3.bf16.msra.mxu0 %v37533_v41 }
0x1091   :  { %32387 = vmatmul.mubr.f32.vlgmr.msra.gmra.mrb[30].mxu1 %v10069_v24  ;;  %34916 = vmatprep.subr.bf16.mxu0 %v40148_v14  ;;  %v40119_v24 = vand.u32 4294901760, %v37582_v7 }
0x1092   :  { %34840 = vmatpush3.bf16.msra.mxu1 %v37318_v25  ;;  %32397 = vmatprep.mubr.msk.f32.mxu1 %vm36438_vm1, %v40150_v22  ;;  %v37543_v25 = vsub.f32 %v37397_v0, %v10527_v5  ;;  %v37561_v0 = vsub.f32 %v37416_v10, %v10533_v17  ;;  %v37577_v5 = vsub.f32 %v37433_v13, %v10539_v6 }
0x1093   :  { %34841 = vmatprep.subr.bf16.mxu1 %v40148_v14  ;;  %v37595_v10 = vsub.f32 %v37385_v59, %v10521_v62  ;;  %v37603_v13 = vsub.f32 %v37456_v28, %v10545_v38  ;;  %v10621_v62 = vand.u32 4294901760, %v37600_v11  ;;  %v37643_v38 = vsub.f32 %v37502_v3, %v10560_v55 }
0x1094   :  { %v40130_v28 = vand.u32 4294901760, %v37543_v25  ;;  %v40128_v3 = vand.u32 4294901760, %v37561_v0  ;;  %v40126_v61 = vand.u32 4294901760, %v37577_v5 }
0x1095   :  { %v37612_v17 = vpack.c.bf16 %v37606_v15, %v37603_v13  ;;  %v10614_v59 = vand.u32 4294901760, %v37595_v10  ;;  %v10622_v39 = vsub.f32 %v37600_v11, %v10621_v62  ;;  %v37648_v46 = vpack.c.bf16 %v37643_v38, %v37640_v29 }
0x1096   :  { %34843 = vmatpush3.bf16.msra.mxu1 %v37320_v30  ;;  %v37556_v30 = vpack.c.bf16 %v37548_v48, %v37543_v25 }
0x1097   :  { %34844 = vmatprep.subr.bf16.mxu1 %v40148_v14  ;;  %v10615_v6 = vsub.f32 %v37595_v10, %v10614_v59  ;;  %v10623_v44 = vand.u32 4294901760, %v10622_v39 }
0x1099   :  { %32398 = vmatmul.mubr.f32.vlgmr.msra.gmra.mrb[30].mxu1 %v37490_v16  ;;  %v10616_v40 = vand.u32 4294901760, %v10615_v6 }
0x109a   :  { %34846 = vmatpush3.bf16.msra.mxu1 %v37322_v18  ;;  %32408 = vmatprep.mubr.msk.f32.mxu1 %vm36438_vm1, %v40150_v22  ;;  %v37572_v18 = vpack.c.bf16 %v37566_v9, %v37561_v0 }
0x109b   :  { %34847 = vmatprep.subr.bf16.mxu1 %v40148_v14  ;;  %v37673_v54 = vpack.c.bf16 %v10623_v44, %v10616_v40  ;;  %v10657_v40 = vsub.f32 %v37577_v5, %v40126_v61  ;;  %v10664_v44 = vsub.f32 %v37582_v7, %v40119_v24 }
0x109e   :  { %34849 = vmatpush3.bf16.msra.mxu1 %v37324_v32  ;;  %v37590_v32 = vpack.c.bf16 %v37582_v7, %v37577_v5 }
0x109f   :  { %34850 = vmatprep.subr.bf16.mxu1 %v40148_v14 }
0x10a1   :  { %32409 = vmatmul.mubr.f32.vlgmr.msra.gmra.mrb[30].mxu1 %v10066_v52  ;;  %v40127_v52 = vand.u32 4294901760, %v37566_v9 }
0x10a2   :  { %34852 = vmatpush3.bf16.msra.mxu1 %v37306_v1  ;;  %32419 = vmatprep.mubr.msk.f32.mxu1 %vm36438_vm1, %v40150_v22 }
0x10a3   :  { %34853 = vmatprep.subr.bf16.mxu1 %v40148_v14  ;;  %v10650_v58 = vsub.f32 %v37566_v9, %v40127_v52 }
0x10a5   :  { %v10651_v39 = vand.u32 4294901760, %v10650_v58  ;;  %v10665_v58 = vand.u32 4294901760, %v10664_v44 }
0x10a6   :  { %34855 = vmatpush3.bf16.msra.mxu1 %v37309_v2 }
0x10a7   :  { %34856 = vmatprep.subr.bf16.mxu1 %v40148_v14 }
0x10a9   :  { %32420 = vmatmul.mubr.f32.vlgmr.msra.gmra.mrb[30].mxu1 %v10067_v4  ;;  %v37671_v4 = vpack.c.bf16 %v37661_v42, %v37658_v20 }
0x10aa   :  { %34858 = vmatpush3.bf16.msra.mxu1 %v37326_v23  ;;  %32430 = vmatprep.mubr.msk.f32.mxu1 %vm36438_vm1, %v40150_v22  ;;  %v40129_v23 = vand.u32 4294901760, %v37548_v48 }
0x10ab   :  { %34859 = vmatprep.subr.bf16.mxu1 %v40148_v14 }
0x10ac   :  { %v10636_v21 = vsub.f32 %v37548_v48, %v40129_v23 }
0x10ae   :  { %34861 = vmatpush3.bf16.msra.mxu1 %v37328_v34  ;;  %v10629_v34 = vsub.f32 %v37543_v25, %v40130_v28  ;;  %v10637_v56 = vand.u32 4294901760, %v10636_v21  ;;  %v40125_v21 = vand.u32 4294901760, %v37617_v60 }
0x10af   :  { %34862 = vmatprep.subr.bf16.mxu1 %v40148_v14 }
0x10b0   :  { %v10630_v55 = vand.u32 4294901760, %v10629_v34  ;;  %v10678_v34 = vsub.f32 %v37606_v15, %v40118_v37 }
0x10b1   :  { %32431 = vmatmul.mubr.f32.vlgmr.msra.gmra.mrb[30].mxu1 %v37490_v16 }
0x10b2   :  { %34864 = vmatpush3.bf16.msra.mxu1 %v37306_v1  ;;  %32441 = vmatprep.mubr.msk.f32.mxu1 %vm36438_vm1, %v40150_v22  ;;  %v10643_v1 = vsub.f32 %v37561_v0, %v40128_v3  ;;  %v37686_v27 = vpack.c.bf16 %v10637_v56, %v10630_v55  ;;  %v40120_v55 = vand.u32 4294901760, %v37620_v63  ;;  %v10679_v36 = vand.u32 4294901760, %v10678_v34 }
0x10b3   :  { %34865 = vmatprep.subr.bf16.mxu1 %v40148_v14 }
0x10b4   :  { %v10644_v6 = vand.u32 4294901760, %v10643_v1  ;;  %v10658_v1 = vand.u32 4294901760, %v10657_v40  ;;  %v10692_v37 = vsub.f32 %v37620_v63, %v40120_v55  ;;  %v40123_v55 = vand.u32 4294901760, %v37661_v42 }
0x10b6   :  { %34867 = vmatpush3.bf16.msra.mxu1 %v37309_v2  ;;  %v40117_v2 = vand.u32 4294901760, %v37603_v13  ;;  %v37709_v56 = vpack.c.bf16 %v10651_v39, %v10644_v6  ;;  %v37719_v24 = vpack.c.bf16 %v10665_v58, %v10658_v1  ;;  %v40122_v6 = vand.u32 4294901760, %v37640_v29 }
0x10b7   :  { %34892 = vmatprep.subr.bf16.mxu1 %v40148_v14  ;;  %v40121_v39 = vand.u32 4294901760, %v37643_v38  ;;  %v40124_v58 = vand.u32 4294901760, %v37658_v20 }
0x10b8   :  { %v10699_v34 = vsub.f32 %v37640_v29, %v40122_v6 }
0x10b9   :  { %32442 = vmatmul.mubr.f32.vlgmr.msra.gmra.mrb[30].mxu1 %v37490_v16  ;;  %v10671_v16 = vsub.f32 %v37603_v13, %v40117_v2  ;;  %v10685_v2 = vsub.f32 %v37617_v60, %v40125_v21  ;;  %v10706_v1 = vsub.f32 %v37643_v38, %v40121_v39  ;;  %v10720_v39 = vsub.f32 %v37661_v42, %v40123_v55 }
0x10ba   :  { %34894 = vmatpush3.bf16.msra.mxu1 %v37673_v54  ;;  %32511 = vmatprep.mubr.msk.f32.mxu1 %vm36438_vm1, %v40150_v22 }
0x10bb   :  { %34895 = vmatprep.subr.bf16.mxu1 %v40148_v14  ;;  %v10672_v49 = vand.u32 4294901760, %v10671_v16  ;;  %v10686_v44 = vand.u32 4294901760, %v10685_v2  ;;  %v10693_v16 = vand.u32 4294901760, %v10692_v37  ;;  %v10707_v2 = vand.u32 4294901760, %v10706_v1  ;;  %v37759_v1 = vld [vmem:[%s40104_s10] ss:$0 sm:$0xff] }
0x10bc   :  { %v10713_v37 = vsub.f32 %v37658_v20, %v40124_v58 }
0x10bd   :  { %v37724_v40 = vpack.c.bf16 %v10679_v36, %v10672_v49  ;;  %v37736_v36 = vpack.c.bf16 %v10693_v16, %v10686_v44  ;;  %v10700_v49 = vand.u32 4294901760, %v10699_v34  ;;  %v10721_v16 = vand.u32 4294901760, %v10720_v39 }
0x10be   :  { %34897 = vmatpush3.bf16.msra.mxu1 %v37686_v27  ;;  %v10714_v44 = vand.u32 4294901760, %v10713_v37 }
0x10bf   :  { %34898 = vmatprep.subr.bf16.mxu1 %v40148_v14  ;;  %v37747_v6 = vpack.c.bf16 %v10707_v2, %v10700_v49 }
0x10c0   :  { %v37751_v34 = vpack.c.bf16 %v10721_v16, %v10714_v44 }
0x10c2   :  { %34900 = vmatpush3.bf16.msra.mxu1 %v37709_v56 }
0x10c3   :  { %34901 = vmatprep.subr.bf16.mxu1 %v40148_v14 }
0x10c6   :  { %34903 = vmatpush3.bf16.msra.mxu1 %v37719_v24 }
0x10c7   :  { %34904 = vmatprep.subr.bf16.mxu1 %v40148_v14 }
0x10ca   :  { %34906 = vmatpush3.bf16.msra.mxu1 %v37724_v40 }
0x10cb   :  { %34907 = vmatprep.subr.bf16.mxu1 %v40148_v14 }
0x10ce   :  { %34909 = vmatpush3.bf16.msra.mxu1 %v37736_v36 }
0x10cf   :  { %34910 = vmatprep.subr.bf16.mxu1 %v40148_v14 }
0x10d2   :  { %34912 = vmatpush3.bf16.msra.mxu1 %v37747_v6 }
0x10d3   :  { %34913 = vmatprep.subr.bf16.mxu1 %v40148_v14 }
0x10d6   :  { %34915 = vmatpush3.bf16.msra.mxu1 %v37751_v34 }
0x10d7   :  { %34940 = vmatprep.subr.bf16.mxu1 %v40148_v14 }
0x10f3   :  { %v9989_v49 = vpop.f32.mrb[30].mxu0 }
0x10f4   :  { %v35734_v39 = vadd.f32 %v37759_v1, %v9989_v49  ;;  %v32377_v2 = vpop.f32.mrb[31].mxu0  ;;  %v40153_v49 = vand.u32 4294901760, %v37548_v48  ;;  %v40156_v48 = vand.u32 4294901760, %v37577_v5  ;;  %v40160_v5 = vand.u32 4294901760, %v37617_v60 }
0x10f5   :  { %v40164_v60 = vand.u32 4294901760, %v37658_v20 }
0x10f6   :  { %v10483_v37 = vmul.f32 0.044715, %v35734_v39  ;;  %v10481_v61 = vmul.f32 0.5, %v35734_v39 }
0x10f8   :  { %v10485_v55 = vmul.f32 %v35734_v39, %v10483_v37 }
0x10fa   :  { %v10487_v58 = vmul.f32 %v35734_v39, %v10485_v55 }
0x10fc   :  { %v10489_v44 = vadd.f32 %v35734_v39, %v10487_v58 }
0x10fe   :  { %v10491_v16 = vmul.f32 0.7978846, %v10489_v44 }
0x1100   :  { %36339 = vtanh.f32 %v10491_v16 }
0x110a   :  { %v36340_v21 = vpop.eup %36339 }
0x110b   :  { %v10495_v52 = vadd.f32 1.0, %v36340_v21  ;;  %v40152_v21 = vand.u32 4294901760, %v37543_v25 }
0x110d   :  { %v10497_v3 = vmul.f32 %v10495_v52, %v10481_v61  ;;  %v37773_v52 = vpack.c.bf16 %v37600_v11, %v37595_v10  ;;  %v37814_v61 = vpack.c.bf16 %v10621_v62, %v10614_v59  ;;  %v37824_v39 = vpack.c.bf16 %v40153_v49, %v40152_v21 }
0x110e   :  { %v40154_v10 = vand.u32 4294901760, %v37561_v0  ;;  %v40155_v11 = vand.u32 4294901760, %v37566_v9  ;;  %v40157_v59 = vand.u32 4294901760, %v37582_v7  ;;  %v40158_v0 = vand.u32 4294901760, %v37603_v13 }
0x110f   :  { %v37762_v23 = vand.u32 4294901760, %v10497_v3  ;;  %v40159_v9 = vand.u32 4294901760, %v37606_v15  ;;  %v40161_v7 = vand.u32 4294901760, %v37620_v63  ;;  %v40162_v13 = vand.u32 4294901760, %v37640_v29 }
0x1110   :  { %v37836_v25 = vpack.c.bf16 %v40155_v11, %v40154_v10  ;;  %v37846_v62 = vpack.c.bf16 %v40157_v59, %v40156_v48  ;;  %v40163_v15 = vand.u32 4294901760, %v37643_v38  ;;  %v40165_v63 = vand.u32 4294901760, %v37661_v42 }
0x1111   :  { %v10602_v28 = vsub.f32 %v10497_v3, %v37762_v23  ;;  %32512 = vmatmul.mubr.f32.vlgmr.msra.gmra.mrb[32].mxu1 %v37762_v23  ;;  %v37866_v2 = vpack.c.bf16 %v40161_v7, %v40160_v5 }
0x1112   :  { %34942 = vmatpush3.bf16.msra.mxu1 %v37408_v50  ;;  %32581 = vmatprep.mubr.msk.f32.mxu1 %vm36438_vm1, %v40150_v22  ;;  %v37876_v37 = vpack.c.bf16 %v40163_v15, %v40162_v13  ;;  %v37886_v44 = vpack.c.bf16 %v40165_v63, %v40164_v60 }
0x1113   :  { %34943 = vmatprep.subr.bf16.mxu1 %v40148_v14  ;;  %v10603_v55 = vand.u32 4294901760, %v10602_v28 }
0x1115   :  { %v10604_v58 = vsub.f32 %v10602_v28, %v10603_v55 }
0x1116   :  { %34945 = vmatpush3.bf16.msra.mxu1 %v37428_v12 }
0x1117   :  { %34946 = vmatprep.subr.bf16.mxu1 %v40148_v14  ;;  %v10605_v3 = vand.u32 4294901760, %v10604_v58 }
0x1119   :  { %32477 = vmatmul.mubr.f32.vlgmr.msra.gmra.mrb[32].mxu0 %v10605_v3 }
0x111a   :  { %34918 = vmatpush3.bf16.msra.mxu0 %v37773_v52  ;;  %34948 = vmatpush3.bf16.msra.mxu1 %v37450_v26 }
0x111b   :  { %34919 = vmatprep.subr.bf16.mxu0 %v40148_v14  ;;  %34949 = vmatprep.subr.bf16.mxu1 %v40148_v14 }
0x111c   :  { %32546 = vmatprep.mubr.msk.f32.mxu0 %vm36438_vm1, %v40150_v22 }
0x111e   :  { %34921 = vmatpush3.bf16.msra.mxu0 %v37556_v30  ;;  %34951 = vmatpush3.bf16.msra.mxu1 %v37468_v35 }
0x111f   :  { %34922 = vmatprep.subr.bf16.mxu0 %v40148_v14  ;;  %34952 = vmatprep.subr.bf16.mxu1 %v40148_v14 }
0x1122   :  { %34924 = vmatpush3.bf16.msra.mxu0 %v37572_v18  ;;  %34954 = vmatpush3.bf16.msra.mxu1 %v37486_v47 }
0x1123   :  { %34925 = vmatprep.subr.bf16.mxu0 %v40148_v14  ;;  %34955 = vmatprep.subr.bf16.mxu1 %v40148_v14 }
0x1126   :  { %34927 = vmatpush3.bf16.msra.mxu0 %v37590_v32  ;;  %34957 = vmatpush3.bf16.msra.mxu1 %v37506_v43 }
0x1127   :  { %34928 = vmatprep.subr.bf16.mxu0 %v40148_v14  ;;  %34958 = vmatprep.subr.bf16.mxu1 %v40148_v14 }
0x112a   :  { %34930 = vmatpush3.bf16.msra.mxu0 %v37612_v17  ;;  %34960 = vmatpush3.bf16.msra.mxu1 %v37512_v51 }
0x112b   :  { %34931 = vmatprep.subr.bf16.mxu0 %v40148_v14  ;;  %34961 = vmatprep.subr.bf16.mxu1 %v40148_v14 }
0x112e   :  { %34933 = vmatpush3.bf16.msra.mxu0 %v37628_v19  ;;  %34963 = vmatpush3.bf16.msra.mxu1 %v37533_v41 }
0x112f   :  { %34934 = vmatprep.subr.bf16.mxu0 %v40148_v14  ;;  %34988 = vmatprep.subr.bf16.mxu1 %v40148_v14 }
0x1131   :  { %32582 = vmatmul.mubr.f32.vlgmr.msra.gmra.mrb[34].mxu1 %v10603_v55 }
0x1132   :  { %34936 = vmatpush3.bf16.msra.mxu0 %v37648_v46  ;;  %34990 = vmatpush3.bf16.msra.mxu1 %v37408_v50 }
0x1133   :  { %34937 = vmatprep.subr.bf16.mxu0 %v40148_v14  ;;  %34991 = vmatprep.subr.bf16.mxu1 %v40148_v14 }
0x1134   :  { %32651 = vmatprep.mubr.msk.f32.mxu1 %vm36438_vm1, %v40150_v22 }
0x1136   :  { %34939 = vmatpush3.bf16.msra.mxu0 %v37671_v4  ;;  %34993 = vmatpush3.bf16.msra.mxu1 %v37428_v12 }
0x1137   :  { %34964 = vmatprep.subr.bf16.mxu0 %v40148_v14  ;;  %34994 = vmatprep.subr.bf16.mxu1 %v40148_v14 }
0x1139   :  { %32547 = vmatmul.mubr.f32.vlgmr.msra.gmra.mrb[34].mxu0 %v10602_v28  ;;  %v37856_v28 = vpack.c.bf16 %v40159_v9, %v40158_v0 }
0x113a   :  { %34966 = vmatpush3.bf16.msra.mxu0 %v37814_v61  ;;  %34996 = vmatpush3.bf16.msra.mxu1 %v37450_v26 }
0x113b   :  { %34967 = vmatprep.subr.bf16.mxu0 %v40148_v14  ;;  %34997 = vmatprep.subr.bf16.mxu1 %v40148_v14 }
0x113c   :  { %32616 = vmatprep.mubr.msk.f32.mxu0 %vm36438_vm1, %v40150_v22 }
0x113e   :  { %34969 = vmatpush3.bf16.msra.mxu0 %v37824_v39  ;;  %34999 = vmatpush3.bf16.msra.mxu1 %v37468_v35 }
0x113f   :  { %34970 = vmatprep.subr.bf16.mxu0 %v40148_v14  ;;  %35000 = vmatprep.subr.bf16.mxu1 %v40148_v14 }
0x1142   :  { %34972 = vmatpush3.bf16.msra.mxu0 %v37836_v25  ;;  %35002 = vmatpush3.bf16.msra.mxu1 %v37486_v47 }
0x1143   :  { %34973 = vmatprep.subr.bf16.mxu0 %v40148_v14  ;;  %35003 = vmatprep.subr.bf16.mxu1 %v40148_v14 }
0x1146   :  { %34975 = vmatpush3.bf16.msra.mxu0 %v37846_v62  ;;  %35005 = vmatpush3.bf16.msra.mxu1 %v37506_v43 }
0x1147   :  { %34976 = vmatprep.subr.bf16.mxu0 %v40148_v14  ;;  %35006 = vmatprep.subr.bf16.mxu1 %v40148_v14 }
0x114a   :  { %34978 = vmatpush3.bf16.msra.mxu0 %v37856_v28  ;;  %35008 = vmatpush3.bf16.msra.mxu1 %v37512_v51 }
0x114b   :  { %34979 = vmatprep.subr.bf16.mxu0 %v40148_v14  ;;  %35009 = vmatprep.subr.bf16.mxu1 %v40148_v14 }
0x114e   :  { %34981 = vmatpush3.bf16.msra.mxu0 %v37866_v2  ;;  %35011 = vmatpush3.bf16.msra.mxu1 %v37533_v41 }
0x114f   :  { %34982 = vmatprep.subr.bf16.mxu0 %v40148_v14  ;;  %35036 = vmatprep.subr.bf16.mxu1 %v40148_v14 }
0x1151   :  { %32652 = vmatmul.mubr.f32.vlgmr.msra.gmra.mrb[36].mxu1 %v37762_v23 }
0x1152   :  { %34984 = vmatpush3.bf16.msra.mxu0 %v37876_v37  ;;  %35038 = vmatpush3.bf16.msra.mxu1 %v37673_v54 }
0x1153   :  { %34985 = vmatprep.subr.bf16.mxu0 %v40148_v14  ;;  %35039 = vmatprep.subr.bf16.mxu1 %v40148_v14 }
0x1154   :  { %32721 = vmatprep.mubr.msk.f32.mxu1 %vm36438_vm1, %v40150_v22 }
0x1156   :  { %34987 = vmatpush3.bf16.msra.mxu0 %v37886_v44  ;;  %35041 = vmatpush3.bf16.msra.mxu1 %v37686_v27 }
0x1157   :  { %35012 = vmatprep.subr.bf16.mxu0 %v40148_v14  ;;  %35042 = vmatprep.subr.bf16.mxu1 %v40148_v14 }
0x1159   :  { %32617 = vmatmul.mubr.f32.vlgmr.msra.gmra.mrb[36].mxu0 %v37762_v23 }
0x115a   :  { %35014 = vmatpush3.bf16.msra.mxu0 %v37408_v50  ;;  %35044 = vmatpush3.bf16.msra.mxu1 %v37709_v56 }
0x115b   :  { %35015 = vmatprep.subr.bf16.mxu0 %v40148_v14  ;;  %35045 = vmatprep.subr.bf16.mxu1 %v40148_v14 }
0x115c   :  { %32686 = vmatprep.mubr.msk.f32.mxu0 %vm36438_vm1, %v40150_v22 }
0x115e   :  { %35017 = vmatpush3.bf16.msra.mxu0 %v37428_v12  ;;  %35047 = vmatpush3.bf16.msra.mxu1 %v37719_v24 }
0x115f   :  { %35018 = vmatprep.subr.bf16.mxu0 %v40148_v14  ;;  %35048 = vmatprep.subr.bf16.mxu1 %v40148_v14 }
0x1162   :  { %35020 = vmatpush3.bf16.msra.mxu0 %v37450_v26  ;;  %35050 = vmatpush3.bf16.msra.mxu1 %v37724_v40 }
0x1163   :  { %35021 = vmatprep.subr.bf16.mxu0 %v40148_v14  ;;  %35051 = vmatprep.subr.bf16.mxu1 %v40148_v14 }
0x1166   :  { %35023 = vmatpush3.bf16.msra.mxu0 %v37468_v35  ;;  %35053 = vmatpush3.bf16.msra.mxu1 %v37736_v36 }
0x1167   :  { %35024 = vmatprep.subr.bf16.mxu0 %v40148_v14  ;;  %35054 = vmatprep.subr.bf16.mxu1 %v40148_v14 }
0x116a   :  { %35026 = vmatpush3.bf16.msra.mxu0 %v37486_v47  ;;  %35056 = vmatpush3.bf16.msra.mxu1 %v37747_v6 }
0x116b   :  { %35027 = vmatprep.subr.bf16.mxu0 %v40148_v14  ;;  %35057 = vmatprep.subr.bf16.mxu1 %v40148_v14 }
0x116e   :  { %35029 = vmatpush3.bf16.msra.mxu0 %v37506_v43  ;;  %35059 = vmatpush3.bf16.msra.mxu1 %v37751_v34 }
0x116f   :  { %35030 = vmatprep.subr.bf16.mxu0 %v40148_v14  ;;  %35084 = vmatprep.subr.bf16.mxu1 %v40148_v14 }
0x1172   :  { %35032 = vmatpush3.bf16.msra.mxu0 %v37512_v51 }
0x1173   :  { %35033 = vmatprep.subr.bf16.mxu0 %v40148_v14 }
0x1176   :  { %35035 = vmatpush3.bf16.msra.mxu0 %v37533_v41 }
0x1177   :  { %35060 = vmatprep.subr.bf16.mxu0 %v40148_v14 }
0x118c   :  { %v10477_v23 = vpop.f32.mrb[30].mxu1 }
0x118d   :  { %v35735_v29 = vadd.f32 %v37759_v1, %v10477_v23  ;;  %v32443_v38 = vpop.f32.mrb[31].mxu1 }
0x118f   :  { %v10484_v20 = vmul.f32 0.044715, %v35735_v29  ;;  %v10482_v6 = vmul.f32 0.5, %v35735_v29 }
0x1191   :  { %v10486_v42 = vmul.f32 %v35735_v29, %v10484_v20 }
0x1193   :  { %v10488_v54 = vmul.f32 %v35735_v29, %v10486_v42 }
0x1195   :  { %v10490_v24 = vadd.f32 %v35735_v29, %v10488_v54 }
0x1197   :  { %v10492_v27 = vmul.f32 0.7978846, %v10490_v24  ;;  %v30171_v24 = vld [vmem:[%s40094_s3 + $0x20] sm:$0xff] }
0x1199   :  { %36341 = vtanh.f32 %v10492_v27  ;;  %v30172_v27 = vld [vmem:[%s40094_s3 + $0x28] sm:$0xff] }
0x11a3   :  { %v36342_v56 = vpop.eup %36341 }
0x11a4   :  { %v10496_v40 = vadd.f32 1.0, %v36342_v56  ;;  %v30173_v56 = vld [vmem:[%s40094_s3 + $0x30] sm:$0xff] }
0x11a6   :  { %v10498_v36 = vmul.f32 %v10496_v40, %v10482_v6  ;;  %v11872_v6 = vand.u32 4294901760, %v30171_v24  ;;  %v11875_v40 = vand.u32 4294901760, %v30172_v27 }
0x11a8   :  { %v37929_v34 = vand.u32 4294901760, %v10498_v36 }
0x11aa   :  { %v11243_v16 = vsub.f32 %v10498_v36, %v37929_v34  ;;  %32722 = vmatmul.mubr.f32.vlgmr.msra.gmra.mrb[38].mxu1 %v37929_v34  ;;  %v11878_v36 = vand.u32 4294901760, %v30173_v56 }
0x11ab   :  { %35086 = vmatpush3.bf16.msra.mxu1 %v37408_v50  ;;  %32791 = vmatprep.mubr.msk.f32.mxu1 %vm36438_vm1, %v40150_v22 }
0x11ac   :  { %35087 = vmatprep.subr.bf16.mxu1 %v40148_v14  ;;  %v11244_v1 = vand.u32 4294901760, %v11243_v16 }
0x11ae   :  { %v11245_v55 = vsub.f32 %v11243_v16, %v11244_v1 }
0x11af   :  { %35089 = vmatpush3.bf16.msra.mxu1 %v37428_v12 }
0x11b0   :  { %35090 = vmatprep.subr.bf16.mxu1 %v40148_v14  ;;  %v11246_v58 = vand.u32 4294901760, %v11245_v55  ;;  %v11952_v55 = vsub.f32 %v30171_v24, %v11872_v6 }
0x11b2   :  { %32687 = vmatmul.mubr.f32.vlgmr.msra.gmra.mrb[38].mxu0 %v11246_v58  ;;  %v11959_v58 = vsub.f32 %v30172_v27, %v11875_v40 }
0x11b3   :  { %35062 = vmatpush3.bf16.msra.mxu0 %v37773_v52  ;;  %35092 = vmatpush3.bf16.msra.mxu1 %v37450_v26 }
0x11b4   :  { %35063 = vmatprep.subr.bf16.mxu0 %v40148_v14  ;;  %35093 = vmatprep.subr.bf16.mxu1 %v40148_v14 }
0x11b5   :  { %32756 = vmatprep.mubr.msk.f32.mxu0 %vm36438_vm1, %v40150_v22 }
0x11b7   :  { %35065 = vmatpush3.bf16.msra.mxu0 %v37556_v30  ;;  %35095 = vmatpush3.bf16.msra.mxu1 %v37468_v35 }
0x11b8   :  { %35066 = vmatprep.subr.bf16.mxu0 %v40148_v14  ;;  %35096 = vmatprep.subr.bf16.mxu1 %v40148_v14 }
0x11bb   :  { %35068 = vmatpush3.bf16.msra.mxu0 %v37572_v18  ;;  %35098 = vmatpush3.bf16.msra.mxu1 %v37486_v47 }
0x11bc   :  { %35069 = vmatprep.subr.bf16.mxu0 %v40148_v14  ;;  %35099 = vmatprep.subr.bf16.mxu1 %v40148_v14 }
0x11bf   :  { %35071 = vmatpush3.bf16.msra.mxu0 %v37590_v32  ;;  %35101 = vmatpush3.bf16.msra.mxu1 %v37506_v43 }
0x11c0   :  { %35072 = vmatprep.subr.bf16.mxu0 %v40148_v14  ;;  %35102 = vmatprep.subr.bf16.mxu1 %v40148_v14 }
0x11c3   :  { %35074 = vmatpush3.bf16.msra.mxu0 %v37612_v17  ;;  %35104 = vmatpush3.bf16.msra.mxu1 %v37512_v51 }
0x11c4   :  { %35075 = vmatprep.subr.bf16.mxu0 %v40148_v14  ;;  %35105 = vmatprep.subr.bf16.mxu1 %v40148_v14 }
0x11c7   :  { %35077 = vmatpush3.bf16.msra.mxu0 %v37628_v19  ;;  %35107 = vmatpush3.bf16.msra.mxu1 %v37533_v41 }
0x11c8   :  { %35078 = vmatprep.subr.bf16.mxu0 %v40148_v14  ;;  %35132 = vmatprep.subr.bf16.mxu1 %v40148_v14 }
0x11ca   :  { %32792 = vmatmul.mubr.f32.vlgmr.msra.gmra.mrb[40].mxu1 %v11244_v1 }
0x11cb   :  { %35080 = vmatpush3.bf16.msra.mxu0 %v37648_v46  ;;  %35134 = vmatpush3.bf16.msra.mxu1 %v37408_v50 }
0x11cc   :  { %35081 = vmatprep.subr.bf16.mxu0 %v40148_v14  ;;  %35135 = vmatprep.subr.bf16.mxu1 %v40148_v14 }
0x11cd   :  { %32861 = vmatprep.mubr.msk.f32.mxu1 %vm36438_vm1, %v40150_v22 }
0x11cf   :  { %35083 = vmatpush3.bf16.msra.mxu0 %v37671_v4  ;;  %35137 = vmatpush3.bf16.msra.mxu1 %v37428_v12 }
0x11d0   :  { %35108 = vmatprep.subr.bf16.mxu0 %v40148_v14  ;;  %35138 = vmatprep.subr.bf16.mxu1 %v40148_v14 }
0x11d2   :  { %32757 = vmatmul.mubr.f32.vlgmr.msra.gmra.mrb[40].mxu0 %v11243_v16  ;;  %v38042_v16 = vpack.c.bf16 %v11875_v40, %v11872_v6 }
0x11d3   :  { %35110 = vmatpush3.bf16.msra.mxu0 %v37814_v61  ;;  %35140 = vmatpush3.bf16.msra.mxu1 %v37450_v26  ;;  %v30168_v26 = vld [vmem:[%s40105_s12] ss:$0 sm:$0xff] }
0x11d4   :  { %35111 = vmatprep.subr.bf16.mxu0 %v40148_v14  ;;  %35141 = vmatprep.subr.bf16.mxu1 %v40148_v14 }
0x11d5   :  { %32826 = vmatprep.mubr.msk.f32.mxu0 %vm36438_vm1, %v40150_v22 }
0x11d7   :  { %35113 = vmatpush3.bf16.msra.mxu0 %v37824_v39  ;;  %35143 = vmatpush3.bf16.msra.mxu1 %v37468_v35 }
0x11d8   :  { %35114 = vmatprep.subr.bf16.mxu0 %v40148_v14  ;;  %35144 = vmatprep.subr.bf16.mxu1 %v40148_v14 }
0x11db   :  { %35116 = vmatpush3.bf16.msra.mxu0 %v37836_v25  ;;  %35146 = vmatpush3.bf16.msra.mxu1 %v37486_v47 }
0x11dc   :  { %35117 = vmatprep.subr.bf16.mxu0 %v40148_v14  ;;  %35147 = vmatprep.subr.bf16.mxu1 %v40148_v14 }
0x11df   :  { %35119 = vmatpush3.bf16.msra.mxu0 %v37846_v62  ;;  %35149 = vmatpush3.bf16.msra.mxu1 %v37506_v43 }
0x11e0   :  { %35120 = vmatprep.subr.bf16.mxu0 %v40148_v14  ;;  %35150 = vmatprep.subr.bf16.mxu1 %v40148_v14 }
0x11e3   :  { %35122 = vmatpush3.bf16.msra.mxu0 %v37856_v28  ;;  %35152 = vmatpush3.bf16.msra.mxu1 %v37512_v51 }
0x11e4   :  { %v10758_v50 = vpop.f32.mrb[32].mxu1  ;;  %35123 = vmatprep.subr.bf16.mxu0 %v40148_v14  ;;  %35153 = vmatprep.subr.bf16.mxu1 %v40148_v14 }
0x11e5   :  { %v32513_v12 = vpop.f32.mrb[33].mxu1 }
0x11e6   :  { %v11960_v12 = vand.u32 4294901760, %v11959_v58 }
0x11e7   :  { %35125 = vmatpush3.bf16.msra.mxu0 %v37866_v2  ;;  %35155 = vmatpush3.bf16.msra.mxu1 %v37533_v41 }
0x11e8   :  { %35126 = vmatprep.subr.bf16.mxu0 %v40148_v14  ;;  %35192 = vmatprep.subr.bf16.mxu1 %v40148_v14 }
0x11ea   :  { %32862 = vmatmul.mubr.f32.vlgmr.msra.gmra.mrb[42].mxu1 %v37929_v34 }
0x11eb   :  { %35128 = vmatpush3.bf16.msra.mxu0 %v37876_v37  ;;  %32938 = vmatprep.mubr.msk.f32.mxu1 %vm36438_vm1, %v40150_v22 }
0x11ec   :  { %v10607_v35 = vpop.f32.mrb[32].mxu0  ;;  %35129 = vmatprep.subr.bf16.mxu0 %v40148_v14  ;;  %35194 = vmatpush3.bf16.msra.mxu1 %v38042_v16 }
0x11ed   :  { %v10608_v47 = vadd.f32 %v30168_v26, %v10607_v35  ;;  %v32478_v43 = vpop.f32.mrb[33].mxu0  ;;  %35195 = vmatprep.subr.bf16.mxu1 %v40148_v14  ;;  %v11961_v35 = vsub.f32 %v11959_v58, %v11960_v12 }
0x11ef   :  { %35131 = vmatpush3.bf16.msra.mxu0 %v37886_v44  ;;  %v10759_v51 = vadd.f32 %v10758_v50, %v10608_v47  ;;  %v11953_v50 = vand.u32 4294901760, %v11952_v55  ;;  %v11966_v47 = vsub.f32 %v30173_v56, %v11878_v36 }
0x11f0   :  { %35156 = vmatprep.subr.bf16.mxu0 %v40148_v14 }
0x11f2   :  { %32827 = vmatmul.mubr.f32.vlgmr.msra.gmra.mrb[42].mxu0 %v37929_v34 }
0x11f3   :  { %32872 = vmatprep.mubr.msk.f32.mxu0 %vm36438_vm1, %v40150_v22  ;;  %35158 = vmatpush3.bf16.msra.mxu0 %v38042_v16 }
0x11f4   :  { %35159 = vmatprep.subr.bf16.mxu0 %v40148_v14 }
0x1204   :  { %v10951_v41 = vpop.f32.mrb[34].mxu1 }
0x1205   :  { %v32583_v30 = vpop.f32.mrb[35].mxu1 }
0x1206   :  { %v11967_v30 = vand.u32 4294901760, %v11966_v47 }
0x120c   :  { %v10862_v18 = vpop.f32.mrb[34].mxu0 }
0x120d   :  { %v10863_v32 = vadd.f32 %v10862_v18, %v10759_v51  ;;  %v32548_v17 = vpop.f32.mrb[35].mxu0 }
0x120e   :  { %v11968_v17 = vsub.f32 %v11966_v47, %v11967_v30 }
0x120f   :  { %v10952_v19 = vadd.f32 %v10951_v41, %v10863_v32  ;;  %v11962_v41 = vand.u32 4294901760, %v11961_v35 }
0x1224   :  { %v11157_v46 = vpop.f32.mrb[36].mxu1 }
0x1225   :  { %v32653_v4 = vpop.f32.mrb[37].mxu1 }
0x122c   :  { %v11070_v52 = vpop.f32.mrb[36].mxu0 }
0x122d   :  { %v11071_v3 = vadd.f32 %v11070_v52, %v10952_v19  ;;  %v32618_v61 = vpop.f32.mrb[37].mxu0 }
0x122f   :  { %v11158_v21 = vadd.f32 %v11157_v46, %v11071_v3  ;;  %v11969_v46 = vand.u32 4294901760, %v11968_v17  ;;  %v38058_v3 = vpack.c.bf16 %v11959_v58, %v11952_v55  ;;  %v30175_v58 = vld [vmem:[%s40097_s4 + $0x1] ss:$0 sm:$0xff] }
0x1231   :  { %v38015_v49 = vadd.f32 %v11158_v21, %v37277_v31  ;;  %v38062_v21 = vpack.c.bf16 %v11960_v12, %v11953_v50 }
0x1233   :  { %v11820_v39 = vsel %vm55_vm0, %v38015_v49, 0.0 }
0x1234   :  { %11821 = vadd.xlane.f32.xlu0 %v11820_v39 }
0x127d   :  { %v11399_v10 = vpop.f32.mrb[38].mxu1 }
0x127e   :  { %v32723_v11 = vpop.f32.mrb[39].mxu1 }
0x1285   :  { %v11248_v25 = vpop.f32.mrb[38].mxu0 }
0x1286   :  { %v11249_v48 = vadd.f32 %v30168_v26, %v11248_v25  ;;  %v32688_v59 = vpop.f32.mrb[39].mxu0  ;;  %v11954_v26 = vsub.f32 %v11952_v55, %v11953_v50 }
0x1288   :  { %v11400_v62 = vadd.f32 %v11399_v10, %v11249_v48  ;;  %v11955_v51 = vand.u32 4294901760, %v11954_v26 }
0x128a   :  { %v38054_v32 = vpack.c.bf16 %v11962_v41, %v11955_v51 }
0x129d   :  { %v11592_v0 = vpop.f32.mrb[40].mxu1 }
0x129e   :  { %v32793_v9 = vpop.f32.mrb[41].mxu1 }
0x12a5   :  { %v11503_v28 = vpop.f32.mrb[40].mxu0 }
0x12a6   :  { %v11504_v5 = vadd.f32 %v11503_v28, %v11400_v62  ;;  %v32758_v7 = vpop.f32.mrb[41].mxu0 }
0x12a8   :  { %v11593_v2 = vadd.f32 %v11592_v0, %v11504_v5  ;;  %v30169_v5 = vld [vmem:[%s40095_s1 + $0x1] ss:$0 sm:$0xff] }
0x12bd   :  { %v11798_v13 = vpop.f32.mrb[42].mxu1 }
0x12be   :  { %v32863_v15 = vpop.f32.mrb[43].mxu1 }
0x12c1   :  { %v11822_v31 = vpop.xlane.xlu0 %11821 }
0x12c2   :  { %v11826_v37 = vmul.f32 0.03125, %v11822_v31 }
0x12c4   :  { %v38020_v60 = vsub.f32 %v38015_v49, %v11826_v37 }
0x12c5   :  { %v11711_v63 = vpop.f32.mrb[42].mxu0 }
0x12c6   :  { %v11712_v44 = vadd.f32 %v11711_v63, %v11593_v2  ;;  %v32828_v23 = vpop.f32.mrb[43].mxu0  ;;  %v11830_v29 = vmul.f32 %v38020_v60, %v38020_v60  ;;  %v30170_v2 = vld [vmem:[%s40096_s2 + $0x1] ss:$0 sm:$0xff] }
0x12c8   :  { %v11799_v38 = vadd.f32 %v11798_v13, %v11712_v44  ;;  %v11832_v20 = vsel %vm55_vm0, %v11830_v29, 0.0 }
0x12c9   :  { %11833 = vadd.xlane.f32.xlu1 %v11832_v20 }
0x12ca   :  { %v38026_v42 = vadd.f32 %v11799_v38, %v37290_v57  ;;  %v30174_v57 = vld [vmem:[%s40094_s3 + $0x38] sm:$0xff] }
0x12cb   :  { %v11881_v34 = vand.u32 4294901760, %v30174_v57 }
0x12cc   :  { %v11823_v54 = vsel %vm55_vm0, %v38026_v42, 0.0 }
0x12cd   :  { %11824 = vadd.xlane.f32.xlu0 %v11823_v54  ;;  %v38045_v1 = vpack.c.bf16 %v11881_v34, %v11878_v36  ;;  %v11973_v43 = vsub.f32 %v30174_v57, %v11881_v34 }
0x12cf   :  { %35161 = vmatpush3.bf16.msra.mxu0 %v38045_v1  ;;  %35197 = vmatpush3.bf16.msra.mxu1 %v38045_v1  ;;  %v11974_v18 = vand.u32 4294901760, %v11973_v43  ;;  %v38060_v61 = vpack.c.bf16 %v11973_v43, %v11966_v47 }
0x12d0   :  { %35162 = vmatprep.subr.bf16.mxu0 %v40148_v14  ;;  %35198 = vmatprep.subr.bf16.mxu1 %v40148_v14 }
0x12d1   :  { %v11975_v19 = vsub.f32 %v11973_v43, %v11974_v18  ;;  %v38064_v39 = vpack.c.bf16 %v11974_v18, %v11967_v30 }
0x12d3   :  { %v11976_v4 = vand.u32 4294901760, %v11975_v19 }
0x12d5   :  { %v38056_v52 = vpack.c.bf16 %v11976_v4, %v11969_v46 }
0x1356   :  { %v11834_v10 = vpop.xlane.xlu1 %11833 }
0x1357   :  { %v11838_v11 = vmul.f32 0.03125, %v11834_v10 }
0x1359   :  { %v11840_v25 = vadd.f32 1e-06, %v11838_v11 }
0x135a   :  { %v11825_v48 = vpop.xlane.xlu0 %11824 }
0x135b   :  { %36343 = vrsqrt.f32 %v11840_v25  ;;  %v11827_v59 = vmul.f32 0.03125, %v11825_v48 }
0x135d   :  { %v11829_v62 = vsub.f32 %v38026_v42, %v11827_v59 }
0x135f   :  { %v11831_v0 = vmul.f32 %v11829_v62, %v11829_v62 }
0x1361   :  { %v11835_v9 = vsel %vm55_vm0, %v11831_v0, 0.0 }
0x1362   :  { %11836 = vadd.xlane.f32.xlu1 %v11835_v9 }
0x1365   :  { %v36344_v28 = vpop.eup %36343 }
0x1366   :  { %v11844_v7 = vmul.f32 %v36344_v28, %v38020_v60 }
0x1368   :  { %v11850_v13 = vmul.f32 %v30169_v5, %v11844_v7 }
0x136a   :  { %v11856_v15 = vadd.f32 %v30170_v2, %v11850_v13 }
0x136c   :  { %v11869_v31 = vsel %vm104_vm2, %v11856_v15, 0 }
0x136d   :  { %v11940_v37 = vand.u32 4294901760, %v11869_v31 }
0x136f   :  { %v11941_v63 = vsub.f32 %v11869_v31, %v11940_v37 }
0x1371   :  { %v11942_v44 = vand.u32 4294901760, %v11941_v63 }
0x1373   :  { %v11943_v23 = vsub.f32 %v11941_v63, %v11942_v44 }
0x1375   :  { %v11944_v29 = vand.u32 4294901760, %v11943_v23 }
0x1377   :  { %32873 = vmatmul.mubr.f32.vlgmr.msra.gmra.mrb[44].mxu0 %v11944_v29 }
0x1378   :  { %35164 = vmatpush3.bf16.msra.mxu0 %v38054_v32  ;;  %32883 = vmatprep.mubr.msk.f32.mxu0 %vm36438_vm1, %v40150_v22 }
0x1379   :  { %35165 = vmatprep.subr.bf16.mxu0 %v40148_v14 }
0x137c   :  { %35167 = vmatpush3.bf16.msra.mxu0 %v38056_v52 }
0x137d   :  { %35168 = vmatprep.subr.bf16.mxu0 %v40148_v14 }
0x137f   :  { %32884 = vmatmul.mubr.f32.vlgmr.msra.gmra.mrb[44].mxu0 %v11940_v37 }
0x1380   :  { %35170 = vmatpush3.bf16.msra.mxu0 %v38058_v3  ;;  %32894 = vmatprep.mubr.msk.f32.mxu0 %vm36438_vm1, %v40150_v22 }
0x1381   :  { %35171 = vmatprep.subr.bf16.mxu0 %v40148_v14 }
0x1384   :  { %35173 = vmatpush3.bf16.msra.mxu0 %v38060_v61 }
0x1385   :  { %35174 = vmatprep.subr.bf16.mxu0 %v40148_v14 }
0x1387   :  { %32895 = vmatmul.mubr.f32.vlgmr.msra.gmra.mrb[44].mxu0 %v11941_v63 }
0x1388   :  { %35176 = vmatpush3.bf16.msra.mxu0 %v38042_v16  ;;  %32905 = vmatprep.mubr.msk.f32.mxu0 %vm36438_vm1, %v40150_v22 }
0x1389   :  { %35177 = vmatprep.subr.bf16.mxu0 %v40148_v14 }
0x138c   :  { %35179 = vmatpush3.bf16.msra.mxu0 %v38045_v1 }
0x138d   :  { %35180 = vmatprep.subr.bf16.mxu0 %v40148_v14 }
0x138f   :  { %32906 = vmatmul.mubr.f32.vlgmr.msra.gmra.mrb[44].mxu0 %v11942_v44 }
0x1390   :  { %35182 = vmatpush3.bf16.msra.mxu0 %v38062_v21  ;;  %32916 = vmatprep.mubr.msk.f32.mxu0 %vm36438_vm1, %v40150_v22 }
0x1391   :  { %35183 = vmatprep.subr.bf16.mxu0 %v40148_v14 }
0x1394   :  { %35185 = vmatpush3.bf16.msra.mxu0 %v38064_v39 }
0x1395   :  { %35186 = vmatprep.subr.bf16.mxu0 %v40148_v14 }
0x1397   :  { %32917 = vmatmul.mubr.f32.vlgmr.msra.gmra.mrb[44].mxu0 %v11940_v37 }
0x1398   :  { %35188 = vmatpush3.bf16.msra.mxu0 %v38042_v16  ;;  %32927 = vmatprep.mubr.msk.f32.mxu0 %vm36438_vm1, %v40150_v22 }
0x1399   :  { %35189 = vmatprep.subr.bf16.mxu0 %v40148_v14 }
0x139c   :  { %35191 = vmatpush3.bf16.msra.mxu0 %v38045_v1 }
0x139d   :  { %32996 = vmatprep.subr.mxu0 %v40150_v22 }
0x139f   :  { %32928 = vmatmul.mubr.f32.vlgmr.msra.gmra.mrb[44].mxu0 %v11940_v37 }
0x13a0   :  { %32998 = vmatprep.mubr.msk.f32.mxu0 %vm36438_vm1, %v40150_v22 }
0x13ef   :  { %v11837_v60 = vpop.xlane.xlu1 %11836 }
0x13f0   :  { %v11839_v38 = vmul.f32 0.03125, %v11837_v60 }
0x13f2   :  { %v11841_v20 = vadd.f32 1e-06, %v11839_v38 }
0x13f4   :  { %36345 = vrsqrt.f32 %v11841_v20 }
0x13fe   :  { %v36346_v54 = vpop.eup %36345 }
0x13ff   :  { %v11845_v24 = vmul.f32 %v36346_v54, %v11829_v62 }
0x1401   :  { %v11851_v27 = vmul.f32 %v30169_v5, %v11845_v24 }
0x1403   :  { %v11857_v56 = vadd.f32 %v30170_v2, %v11851_v27 }
0x1405   :  { %v12357_v6 = vsel %vm104_vm2, %v11857_v56, 0 }
0x1406   :  { %v12428_v40 = vand.u32 4294901760, %v12357_v6 }
0x1408   :  { %v12429_v57 = vsub.f32 %v12357_v6, %v12428_v40 }
0x140a   :  { %v12430_v36 = vand.u32 4294901760, %v12429_v57 }
0x140c   :  { %v12431_v34 = vsub.f32 %v12429_v57, %v12430_v36 }
0x140e   :  { %v12432_v55 = vand.u32 4294901760, %v12431_v34 }
0x1410   :  { %32939 = vmatmul.mubr.f32.vlgmr.msra.gmra.mrb[44].mxu1 %v12432_v55 }
0x1411   :  { %35200 = vmatpush3.bf16.msra.mxu1 %v38054_v32  ;;  %32949 = vmatprep.mubr.msk.f32.mxu1 %vm36438_vm1, %v40150_v22 }
0x1412   :  { %35201 = vmatprep.subr.bf16.mxu1 %v40148_v14 }
0x1415   :  { %35203 = vmatpush3.bf16.msra.mxu1 %v38056_v52 }
0x1416   :  { %35204 = vmatprep.subr.bf16.mxu1 %v40148_v14 }
0x1418   :  { %32950 = vmatmul.mubr.f32.vlgmr.msra.gmra.mrb[44].mxu1 %v12428_v40 }
0x1419   :  { %35206 = vmatpush3.bf16.msra.mxu1 %v38058_v3  ;;  %32960 = vmatprep.mubr.msk.f32.mxu1 %vm36438_vm1, %v40150_v22 }
0x141a   :  { %35207 = vmatprep.subr.bf16.mxu1 %v40148_v14 }
0x141d   :  { %35209 = vmatpush3.bf16.msra.mxu1 %v38060_v61 }
0x141e   :  { %35210 = vmatprep.subr.bf16.mxu1 %v40148_v14 }
0x1420   :  { %32961 = vmatmul.mubr.f32.vlgmr.msra.gmra.mrb[44].mxu1 %v12429_v57 }
0x1421   :  { %35212 = vmatpush3.bf16.msra.mxu1 %v38042_v16  ;;  %32971 = vmatprep.mubr.msk.f32.mxu1 %vm36438_vm1, %v40150_v22 }
0x1422   :  { %35213 = vmatprep.subr.bf16.mxu1 %v40148_v14 }
0x1425   :  { %35215 = vmatpush3.bf16.msra.mxu1 %v38045_v1 }
0x1426   :  { %35216 = vmatprep.subr.bf16.mxu1 %v40148_v14 }
0x1428   :  { %32972 = vmatmul.mubr.f32.vlgmr.msra.gmra.mrb[44].mxu1 %v12430_v36 }
0x1429   :  { %35218 = vmatpush3.bf16.msra.mxu1 %v38062_v21  ;;  %32982 = vmatprep.mubr.msk.f32.mxu1 %vm36438_vm1, %v40150_v22 }
0x142a   :  { %35219 = vmatprep.subr.bf16.mxu1 %v40148_v14 }
0x142d   :  { %35221 = vmatpush3.bf16.msra.mxu1 %v38064_v39 }
0x142e   :  { %35222 = vmatprep.subr.bf16.mxu1 %v40148_v14 }
0x1430   :  { %32983 = vmatmul.mubr.f32.vlgmr.msra.gmra.mrb[44].mxu1 %v12428_v40 }
0x1431   :  { %35224 = vmatpush3.bf16.msra.mxu1 %v38042_v16  ;;  %32993 = vmatprep.mubr.msk.f32.mxu1 %vm36438_vm1, %v40150_v22 }
0x1432   :  { %35225 = vmatprep.subr.bf16.mxu1 %v40148_v14 }
0x1435   :  { %35227 = vmatpush3.bf16.msra.mxu1 %v38045_v1 }
0x1436   :  { %33026 = vmatprep.subr.mxu1 %v40150_v22 }
0x1438   :  { %32994 = vmatmul.mubr.f32.vlgmr.msra.gmra.mrb[44].mxu1 %v12428_v40 }
0x1439   :  { %33028 = vmatprep.mubr.msk.f32.mxu1 %vm36438_vm1, %v40150_v22 }
0x1472   :  { %v12352_v50 = vpop.f32.mrb[44].mxu0 }
0x1473   :  { %v38144_v12 = vadd.f32 %v30175_v58, %v12352_v50  ;;  %v32929_v16 = vpop.f32.mrb[45].mxu0 }
0x1475   :  { %12847 = vrot.lane.b32.xlu0 %v38144_v12, %s36440_s26  ;;  %v38149_v26 = vmul.f32 0.35355338, %v38144_v12 }
0x1477   :  { %v12850_v1 = vsel %vm1086_vm3, %v38149_v26, 0 }
0x1478   :  { %v12920_v35 = vand.u32 4294901760, %v12850_v1 }
0x147a   :  { %v12921_v47 = vsub.f32 %v12850_v1, %v12920_v35 }
0x147c   :  { %v12922_v43 = vand.u32 4294901760, %v12921_v47 }
0x147e   :  { %v12923_v30 = vsub.f32 %v12921_v47, %v12922_v43 }
0x1480   :  { %v12924_v17 = vand.u32 4294901760, %v12923_v30 }
0x14e7   :  { %v12848_v51 = vpop.permute.xlu0 %12847 }
0x14e8   :  { %v12852_v41 = vsel %vm1086_vm3, %v12848_v51, 0 }
0x14e9   :  { %v12855_v18 = vand.u32 4294901760, %v12852_v41 }
0x14eb   :  { %v12932_v32 = vsub.f32 %v12852_v41, %v12855_v18  ;;  %32997 = vmatpush3.xpose.msra.mxu0 %v12855_v18 }
0x14ec   :  { %33001 = vmatprep.subr.mxu0 %v40150_v22 }
0x14ed   :  { %v12933_v19 = vand.u32 4294901760, %v12932_v32 }
0x14ee   :  { %32999 = vmatmul.mubr.f32.vlgmr.msra.gmra.mrb[46].mxu0 %v12924_v17 }
0x14ef   :  { %v12934_v46 = vsub.f32 %v12932_v32, %v12933_v19  ;;  %33003 = vmatprep.mubr.msk.f32.mxu0 %vm36438_vm1, %v40150_v22 }
0x14f1   :  { %v12935_v4 = vand.u32 4294901760, %v12934_v46 }
0x14f3   :  { %33002 = vmatpush3.xpose.msra.mxu0 %v12935_v4 }
0x14f4   :  { %33006 = vmatprep.subr.mxu0 %v40150_v22 }
0x14f6   :  { %33004 = vmatmul.mubr.f32.vlgmr.msra.gmra.mrb[46].mxu0 %v12920_v35 }
0x14f7   :  { %33007 = vmatpush3.xpose.msra.mxu0 %v12932_v32  ;;  %33008 = vmatprep.mubr.msk.f32.mxu0 %vm36438_vm1, %v40150_v22 }
0x14f8   :  { %33011 = vmatprep.subr.mxu0 %v40150_v22 }
0x14fe   :  { %33009 = vmatmul.mubr.f32.vlgmr.msra.gmra.mrb[46].mxu0 %v12921_v47 }
0x14ff   :  { %33012 = vmatpush3.xpose.msra.mxu0 %v12855_v18  ;;  %33013 = vmatprep.mubr.msk.f32.mxu0 %vm36438_vm1, %v40150_v22 }
0x1500   :  { %33016 = vmatprep.subr.mxu0 %v40150_v22 }
0x1506   :  { %33014 = vmatmul.mubr.f32.vlgmr.msra.gmra.mrb[46].mxu0 %v12922_v43 }
0x1507   :  { %33017 = vmatpush3.xpose.msra.mxu0 %v12933_v19  ;;  %33018 = vmatprep.mubr.msk.f32.mxu0 %vm36438_vm1, %v40150_v22 }
0x1508   :  { %33021 = vmatprep.subr.mxu0 %v40150_v22 }
0x150b   :  { %v12840_v52 = vpop.f32.mrb[44].mxu1 }
0x150c   :  { %v38167_v3 = vadd.f32 %v30175_v58, %v12840_v52  ;;  %v32995_v61 = vpop.f32.mrb[45].mxu1 }
0x150e   :  { %33019 = vmatmul.mubr.f32.vlgmr.msra.gmra.mrb[46].mxu0 %v12920_v35  ;;  %13301 = vrot.lane.b32.xlu1 %v38167_v3, %s36440_s26  ;;  %v38177_v21 = vmul.f32 0.35355338, %v38167_v3 }
0x150f   :  { %33022 = vmatpush3.xpose.msra.mxu0 %v12855_v18  ;;  %33023 = vmatprep.mubr.msk.f32.mxu0 %vm36438_vm1, %v40150_v22 }
0x1510   :  { %33056 = vmatprep.subr.mxu0 %v40150_v22  ;;  %v13304_v39 = vsel %vm1086_vm3, %v38177_v21, 0 }
0x1511   :  { %v13374_v10 = vand.u32 4294901760, %v13304_v39 }
0x1513   :  { %v13375_v11 = vsub.f32 %v13304_v39, %v13374_v10 }
0x1515   :  { %v13376_v25 = vand.u32 4294901760, %v13375_v11 }
0x1516   :  { %33024 = vmatmul.mubr.f32.vlgmr.msra.gmra.mrb[46].mxu0 %v12920_v35 }
0x1517   :  { %33058 = vmatprep.mubr.msk.f32.mxu0 %vm36438_vm1, %v40150_v22  ;;  %v13377_v62 = vsub.f32 %v13375_v11, %v13376_v25 }
0x1519   :  { %v13378_v28 = vand.u32 4294901760, %v13377_v62 }
0x1580   :  { %v13302_v48 = vpop.permute.xlu1 %13301 }
0x1581   :  { %v13306_v59 = vsel %vm1086_vm3, %v13302_v48, 0 }
0x1582   :  { %v13309_v0 = vand.u32 4294901760, %v13306_v59 }
0x1584   :  { %v13386_v9 = vsub.f32 %v13306_v59, %v13309_v0  ;;  %33027 = vmatpush3.xpose.msra.mxu1 %v13309_v0 }
0x1585   :  { %33031 = vmatprep.subr.mxu1 %v40150_v22 }
0x1586   :  { %v13387_v5 = vand.u32 4294901760, %v13386_v9 }
0x1587   :  { %33029 = vmatmul.mubr.f32.vlgmr.msra.gmra.mrb[46].mxu1 %v13378_v28 }
0x1588   :  { %v13388_v7 = vsub.f32 %v13386_v9, %v13387_v5  ;;  %33033 = vmatprep.mubr.msk.f32.mxu1 %vm36438_vm1, %v40150_v22 }
0x158a   :  { %v13389_v2 = vand.u32 4294901760, %v13388_v7 }
0x158c   :  { %33032 = vmatpush3.xpose.msra.mxu1 %v13389_v2 }
0x158d   :  { %33036 = vmatprep.subr.mxu1 %v40150_v22 }
0x158f   :  { %33034 = vmatmul.mubr.f32.vlgmr.msra.gmra.mrb[46].mxu1 %v13374_v10 }
0x1590   :  { %33037 = vmatpush3.xpose.msra.mxu1 %v13386_v9  ;;  %33038 = vmatprep.mubr.msk.f32.mxu1 %vm36438_vm1, %v40150_v22 }
0x1591   :  { %33041 = vmatprep.subr.mxu1 %v40150_v22 }
0x1597   :  { %33039 = vmatmul.mubr.f32.vlgmr.msra.gmra.mrb[46].mxu1 %v13375_v11 }
0x1598   :  { %33042 = vmatpush3.xpose.msra.mxu1 %v13309_v0  ;;  %33043 = vmatprep.mubr.msk.f32.mxu1 %vm36438_vm1, %v40150_v22 }
0x1599   :  { %33046 = vmatprep.subr.mxu1 %v40150_v22 }
0x159f   :  { %33044 = vmatmul.mubr.f32.vlgmr.msra.gmra.mrb[46].mxu1 %v13376_v25 }
0x15a0   :  { %33047 = vmatpush3.xpose.msra.mxu1 %v13387_v5  ;;  %33048 = vmatprep.mubr.msk.f32.mxu1 %vm36438_vm1, %v40150_v22 }
0x15a1   :  { %33051 = vmatprep.subr.mxu1 %v40150_v22 }
0x15a7   :  { %33049 = vmatmul.mubr.f32.vlgmr.msra.gmra.mrb[46].mxu1 %v13374_v10 }
0x15a8   :  { %33052 = vmatpush3.xpose.msra.mxu1 %v13309_v0  ;;  %33053 = vmatprep.mubr.msk.f32.mxu1 %vm36438_vm1, %v40150_v22 }
0x15a9   :  { %33086 = vmatprep.subr.mxu1 %v40150_v22 }
0x15af   :  { %33054 = vmatmul.mubr.f32.vlgmr.msra.gmra.mrb[46].mxu1 %v13374_v10 }
0x15b0   :  { %33088 = vmatprep.mubr.msk.f32.mxu1 %vm36438_vm1, %v40150_v22 }
0x15e9   :  { %v13296_v13 = vpop.f32.mrb[46].mxu0 }
0x15ea   :  { %v33025_v15 = vpop.f32.mrb[47].mxu0  ;;  %v13754_v31 = vsel %vm1992_vm4, %v13296_v13, -inf }
0x15eb   :  { %13755 = vmax.xlane.f32.xlu1 %v13754_v31 }
0x15fc   :  { %13776 = vrot.lane.b32.xlu1 %v38144_v12, %s36441_s27 }
0x1600   :  { %14684 = vrot.lane.b32.xlu1 %v38144_v12, %s36442_s28 }
0x1678   :  { %v13756_v37 = vpop.xlane.xlu1 %13755 }
0x1679   :  { %v13760_v63 = vsub.f32 %v13296_v13, %v13756_v37 }
0x167b   :  { %v13762_v44 = vmul.f32 1.442695, %v13760_v63 }
0x167c   :  { %v13777_v23 = vpop.permute.xlu1 %13776 }
0x167d   :  { %36347 = vpow2.f32 %v13762_v44  ;;  %v13781_v29 = vsel %vm2021_vm5, %v13777_v23, 0 }
0x167e   :  { %v38206_v60 = vand.u32 4294901760, %v13781_v29 }
0x1680   :  { %33057 = vmatpush3.msra.mxu0 %v38206_v60  ;;  %v13861_v55 = vsub.f32 %v13781_v29, %v38206_v60  ;;  %v14685_v4 = vpop.permute.xlu1 %14684 }
0x1681   :  { %33061 = vmatprep.subr.mxu0 %v40150_v22  ;;  %v14688_v61 = vsel %vm1086_vm3, %v14685_v4, 0 }
0x1682   :  { %v13750_v38 = vpop.f32.mrb[46].mxu1  ;;  %v13862_v43 = vand.u32 4294901760, %v13861_v55  ;;  %v14691_v10 = vand.u32 4294901760, %v14688_v61 }
0x1683   :  { %v33055_v20 = vpop.f32.mrb[47].mxu1  ;;  %v13757_v27 = vsel %vm1992_vm4, %v13750_v38, -inf }
0x1684   :  { %v13863_v18 = vsub.f32 %v13861_v55, %v13862_v43  ;;  %v14768_v25 = vsub.f32 %v14688_v61, %v14691_v10 }
0x1686   :  { %v13864_v46 = vand.u32 4294901760, %v13863_v18  ;;  %v14769_v59 = vand.u32 4294901760, %v14768_v25 }
0x1687   :  { %v36348_v54 = vpop.eup %36347 }
0x1688   :  { %v13766_v24 = vsel %vm1992_vm4, %v36348_v54, 0.0  ;;  %v14770_v0 = vsub.f32 %v14768_v25, %v14769_v59 }
0x1689   :  { %13767 = vadd.xlane.f32.xlu0 %v13766_v24 }
0x168a   :  { %v14771_v28 = vand.u32 4294901760, %v14770_v0 }
0x168d   :  { %13758 = vmax.xlane.f32.xlu0 %v13757_v27 }
0x16a3   :  { %14682 = vrot.lane.b32.xlu0 %v38149_v26, %s36443_s29 }
0x16a7   :  { %14229 = vrot.lane.b32.xlu0 %v38167_v3, %s36441_s27  ;;  %s40166_s27 = smov 72  }
0x16ab   :  { %15136 = vrot.lane.b32.xlu0 %v38177_v21, %s36443_s29 }
0x16af   :  { %15138 = vrot.lane.b32.xlu0 %v38167_v3, %s36442_s28 }
0x1716   :  { %v13768_v56 = vpop.xlane.xlu0 %13767 }
0x1717   :  { %36349 = vrcp.f32 %v13768_v56 }
0x171a   :  { %v13759_v6 = vpop.xlane.xlu0 %13758 }
0x171b   :  { %v13761_v40 = vsub.f32 %v13750_v38, %v13759_v6 }
0x171d   :  { %v13764_v57 = vmul.f32 1.442695, %v13761_v40 }
0x171e   :  { %v14683_v36 = vpop.permute.xlu0 %14682 }
0x171f   :  { %36351 = vpow2.f32 %v13764_v57  ;;  %v14686_v52 = vsel %vm1086_vm3, %v14683_v36, 0 }
0x1720   :  { %v14756_v39 = vand.u32 4294901760, %v14686_v52 }
0x1721   :  { %v36350_v34 = vpop.eup %36349 }
0x1722   :  { %v38221_v58 = vmul.f32 %v36350_v34, %v36348_v54  ;;  %v14230_v50 = vpop.permute.xlu0 %14229  ;;  %v14757_v11 = vsub.f32 %v14686_v52, %v14756_v39 }
0x1723   :  { %v38224_v16 = vsel %vm2021_vm5, %v14230_v50, 0 }
0x1724   :  { %v38227_v1 = vand.u32 4294901760, %v38224_v16  ;;  %v13779_v35 = vsel %vm2017_vm6, %v38221_v58, 0  ;;  %v14758_v48 = vand.u32 4294901760, %v14757_v11 }
0x1725   :  { %v13849_v47 = vand.u32 4294901760, %v13779_v35 }
0x1726   :  { %33087 = vmatpush3.msra.mxu1 %v38227_v1  ;;  %v14759_v62 = vsub.f32 %v14757_v11, %v14758_v48  ;;  %v14314_v2 = vsub.f32 %v38224_v16, %v38227_v1  ;;  %v15137_v20 = vpop.permute.xlu0 %15136 }
0x1727   :  { %v13850_v51 = vsub.f32 %v13779_v35, %v13849_v47  ;;  %33091 = vmatprep.subr.mxu1 %v40150_v22  ;;  %v15140_v24 = vsel %vm1086_vm3, %v15137_v20, 0 }
0x1728   :  { %v14760_v9 = vand.u32 4294901760, %v14759_v62  ;;  %v14315_v37 = vand.u32 4294901760, %v14314_v2  ;;  %v15210_v56 = vand.u32 4294901760, %v15140_v24 }
0x1729   :  { %v38233_v41 = vpop.eup %36351  ;;  %v13851_v30 = vand.u32 4294901760, %v13850_v51 }
0x172a   :  { %v13769_v32 = vsel %vm1992_vm4, %v38233_v41, 0.0  ;;  %v14316_v23 = vsub.f32 %v14314_v2, %v14315_v37  ;;  %v15139_v54 = vpop.permute.xlu0 %15138  ;;  %v15211_v40 = vsub.f32 %v15140_v24, %v15210_v56 }
0x172b   :  { %13770 = vadd.xlane.f32.xlu1 %v13769_v32  ;;  %v13852_v17 = vsub.f32 %v13850_v51, %v13851_v30  ;;  %v15142_v27 = vsel %vm1086_vm3, %v15139_v54, 0 }
0x172c   :  { %v14317_v38 = vand.u32 4294901760, %v14316_v23  ;;  %v15145_v6 = vand.u32 4294901760, %v15142_v27  ;;  %v15212_v36 = vand.u32 4294901760, %v15211_v40 }
0x172d   :  { %v13853_v19 = vand.u32 4294901760, %v13852_v17 }
0x172e   :  { %v15222_v57 = vsub.f32 %v15142_v27, %v15145_v6 }
0x172f   :  { %33059 = vmatmul.mubr.f32.vlgmr.msra.gmra.mrb[48].mxu0 %v13853_v19 }
0x1730   :  { %33062 = vmatpush3.msra.mxu0 %v13864_v46  ;;  %33063 = vmatprep.mubr.msk.f32.mxu0 %vm36438_vm1, %v40150_v22  ;;  %v15223_v34 = vand.u32 4294901760, %v15222_v57 }
0x1731   :  { %33066 = vmatprep.subr.mxu0 %v40150_v22 }
0x1732   :  { %v15224_v50 = vsub.f32 %v15222_v57, %v15223_v34 }
0x1734   :  { %v15225_v35 = vand.u32 4294901760, %v15224_v50 }
0x1737   :  { %33064 = vmatmul.mubr.f32.vlgmr.msra.gmra.mrb[48].mxu0 %v13849_v47 }
0x1738   :  { %33067 = vmatpush3.msra.mxu0 %v13861_v55  ;;  %33068 = vmatprep.mubr.msk.f32.mxu0 %vm36438_vm1, %v40150_v22  ;;  %v15213_v55 = vsub.f32 %v15211_v40, %v15212_v36 }
0x1739   :  { %33071 = vmatprep.subr.mxu0 %v40150_v22 }
0x173a   :  { %v15214_v16 = vand.u32 4294901760, %v15213_v55 }
0x173f   :  { %33069 = vmatmul.mubr.f32.vlgmr.msra.gmra.mrb[48].mxu0 %v13850_v51 }
0x1740   :  { %33072 = vmatpush3.msra.mxu0 %v38206_v60  ;;  %33073 = vmatprep.mubr.msk.f32.mxu0 %vm36438_vm1, %v40150_v22 }
0x1741   :  { %33076 = vmatprep.subr.mxu0 %v40150_v22 }
0x1747   :  { %33074 = vmatmul.mubr.f32.vlgmr.msra.gmra.mrb[48].mxu0 %v13851_v30 }
0x1748   :  { %33077 = vmatpush3.msra.mxu0 %v13862_v43  ;;  %33078 = vmatprep.mubr.msk.f32.mxu0 %vm36438_vm1, %v40150_v22 }
0x1749   :  { %33081 = vmatprep.subr.mxu0 %v40150_v22 }
0x174f   :  { %33079 = vmatmul.mubr.f32.vlgmr.msra.gmra.mrb[48].mxu0 %v13849_v47 }
0x1750   :  { %33082 = vmatpush3.msra.mxu0 %v38206_v60  ;;  %33083 = vmatprep.mubr.msk.f32.mxu0 %vm36438_vm1, %v40150_v22 }
0x1751   :  { %33116 = vmatprep.subr.mxu0 %v40150_v22 }
0x1757   :  { %33084 = vmatmul.mubr.f32.vlgmr.msra.gmra.mrb[48].mxu0 %v13849_v47 }
0x1758   :  { %33117 = vmatpush3.xpose.msra.mxu0 %v14691_v10  ;;  %33118 = vmatprep.mubr.msk.f32.mxu0 %vm36438_vm1, %v40150_v22 }
0x1759   :  { %33121 = vmatprep.subr.mxu0 %v40150_v22 }
0x175b   :  { %33119 = vmatmul.mubr.f32.vlgmr.msra.gmra.mrb[50].mxu0 %v14760_v9 }
0x175c   :  { %33122 = vmatpush3.xpose.msra.mxu0 %v14771_v28  ;;  %33123 = vmatprep.mubr.msk.f32.mxu0 %vm36438_vm1, %v40150_v22 }
0x175d   :  { %33126 = vmatprep.subr.mxu0 %v40150_v22 }
0x1763   :  { %33124 = vmatmul.mubr.f32.vlgmr.msra.gmra.mrb[50].mxu0 %v14756_v39 }
0x1764   :  { %33127 = vmatpush3.xpose.msra.mxu0 %v14768_v25  ;;  %33128 = vmatprep.mubr.msk.f32.mxu0 %vm36438_vm1, %v40150_v22 }
0x1765   :  { %33131 = vmatprep.subr.mxu0 %v40150_v22 }
0x176b   :  { %33129 = vmatmul.mubr.f32.vlgmr.msra.gmra.mrb[50].mxu0 %v14757_v11 }
0x176c   :  { %33132 = vmatpush3.xpose.msra.mxu0 %v14691_v10  ;;  %33133 = vmatprep.mubr.msk.f32.mxu0 %vm36438_vm1, %v40150_v22 }
0x176d   :  { %33136 = vmatprep.subr.mxu0 %v40150_v22 }
0x1773   :  { %33134 = vmatmul.mubr.f32.vlgmr.msra.gmra.mrb[50].mxu0 %v14758_v48 }
0x1774   :  { %33137 = vmatpush3.xpose.msra.mxu0 %v14769_v59  ;;  %33138 = vmatprep.mubr.msk.f32.mxu0 %vm36438_vm1, %v40150_v22 }
0x1775   :  { %33141 = vmatprep.subr.mxu0 %v40150_v22 }
0x177b   :  { %33139 = vmatmul.mubr.f32.vlgmr.msra.gmra.mrb[50].mxu0 %v14756_v39 }
0x177c   :  { %33142 = vmatpush3.xpose.msra.mxu0 %v14691_v10  ;;  %33143 = vmatprep.mubr.msk.f32.mxu0 %vm36438_vm1, %v40150_v22 }
0x177d   :  { %33176 = vmatprep.subr.mxu0 %v40150_v22 }
0x1783   :  { %33144 = vmatmul.mubr.f32.vlgmr.msra.gmra.mrb[50].mxu0 %v14756_v39 }
0x1784   :  { %33178 = vmatprep.mubr.msk.f32.mxu0 %vm36438_vm1, %v40150_v22 }
0x17b8   :  { %v13771_v5 = vpop.xlane.xlu1 %13770 }
0x17b9   :  { %36353 = vrcp.f32 %v13771_v5 }
0x17c3   :  { %v36354_v7 = vpop.eup %36353 }
0x17c4   :  { %v38279_v13 = vmul.f32 %v36354_v7, %v38233_v41 }
0x17c6   :  { %v14232_v15 = vsel %vm2017_vm6, %v38279_v13, 0 }
0x17c7   :  { %v14302_v31 = vand.u32 4294901760, %v14232_v15 }
0x17c9   :  { %v14303_v63 = vsub.f32 %v14232_v15, %v14302_v31 }
0x17cb   :  { %v14304_v44 = vand.u32 4294901760, %v14303_v63 }
0x17cd   :  { %v14305_v29 = vsub.f32 %v14303_v63, %v14304_v44 }
0x17cf   :  { %v14306_v60 = vand.u32 4294901760, %v14305_v29 }
0x17d1   :  { %33089 = vmatmul.mubr.f32.vlgmr.msra.gmra.mrb[48].mxu1 %v14306_v60 }
0x17d2   :  { %33092 = vmatpush3.msra.mxu1 %v14317_v38  ;;  %33093 = vmatprep.mubr.msk.f32.mxu1 %vm36438_vm1, %v40150_v22 }
0x17d3   :  { %33096 = vmatprep.subr.mxu1 %v40150_v22 }
0x17d9   :  { %33094 = vmatmul.mubr.f32.vlgmr.msra.gmra.mrb[48].mxu1 %v14302_v31 }
0x17da   :  { %33097 = vmatpush3.msra.mxu1 %v14314_v2  ;;  %33098 = vmatprep.mubr.msk.f32.mxu1 %vm36438_vm1, %v40150_v22 }
0x17db   :  { %33101 = vmatprep.subr.mxu1 %v40150_v22 }
0x17e1   :  { %33099 = vmatmul.mubr.f32.vlgmr.msra.gmra.mrb[48].mxu1 %v14303_v63 }
0x17e2   :  { %33102 = vmatpush3.msra.mxu1 %v38227_v1  ;;  %33103 = vmatprep.mubr.msk.f32.mxu1 %vm36438_vm1, %v40150_v22 }
0x17e3   :  { %33106 = vmatprep.subr.mxu1 %v40150_v22 }
0x17e9   :  { %33104 = vmatmul.mubr.f32.vlgmr.msra.gmra.mrb[48].mxu1 %v14304_v44 }
0x17ea   :  { %33107 = vmatpush3.msra.mxu1 %v14315_v37  ;;  %33108 = vmatprep.mubr.msk.f32.mxu1 %vm36438_vm1, %v40150_v22 }
0x17eb   :  { %33111 = vmatprep.subr.mxu1 %v40150_v22 }
0x17f1   :  { %33109 = vmatmul.mubr.f32.vlgmr.msra.gmra.mrb[48].mxu1 %v14302_v31 }
0x17f2   :  { %33112 = vmatpush3.msra.mxu1 %v38227_v1  ;;  %33113 = vmatprep.mubr.msk.f32.mxu1 %vm36438_vm1, %v40150_v22 }
0x17f3   :  { %33146 = vmatprep.subr.mxu1 %v40150_v22 }
0x17f9   :  { %33114 = vmatmul.mubr.f32.vlgmr.msra.gmra.mrb[48].mxu1 %v14302_v31 }
0x17fa   :  { %33147 = vmatpush3.xpose.msra.mxu1 %v15145_v6  ;;  %33148 = vmatprep.mubr.msk.f32.mxu1 %vm36438_vm1, %v40150_v22 }
0x17fb   :  { %33151 = vmatprep.subr.mxu1 %v40150_v22 }
0x17fd   :  { %33149 = vmatmul.mubr.f32.vlgmr.msra.gmra.mrb[50].mxu1 %v15214_v16 }
0x17fe   :  { %33152 = vmatpush3.xpose.msra.mxu1 %v15225_v35  ;;  %33153 = vmatprep.mubr.msk.f32.mxu1 %vm36438_vm1, %v40150_v22 }
0x17ff   :  { %33156 = vmatprep.subr.mxu1 %v40150_v22 }
0x1805   :  { %33154 = vmatmul.mubr.f32.vlgmr.msra.gmra.mrb[50].mxu1 %v15210_v56 }
0x1806   :  { %33157 = vmatpush3.xpose.msra.mxu1 %v15222_v57  ;;  %33158 = vmatprep.mubr.msk.f32.mxu1 %vm36438_vm1, %v40150_v22 }
0x1807   :  { %33161 = vmatprep.subr.mxu1 %v40150_v22 }
0x180d   :  { %33159 = vmatmul.mubr.f32.vlgmr.msra.gmra.mrb[50].mxu1 %v15211_v40 }
0x180e   :  { %33162 = vmatpush3.xpose.msra.mxu1 %v15145_v6  ;;  %33163 = vmatprep.mubr.msk.f32.mxu1 %vm36438_vm1, %v40150_v22 }
0x180f   :  { %33166 = vmatprep.subr.mxu1 %v40150_v22 }
0x1815   :  { %33164 = vmatmul.mubr.f32.vlgmr.msra.gmra.mrb[50].mxu1 %v15212_v36 }
0x1816   :  { %33167 = vmatpush3.xpose.msra.mxu1 %v15223_v34  ;;  %33168 = vmatprep.mubr.msk.f32.mxu1 %vm36438_vm1, %v40150_v22 }
0x1817   :  { %33171 = vmatprep.subr.mxu1 %v40150_v22 }
0x181d   :  { %33169 = vmatmul.mubr.f32.vlgmr.msra.gmra.mrb[50].mxu1 %v15210_v56 }
0x181e   :  { %33172 = vmatpush3.xpose.msra.mxu1 %v15145_v6  ;;  %33173 = vmatprep.mubr.msk.f32.mxu1 %vm36438_vm1, %v40150_v22 }
0x181f   :  { %33206 = vmatprep.subr.mxu1 %v40150_v22 }
0x1825   :  { %33174 = vmatmul.mubr.f32.vlgmr.msra.gmra.mrb[50].mxu1 %v15210_v56 }
0x1826   :  { %33208 = vmatprep.mubr.msk.f32.mxu1 %vm36438_vm1, %v40150_v22 }
0x182a   :  { %v38322_v1 = vpop.f32.mrb[48].mxu0 }
0x182b   :  { %v33085_v47 = vpop.f32.mrb[49].mxu0 }
0x1856   :  { %v15132_v43 = vpop.f32.mrb[50].mxu0 }
0x1857   :  { %v33145_v51 = vpop.f32.mrb[51].mxu0  ;;  %v15590_v41 = vsel %vm1992_vm4, %v15132_v43, -inf }
0x1858   :  { %15591 = vmax.xlane.f32.xlu0 %v15590_v41 }
0x186e   :  { %16520 = vrot.lane.b32.xlu0 %v38149_v26, %s36444_s30 }
0x1872   :  { %16065 = vrot.lane.b32.xlu0 %v38167_v3, %s36445_s14 }
0x1876   :  { %16974 = vrot.lane.b32.xlu0 %v38177_v21, %s36444_s30 }
0x187a   :  { %16976 = vrot.lane.b32.xlu0 %v38167_v3, %s36446_s15 }
0x18cc   :  { %v38333_v30 = vpop.f32.mrb[48].mxu1 }
0x18cd   :  { %v33115_v18 = vpop.f32.mrb[49].mxu1 }
0x18e5   :  { %v15592_v32 = vpop.xlane.xlu0 %15591 }
0x18e6   :  { %v15596_v17 = vsub.f32 %v15132_v43, %v15592_v32 }
0x18e8   :  { %v15598_v46 = vmul.f32 1.442695, %v15596_v17 }
0x18e9   :  { %v16521_v19 = vpop.permute.xlu0 %16520 }
0x18ea   :  { %36355 = vpow2.f32 %v15598_v46  ;;  %v16524_v6 = vsel %vm1086_vm3, %v16521_v19, 0 }
0x18eb   :  { %v16594_v57 = vand.u32 4294901760, %v16524_v6 }
0x18ed   :  { %v16066_v4 = vpop.permute.xlu0 %16065  ;;  %v16595_v34 = vsub.f32 %v16524_v6, %v16594_v57 }
0x18ee   :  { %v38336_v52 = vsel %vm2021_vm5, %v16066_v4, 0 }
0x18ef   :  { %v38339_v61 = vand.u32 4294901760, %v38336_v52  ;;  %v16596_v50 = vand.u32 4294901760, %v16595_v34 }
0x18f1   :  { %33207 = vmatpush3.msra.mxu1 %v38339_v61  ;;  %v16597_v35 = vsub.f32 %v16595_v34, %v16596_v50  ;;  %v16150_v32 = vsub.f32 %v38336_v52, %v38339_v61  ;;  %v16975_v52 = vpop.permute.xlu0 %16974 }
0x18f2   :  { %33211 = vmatprep.subr.mxu1 %v40150_v22 }
0x18f3   :  { %v16598_v43 = vand.u32 4294901760, %v16597_v35  ;;  %v16151_v4 = vand.u32 4294901760, %v16150_v32 }
0x18f4   :  { %v36356_v25 = vpop.eup %36355 }
0x18f5   :  { %v15602_v48 = vsel %vm1992_vm4, %v36356_v25, 0.0 }
0x18f8   :  { %v15586_v39 = vpop.f32.mrb[50].mxu1 }
0x18f9   :  { %v33175_v10 = vpop.f32.mrb[51].mxu1  ;;  %v15593_v11 = vsel %vm1992_vm4, %v15586_v39, -inf }
0x18fa   :  { %15594 = vmax.xlane.f32.xlu1 %v15593_v11  ;;  %v16152_v11 = vsub.f32 %v16150_v32, %v16151_v4 }
0x18fe   :  { %15603 = vadd.xlane.f32.xlu1 %v15602_v48 }
0x190f   :  { %15612 = vrot.lane.b32.xlu1 %v38144_v12, %s36445_s14  ;;  %s40167_s14 = smov 40  }
0x1913   :  { %16522 = vrot.lane.b32.xlu1 %v38144_v12, %s36446_s15 }
0x1987   :  { %v15595_v59 = vpop.xlane.xlu1 %15594 }
0x1988   :  { %v15597_v62 = vsub.f32 %v15586_v39, %v15595_v59  ;;  %v16153_v59 = vand.u32 4294901760, %v16152_v11 }
0x198a   :  { %v15600_v0 = vmul.f32 1.442695, %v15597_v62  ;;  %v16977_v62 = vpop.permute.xlu0 %16976 }
0x198b   :  { %v15604_v9 = vpop.xlane.xlu1 %15603 }
0x198c   :  { %36357 = vpow2.f32 %v15600_v0  ;;  %v16978_v0 = vsel %vm1086_vm3, %v16975_v52, 0 }
0x198d   :  { %36359 = vrcp.f32 %v15604_v9  ;;  %v16980_v9 = vsel %vm1086_vm3, %v16977_v62, 0 }
0x198f   :  { %v15613_v28 = vpop.permute.xlu1 %15612 }
0x1990   :  { %v15617_v5 = vsel %vm2021_vm5, %v15613_v28, 0  ;;  %v17048_v28 = vand.u32 4294901760, %v16978_v0 }
0x1991   :  { %v15620_v7 = vand.u32 4294901760, %v15617_v5 }
0x1993   :  { %33177 = vmatpush3.msra.mxu0 %v15620_v7  ;;  %v15697_v63 = vsub.f32 %v15617_v5, %v15620_v7  ;;  %v16523_v56 = vpop.permute.xlu1 %16522  ;;  %v16983_v5 = vand.u32 4294901760, %v16980_v9 }
0x1994   :  { %33181 = vmatprep.subr.mxu0 %v40150_v22  ;;  %v16526_v40 = vsel %vm1086_vm3, %v16523_v56, 0 }
0x1995   :  { %v15698_v29 = vand.u32 4294901760, %v15697_v63  ;;  %v16529_v36 = vand.u32 4294901760, %v16526_v40 }
0x1996   :  { %v38351_v2 = vpop.eup %36357 }
0x1997   :  { %v36360_v15 = vpop.eup %36359  ;;  %v15605_v31 = vsel %vm1992_vm4, %v38351_v2, 0.0  ;;  %v15699_v20 = vsub.f32 %v15697_v63, %v15698_v29  ;;  %v16606_v55 = vsub.f32 %v16526_v40, %v16529_v36 }
0x1998   :  { %v38355_v37 = vmul.f32 %v36360_v15, %v36356_v25  ;;  %15606 = vadd.xlane.f32.xlu1 %v15605_v31 }
0x1999   :  { %v15700_v27 = vand.u32 4294901760, %v15699_v20  ;;  %v16607_v16 = vand.u32 4294901760, %v16606_v55 }
0x199a   :  { %v15615_v44 = vsel %vm2017_vm6, %v38355_v37, 0 }
0x199b   :  { %v15685_v23 = vand.u32 4294901760, %v15615_v44  ;;  %v16608_v47 = vsub.f32 %v16606_v55, %v16607_v16 }
0x199d   :  { %v15686_v60 = vsub.f32 %v15615_v44, %v15685_v23  ;;  %v16609_v51 = vand.u32 4294901760, %v16608_v47 }
0x199f   :  { %v15687_v38 = vand.u32 4294901760, %v15686_v60 }
0x19a1   :  { %v15688_v54 = vsub.f32 %v15686_v60, %v15687_v38 }
0x19a3   :  { %v15689_v24 = vand.u32 4294901760, %v15688_v54 }
0x19a5   :  { %33179 = vmatmul.mubr.f32.vlgmr.msra.gmra.mrb[52].mxu0 %v15689_v24 }
0x19a6   :  { %33182 = vmatpush3.msra.mxu0 %v15700_v27  ;;  %33183 = vmatprep.mubr.msk.f32.mxu0 %vm36438_vm1, %v40150_v22 }
0x19a7   :  { %33186 = vmatprep.subr.mxu0 %v40150_v22 }
0x19ad   :  { %33184 = vmatmul.mubr.f32.vlgmr.msra.gmra.mrb[52].mxu0 %v15685_v23 }
0x19ae   :  { %33187 = vmatpush3.msra.mxu0 %v15697_v63  ;;  %33188 = vmatprep.mubr.msk.f32.mxu0 %vm36438_vm1, %v40150_v22 }
0x19af   :  { %33191 = vmatprep.subr.mxu0 %v40150_v22 }
0x19b5   :  { %33189 = vmatmul.mubr.f32.vlgmr.msra.gmra.mrb[52].mxu0 %v15686_v60 }
0x19b6   :  { %33192 = vmatpush3.msra.mxu0 %v15620_v7  ;;  %33193 = vmatprep.mubr.msk.f32.mxu0 %vm36438_vm1, %v40150_v22 }
0x19b7   :  { %33196 = vmatprep.subr.mxu0 %v40150_v22 }
0x19bd   :  { %33194 = vmatmul.mubr.f32.vlgmr.msra.gmra.mrb[52].mxu0 %v15687_v38 }
0x19be   :  { %33197 = vmatpush3.msra.mxu0 %v15698_v29  ;;  %33198 = vmatprep.mubr.msk.f32.mxu0 %vm36438_vm1, %v40150_v22 }
0x19bf   :  { %33201 = vmatprep.subr.mxu0 %v40150_v22 }
0x19c5   :  { %33199 = vmatmul.mubr.f32.vlgmr.msra.gmra.mrb[52].mxu0 %v15685_v23 }
0x19c6   :  { %33202 = vmatpush3.msra.mxu0 %v15620_v7  ;;  %33203 = vmatprep.mubr.msk.f32.mxu0 %vm36438_vm1, %v40150_v22  ;;  %v17049_v7 = vsub.f32 %v16978_v0, %v17048_v28 }
0x19c7   :  { %33236 = vmatprep.subr.mxu0 %v40150_v22 }
0x19c8   :  { %v17050_v15 = vand.u32 4294901760, %v17049_v7 }
0x19ca   :  { %v17051_v63 = vsub.f32 %v17049_v7, %v17050_v15 }
0x19cd   :  { %33204 = vmatmul.mubr.f32.vlgmr.msra.gmra.mrb[52].mxu0 %v15685_v23  ;;  %v17052_v23 = vand.u32 4294901760, %v17051_v63 }
0x19ce   :  { %33237 = vmatpush3.xpose.msra.mxu0 %v16529_v36  ;;  %33238 = vmatprep.mubr.msk.f32.mxu0 %vm36438_vm1, %v40150_v22 }
0x19cf   :  { %33241 = vmatprep.subr.mxu0 %v40150_v22 }
0x19d1   :  { %33239 = vmatmul.mubr.f32.vlgmr.msra.gmra.mrb[54].mxu0 %v16598_v43 }
0x19d2   :  { %33242 = vmatpush3.xpose.msra.mxu0 %v16609_v51  ;;  %33243 = vmatprep.mubr.msk.f32.mxu0 %vm36438_vm1, %v40150_v22 }
0x19d3   :  { %33246 = vmatprep.subr.mxu0 %v40150_v22 }
0x19d9   :  { %33244 = vmatmul.mubr.f32.vlgmr.msra.gmra.mrb[54].mxu0 %v16594_v57 }
0x19da   :  { %33247 = vmatpush3.xpose.msra.mxu0 %v16606_v55  ;;  %33248 = vmatprep.mubr.msk.f32.mxu0 %vm36438_vm1, %v40150_v22 }
0x19db   :  { %33251 = vmatprep.subr.mxu0 %v40150_v22 }
0x19e1   :  { %33249 = vmatmul.mubr.f32.vlgmr.msra.gmra.mrb[54].mxu0 %v16595_v34 }
0x19e2   :  { %33252 = vmatpush3.xpose.msra.mxu0 %v16529_v36  ;;  %33253 = vmatprep.mubr.msk.f32.mxu0 %vm36438_vm1, %v40150_v22 }
0x19e3   :  { %33256 = vmatprep.subr.mxu0 %v40150_v22 }
0x19e9   :  { %33254 = vmatmul.mubr.f32.vlgmr.msra.gmra.mrb[54].mxu0 %v16596_v50 }
0x19ea   :  { %33257 = vmatpush3.xpose.msra.mxu0 %v16607_v16  ;;  %33258 = vmatprep.mubr.msk.f32.mxu0 %vm36438_vm1, %v40150_v22 }
0x19eb   :  { %33261 = vmatprep.subr.mxu0 %v40150_v22 }
0x19f1   :  { %33259 = vmatmul.mubr.f32.vlgmr.msra.gmra.mrb[54].mxu0 %v16594_v57 }
0x19f2   :  { %33262 = vmatpush3.xpose.msra.mxu0 %v16529_v36  ;;  %33263 = vmatprep.mubr.msk.f32.mxu0 %vm36438_vm1, %v40150_v22 }
0x19f3   :  { %33296 = vmatprep.subr.mxu0 %v40150_v22 }
0x19f9   :  { %33264 = vmatmul.mubr.f32.vlgmr.msra.gmra.mrb[54].mxu0 %v16594_v57 }
0x19fa   :  { %33298 = vmatprep.mubr.msk.f32.mxu0 %vm36438_vm1, %v40150_v22 }
0x1a25   :  { %v15607_v41 = vpop.xlane.xlu1 %15606 }
0x1a26   :  { %36361 = vrcp.f32 %v15607_v41 }
0x1a30   :  { %v36362_v18 = vpop.eup %36361 }
0x1a31   :  { %v38399_v17 = vmul.f32 %v36362_v18, %v38351_v2  ;;  %v17060_v2 = vsub.f32 %v16980_v9, %v16983_v5 }
0x1a33   :  { %v16068_v19 = vsel %vm2017_vm6, %v38399_v17, 0  ;;  %v17061_v31 = vand.u32 4294901760, %v17060_v2 }
0x1a34   :  { %v16138_v46 = vand.u32 4294901760, %v16068_v19 }
0x1a35   :  { %v17062_v44 = vsub.f32 %v17060_v2, %v17061_v31 }
0x1a36   :  { %v16139_v39 = vsub.f32 %v16068_v19, %v16138_v46 }
0x1a37   :  { %v17063_v29 = vand.u32 4294901760, %v17062_v44 }
0x1a38   :  { %v16140_v10 = vand.u32 4294901760, %v16139_v39 }
0x1a3a   :  { %v16141_v25 = vsub.f32 %v16139_v39, %v16140_v10 }
0x1a3c   :  { %v16142_v48 = vand.u32 4294901760, %v16141_v25  ;;  %v16518_v25 = vmin.f32 %v38221_v58, %v38355_v37 }
0x1a3e   :  { %33209 = vmatmul.mubr.f32.vlgmr.msra.gmra.mrb[52].mxu1 %v16142_v48 }
0x1a3f   :  { %33212 = vmatpush3.msra.mxu1 %v16153_v59  ;;  %33213 = vmatprep.mubr.msk.f32.mxu1 %vm36438_vm1, %v40150_v22 }
0x1a40   :  { %33216 = vmatprep.subr.mxu1 %v40150_v22 }
0x1a46   :  { %33214 = vmatmul.mubr.f32.vlgmr.msra.gmra.mrb[52].mxu1 %v16138_v46 }
0x1a47   :  { %33217 = vmatpush3.msra.mxu1 %v16150_v32  ;;  %33218 = vmatprep.mubr.msk.f32.mxu1 %vm36438_vm1, %v40150_v22 }
0x1a48   :  { %33221 = vmatprep.subr.mxu1 %v40150_v22 }
0x1a4e   :  { %33219 = vmatmul.mubr.f32.vlgmr.msra.gmra.mrb[52].mxu1 %v16139_v39 }
0x1a4f   :  { %33222 = vmatpush3.msra.mxu1 %v38339_v61  ;;  %33223 = vmatprep.mubr.msk.f32.mxu1 %vm36438_vm1, %v40150_v22 }
0x1a50   :  { %33226 = vmatprep.subr.mxu1 %v40150_v22 }
0x1a56   :  { %33224 = vmatmul.mubr.f32.vlgmr.msra.gmra.mrb[52].mxu1 %v16140_v10 }
0x1a57   :  { %33227 = vmatpush3.msra.mxu1 %v16151_v4  ;;  %33228 = vmatprep.mubr.msk.f32.mxu1 %vm36438_vm1, %v40150_v22 }
0x1a58   :  { %33231 = vmatprep.subr.mxu1 %v40150_v22 }
0x1a5e   :  { %33229 = vmatmul.mubr.f32.vlgmr.msra.gmra.mrb[52].mxu1 %v16138_v46 }
0x1a5f   :  { %33232 = vmatpush3.msra.mxu1 %v38339_v61  ;;  %33233 = vmatprep.mubr.msk.f32.mxu1 %vm36438_vm1, %v40150_v22 }
0x1a60   :  { %33266 = vmatprep.subr.mxu1 %v40150_v22 }
0x1a66   :  { %33234 = vmatmul.mubr.f32.vlgmr.msra.gmra.mrb[52].mxu1 %v16138_v46 }
0x1a67   :  { %33267 = vmatpush3.xpose.msra.mxu1 %v16983_v5  ;;  %33268 = vmatprep.mubr.msk.f32.mxu1 %vm36438_vm1, %v40150_v22 }
0x1a68   :  { %33271 = vmatprep.subr.mxu1 %v40150_v22 }
0x1a6a   :  { %33269 = vmatmul.mubr.f32.vlgmr.msra.gmra.mrb[54].mxu1 %v17052_v23 }
0x1a6b   :  { %33272 = vmatpush3.xpose.msra.mxu1 %v17063_v29  ;;  %33273 = vmatprep.mubr.msk.f32.mxu1 %vm36438_vm1, %v40150_v22 }
0x1a6c   :  { %33276 = vmatprep.subr.mxu1 %v40150_v22 }
0x1a72   :  { %33274 = vmatmul.mubr.f32.vlgmr.msra.gmra.mrb[54].mxu1 %v17048_v28 }
0x1a73   :  { %33277 = vmatpush3.xpose.msra.mxu1 %v17060_v2  ;;  %33278 = vmatprep.mubr.msk.f32.mxu1 %vm36438_vm1, %v40150_v22 }
0x1a74   :  { %33281 = vmatprep.subr.mxu1 %v40150_v22 }
0x1a7a   :  { %33279 = vmatmul.mubr.f32.vlgmr.msra.gmra.mrb[54].mxu1 %v17049_v7 }
0x1a7b   :  { %33282 = vmatpush3.xpose.msra.mxu1 %v16983_v5  ;;  %33283 = vmatprep.mubr.msk.f32.mxu1 %vm36438_vm1, %v40150_v22 }
0x1a7c   :  { %33286 = vmatprep.subr.mxu1 %v40150_v22 }
0x1a82   :  { %33284 = vmatmul.mubr.f32.vlgmr.msra.gmra.mrb[54].mxu1 %v17050_v15 }
0x1a83   :  { %33287 = vmatpush3.xpose.msra.mxu1 %v17061_v31  ;;  %33288 = vmatprep.mubr.msk.f32.mxu1 %vm36438_vm1, %v40150_v22 }
0x1a84   :  { %33291 = vmatprep.subr.mxu1 %v40150_v22 }
0x1a8a   :  { %33289 = vmatmul.mubr.f32.vlgmr.msra.gmra.mrb[54].mxu1 %v17048_v28 }
0x1a8b   :  { %33292 = vmatpush3.xpose.msra.mxu1 %v16983_v5  ;;  %33293 = vmatprep.mubr.msk.f32.mxu1 %vm36438_vm1, %v40150_v22 }
0x1a8c   :  { %33326 = vmatprep.subr.mxu1 %v40150_v22 }
0x1a92   :  { %33294 = vmatmul.mubr.f32.vlgmr.msra.gmra.mrb[54].mxu1 %v17048_v28 }
0x1a93   :  { %33328 = vmatprep.mubr.msk.f32.mxu1 %vm36438_vm1, %v40150_v22 }
0x1aa0   :  { %v38442_v61 = vpop.f32.mrb[52].mxu0 }
0x1aa1   :  { %v33205_v60 = vpop.f32.mrb[53].mxu0 }
0x1acc   :  { %v16970_v38 = vpop.f32.mrb[54].mxu0 }
0x1acd   :  { %v33265_v20 = vpop.f32.mrb[55].mxu0  ;;  %v17428_v54 = vsel %vm1992_vm4, %v16970_v38, -inf }
0x1ace   :  { %17429 = vmax.xlane.f32.xlu0 %v17428_v54 }
0x1ae4   :  { %18358 = vrot.lane.b32.xlu0 %v38149_v26, %s36447_s16 }
0x1ae8   :  { %17903 = vrot.lane.b32.xlu0 %v38167_v3, %s36448_s17 }
0x1aec   :  { %18812 = vrot.lane.b32.xlu0 %v38177_v21, %s36447_s16 }
0x1af0   :  { %18814 = vrot.lane.b32.xlu0 %v38167_v3, %s40166_s27 }
0x1b39   :  { %v38453_v24 = vpop.f32.mrb[52].mxu1 }
0x1b3a   :  { %v33235_v27 = vpop.f32.mrb[53].mxu1 }
0x1b5b   :  { %v17430_v56 = vpop.xlane.xlu0 %17429 }
0x1b5c   :  { %v17434_v6 = vsub.f32 %v16970_v38, %v17430_v56 }
0x1b5e   :  { %v17436_v40 = vmul.f32 1.442695, %v17434_v6 }
0x1b5f   :  { %v18359_v57 = vpop.permute.xlu0 %18358 }
0x1b60   :  { %36363 = vpow2.f32 %v17436_v40  ;;  %v18362_v37 = vsel %vm1086_vm3, %v18359_v57, 0 }
0x1b61   :  { %v18432_v31 = vand.u32 4294901760, %v18362_v37 }
0x1b63   :  { %v17904_v36 = vpop.permute.xlu0 %17903  ;;  %v18433_v44 = vsub.f32 %v18362_v37, %v18432_v31 }
0x1b64   :  { %v38456_v26 = vsel %vm2021_vm5, %v17904_v36, 0  ;;  %v16519_v36 = vmin.f32 %v38279_v13, %v38399_v17 }
0x1b65   :  { %v38459_v34 = vand.u32 4294901760, %v38456_v26  ;;  %v17424_v55 = vpop.f32.mrb[54].mxu1  ;;  %v18434_v29 = vand.u32 4294901760, %v18433_v44 }
0x1b66   :  { %v33295_v21 = vpop.f32.mrb[55].mxu1  ;;  %v17431_v50 = vsel %vm1992_vm4, %v17424_v55, -inf }
0x1b67   :  { %33327 = vmatpush3.msra.mxu1 %v38459_v34  ;;  %17432 = vmax.xlane.f32.xlu1 %v17431_v50  ;;  %v18435_v38 = vsub.f32 %v18433_v44, %v18434_v29  ;;  %v17988_v40 = vsub.f32 %v38456_v26, %v38459_v34  ;;  %v18813_v13 = vpop.permute.xlu0 %18812 }
0x1b68   :  { %33331 = vmatprep.subr.mxu1 %v40150_v22  ;;  %v18816_v26 = vsel %vm1086_vm3, %v18813_v13, 0 }
0x1b69   :  { %v18436_v54 = vand.u32 4294901760, %v18435_v38 }
0x1b6a   :  { %v36364_v16 = vpop.eup %36363 }
0x1b6b   :  { %v17440_v35 = vsel %vm1992_vm4, %v36364_v16, 0.0  ;;  %v18815_v17 = vpop.permute.xlu0 %18814 }
0x1b6c   :  { %17441 = vadd.xlane.f32.xlu1 %v17440_v35 }
0x1b7d   :  { %17450 = vrot.lane.b32.xlu1 %v38144_v12, %s36448_s17  ;;  %s40168_s17 = smov 8  }
0x1b81   :  { %18360 = vrot.lane.b32.xlu1 %v38144_v12, %s40166_s27 }
0x1bf4   :  { %v17433_v47 = vpop.xlane.xlu1 %17432 }
0x1bf5   :  { %v17435_v43 = vsub.f32 %v17424_v55, %v17433_v47 }
0x1bf7   :  { %v17438_v51 = vmul.f32 1.442695, %v17435_v43 }
0x1bf9   :  { %36365 = vpow2.f32 %v17438_v51  ;;  %v17442_v41 = vpop.xlane.xlu1 %17441 }
0x1bfa   :  { %36367 = vrcp.f32 %v17442_v41 }
0x1bfd   :  { %v17451_v18 = vpop.permute.xlu1 %17450 }
0x1bfe   :  { %v17455_v32 = vsel %vm2021_vm5, %v17451_v18, 0 }
0x1bff   :  { %v17458_v19 = vand.u32 4294901760, %v17455_v32 }
0x1c01   :  { %33297 = vmatpush3.msra.mxu0 %v17458_v19  ;;  %v17535_v11 = vsub.f32 %v17455_v32, %v17458_v19  ;;  %v18361_v58 = vpop.permute.xlu1 %18360  ;;  %v18818_v32 = vsel %vm1086_vm3, %v18815_v17, 0 }
0x1c02   :  { %33301 = vmatprep.subr.mxu0 %v40150_v22  ;;  %v18364_v15 = vsel %vm1086_vm3, %v18361_v58, 0 }
0x1c03   :  { %v38471_v46 = vpop.eup %36365  ;;  %v17536_v62 = vand.u32 4294901760, %v17535_v11  ;;  %v18367_v63 = vand.u32 4294901760, %v18364_v15 }
0x1c04   :  { %v36368_v4 = vpop.eup %36367  ;;  %v17443_v39 = vsel %vm1992_vm4, %v38471_v46, 0.0 }
0x1c05   :  { %v17448_v10 = vmul.f32 %v36368_v4, %v36364_v16  ;;  %17444 = vadd.xlane.f32.xlu1 %v17443_v39  ;;  %v17537_v28 = vsub.f32 %v17535_v11, %v17536_v62  ;;  %v18444_v23 = vsub.f32 %v18364_v15, %v18367_v63  ;;  %v17989_v16 = vand.u32 4294901760, %v17988_v40 }
0x1c07   :  { %v17453_v48 = vsel %vm2017_vm6, %v17448_v10, 0  ;;  %v38478_v59 = vmin.f32 %v16518_v25, %v17448_v10  ;;  %v17538_v2 = vand.u32 4294901760, %v17537_v28  ;;  %v18445_v60 = vand.u32 4294901760, %v18444_v23 }
0x1c08   :  { %v17523_v52 = vand.u32 4294901760, %v17453_v48  ;;  %v17990_v43 = vsub.f32 %v17988_v40, %v17989_v16 }
0x1c09   :  { %v18446_v20 = vsub.f32 %v18444_v23, %v18445_v60 }
0x1c0a   :  { %v17524_v0 = vsub.f32 %v17453_v48, %v17523_v52  ;;  %v17991_v18 = vand.u32 4294901760, %v17990_v43 }
0x1c0b   :  { %v18447_v27 = vand.u32 4294901760, %v18446_v20 }
0x1c0c   :  { %v17525_v9 = vand.u32 4294901760, %v17524_v0 }
0x1c0e   :  { %v17526_v5 = vsub.f32 %v17524_v0, %v17525_v9 }
0x1c10   :  { %v17527_v7 = vand.u32 4294901760, %v17526_v5 }
0x1c12   :  { %33299 = vmatmul.mubr.f32.vlgmr.msra.gmra.mrb[56].mxu0 %v17527_v7 }
0x1c13   :  { %33302 = vmatpush3.msra.mxu0 %v17538_v2  ;;  %33303 = vmatprep.mubr.msk.f32.mxu0 %vm36438_vm1, %v40150_v22 }
0x1c14   :  { %33306 = vmatprep.subr.mxu0 %v40150_v22 }
0x1c1a   :  { %33304 = vmatmul.mubr.f32.vlgmr.msra.gmra.mrb[56].mxu0 %v17523_v52 }
0x1c1b   :  { %33307 = vmatpush3.msra.mxu0 %v17535_v11  ;;  %33308 = vmatprep.mubr.msk.f32.mxu0 %vm36438_vm1, %v40150_v22 }
0x1c1c   :  { %33311 = vmatprep.subr.mxu0 %v40150_v22 }
0x1c22   :  { %33309 = vmatmul.mubr.f32.vlgmr.msra.gmra.mrb[56].mxu0 %v17524_v0 }
0x1c23   :  { %33312 = vmatpush3.msra.mxu0 %v17458_v19  ;;  %33313 = vmatprep.mubr.msk.f32.mxu0 %vm36438_vm1, %v40150_v22 }
0x1c24   :  { %33316 = vmatprep.subr.mxu0 %v40150_v22 }
0x1c2a   :  { %33314 = vmatmul.mubr.f32.vlgmr.msra.gmra.mrb[56].mxu0 %v17525_v9 }
0x1c2b   :  { %33317 = vmatpush3.msra.mxu0 %v17536_v62  ;;  %33318 = vmatprep.mubr.msk.f32.mxu0 %vm36438_vm1, %v40150_v22 }
0x1c2c   :  { %33321 = vmatprep.subr.mxu0 %v40150_v22 }
0x1c32   :  { %33319 = vmatmul.mubr.f32.vlgmr.msra.gmra.mrb[56].mxu0 %v17523_v52 }
0x1c33   :  { %33322 = vmatpush3.msra.mxu0 %v17458_v19  ;;  %33323 = vmatprep.mubr.msk.f32.mxu0 %vm36438_vm1, %v40150_v22  ;;  %v18886_v19 = vand.u32 4294901760, %v18816_v26 }
0x1c34   :  { %33356 = vmatprep.subr.mxu0 %v40150_v22 }
0x1c35   :  { %v18887_v4 = vsub.f32 %v18816_v26, %v18886_v19 }
0x1c37   :  { %v18888_v10 = vand.u32 4294901760, %v18887_v4 }
0x1c39   :  { %v18889_v25 = vsub.f32 %v18887_v4, %v18888_v10 }
0x1c3a   :  { %33324 = vmatmul.mubr.f32.vlgmr.msra.gmra.mrb[56].mxu0 %v17523_v52 }
0x1c3b   :  { %33357 = vmatpush3.xpose.msra.mxu0 %v18367_v63  ;;  %33358 = vmatprep.mubr.msk.f32.mxu0 %vm36438_vm1, %v40150_v22  ;;  %v18890_v52 = vand.u32 4294901760, %v18889_v25 }
0x1c3c   :  { %33361 = vmatprep.subr.mxu0 %v40150_v22 }
0x1c3e   :  { %33359 = vmatmul.mubr.f32.vlgmr.msra.gmra.mrb[58].mxu0 %v18436_v54 }
0x1c3f   :  { %33362 = vmatpush3.xpose.msra.mxu0 %v18447_v27  ;;  %33363 = vmatprep.mubr.msk.f32.mxu0 %vm36438_vm1, %v40150_v22 }
0x1c40   :  { %33366 = vmatprep.subr.mxu0 %v40150_v22 }
0x1c46   :  { %33364 = vmatmul.mubr.f32.vlgmr.msra.gmra.mrb[58].mxu0 %v18432_v31 }
0x1c47   :  { %33367 = vmatpush3.xpose.msra.mxu0 %v18444_v23  ;;  %33368 = vmatprep.mubr.msk.f32.mxu0 %vm36438_vm1, %v40150_v22 }
0x1c48   :  { %33371 = vmatprep.subr.mxu0 %v40150_v22 }
0x1c4e   :  { %33369 = vmatmul.mubr.f32.vlgmr.msra.gmra.mrb[58].mxu0 %v18433_v44 }
0x1c4f   :  { %33372 = vmatpush3.xpose.msra.mxu0 %v18367_v63  ;;  %33373 = vmatprep.mubr.msk.f32.mxu0 %vm36438_vm1, %v40150_v22 }
0x1c50   :  { %33376 = vmatprep.subr.mxu0 %v40150_v22 }
0x1c56   :  { %33374 = vmatmul.mubr.f32.vlgmr.msra.gmra.mrb[58].mxu0 %v18434_v29 }
0x1c57   :  { %33377 = vmatpush3.xpose.msra.mxu0 %v18445_v60  ;;  %33378 = vmatprep.mubr.msk.f32.mxu0 %vm36438_vm1, %v40150_v22 }
0x1c58   :  { %33381 = vmatprep.subr.mxu0 %v40150_v22 }
0x1c5e   :  { %33379 = vmatmul.mubr.f32.vlgmr.msra.gmra.mrb[58].mxu0 %v18432_v31 }
0x1c5f   :  { %33382 = vmatpush3.xpose.msra.mxu0 %v18367_v63  ;;  %33383 = vmatprep.mubr.msk.f32.mxu0 %vm36438_vm1, %v40150_v22 }
0x1c60   :  { %33416 = vmatprep.subr.mxu0 %v40150_v22 }
0x1c66   :  { %33384 = vmatmul.mubr.f32.vlgmr.msra.gmra.mrb[58].mxu0 %v18432_v31 }
0x1c67   :  { %33418 = vmatprep.mubr.msk.f32.mxu0 %vm36438_vm1, %v40150_v22 }
0x1c92   :  { %v17445_v56 = vpop.xlane.xlu1 %17444 }
0x1c93   :  { %36369 = vrcp.f32 %v17445_v56 }
0x1c9d   :  { %v36370_v6 = vpop.eup %36369 }
0x1c9e   :  { %v17449_v57 = vmul.f32 %v36370_v6, %v38471_v46  ;;  %v18821_v46 = vand.u32 4294901760, %v18818_v32 }
0x1ca0   :  { %v17906_v55 = vsel %vm2017_vm6, %v17449_v57, 0  ;;  %v38523_v21 = vmin.f32 %v16519_v36, %v17449_v57  ;;  %v18898_v39 = vsub.f32 %v18818_v32, %v18821_v46 }
0x1ca1   :  { %v17976_v50 = vand.u32 4294901760, %v17906_v55 }
0x1ca2   :  { %v18899_v11 = vand.u32 4294901760, %v18898_v39 }
0x1ca3   :  { %v17977_v35 = vsub.f32 %v17906_v55, %v17976_v50 }
0x1ca4   :  { %v18900_v48 = vsub.f32 %v18898_v39, %v18899_v11 }
0x1ca5   :  { %v17978_v47 = vand.u32 4294901760, %v17977_v35 }
0x1ca6   :  { %v18901_v62 = vand.u32 4294901760, %v18900_v48 }
0x1ca7   :  { %v17979_v51 = vsub.f32 %v17977_v35, %v17978_v47 }
0x1ca9   :  { %v17980_v41 = vand.u32 4294901760, %v17979_v51 }
0x1cab   :  { %33329 = vmatmul.mubr.f32.vlgmr.msra.gmra.mrb[56].mxu1 %v17980_v41 }
0x1cac   :  { %33332 = vmatpush3.msra.mxu1 %v17991_v18  ;;  %33333 = vmatprep.mubr.msk.f32.mxu1 %vm36438_vm1, %v40150_v22 }
0x1cad   :  { %33336 = vmatprep.subr.mxu1 %v40150_v22 }
0x1cb3   :  { %33334 = vmatmul.mubr.f32.vlgmr.msra.gmra.mrb[56].mxu1 %v17976_v50 }
0x1cb4   :  { %33337 = vmatpush3.msra.mxu1 %v17988_v40  ;;  %33338 = vmatprep.mubr.msk.f32.mxu1 %vm36438_vm1, %v40150_v22 }
0x1cb5   :  { %33341 = vmatprep.subr.mxu1 %v40150_v22 }
0x1cbb   :  { %33339 = vmatmul.mubr.f32.vlgmr.msra.gmra.mrb[56].mxu1 %v17977_v35 }
0x1cbc   :  { %33342 = vmatpush3.msra.mxu1 %v38459_v34  ;;  %33343 = vmatprep.mubr.msk.f32.mxu1 %vm36438_vm1, %v40150_v22 }
0x1cbd   :  { %33346 = vmatprep.subr.mxu1 %v40150_v22 }
0x1cc3   :  { %33344 = vmatmul.mubr.f32.vlgmr.msra.gmra.mrb[56].mxu1 %v17978_v47 }
0x1cc4   :  { %33347 = vmatpush3.msra.mxu1 %v17989_v16  ;;  %33348 = vmatprep.mubr.msk.f32.mxu1 %vm36438_vm1, %v40150_v22 }
0x1cc5   :  { %33351 = vmatprep.subr.mxu1 %v40150_v22 }
0x1ccb   :  { %33349 = vmatmul.mubr.f32.vlgmr.msra.gmra.mrb[56].mxu1 %v17976_v50 }
0x1ccc   :  { %33352 = vmatpush3.msra.mxu1 %v38459_v34  ;;  %33353 = vmatprep.mubr.msk.f32.mxu1 %vm36438_vm1, %v40150_v22 }
0x1ccd   :  { %33386 = vmatprep.subr.mxu1 %v40150_v22 }
0x1cd3   :  { %33354 = vmatmul.mubr.f32.vlgmr.msra.gmra.mrb[56].mxu1 %v17976_v50 }
0x1cd4   :  { %33387 = vmatpush3.xpose.msra.mxu1 %v18821_v46  ;;  %33388 = vmatprep.mubr.msk.f32.mxu1 %vm36438_vm1, %v40150_v22 }
0x1cd5   :  { %33391 = vmatprep.subr.mxu1 %v40150_v22 }
0x1cd7   :  { %33389 = vmatmul.mubr.f32.vlgmr.msra.gmra.mrb[58].mxu1 %v18890_v52 }
0x1cd8   :  { %33392 = vmatpush3.xpose.msra.mxu1 %v18901_v62  ;;  %33393 = vmatprep.mubr.msk.f32.mxu1 %vm36438_vm1, %v40150_v22 }
0x1cd9   :  { %33396 = vmatprep.subr.mxu1 %v40150_v22 }
0x1cdf   :  { %33394 = vmatmul.mubr.f32.vlgmr.msra.gmra.mrb[58].mxu1 %v18886_v19 }
0x1ce0   :  { %33397 = vmatpush3.xpose.msra.mxu1 %v18898_v39  ;;  %33398 = vmatprep.mubr.msk.f32.mxu1 %vm36438_vm1, %v40150_v22 }
0x1ce1   :  { %33401 = vmatprep.subr.mxu1 %v40150_v22 }
0x1ce7   :  { %33399 = vmatmul.mubr.f32.vlgmr.msra.gmra.mrb[58].mxu1 %v18887_v4 }
0x1ce8   :  { %33402 = vmatpush3.xpose.msra.mxu1 %v18821_v46  ;;  %33403 = vmatprep.mubr.msk.f32.mxu1 %vm36438_vm1, %v40150_v22 }
0x1ce9   :  { %33406 = vmatprep.subr.mxu1 %v40150_v22 }
0x1cef   :  { %33404 = vmatmul.mubr.f32.vlgmr.msra.gmra.mrb[58].mxu1 %v18888_v10 }
0x1cf0   :  { %33407 = vmatpush3.xpose.msra.mxu1 %v18899_v11  ;;  %33408 = vmatprep.mubr.msk.f32.mxu1 %vm36438_vm1, %v40150_v22 }
0x1cf1   :  { %33411 = vmatprep.subr.mxu1 %v40150_v22 }
0x1cf7   :  { %33409 = vmatmul.mubr.f32.vlgmr.msra.gmra.mrb[58].mxu1 %v18886_v19 }
0x1cf8   :  { %33412 = vmatpush3.xpose.msra.mxu1 %v18821_v46  ;;  %33413 = vmatprep.mubr.msk.f32.mxu1 %vm36438_vm1, %v40150_v22 }
0x1cf9   :  { %33446 = vmatprep.subr.mxu1 %v40150_v22 }
0x1cff   :  { %33414 = vmatmul.mubr.f32.vlgmr.msra.gmra.mrb[58].mxu1 %v18886_v19 }
0x1d00   :  { %33448 = vmatprep.mubr.msk.f32.mxu1 %vm36438_vm1, %v40150_v22 }
0x1d0d   :  { %v17899_v34 = vpop.f32.mrb[56].mxu0 }
0x1d0e   :  { %v33325_v0 = vpop.f32.mrb[57].mxu0 }
0x1d39   :  { %v18808_v9 = vpop.f32.mrb[58].mxu0 }
0x1d3a   :  { %v33385_v28 = vpop.f32.mrb[59].mxu0  ;;  %v19266_v5 = vsel %vm1992_vm4, %v18808_v9, -inf }
0x1d3b   :  { %19267 = vmax.xlane.f32.xlu0 %v19266_v5  ;;  %v30176_v28 = vld [vmem:[%s40098_s5 + $0x20] sm:$0xff]  ;;  %v30177_v5 = vld [vmem:[%s40098_s5 + $0x28] sm:$0xff] }
0x1da6   :  { %v18352_v7 = vpop.f32.mrb[56].mxu1 }
0x1da7   :  { %v33355_v2 = vpop.f32.mrb[57].mxu1 }
0x1da8   :  { %v20243_v2 = vand.u32 4294901760, %v30177_v5 }
0x1dc8   :  { %v19268_v58 = vpop.xlane.xlu0 %19267 }
0x1dc9   :  { %v19272_v37 = vsub.f32 %v18808_v9, %v19268_v58 }
0x1dcb   :  { %v19274_v15 = vmul.f32 1.442695, %v19272_v37  ;;  %v38626_v37 = vsub.f32 %v30177_v5, %v20243_v2 }
0x1dcd   :  { %36371 = vpow2.f32 %v19274_v15 }
0x1dd2   :  { %v19262_v31 = vpop.f32.mrb[58].mxu1 }
0x1dd3   :  { %v33415_v63 = vpop.f32.mrb[59].mxu1  ;;  %v19269_v44 = vsel %vm1992_vm4, %v19262_v31, -inf }
0x1dd4   :  { %19270 = vmax.xlane.f32.xlu1 %v19269_v44 }
0x1dd7   :  { %v36372_v23 = vpop.eup %36371 }
0x1dd8   :  { %v19278_v29 = vsel %vm1992_vm4, %v36372_v23, 0.0 }
0x1dd9   :  { %19279 = vadd.xlane.f32.xlu1 %v19278_v29 }
0x1dea   :  { %19288 = vrot.lane.b32.xlu1 %v38144_v12, %s40167_s14 }
0x1dee   :  { %20198 = vrot.lane.b32.xlu1 %v38442_v61, %s40168_s17 }
0x1df2   :  { %20206 = vrot.lane.b32.xlu1 %v17899_v34, %s40169_s18 }
0x1e61   :  { %v19271_v60 = vpop.xlane.xlu1 %19270 }
0x1e62   :  { %v19273_v38 = vsub.f32 %v19262_v31, %v19271_v60  ;;  %v20328_v31 = vand.u32 4294901760, %v38626_v37 }
0x1e64   :  { %v19276_v20 = vmul.f32 1.442695, %v19273_v38  ;;  %v20329_v44 = vsub.f32 %v38626_v37, %v20328_v31  ;;  %v30178_v38 = vld [vmem:[%s40098_s5 + $0x30] sm:$0xff] }
0x1e66   :  { %36373 = vpow2.f32 %v19276_v20  ;;  %v19280_v54 = vpop.xlane.xlu1 %19279  ;;  %v20330_v29 = vand.u32 4294901760, %v20329_v44  ;;  %v30179_v20 = vld [vmem:[%s40098_s5 + $0x38] sm:$0xff]  ;;  %s40170_s5 = smov 24  }
0x1e67   :  { %36375 = vrcp.f32 %v19280_v54  ;;  %v20246_v54 = vand.u32 4294901760, %v30178_v38 }
0x1e6a   :  { %v19289_v27 = vpop.permute.xlu1 %19288 }
0x1e6b   :  { %v19293_v56 = vsel %vm2021_vm5, %v19289_v27, 0  ;;  %v20249_v27 = vand.u32 4294901760, %v30179_v20 }
0x1e6c   :  { %v19296_v6 = vand.u32 4294901760, %v19293_v56 }
0x1e6e   :  { %33417 = vmatpush3.msra.mxu0 %v19296_v6  ;;  %v19373_v36 = vsub.f32 %v19293_v56, %v19296_v6  ;;  %v20334_v56 = vsub.f32 %v30178_v38, %v20246_v54 }
0x1e6f   :  { %33421 = vmatprep.subr.mxu0 %v40150_v22 }
0x1e70   :  { %v36374_v40 = vpop.eup %36373  ;;  %v19374_v35 = vand.u32 4294901760, %v19373_v36 }
0x1e71   :  { %v36376_v12 = vpop.eup %36375  ;;  %v19281_v57 = vsel %vm1992_vm4, %v36374_v40, 0.0 }
0x1e72   :  { %v38575_v61 = vmul.f32 %v36376_v12, %v36372_v23  ;;  %19282 = vadd.xlane.f32.xlu0 %v19281_v57  ;;  %v19375_v51 = vsub.f32 %v19373_v36, %v19374_v35 }
0x1e74   :  { %v19291_v55 = vsel %vm2017_vm6, %v38575_v61, 0  ;;  %v19376_v13 = vand.u32 4294901760, %v19375_v51 }
0x1e75   :  { %v19361_v16 = vand.u32 4294901760, %v19291_v55 }
0x1e77   :  { %v19362_v47 = vsub.f32 %v19291_v55, %v19361_v16 }
0x1e79   :  { %v19363_v43 = vand.u32 4294901760, %v19362_v47 }
0x1e7b   :  { %v19364_v41 = vsub.f32 %v19362_v47, %v19363_v43 }
0x1e7d   :  { %v19365_v18 = vand.u32 4294901760, %v19364_v41 }
0x1e7f   :  { %33419 = vmatmul.mubr.f32.vlgmr.msra.gmra.mrb[60].mxu0 %v19365_v18 }
0x1e80   :  { %33422 = vmatpush3.msra.mxu0 %v19376_v13  ;;  %33423 = vmatprep.mubr.msk.f32.mxu0 %vm36438_vm1, %v40150_v22 }
0x1e81   :  { %33426 = vmatprep.subr.mxu0 %v40150_v22 }
0x1e87   :  { %33424 = vmatmul.mubr.f32.vlgmr.msra.gmra.mrb[60].mxu0 %v19361_v16 }
0x1e88   :  { %33427 = vmatpush3.msra.mxu0 %v19373_v36  ;;  %19741 = vrot.lane.b32.xlu0 %v38167_v3, %s40167_s14 }
0x1e89   :  { %33428 = vmatprep.mubr.msk.f32.mxu0 %vm36438_vm1, %v40150_v22  ;;  %33431 = vmatprep.subr.mxu0 %v40150_v22 }
0x1e8c   :  { %20208 = vrot.lane.b32.xlu0 %v18352_v7, %s40169_s18  ;;  %v20240_v7 = vand.u32 4294901760, %v30176_v28 }
0x1e8e   :  { %v38624_v58 = vsub.f32 %v30176_v28, %v20240_v7 }
0x1e8f   :  { %33429 = vmatmul.mubr.f32.vlgmr.msra.gmra.mrb[60].mxu0 %v19362_v47  ;;  %v38655_v47 = vpack.c.bf16 %v20243_v2, %v20240_v7 }
0x1e90   :  { %33432 = vmatpush3.msra.mxu0 %v19296_v6  ;;  %33433 = vmatprep.mubr.msk.f32.mxu0 %vm36438_vm1, %v40150_v22  ;;  %v20321_v15 = vand.u32 4294901760, %v38624_v58 }
0x1e91   :  { %33436 = vmatprep.subr.mxu0 %v40150_v22 }
0x1e92   :  { %v20322_v63 = vsub.f32 %v38624_v58, %v20321_v15 }
0x1e94   :  { %v20323_v23 = vand.u32 4294901760, %v20322_v63 }
0x1e96   :  { %v38642_v60 = vpack.c.bf16 %v20330_v29, %v20323_v23 }
0x1e97   :  { %33434 = vmatmul.mubr.f32.vlgmr.msra.gmra.mrb[60].mxu0 %v19363_v43  ;;  %v38659_v43 = vpack.c.bf16 %v20249_v27, %v20246_v54 }
0x1e98   :  { %33437 = vmatpush3.msra.mxu0 %v19374_v35  ;;  %33438 = vmatprep.mubr.msk.f32.mxu0 %vm36438_vm1, %v40150_v22 }
0x1e99   :  { %33441 = vmatprep.subr.mxu0 %v40150_v22 }
0x1e9f   :  { %33439 = vmatmul.mubr.f32.vlgmr.msra.gmra.mrb[60].mxu0 %v19361_v16 }
0x1ea0   :  { %33442 = vmatpush3.msra.mxu0 %v19296_v6  ;;  %33443 = vmatprep.mubr.msk.f32.mxu0 %vm36438_vm1, %v40150_v22  ;;  %v20341_v6 = vsub.f32 %v30179_v20, %v20249_v27 }
0x1ea1   :  { %35228 = vmatprep.subr.bf16.mxu0 %v40148_v14 }
0x1ea2   :  { %v20342_v12 = vand.u32 4294901760, %v20341_v6  ;;  %v38664_v18 = vpack.c.bf16 %v20341_v6, %v20334_v56 }
0x1ea4   :  { %v20343_v36 = vsub.f32 %v20341_v6, %v20342_v12 }
0x1ea7   :  { %33444 = vmatmul.mubr.f32.vlgmr.msra.gmra.mrb[60].mxu0 %v19361_v16  ;;  %v20344_v16 = vand.u32 4294901760, %v20343_v36 }
0x1ea8   :  { %33484 = vmatprep.mubr.msk.f32.mxu0 %vm36438_vm1, %v40150_v22  ;;  %35230 = vmatpush3.bf16.msra.mxu0 %v38655_v47 }
0x1ea9   :  { %35231 = vmatprep.subr.bf16.mxu0 %v40148_v14 }
0x1eac   :  { %35233 = vmatpush3.bf16.msra.mxu0 %v38659_v43 }
0x1ead   :  { %35240 = vmatprep.subr.bf16.mxu0 %v40148_v14 }
0x1eff   :  { %v19283_v3 = vpop.xlane.xlu0 %19282 }
0x1f00   :  { %36377 = vrcp.f32 %v19283_v3  ;;  %v20199_v3 = vpop.permute.xlu1 %20198 }
0x1f03   :  { %v19742_v17 = vpop.permute.xlu0 %19741 }
0x1f04   :  { %v19746_v26 = vsel %vm2021_vm5, %v19742_v17, 0  ;;  %v20207_v17 = vpop.permute.xlu1 %20206 }
0x1f05   :  { %v19749_v32 = vand.u32 4294901760, %v19746_v26 }
0x1f07   :  { %33447 = vmatpush3.msra.mxu1 %v19749_v32  ;;  %v19826_v4 = vsub.f32 %v19746_v26, %v19749_v32  ;;  %v20220_v26 = vsel %vm1086_vm3, %v38322_v1, %v20199_v3  ;;  %v35241_v1 = vpack.c.bf16 %v38626_v37, %v38624_v58  ;;  %v20209_v5 = vpop.permute.xlu0 %20208 }
0x1f08   :  { %33451 = vmatprep.subr.mxu1 %v40150_v22 }
0x1f09   :  { %v19827_v25 = vand.u32 4294901760, %v19826_v4 }
0x1f0a   :  { %v36378_v19 = vpop.eup %36377 }
0x1f0b   :  { %v38603_v46 = vmul.f32 %v36378_v19, %v36374_v40  ;;  %v19828_v62 = vsub.f32 %v19826_v4, %v19827_v25  ;;  %v20335_v40 = vand.u32 4294901760, %v20334_v56 }
0x1f0d   :  { %v19744_v39 = vsel %vm2017_vm6, %v38603_v46, 0  ;;  %v19829_v9 = vand.u32 4294901760, %v19828_v62  ;;  %v20336_v57 = vsub.f32 %v20334_v56, %v20335_v40  ;;  %v38668_v13 = vpack.c.bf16 %v20342_v12, %v20335_v40 }
0x1f0e   :  { %v19814_v11 = vand.u32 4294901760, %v19744_v39  ;;  %v35253_v62 = vpack.c.bf16 %v20328_v31, %v20321_v15 }
0x1f0f   :  { %v20337_v55 = vand.u32 4294901760, %v20336_v57 }
0x1f10   :  { %v19815_v48 = vsub.f32 %v19744_v39, %v19814_v11 }
0x1f11   :  { %v35238_v35 = vpack.c.bf16 %v20344_v16, %v20337_v55 }
0x1f12   :  { %v19816_v52 = vand.u32 4294901760, %v19815_v48 }
0x1f14   :  { %v19817_v34 = vsub.f32 %v19815_v48, %v19816_v52 }
0x1f16   :  { %v19818_v0 = vand.u32 4294901760, %v19817_v34 }
0x1f18   :  { %33449 = vmatmul.mubr.f32.vlgmr.msra.gmra.mrb[60].mxu1 %v19818_v0 }
0x1f19   :  { %33452 = vmatpush3.msra.mxu1 %v19829_v9  ;;  %33453 = vmatprep.mubr.msk.f32.mxu1 %vm36438_vm1, %v40150_v22 }
0x1f1a   :  { %33456 = vmatprep.subr.mxu1 %v40150_v22 }
0x1f20   :  { %33454 = vmatmul.mubr.f32.vlgmr.msra.gmra.mrb[60].mxu1 %v19814_v11 }
0x1f21   :  { %33457 = vmatpush3.msra.mxu1 %v19826_v4  ;;  %33458 = vmatprep.mubr.msk.f32.mxu1 %vm36438_vm1, %v40150_v22 }
0x1f22   :  { %33461 = vmatprep.subr.mxu1 %v40150_v22 }
0x1f28   :  { %33459 = vmatmul.mubr.f32.vlgmr.msra.gmra.mrb[60].mxu1 %v19815_v48 }
0x1f29   :  { %33462 = vmatpush3.msra.mxu1 %v19749_v32  ;;  %33463 = vmatprep.mubr.msk.f32.mxu1 %vm36438_vm1, %v40150_v22 }
0x1f2a   :  { %33466 = vmatprep.subr.mxu1 %v40150_v22 }
0x1f30   :  { %33464 = vmatmul.mubr.f32.vlgmr.msra.gmra.mrb[60].mxu1 %v19816_v52 }
0x1f31   :  { %33467 = vmatpush3.msra.mxu1 %v19827_v25  ;;  %33468 = vmatprep.mubr.msk.f32.mxu1 %vm36438_vm1, %v40150_v22 }
0x1f32   :  { %33471 = vmatprep.subr.mxu1 %v40150_v22 }
0x1f38   :  { %33469 = vmatmul.mubr.f32.vlgmr.msra.gmra.mrb[60].mxu1 %v19814_v11 }
0x1f39   :  { %33472 = vmatpush3.msra.mxu1 %v19749_v32  ;;  %33473 = vmatprep.mubr.msk.f32.mxu1 %vm36438_vm1, %v40150_v22  ;;  %v20222_v32 = vsel %vm8463_vm7, %v20220_v26, %v20207_v17 }
0x1f3a   :  { %35234 = vmatprep.subr.bf16.mxu1 %v40148_v14 }
0x1f40   :  { %33474 = vmatmul.mubr.f32.vlgmr.msra.gmra.mrb[60].mxu1 %v19814_v11 }
0x1f41   :  { %35236 = vmatpush3.bf16.msra.mxu1 %v38642_v60  ;;  %33495 = vmatprep.mubr.msk.f32.mxu1 %vm36438_vm1, %v40150_v22 }
0x1f42   :  { %35237 = vmatprep.subr.bf16.mxu1 %v40148_v14 }
0x1f45   :  { %35239 = vmatpush3.bf16.msra.mxu1 %v35238_v35 }
0x1f46   :  { %35246 = vmatprep.subr.bf16.mxu1 %v40148_v14 }
0x1f7a   :  { %v19737_v51 = vpop.f32.mrb[60].mxu0 }
0x1f7b   :  { %20214 = vrot.lane.b32.xlu1 %v19737_v51, %s40170_s5  ;;  %v33445_v41 = vpop.f32.mrb[61].mxu0 }
0x1f7f   :  { %20200 = vrot.lane.b32.xlu1 %v38453_v24, %s40168_s17 }
0x1fed   :  { %v20215_v19 = vpop.permute.xlu1 %20214 }
0x1fee   :  { %v20224_v4 = vsel %vm8466_vm8, %v20222_v32, %v20215_v19 }
0x1fef   :  { %v20237_v39 = vsel %vm104_vm2, %v20224_v4, 0 }
0x1ff0   :  { %v20308_v11 = vand.u32 4294901760, %v20237_v39 }
0x1ff1   :  { %v20201_v9 = vpop.permute.xlu1 %20200 }
0x1ff2   :  { %v20309_v25 = vsub.f32 %v20237_v39, %v20308_v11  ;;  %33496 = vmatmul.mubr.f32.vlgmr.msra.gmra.mrb[62].mxu1 %v20308_v11  ;;  %v20221_v28 = vsel %vm1086_vm3, %v38333_v30, %v20201_v9 }
0x1ff3   :  { %35248 = vmatpush3.bf16.msra.mxu1 %v38655_v47  ;;  %33517 = vmatprep.mubr.msk.f32.mxu1 %vm36438_vm1, %v40150_v22  ;;  %v20223_v7 = vsel %vm8463_vm7, %v20221_v28, %v20209_v5 }
0x1ff4   :  { %35249 = vmatprep.subr.bf16.mxu1 %v40148_v14  ;;  %v20310_v24 = vand.u32 4294901760, %v20309_v25 }
0x1ff6   :  { %v20311_v48 = vsub.f32 %v20309_v25, %v20310_v24 }
0x1ff7   :  { %35251 = vmatpush3.bf16.msra.mxu1 %v38659_v43 }
0x1ff8   :  { %35258 = vmatprep.subr.bf16.mxu1 %v40148_v14  ;;  %v20312_v52 = vand.u32 4294901760, %v20311_v48 }
0x1ffa   :  { %33518 = vmatmul.mubr.f32.vlgmr.msra.gmra.mrb[64].mxu1 %v20310_v24  ;;  %33485 = vmatmul.mubr.f32.vlgmr.msra.gmra.mrb[62].mxu0 %v20312_v52 }
0x1ffb   :  { %35242 = vmatpush3.bf16.msra.mxu0 %v35241_v1  ;;  %35260 = vmatpush3.bf16.msra.mxu1 %v38655_v47 }
0x1ffc   :  { %35243 = vmatprep.subr.bf16.mxu0 %v40148_v14  ;;  %35261 = vmatprep.subr.bf16.mxu1 %v40148_v14 }
0x1ffd   :  { %33506 = vmatprep.mubr.msk.f32.mxu0 %vm36438_vm1, %v40150_v22  ;;  %33539 = vmatprep.mubr.msk.f32.mxu1 %vm36438_vm1, %v40150_v22 }
0x1fff   :  { %35245 = vmatpush3.bf16.msra.mxu0 %v38664_v18  ;;  %35263 = vmatpush3.bf16.msra.mxu1 %v38659_v43 }
0x2000   :  { %35252 = vmatprep.subr.bf16.mxu0 %v40148_v14  ;;  %35270 = vmatprep.subr.bf16.mxu1 %v40148_v14 }
0x2002   :  { %33507 = vmatmul.mubr.f32.vlgmr.msra.gmra.mrb[64].mxu0 %v20309_v25  ;;  %33540 = vmatmul.mubr.f32.vlgmr.msra.gmra.mrb[66].mxu1 %v20308_v11 }
0x2003   :  { %35254 = vmatpush3.bf16.msra.mxu0 %v35253_v62  ;;  %33528 = vmatprep.mubr.msk.f32.mxu0 %vm36438_vm1, %v40150_v22 }
0x2004   :  { %35255 = vmatprep.subr.bf16.mxu0 %v40148_v14  ;;  %35272 = vmatpush3.bf16.msra.mxu1 %v38642_v60  ;;  %v30180_v60 = vld [vmem:[%s40099_s6 + $0x1] ss:$0 sm:$0xff] }
0x2005   :  { %35273 = vmatprep.subr.bf16.mxu1 %v40148_v14  ;;  %33561 = vmatprep.mubr.msk.f32.mxu1 %vm36438_vm1, %v40150_v22 }
0x2007   :  { %35257 = vmatpush3.bf16.msra.mxu0 %v38668_v13 }
0x2008   :  { %35275 = vmatpush3.bf16.msra.mxu1 %v35238_v35  ;;  %35264 = vmatprep.subr.bf16.mxu0 %v40148_v14 }
0x2009   :  { %35282 = vmatprep.subr.bf16.mxu1 %v40148_v14 }
0x200a   :  { %33529 = vmatmul.mubr.f32.vlgmr.msra.gmra.mrb[66].mxu0 %v20308_v11 }
0x200b   :  { %35266 = vmatpush3.bf16.msra.mxu0 %v38655_v47  ;;  %33550 = vmatprep.mubr.msk.f32.mxu0 %vm36438_vm1, %v40150_v22 }
0x200c   :  { %35267 = vmatprep.subr.bf16.mxu0 %v40148_v14 }
0x200f   :  { %35269 = vmatpush3.bf16.msra.mxu0 %v38659_v43 }
0x2010   :  { %35276 = vmatprep.subr.bf16.mxu0 %v40148_v14 }
0x2013   :  { %v20190_v34 = vpop.f32.mrb[60].mxu1 }
0x2014   :  { %v33475_v0 = vpop.f32.mrb[61].mxu1  ;;  %20216 = vrot.lane.b32.xlu1 %v20190_v34, %s40170_s5 }
0x2086   :  { %v20217_v2 = vpop.permute.xlu1 %20216 }
0x2087   :  { %v20225_v58 = vsel %vm8466_vm8, %v20223_v7, %v20217_v2 }
0x2088   :  { %v20725_v37 = vsel %vm104_vm2, %v20225_v58, 0 }
0x2089   :  { %v20796_v15 = vand.u32 4294901760, %v20725_v37 }
0x208b   :  { %v20797_v31 = vsub.f32 %v20725_v37, %v20796_v15  ;;  %33562 = vmatmul.mubr.f32.vlgmr.msra.gmra.mrb[68].mxu1 %v20796_v15 }
0x208c   :  { %35284 = vmatpush3.bf16.msra.mxu1 %v38655_v47  ;;  %33583 = vmatprep.mubr.msk.f32.mxu1 %vm36438_vm1, %v40150_v22 }
0x208d   :  { %35285 = vmatprep.subr.bf16.mxu1 %v40148_v14  ;;  %v20798_v63 = vand.u32 4294901760, %v20797_v31 }
0x208f   :  { %v20799_v30 = vsub.f32 %v20797_v31, %v20798_v63 }
0x2090   :  { %35287 = vmatpush3.bf16.msra.mxu1 %v38659_v43 }
0x2091   :  { %35294 = vmatprep.subr.bf16.mxu1 %v40148_v14  ;;  %v20800_v44 = vand.u32 4294901760, %v20799_v30 }
0x2093   :  { %33584 = vmatmul.mubr.f32.vlgmr.msra.gmra.mrb[70].mxu1 %v20798_v63  ;;  %33551 = vmatmul.mubr.f32.vlgmr.msra.gmra.mrb[68].mxu0 %v20800_v44  ;;  %v30185_v63 = vld [vmem:[%s40100_s9 + $0x30] sm:$0xff] }
0x2094   :  { %35278 = vmatpush3.bf16.msra.mxu0 %v35241_v1  ;;  %35296 = vmatpush3.bf16.msra.mxu1 %v38655_v47 }
0x2095   :  { %35279 = vmatprep.subr.bf16.mxu0 %v40148_v14  ;;  %35297 = vmatprep.subr.bf16.mxu1 %v40148_v14 }
0x2096   :  { %33572 = vmatprep.mubr.msk.f32.mxu0 %vm36438_vm1, %v40150_v22  ;;  %33605 = vmatprep.mubr.msk.f32.mxu1 %vm36438_vm1, %v40150_v22 }
0x2098   :  { %35281 = vmatpush3.bf16.msra.mxu0 %v38664_v18  ;;  %35299 = vmatpush3.bf16.msra.mxu1 %v38659_v43 }
0x2099   :  { %35288 = vmatprep.subr.bf16.mxu0 %v40148_v14  ;;  %35336 = vmatprep.subr.bf16.mxu1 %v40148_v14 }
0x209b   :  { %33573 = vmatmul.mubr.f32.vlgmr.msra.gmra.mrb[70].mxu0 %v20797_v31  ;;  %33606 = vmatmul.mubr.f32.vlgmr.msra.gmra.mrb[72].mxu1 %v20796_v15  ;;  %v30184_v31 = vld [vmem:[%s40100_s9 + $0x28] sm:$0xff] }
0x209c   :  { %35290 = vmatpush3.bf16.msra.mxu0 %v35253_v62  ;;  %33594 = vmatprep.mubr.msk.f32.mxu0 %vm36438_vm1, %v40150_v22  ;;  %v21271_v44 = vand.u32 4294901760, %v30184_v31 }
0x209d   :  { %35291 = vmatprep.subr.bf16.mxu0 %v40148_v14  ;;  %33682 = vmatprep.mubr.msk.f32.mxu1 %vm36438_vm1, %v40150_v22 }
0x20a0   :  { %35293 = vmatpush3.bf16.msra.mxu0 %v38668_v13 }
0x20a1   :  { %35300 = vmatprep.subr.bf16.mxu0 %v40148_v14 }
0x20a3   :  { %33595 = vmatmul.mubr.f32.vlgmr.msra.gmra.mrb[72].mxu0 %v20796_v15  ;;  %v30183_v15 = vld [vmem:[%s40100_s9 + $0x20] sm:$0xff] }
0x20a4   :  { %33616 = vmatprep.mubr.msk.f32.mxu0 %vm36438_vm1, %v40150_v22  ;;  %v21268_v30 = vand.u32 4294901760, %v30183_v15 }
0x20c5   :  { %v20405_v23 = vpop.f32.mrb[62].mxu1 }
0x20c6   :  { %v33497_v29 = vpop.f32.mrb[63].mxu1 }
0x20cd   :  { %v20562_v38 = vpop.f32.mrb[64].mxu1  ;;  %v20314_v20 = vpop.f32.mrb[62].mxu0 }
0x20ce   :  { %v20315_v54 = vadd.f32 %v30180_v60, %v20314_v20  ;;  %v33519_v27 = vpop.f32.mrb[65].mxu1  ;;  %v33486_v56 = vpop.f32.mrb[63].mxu0  ;;  %v21348_v20 = vsub.f32 %v30183_v15, %v21268_v30 }
0x20d0   :  { %v20406_v6 = vadd.f32 %v20405_v23, %v20315_v54  ;;  %v21274_v23 = vand.u32 4294901760, %v30185_v63  ;;  %v21355_v54 = vsub.f32 %v30184_v31, %v21271_v44  ;;  %v21349_v27 = vand.u32 4294901760, %v21348_v20 }
0x20d2   :  { %v21356_v56 = vand.u32 4294901760, %v21355_v54 }
0x20d5   :  { %v20485_v40 = vpop.f32.mrb[64].mxu0  ;;  %v20720_v12 = vpop.f32.mrb[66].mxu1 }
0x20d6   :  { %v20486_v57 = vadd.f32 %v20485_v40, %v20406_v6  ;;  %v33508_v36 = vpop.f32.mrb[65].mxu0  ;;  %v33541_v55 = vpop.f32.mrb[67].mxu1  ;;  %v21350_v6 = vsub.f32 %v21348_v20, %v21349_v27  ;;  %v21357_v40 = vsub.f32 %v21355_v54, %v21356_v56 }
0x20d8   :  { %v20563_v16 = vadd.f32 %v20562_v38, %v20486_v57  ;;  %v21351_v36 = vand.u32 4294901760, %v21350_v6  ;;  %v21358_v55 = vand.u32 4294901760, %v21357_v40 }
0x20dd   :  { %v20645_v35 = vpop.f32.mrb[66].mxu0 }
0x20de   :  { %v20646_v47 = vadd.f32 %v20645_v35, %v20563_v16  ;;  %v33530_v43 = vpop.f32.mrb[67].mxu0 }
0x20e0   :  { %v20721_v51 = vadd.f32 %v20720_v12, %v20646_v47  ;;  %v21362_v12 = vsub.f32 %v30185_v63, %v21274_v23  ;;  %v38789_v47 = vpack.c.bf16 %v21358_v55, %v21351_v36  ;;  %v38904_v55 = vld [vmem:[%s40103_s11 + $0xb0] sm:$0xff] }
0x20e2   :  { %v38750_v41 = vadd.f32 %v20721_v51, %v38015_v49  ;;  %v21363_v16 = vand.u32 4294901760, %v21362_v12 }
0x20e4   :  { %v21216_v18 = vsel %vm55_vm0, %v38750_v41, 0.0  ;;  %v21364_v43 = vsub.f32 %v21362_v12, %v21363_v16 }
0x20e5   :  { %21217 = vadd.xlane.f32.xlu0 %v21216_v18 }
0x20e6   :  { %v21365_v18 = vand.u32 4294901760, %v21364_v43 }
0x215e   :  { %v20893_v13 = vpop.f32.mrb[68].mxu1 }
0x215f   :  { %v33563_v3 = vpop.f32.mrb[69].mxu1 }
0x2166   :  { %v21050_v17 = vpop.f32.mrb[70].mxu1  ;;  %v20802_v26 = vpop.f32.mrb[68].mxu0 }
0x2167   :  { %v20803_v32 = vadd.f32 %v30180_v60, %v20802_v26  ;;  %v33585_v19 = vpop.f32.mrb[71].mxu1  ;;  %v33552_v4 = vpop.f32.mrb[69].mxu0  ;;  %v38777_v60 = vpack.c.bf16 %v21271_v44, %v21268_v30  ;;  %v38856_v44 = vld [vmem:[%s40103_s11 + $0x80] sm:$0xff] }
0x2169   :  { %v20894_v39 = vadd.f32 %v20893_v13, %v20803_v32  ;;  %35302 = vmatpush3.bf16.msra.mxu0 %v38777_v60  ;;  %35338 = vmatpush3.bf16.msra.mxu1 %v38777_v60  ;;  %v38797_v32 = vpack.c.bf16 %v21356_v56, %v21349_v27  ;;  %v38873_v27 = vld [vmem:[%s40103_s11 + $0x98] sm:$0xff] }
0x216a   :  { %35303 = vmatprep.subr.bf16.mxu0 %v40148_v14  ;;  %35339 = vmatprep.subr.bf16.mxu1 %v40148_v14  ;;  %v22290_v40 = vand.u32 4294901760, %v38873_v27 }
0x216e   :  { %v20973_v11 = vpop.f32.mrb[70].mxu0  ;;  %v21208_v25 = vpop.f32.mrb[72].mxu1 }
0x216f   :  { %v20974_v24 = vadd.f32 %v20973_v11, %v20894_v39  ;;  %v33574_v48 = vpop.f32.mrb[71].mxu0  ;;  %v33607_v1 = vpop.f32.mrb[73].mxu1 }
0x2171   :  { %v21051_v52 = vadd.f32 %v21050_v17, %v20974_v24  ;;  %v38793_v17 = vpack.c.bf16 %v21355_v54, %v21348_v20  ;;  %v38868_v54 = vld [vmem:[%s40103_s11 + $0x90] sm:$0xff] }
0x2172   :  { %v21218_v49 = vpop.xlane.xlu0 %21217  ;;  %v22287_v6 = vand.u32 4294901760, %v38868_v54 }
0x2173   :  { %v21222_v62 = vmul.f32 0.03125, %v21218_v49 }
0x2174   :  { %v38899_v36 = vpack.c.bf16 %v22290_v40, %v22287_v6 }
0x2175   :  { %v38755_v34 = vsub.f32 %v38750_v41, %v21222_v62  ;;  %v38810_v62 = vld [vmem:[%s40101_s7 + $0x1] ss:$0 sm:$0xff] }
0x2176   :  { %v21133_v0 = vpop.f32.mrb[72].mxu0 }
0x2177   :  { %v21134_v9 = vadd.f32 %v21133_v0, %v21051_v52  ;;  %v33596_v28 = vpop.f32.mrb[73].mxu0  ;;  %v21226_v5 = vmul.f32 %v38755_v34, %v38755_v34 }
0x2179   :  { %v21209_v7 = vadd.f32 %v21208_v25, %v21134_v9  ;;  %v21228_v2 = vsel %vm55_vm0, %v21226_v5, 0.0  ;;  %v38816_v9 = vld [vmem:[%s40102_s8 + $0x1] ss:$0 sm:$0xff] }
0x217a   :  { %21229 = vadd.xlane.f32.xlu1 %v21228_v2 }
0x217b   :  { %v38761_v58 = vadd.f32 %v21209_v7, %v38026_v42  ;;  %v30186_v42 = vld [vmem:[%s40100_s9 + $0x38] sm:$0xff] }
0x217c   :  { %v21277_v29 = vand.u32 4294901760, %v30186_v42 }
0x217d   :  { %v21219_v37 = vsel %vm55_vm0, %v38761_v58, 0.0 }
0x217e   :  { %21220 = vadd.xlane.f32.xlu0 %v21219_v37  ;;  %v38780_v38 = vpack.c.bf16 %v21277_v29, %v21274_v23  ;;  %v21369_v57 = vsub.f32 %v30186_v42, %v21277_v29  ;;  %v38861_v42 = vld [vmem:[%s40103_s11 + $0x88] sm:$0xff]  ;;  %v22281_v29 = vand.u32 4294901760, %v38856_v44 }
0x217f   :  { %v40131_v20 = vand.u32 4294901760, %v38861_v42 }
0x2180   :  { %35305 = vmatpush3.bf16.msra.mxu0 %v38780_v38  ;;  %35341 = vmatpush3.bf16.msra.mxu1 %v38780_v38  ;;  %v21370_v35 = vand.u32 4294901760, %v21369_v57  ;;  %v38795_v26 = vpack.c.bf16 %v21369_v57, %v21362_v12  ;;  %v38887_v12 = vld [vmem:[%s40103_s11 + $0xa0] sm:$0xff] }
0x2181   :  { %35306 = vmatprep.subr.bf16.mxu0 %v40148_v14  ;;  %35342 = vmatprep.subr.bf16.mxu1 %v40148_v14  ;;  %v38879_v56 = vpack.c.bf16 %v40131_v20, %v22281_v29 }
0x2182   :  { %v21371_v51 = vsub.f32 %v21369_v57, %v21370_v35  ;;  %v38799_v19 = vpack.c.bf16 %v21370_v35, %v21363_v16  ;;  %v38892_v57 = vld [vmem:[%s40103_s11 + $0xa8] sm:$0xff]  ;;  %v38909_v16 = vld [vmem:[%s40103_s11 + $0xb8] sm:$0xff]  ;;  %v22293_v35 = vand.u32 4294901760, %v38887_v12 }
0x2183   :  { %v22296_v43 = vand.u32 4294901760, %v38892_v57 }
0x2184   :  { %v21372_v13 = vand.u32 4294901760, %v21371_v51 }
0x2186   :  { %v38791_v3 = vpack.c.bf16 %v21372_v13, %v21365_v18  ;;  %v22299_v18 = vand.u32 4294901760, %v38904_v55  ;;  %v22302_v13 = vand.u32 4294901760, %v38909_v16 }
0x2207   :  { %v21230_v4 = vpop.xlane.xlu1 %21229 }
0x2208   :  { %v21234_v39 = vmul.f32 0.03125, %v21230_v4  ;;  %v38921_v4 = vpack.c.bf16 %v22296_v43, %v22293_v35 }
0x220a   :  { %v21236_v11 = vadd.f32 1e-06, %v21234_v39 }
0x220b   :  { %v21221_v25 = vpop.xlane.xlu0 %21220 }
0x220c   :  { %36379 = vrsqrt.f32 %v21236_v11  ;;  %v21223_v24 = vmul.f32 0.03125, %v21221_v25  ;;  %v38927_v11 = vld [vmem:[%s40103_s11 + $0xc0] sm:$0xff]  ;;  %v38932_v25 = vld [vmem:[%s40103_s11 + $0xc8] sm:$0xff] }
0x220e   :  { %v38802_v48 = vsub.f32 %v38761_v58, %v21223_v24  ;;  %v38939_v24 = vpack.c.bf16 %v22302_v13, %v22299_v18 }
0x2210   :  { %v21227_v1 = vmul.f32 %v38802_v48, %v38802_v48 }
0x2212   :  { %v21231_v52 = vsel %vm55_vm0, %v21227_v1, 0.0  ;;  %v22305_v1 = vand.u32 4294901760, %v38927_v11 }
0x2213   :  { %21232 = vadd.xlane.f32.xlu0 %v21231_v52  ;;  %v22308_v52 = vand.u32 4294901760, %v38932_v25 }
0x2216   :  { %v36380_v49 = vpop.eup %36379 }
0x2217   :  { %v21240_v0 = vmul.f32 %v36380_v49, %v38755_v34 }
0x2219   :  { %v21246_v28 = vmul.f32 %v38810_v62, %v21240_v0  ;;  %v38949_v0 = vld [vmem:[%s40103_s11 + $0xd0] sm:$0xff] }
0x221b   :  { %v21252_v5 = vadd.f32 %v38816_v9, %v21246_v28  ;;  %v38954_v28 = vld [vmem:[%s40103_s11 + $0xd8] sm:$0xff] }
0x221d   :  { %v21265_v7 = vsel %vm104_vm2, %v21252_v5, 0 }
0x221e   :  { %v21336_v2 = vand.u32 4294901760, %v21265_v7 }
0x2220   :  { %v21337_v37 = vsub.f32 %v21265_v7, %v21336_v2 }
0x2222   :  { %v21338_v15 = vand.u32 4294901760, %v21337_v37 }
0x2224   :  { %v21339_v31 = vsub.f32 %v21337_v37, %v21338_v15 }
0x2226   :  { %v21340_v63 = vand.u32 4294901760, %v21339_v31 }
0x2228   :  { %33617 = vmatmul.mubr.f32.vlgmr.msra.gmra.mrb[74].mxu0 %v21340_v63 }
0x2229   :  { %35308 = vmatpush3.bf16.msra.mxu0 %v38789_v47  ;;  %33627 = vmatprep.mubr.msk.f32.mxu0 %vm36438_vm1, %v40150_v22 }
0x222a   :  { %35309 = vmatprep.subr.bf16.mxu0 %v40148_v14 }
0x222d   :  { %35311 = vmatpush3.bf16.msra.mxu0 %v38791_v3 }
0x222e   :  { %35312 = vmatprep.subr.bf16.mxu0 %v40148_v14 }
0x2230   :  { %33628 = vmatmul.mubr.f32.vlgmr.msra.gmra.mrb[74].mxu0 %v21336_v2 }
0x2231   :  { %35314 = vmatpush3.bf16.msra.mxu0 %v38793_v17  ;;  %33638 = vmatprep.mubr.msk.f32.mxu0 %vm36438_vm1, %v40150_v22 }
0x2232   :  { %35315 = vmatprep.subr.bf16.mxu0 %v40148_v14 }
0x2235   :  { %35317 = vmatpush3.bf16.msra.mxu0 %v38795_v26 }
0x2236   :  { %35318 = vmatprep.subr.bf16.mxu0 %v40148_v14 }
0x2238   :  { %33639 = vmatmul.mubr.f32.vlgmr.msra.gmra.mrb[74].mxu0 %v21337_v37  ;;  %v38968_v37 = vld [vmem:[%s40103_s11 + $0xe0] sm:$0xff] }
0x2239   :  { %35320 = vmatpush3.bf16.msra.mxu0 %v38777_v60  ;;  %33649 = vmatprep.mubr.msk.f32.mxu0 %vm36438_vm1, %v40150_v22 }
0x223a   :  { %35321 = vmatprep.subr.bf16.mxu0 %v40148_v14 }
0x223d   :  { %35323 = vmatpush3.bf16.msra.mxu0 %v38780_v38 }
0x223e   :  { %35324 = vmatprep.subr.bf16.mxu0 %v40148_v14 }
0x2240   :  { %33650 = vmatmul.mubr.f32.vlgmr.msra.gmra.mrb[74].mxu0 %v21338_v15  ;;  %v38973_v15 = vld [vmem:[%s40103_s11 + $0xe8] sm:$0xff] }
0x2241   :  { %35326 = vmatpush3.bf16.msra.mxu0 %v38797_v32  ;;  %33660 = vmatprep.mubr.msk.f32.mxu0 %vm36438_vm1, %v40150_v22 }
0x2242   :  { %35327 = vmatprep.subr.bf16.mxu0 %v40148_v14 }
0x2245   :  { %35329 = vmatpush3.bf16.msra.mxu0 %v38799_v19 }
0x2246   :  { %35330 = vmatprep.subr.bf16.mxu0 %v40148_v14 }
0x2248   :  { %33661 = vmatmul.mubr.f32.vlgmr.msra.gmra.mrb[74].mxu0 %v21336_v2 }
0x2249   :  { %35332 = vmatpush3.bf16.msra.mxu0 %v38777_v60  ;;  %33671 = vmatprep.mubr.msk.f32.mxu0 %vm36438_vm1, %v40150_v22 }
0x224a   :  { %35333 = vmatprep.subr.bf16.mxu0 %v40148_v14 }
0x224d   :  { %35335 = vmatpush3.bf16.msra.mxu0 %v38780_v38 }
0x224e   :  { %35372 = vmatprep.subr.bf16.mxu0 %v40148_v14 }
0x2250   :  { %33672 = vmatmul.mubr.f32.vlgmr.msra.gmra.mrb[74].mxu0 %v21336_v2  ;;  %v22314_v2 = vand.u32 4294901760, %v38954_v28 }
0x2251   :  { %33772 = vmatprep.mubr.msk.f32.mxu0 %vm36438_vm1, %v40150_v22  ;;  %35374 = vmatpush3.bf16.msra.mxu0 %v38879_v56 }
0x2252   :  { %35375 = vmatprep.subr.bf16.mxu0 %v40148_v14 }
0x2255   :  { %35377 = vmatpush3.bf16.msra.mxu0 %v38899_v36 }
0x2256   :  { %35378 = vmatprep.subr.bf16.mxu0 %v40148_v14 }
0x2259   :  { %35380 = vmatpush3.bf16.msra.mxu0 %v38921_v4 }
0x225a   :  { %35381 = vmatprep.subr.bf16.mxu0 %v40148_v14 }
0x225d   :  { %35383 = vmatpush3.bf16.msra.mxu0 %v38939_v24 }
0x225e   :  { %35384 = vmatprep.subr.bf16.mxu0 %v40148_v14 }
0x22a0   :  { %v21233_v34 = vpop.xlane.xlu0 %21232 }
0x22a1   :  { %v21235_v30 = vmul.f32 0.03125, %v21233_v34 }
0x22a3   :  { %v21237_v23 = vadd.f32 1e-06, %v21235_v30  ;;  %v22317_v30 = vand.u32 4294901760, %v38968_v37 }
0x22a5   :  { %36381 = vrsqrt.f32 %v21237_v23  ;;  %v22320_v23 = vand.u32 4294901760, %v38973_v15 }
0x22af   :  { %v36382_v51 = vpop.eup %36381 }
0x22b0   :  { %v21241_v39 = vmul.f32 %v36382_v51, %v38802_v48 }
0x22b2   :  { %v21247_v48 = vmul.f32 %v38810_v62, %v21241_v39  ;;  %v38957_v62 = vpack.c.bf16 %v22308_v52, %v22305_v1  ;;  %v38983_v39 = vpack.c.bf16 %v22320_v23, %v22317_v30 }
0x22b4   :  { %v21253_v49 = vadd.f32 %v38816_v9, %v21247_v48  ;;  %v22311_v9 = vand.u32 4294901760, %v38949_v0  ;;  %35386 = vmatpush3.bf16.msra.mxu0 %v38957_v62  ;;  %v38988_v48 = vld [vmem:[%s40103_s11 + $0xf0] sm:$0xff] }
0x22b5   :  { %35387 = vmatprep.subr.bf16.mxu0 %v40148_v14  ;;  %v22323_v10 = vand.u32 4294901760, %v38988_v48 }
0x22b6   :  { %v21753_v5 = vsel %vm104_vm2, %v21253_v49, 0  ;;  %v38977_v63 = vpack.c.bf16 %v22314_v2, %v22311_v9  ;;  %v38993_v49 = vld [vmem:[%s40103_s11 + $0xf8] sm:$0xff] }
0x22b7   :  { %v38961_v7 = vand.u32 4294901760, %v21753_v5  ;;  %v22326_v50 = vand.u32 4294901760, %v38993_v49 }
0x22b8   :  { %35389 = vmatpush3.bf16.msra.mxu0 %v38977_v63 }
0x22b9   :  { %v21825_v31 = vsub.f32 %v21753_v5, %v38961_v7  ;;  %35390 = vmatprep.subr.bf16.mxu0 %v40148_v14  ;;  %v39004_v20 = vpack.c.bf16 %v22326_v50, %v22323_v10 }
0x22bb   :  { %v21826_v34 = vand.u32 4294901760, %v21825_v31 }
0x22bc   :  { %35392 = vmatpush3.bf16.msra.mxu0 %v38983_v39 }
0x22bd   :  { %v21827_v51 = vsub.f32 %v21825_v31, %v21826_v34  ;;  %35393 = vmatprep.subr.bf16.mxu0 %v40148_v14 }
0x22bf   :  { %v21828_v5 = vand.u32 4294901760, %v21827_v51  ;;  %v39019_v51 = vsub.f32 %v38873_v27, %v22290_v40  ;;  %v39037_v27 = vsub.f32 %v38892_v57, %v22296_v43  ;;  %v39053_v40 = vsub.f32 %v38909_v16, %v22302_v13 }
0x22c0   :  { %35395 = vmatpush3.bf16.msra.mxu0 %v39004_v20  ;;  %v40171_v57 = vand.u32 4294901760, %v38861_v42  ;;  %v39074_v16 = vsub.f32 %v38927_v11, %v22305_v1 }
0x22c1   :  { %33683 = vmatmul.mubr.f32.vlgmr.msra.gmra.mrb[74].mxu1 %v21828_v5  ;;  %35420 = vmatprep.subr.bf16.mxu0 %v40148_v14 }
0x22c2   :  { %35344 = vmatpush3.bf16.msra.mxu1 %v38789_v47  ;;  %33693 = vmatprep.mubr.msk.f32.mxu1 %vm36438_vm1, %v40150_v22  ;;  %v39014_v47 = vsub.f32 %v38868_v54, %v22287_v6  ;;  %v39032_v54 = vsub.f32 %v38887_v12, %v22293_v35  ;;  %v39048_v6 = vsub.f32 %v38904_v55, %v22299_v18 }
0x22c3   :  { %35345 = vmatprep.subr.bf16.mxu1 %v40148_v14  ;;  %v39066_v12 = vsub.f32 %v38856_v44, %v22281_v29  ;;  %v39071_v55 = vsub.f32 %v38861_v42, %v40171_v57  ;;  %v39077_v35 = vsub.f32 %v38932_v25, %v22308_v52  ;;  %v39088_v42 = vsub.f32 %v38949_v0, %v22311_v9 }
0x22c4   :  { %v39091_v18 = vsub.f32 %v38954_v28, %v22314_v2  ;;  %v40145_v1 = vand.u32 4294901760, %v39014_v47  ;;  %v39111_v52 = vsub.f32 %v38968_v37, %v22317_v30  ;;  %v39114_v0 = vsub.f32 %v38973_v15, %v22320_v23 }
0x22c5   :  { %v39083_v43 = vpack.c.bf16 %v39077_v35, %v39074_v16  ;;  %v40147_v44 = vand.u32 4294901760, %v39066_v12  ;;  %v40146_v29 = vand.u32 4294901760, %v39071_v55  ;;  %v39129_v15 = vsub.f32 %v38988_v48, %v22323_v10 }
0x22c6   :  { %35347 = vmatpush3.bf16.msra.mxu1 %v38791_v3  ;;  %v39027_v3 = vpack.c.bf16 %v39019_v51, %v39014_v47  ;;  %v39099_v13 = vpack.c.bf16 %v39091_v18, %v39088_v42  ;;  %v39119_v2 = vpack.c.bf16 %v39114_v0, %v39111_v52  ;;  %v40134_v30 = vand.u32 4294901760, %v39037_v27 }
0x22c7   :  { %35348 = vmatprep.subr.bf16.mxu1 %v40148_v14  ;;  %v22375_v11 = vsub.f32 %v39066_v12, %v40147_v44  ;;  %v22382_v25 = vsub.f32 %v39071_v55, %v40146_v29  ;;  %v40133_v5 = vand.u32 4294901760, %v39048_v6  ;;  %v40132_v57 = vand.u32 4294901760, %v39053_v40 }
0x22c9   :  { %33694 = vmatmul.mubr.f32.vlgmr.msra.gmra.mrb[74].mxu1 %v38961_v7  ;;  %v22376_v28 = vand.u32 4294901760, %v22375_v11  ;;  %v22383_v9 = vand.u32 4294901760, %v22382_v25  ;;  %v40137_v25 = vand.u32 4294901760, %v39077_v35 }
0x22ca   :  { %35350 = vmatpush3.bf16.msra.mxu1 %v38793_v17  ;;  %33704 = vmatprep.mubr.msk.f32.mxu1 %vm36438_vm1, %v40150_v22  ;;  %v39043_v17 = vpack.c.bf16 %v39037_v27, %v39032_v54 }
0x22cb   :  { %35351 = vmatprep.subr.bf16.mxu1 %v40148_v14  ;;  %v39144_v10 = vpack.c.bf16 %v22383_v9, %v22376_v28 }
0x22ce   :  { %35353 = vmatpush3.bf16.msra.mxu1 %v38795_v26  ;;  %v39061_v26 = vpack.c.bf16 %v39053_v40, %v39048_v6 }
0x22cf   :  { %35354 = vmatprep.subr.bf16.mxu1 %v40148_v14 }
0x22d1   :  { %33705 = vmatmul.mubr.f32.vlgmr.msra.gmra.mrb[74].mxu1 %v21825_v31  ;;  %v39132_v31 = vsub.f32 %v38993_v49, %v22326_v50  ;;  %v22410_v49 = vsub.f32 %v39037_v27, %v40134_v30 }
0x22d2   :  { %35356 = vmatpush3.bf16.msra.mxu1 %v38777_v60  ;;  %33715 = vmatprep.mubr.msk.f32.mxu1 %vm36438_vm1, %v40150_v22 }
0x22d3   :  { %35357 = vmatprep.subr.bf16.mxu1 %v40148_v14  ;;  %v39142_v23 = vpack.c.bf16 %v39132_v31, %v39129_v15  ;;  %v22411_v9 = vand.u32 4294901760, %v22410_v49 }
0x22d6   :  { %35359 = vmatpush3.bf16.msra.mxu1 %v38780_v38 }
0x22d7   :  { %35360 = vmatprep.subr.bf16.mxu1 %v40148_v14 }
0x22d9   :  { %33716 = vmatmul.mubr.f32.vlgmr.msra.gmra.mrb[74].mxu1 %v21826_v34  ;;  %v40135_v34 = vand.u32 4294901760, %v39032_v54 }
0x22da   :  { %35362 = vmatpush3.bf16.msra.mxu1 %v38797_v32  ;;  %33726 = vmatprep.mubr.msk.f32.mxu1 %vm36438_vm1, %v40150_v22  ;;  %v40138_v32 = vand.u32 4294901760, %v39019_v51 }
0x22db   :  { %35363 = vmatprep.subr.bf16.mxu1 %v40148_v14 }
0x22dc   :  { %v22396_v37 = vsub.f32 %v39019_v51, %v40138_v32 }
0x22de   :  { %35365 = vmatpush3.bf16.msra.mxu1 %v38799_v19  ;;  %v22389_v19 = vsub.f32 %v39014_v47, %v40145_v1  ;;  %v22397_v50 = vand.u32 4294901760, %v22396_v37  ;;  %v22424_v37 = vsub.f32 %v39053_v40, %v40132_v57 }
0x22df   :  { %35366 = vmatprep.subr.bf16.mxu1 %v40148_v14 }
0x22e0   :  { %v22390_v48 = vand.u32 4294901760, %v22389_v19  ;;  %v22417_v19 = vsub.f32 %v39048_v6, %v40133_v5  ;;  %v22425_v5 = vand.u32 4294901760, %v22424_v37 }
0x22e1   :  { %33727 = vmatmul.mubr.f32.vlgmr.msra.gmra.mrb[74].mxu1 %v38961_v7 }
0x22e2   :  { %35368 = vmatpush3.bf16.msra.mxu1 %v38777_v60  ;;  %33737 = vmatprep.mubr.msk.f32.mxu1 %vm36438_vm1, %v40150_v22  ;;  %v22403_v60 = vsub.f32 %v39032_v54, %v40135_v34  ;;  %v39157_v11 = vpack.c.bf16 %v22397_v50, %v22390_v48  ;;  %v22438_v48 = vsub.f32 %v39077_v35, %v40137_v25  ;;  %v40144_v50 = vand.u32 4294901760, %v39088_v42 }
0x22e3   :  { %35369 = vmatprep.subr.bf16.mxu1 %v40148_v14  ;;  %v22418_v57 = vand.u32 4294901760, %v22417_v19 }
0x22e4   :  { %v22404_v28 = vand.u32 4294901760, %v22403_v60  ;;  %v40139_v60 = vand.u32 4294901760, %v39091_v18  ;;  %v22439_v34 = vand.u32 4294901760, %v22438_v48 }
0x22e5   :  { %v39190_v32 = vpack.c.bf16 %v22425_v5, %v22418_v57  ;;  %v40143_v57 = vand.u32 4294901760, %v39129_v15 }
0x22e6   :  { %35371 = vmatpush3.bf16.msra.mxu1 %v38780_v38  ;;  %v40136_v38 = vand.u32 4294901760, %v39074_v16  ;;  %v39180_v49 = vpack.c.bf16 %v22411_v9, %v22404_v28  ;;  %v22452_v25 = vsub.f32 %v39091_v18, %v40139_v60  ;;  %v40141_v28 = vand.u32 4294901760, %v39111_v52 }
0x22e7   :  { %35396 = vmatprep.subr.bf16.mxu1 %v40148_v14  ;;  %v40140_v9 = vand.u32 4294901760, %v39114_v0  ;;  %v40142_v60 = vand.u32 4294901760, %v39132_v31 }
0x22e8   :  { %v22459_v48 = vsub.f32 %v39111_v52, %v40141_v28 }
0x22e9   :  { %33738 = vmatmul.mubr.f32.vlgmr.msra.gmra.mrb[74].mxu1 %v38961_v7  ;;  %v22431_v7 = vsub.f32 %v39074_v16, %v40136_v38  ;;  %v22445_v38 = vsub.f32 %v39088_v42, %v40144_v50  ;;  %v22466_v5 = vsub.f32 %v39114_v0, %v40140_v9  ;;  %v22480_v9 = vsub.f32 %v39132_v31, %v40142_v60 }
0x22ea   :  { %35398 = vmatpush3.bf16.msra.mxu1 %v39144_v10  ;;  %33807 = vmatprep.mubr.msk.f32.mxu1 %vm36438_vm1, %v40150_v22 }
0x22eb   :  { %35399 = vmatprep.subr.bf16.mxu1 %v40148_v14  ;;  %v22432_v30 = vand.u32 4294901760, %v22431_v7  ;;  %v22446_v37 = vand.u32 4294901760, %v22445_v38  ;;  %v22453_v7 = vand.u32 4294901760, %v22452_v25  ;;  %v22467_v38 = vand.u32 4294901760, %v22466_v5  ;;  %v39230_v5 = vld [vmem:[%s40104_s10 + $0x1] ss:$0 sm:$0xff] }
0x22ec   :  { %v22473_v25 = vsub.f32 %v39129_v15, %v40143_v57 }
0x22ed   :  { %v39195_v19 = vpack.c.bf16 %v22439_v34, %v22432_v30  ;;  %v39207_v34 = vpack.c.bf16 %v22453_v7, %v22446_v37  ;;  %v22460_v30 = vand.u32 4294901760, %v22459_v48  ;;  %v22481_v7 = vand.u32 4294901760, %v22480_v9 }
0x22ee   :  { %35401 = vmatpush3.bf16.msra.mxu1 %v39157_v11  ;;  %v22474_v37 = vand.u32 4294901760, %v22473_v25 }
0x22ef   :  { %35402 = vmatprep.subr.bf16.mxu1 %v40148_v14  ;;  %v39218_v28 = vpack.c.bf16 %v22467_v38, %v22460_v30 }
0x22f0   :  { %v39222_v48 = vpack.c.bf16 %v22481_v7, %v22474_v37 }
0x22f2   :  { %35404 = vmatpush3.bf16.msra.mxu1 %v39180_v49 }
0x22f3   :  { %35405 = vmatprep.subr.bf16.mxu1 %v40148_v14 }
0x22f6   :  { %35407 = vmatpush3.bf16.msra.mxu1 %v39190_v32 }
0x22f7   :  { %35408 = vmatprep.subr.bf16.mxu1 %v40148_v14 }
0x22fa   :  { %35410 = vmatpush3.bf16.msra.mxu1 %v39195_v19 }
0x22fb   :  { %35411 = vmatprep.subr.bf16.mxu1 %v40148_v14 }
0x22fe   :  { %35413 = vmatpush3.bf16.msra.mxu1 %v39207_v34 }
0x22ff   :  { %35414 = vmatprep.subr.bf16.mxu1 %v40148_v14 }
0x2302   :  { %35416 = vmatpush3.bf16.msra.mxu1 %v39218_v28 }
0x2303   :  { %35417 = vmatprep.subr.bf16.mxu1 %v40148_v14 }
0x2306   :  { %35419 = vmatpush3.bf16.msra.mxu1 %v39222_v48 }
0x2307   :  { %35444 = vmatprep.subr.bf16.mxu1 %v40148_v14 }
0x2323   :  { %v21748_v30 = vpop.f32.mrb[74].mxu0 }
0x2324   :  { %v35738_v9 = vadd.f32 %v39230_v5, %v21748_v30  ;;  %v33673_v38 = vpop.f32.mrb[75].mxu0  ;;  %v40172_v30 = vmov 0.0  }
0x2325   :  { %v40173_v38 = vmov 0.0|0.0  }
0x2326   :  { %v22242_v25 = vmul.f32 0.044715, %v35738_v9  ;;  %v22240_v1 = vmul.f32 0.5, %v35738_v9 }
0x2328   :  { %v22244_v60 = vmul.f32 %v35738_v9, %v22242_v25  ;;  %v40176_v25 = vand.u32 4294901760, %v39014_v47 }
0x232a   :  { %v22246_v57 = vmul.f32 %v35738_v9, %v22244_v60 }
0x232c   :  { %v22248_v37 = vadd.f32 %v35738_v9, %v22246_v57 }
0x232e   :  { %v22250_v7 = vmul.f32 0.7978846, %v22248_v37  ;;  %v40177_v37 = vand.u32 4294901760, %v39019_v51  ;;  %v40180_v51 = vand.u32 4294901760, %v39048_v6  ;;  %v40184_v6 = vand.u32 4294901760, %v39088_v42 }
0x232f   :  { %v40188_v42 = vand.u32 4294901760, %v39129_v15 }
0x2330   :  { %36383 = vtanh.f32 %v22250_v7  ;;  %v39295_v7 = vpack.c.bf16 %v40177_v37, %v40176_v25 }
0x233a   :  { %v36384_v50 = vpop.eup %36383 }
0x233b   :  { %v22254_v29 = vadd.f32 1.0, %v36384_v50  ;;  %v40175_v50 = vand.u32 4294901760, %v39071_v55 }
0x233d   :  { %v22256_v44 = vmul.f32 %v22254_v29, %v22240_v1  ;;  %v39244_v29 = vpack.c.bf16 %v39071_v55, %v39066_v12  ;;  %v40174_v1 = vand.u32 4294901760, %v39066_v12  ;;  %v40179_v12 = vand.u32 4294901760, %v39037_v27 }
0x233e   :  { %v40181_v55 = vand.u32 4294901760, %v39053_v40  ;;  %v40183_v27 = vand.u32 4294901760, %v39077_v35  ;;  %v40185_v40 = vand.u32 4294901760, %v39091_v18  ;;  %v40187_v35 = vand.u32 4294901760, %v39114_v0 }
0x233f   :  { %v39233_v14 = vand.u32 4294901760, %v22256_v44  ;;  %v39285_v9 = vpack.c.bf16 %v40175_v50, %v40174_v1  ;;  %v40189_v18 = vand.u32 4294901760, %v39132_v31 }
0x2341   :  { %v22362_v22 = vsub.f32 %v22256_v44, %v39233_v14  ;;  %33808 = vmatmul.mubr.f32.vlgmr.msra.gmra.mrb[76].mxu1 %v39233_v14  ;;  %v39357_v50 = vpack.c.bf16 %v40189_v18, %v40188_v42 }
0x2342   :  { %35446 = vmatpush3.bf16.msra.mxu1 %v38879_v56  ;;  %33877 = vmatprep.mubr.msk.f32.mxu1 %vm36438_vm1, %v40172_v30 }
0x2343   :  { %35447 = vmatprep.subr.bf16.mxu1 %v40173_v38  ;;  %v22363_v60 = vand.u32 4294901760, %v22362_v22 }
0x2345   :  { %v22364_v57 = vsub.f32 %v22362_v22, %v22363_v60 }
0x2346   :  { %35449 = vmatpush3.bf16.msra.mxu1 %v38899_v36 }
0x2347   :  { %35450 = vmatprep.subr.bf16.mxu1 %v40173_v38  ;;  %v22365_v44 = vand.u32 4294901760, %v22364_v57 }
0x2349   :  { %33773 = vmatmul.mubr.f32.vlgmr.msra.gmra.mrb[76].mxu0 %v22365_v44  ;;  %v39337_v44 = vpack.c.bf16 %v40185_v40, %v40184_v6 }
0x234a   :  { %35422 = vmatpush3.bf16.msra.mxu0 %v39244_v29  ;;  %35452 = vmatpush3.bf16.msra.mxu1 %v38921_v4 }
0x234b   :  { %35423 = vmatprep.subr.bf16.mxu0 %v40173_v38  ;;  %35453 = vmatprep.subr.bf16.mxu1 %v40173_v38 }
0x234c   :  { %33842 = vmatprep.mubr.msk.f32.mxu0 %vm36438_vm1, %v40172_v30 }
0x234e   :  { %35425 = vmatpush3.bf16.msra.mxu0 %v39027_v3  ;;  %35455 = vmatpush3.bf16.msra.mxu1 %v38939_v24 }
0x234f   :  { %35426 = vmatprep.subr.bf16.mxu0 %v40173_v38  ;;  %35456 = vmatprep.subr.bf16.mxu1 %v40173_v38 }
0x2352   :  { %35428 = vmatpush3.bf16.msra.mxu0 %v39043_v17  ;;  %35458 = vmatpush3.bf16.msra.mxu1 %v38957_v62 }
0x2353   :  { %35429 = vmatprep.subr.bf16.mxu0 %v40173_v38  ;;  %35459 = vmatprep.subr.bf16.mxu1 %v40173_v38 }
0x2356   :  { %35431 = vmatpush3.bf16.msra.mxu0 %v39061_v26  ;;  %35461 = vmatpush3.bf16.msra.mxu1 %v38977_v63 }
0x2357   :  { %35432 = vmatprep.subr.bf16.mxu0 %v40173_v38  ;;  %35462 = vmatprep.subr.bf16.mxu1 %v40173_v38 }
0x235a   :  { %35434 = vmatpush3.bf16.msra.mxu0 %v39083_v43  ;;  %35464 = vmatpush3.bf16.msra.mxu1 %v38983_v39 }
0x235b   :  { %35435 = vmatprep.subr.bf16.mxu0 %v40173_v38  ;;  %35465 = vmatprep.subr.bf16.mxu1 %v40173_v38 }
0x235e   :  { %35437 = vmatpush3.bf16.msra.mxu0 %v39099_v13  ;;  %35467 = vmatpush3.bf16.msra.mxu1 %v39004_v20 }
0x235f   :  { %35438 = vmatprep.subr.bf16.mxu0 %v40173_v38  ;;  %35492 = vmatprep.subr.bf16.mxu1 %v40173_v38 }
0x2361   :  { %33878 = vmatmul.mubr.f32.vlgmr.msra.gmra.mrb[78].mxu1 %v22363_v60  ;;  %v39317_v60 = vpack.c.bf16 %v40181_v55, %v40180_v51 }
0x2362   :  { %35440 = vmatpush3.bf16.msra.mxu0 %v39119_v2  ;;  %35494 = vmatpush3.bf16.msra.mxu1 %v38879_v56 }
0x2363   :  { %35441 = vmatprep.subr.bf16.mxu0 %v40173_v38  ;;  %35495 = vmatprep.subr.bf16.mxu1 %v40173_v38 }
0x2364   :  { %33947 = vmatprep.mubr.msk.f32.mxu1 %vm36438_vm1, %v40172_v30 }
0x2366   :  { %35443 = vmatpush3.bf16.msra.mxu0 %v39142_v23  ;;  %35497 = vmatpush3.bf16.msra.mxu1 %v38899_v36 }
0x2367   :  { %35468 = vmatprep.subr.bf16.mxu0 %v40173_v38  ;;  %35498 = vmatprep.subr.bf16.mxu1 %v40173_v38 }
0x2369   :  { %33843 = vmatmul.mubr.f32.vlgmr.msra.gmra.mrb[78].mxu0 %v22362_v22  ;;  %v40178_v22 = vand.u32 4294901760, %v39032_v54  ;;  %v40182_v54 = vand.u32 4294901760, %v39074_v16  ;;  %v40186_v16 = vand.u32 4294901760, %v39111_v52 }
0x236a   :  { %35470 = vmatpush3.bf16.msra.mxu0 %v39285_v9  ;;  %35500 = vmatpush3.bf16.msra.mxu1 %v38921_v4 }
0x236b   :  { %35471 = vmatprep.subr.bf16.mxu0 %v40173_v38  ;;  %35501 = vmatprep.subr.bf16.mxu1 %v40173_v38  ;;  %v39307_v47 = vpack.c.bf16 %v40179_v12, %v40178_v22  ;;  %v39327_v57 = vpack.c.bf16 %v40183_v27, %v40182_v54  ;;  %v39347_v1 = vpack.c.bf16 %v40187_v35, %v40186_v16 }
0x236c   :  { %33912 = vmatprep.mubr.msk.f32.mxu0 %vm36438_vm1, %v40172_v30  ;;  %v40190_v54 = vmin.f32 %v38478_v59, %v38575_v61 }
0x236e   :  { %35473 = vmatpush3.bf16.msra.mxu0 %v39295_v7  ;;  %35503 = vmatpush3.bf16.msra.mxu1 %v38939_v24 }
0x236f   :  { %35474 = vmatprep.subr.bf16.mxu0 %v40173_v38  ;;  %35504 = vmatprep.subr.bf16.mxu1 %v40173_v38 }
0x2372   :  { %35476 = vmatpush3.bf16.msra.mxu0 %v39307_v47  ;;  %35506 = vmatpush3.bf16.msra.mxu1 %v38957_v62 }
0x2373   :  { %35477 = vmatprep.subr.bf16.mxu0 %v40173_v38  ;;  %35507 = vmatprep.subr.bf16.mxu1 %v40173_v38 }
0x2376   :  { %35479 = vmatpush3.bf16.msra.mxu0 %v39317_v60  ;;  %35509 = vmatpush3.bf16.msra.mxu1 %v38977_v63 }
0x2377   :  { %35480 = vmatprep.subr.bf16.mxu0 %v40173_v38  ;;  %35510 = vmatprep.subr.bf16.mxu1 %v40173_v38 }
0x237a   :  { %35482 = vmatpush3.bf16.msra.mxu0 %v39327_v57  ;;  %35512 = vmatpush3.bf16.msra.mxu1 %v38983_v39 }
0x237b   :  { %35483 = vmatprep.subr.bf16.mxu0 %v40173_v38  ;;  %35513 = vmatprep.subr.bf16.mxu1 %v40173_v38 }
0x237e   :  { %35485 = vmatpush3.bf16.msra.mxu0 %v39337_v44  ;;  %35515 = vmatpush3.bf16.msra.mxu1 %v39004_v20 }
0x237f   :  { %35486 = vmatprep.subr.bf16.mxu0 %v40173_v38  ;;  %35540 = vmatprep.subr.bf16.mxu1 %v40173_v38 }
0x2381   :  { %33948 = vmatmul.mubr.f32.vlgmr.msra.gmra.mrb[80].mxu1 %v39233_v14 }
0x2382   :  { %35488 = vmatpush3.bf16.msra.mxu0 %v39347_v1  ;;  %35542 = vmatpush3.bf16.msra.mxu1 %v39144_v10 }
0x2383   :  { %35489 = vmatprep.subr.bf16.mxu0 %v40173_v38  ;;  %35543 = vmatprep.subr.bf16.mxu1 %v40173_v38 }
0x2384   :  { %34017 = vmatprep.mubr.msk.f32.mxu1 %vm36438_vm1, %v40172_v30 }
0x2386   :  { %35491 = vmatpush3.bf16.msra.mxu0 %v39357_v50  ;;  %35545 = vmatpush3.bf16.msra.mxu1 %v39157_v11 }
0x2387   :  { %35516 = vmatprep.subr.bf16.mxu0 %v40173_v38  ;;  %35546 = vmatprep.subr.bf16.mxu1 %v40173_v38 }
0x2389   :  { %33913 = vmatmul.mubr.f32.vlgmr.msra.gmra.mrb[80].mxu0 %v39233_v14 }
0x238a   :  { %35518 = vmatpush3.bf16.msra.mxu0 %v38879_v56  ;;  %35548 = vmatpush3.bf16.msra.mxu1 %v39180_v49 }
0x238b   :  { %35519 = vmatprep.subr.bf16.mxu0 %v40173_v38  ;;  %35549 = vmatprep.subr.bf16.mxu1 %v40173_v38 }
0x238c   :  { %33982 = vmatprep.mubr.msk.f32.mxu0 %vm36438_vm1, %v40172_v30 }
0x238e   :  { %35521 = vmatpush3.bf16.msra.mxu0 %v38899_v36  ;;  %35551 = vmatpush3.bf16.msra.mxu1 %v39190_v32 }
0x238f   :  { %35522 = vmatprep.subr.bf16.mxu0 %v40173_v38  ;;  %35552 = vmatprep.subr.bf16.mxu1 %v40173_v38 }
0x2392   :  { %35524 = vmatpush3.bf16.msra.mxu0 %v38921_v4  ;;  %35554 = vmatpush3.bf16.msra.mxu1 %v39195_v19 }
0x2393   :  { %35525 = vmatprep.subr.bf16.mxu0 %v40173_v38  ;;  %35555 = vmatprep.subr.bf16.mxu1 %v40173_v38 }
0x2396   :  { %35527 = vmatpush3.bf16.msra.mxu0 %v38939_v24  ;;  %35557 = vmatpush3.bf16.msra.mxu1 %v39207_v34 }
0x2397   :  { %35528 = vmatprep.subr.bf16.mxu0 %v40173_v38  ;;  %35558 = vmatprep.subr.bf16.mxu1 %v40173_v38 }
0x239a   :  { %35530 = vmatpush3.bf16.msra.mxu0 %v38957_v62  ;;  %35560 = vmatpush3.bf16.msra.mxu1 %v39218_v28 }
0x239b   :  { %35531 = vmatprep.subr.bf16.mxu0 %v40173_v38  ;;  %35561 = vmatprep.subr.bf16.mxu1 %v40173_v38 }
0x239e   :  { %35533 = vmatpush3.bf16.msra.mxu0 %v38977_v63  ;;  %35563 = vmatpush3.bf16.msra.mxu1 %v39222_v48 }
0x239f   :  { %35534 = vmatprep.subr.bf16.mxu0 %v40173_v38  ;;  %35588 = vmatprep.subr.bf16.mxu1 %v40173_v38 }
0x23a2   :  { %35536 = vmatpush3.bf16.msra.mxu0 %v38983_v39 }
0x23a3   :  { %35537 = vmatprep.subr.bf16.mxu0 %v40173_v38 }
0x23a6   :  { %35539 = vmatpush3.bf16.msra.mxu0 %v39004_v20 }
0x23a7   :  { %35564 = vmatprep.subr.bf16.mxu0 %v40173_v38 }
0x23bc   :  { %v22236_v14 = vpop.f32.mrb[74].mxu1 }
0x23bd   :  { %v35739_v32 = vadd.f32 %v39230_v5, %v22236_v14  ;;  %v33739_v52 = vpop.f32.mrb[75].mxu1 }
0x23bf   :  { %v22243_v0 = vmul.f32 0.044715, %v35739_v32  ;;  %v22241_v28 = vmul.f32 0.5, %v35739_v32 }
0x23c1   :  { %v22245_v15 = vmul.f32 %v35739_v32, %v22243_v0 }
0x23c3   :  { %v22247_v31 = vmul.f32 %v35739_v32, %v22245_v15 }
0x23c5   :  { %v22249_v10 = vadd.f32 %v35739_v32, %v22247_v31 }
0x23c7   :  { %v22251_v11 = vmul.f32 0.7978846, %v22249_v10 }
0x23c9   :  { %36385 = vtanh.f32 %v22251_v11 }
0x23d3   :  { %v36386_v49 = vpop.eup %36385 }
0x23d4   :  { %v22255_v19 = vadd.f32 1.0, %v36386_v49 }
0x23d6   :  { %v22257_v34 = vmul.f32 %v22255_v19, %v22241_v28 }
0x23d8   :  { %v39400_v48 = vand.u32 4294901760, %v22257_v34 }
0x23da   :  { %v23003_v25 = vsub.f32 %v22257_v34, %v39400_v48  ;;  %34018 = vmatmul.mubr.f32.vlgmr.msra.gmra.mrb[82].mxu1 %v39400_v48 }
0x23db   :  { %35590 = vmatpush3.bf16.msra.mxu1 %v38879_v56  ;;  %34087 = vmatprep.mubr.msk.f32.mxu1 %vm36438_vm1, %v40172_v30 }
0x23dc   :  { %35591 = vmatprep.subr.bf16.mxu1 %v40173_v38  ;;  %v23004_v5 = vand.u32 4294901760, %v23003_v25 }
0x23de   :  { %v23005_v37 = vsub.f32 %v23003_v25, %v23004_v5 }
0x23df   :  { %35593 = vmatpush3.bf16.msra.mxu1 %v38899_v36 }
0x23e0   :  { %35594 = vmatprep.subr.bf16.mxu1 %v40173_v38  ;;  %v23006_v22 = vand.u32 4294901760, %v23005_v37 }
0x23e2   :  { %33983 = vmatmul.mubr.f32.vlgmr.msra.gmra.mrb[82].mxu0 %v23006_v22 }
0x23e3   :  { %35566 = vmatpush3.bf16.msra.mxu0 %v39244_v29  ;;  %35596 = vmatpush3.bf16.msra.mxu1 %v38921_v4 }
0x23e4   :  { %35567 = vmatprep.subr.bf16.mxu0 %v40173_v38  ;;  %35597 = vmatprep.subr.bf16.mxu1 %v40173_v38 }
0x23e5   :  { %34052 = vmatprep.mubr.msk.f32.mxu0 %vm36438_vm1, %v40172_v30 }
0x23e7   :  { %35569 = vmatpush3.bf16.msra.mxu0 %v39027_v3  ;;  %35599 = vmatpush3.bf16.msra.mxu1 %v38939_v24 }
0x23e8   :  { %35570 = vmatprep.subr.bf16.mxu0 %v40173_v38  ;;  %35600 = vmatprep.subr.bf16.mxu1 %v40173_v38 }
0x23eb   :  { %35572 = vmatpush3.bf16.msra.mxu0 %v39043_v17  ;;  %35602 = vmatpush3.bf16.msra.mxu1 %v38957_v62 }
0x23ec   :  { %35573 = vmatprep.subr.bf16.mxu0 %v40173_v38  ;;  %35603 = vmatprep.subr.bf16.mxu1 %v40173_v38 }
0x23ef   :  { %35575 = vmatpush3.bf16.msra.mxu0 %v39061_v26  ;;  %35605 = vmatpush3.bf16.msra.mxu1 %v38977_v63 }
0x23f0   :  { %35576 = vmatprep.subr.bf16.mxu0 %v40173_v38  ;;  %35606 = vmatprep.subr.bf16.mxu1 %v40173_v38 }
0x23f3   :  { %35578 = vmatpush3.bf16.msra.mxu0 %v39083_v43  ;;  %35608 = vmatpush3.bf16.msra.mxu1 %v38983_v39 }
0x23f4   :  { %35579 = vmatprep.subr.bf16.mxu0 %v40173_v38  ;;  %35609 = vmatprep.subr.bf16.mxu1 %v40173_v38 }
0x23f7   :  { %35581 = vmatpush3.bf16.msra.mxu0 %v39099_v13  ;;  %35611 = vmatpush3.bf16.msra.mxu1 %v39004_v20 }
0x23f8   :  { %35582 = vmatprep.subr.bf16.mxu0 %v40173_v38  ;;  %35636 = vmatprep.subr.bf16.mxu1 %v40173_v38 }
0x23fa   :  { %34088 = vmatmul.mubr.f32.vlgmr.msra.gmra.mrb[84].mxu1 %v23004_v5 }
0x23fb   :  { %35584 = vmatpush3.bf16.msra.mxu0 %v39119_v2  ;;  %35638 = vmatpush3.bf16.msra.mxu1 %v38879_v56  ;;  %v44_v2 = vlaneseq }
0x23fc   :  { %35585 = vmatprep.subr.bf16.mxu0 %v40173_v38  ;;  %35639 = vmatprep.subr.bf16.mxu1 %v40173_v38 }
0x23fd   :  { %34157 = vmatprep.mubr.msk.f32.mxu1 %vm36438_vm1, %v40172_v30 }
0x23ff   :  { %35587 = vmatpush3.bf16.msra.mxu0 %v39142_v23  ;;  %35641 = vmatpush3.bf16.msra.mxu1 %v38899_v36 }
0x2400   :  { %35612 = vmatprep.subr.bf16.mxu0 %v40173_v38  ;;  %35642 = vmatprep.subr.bf16.mxu1 %v40173_v38 }
0x2402   :  { %34053 = vmatmul.mubr.f32.vlgmr.msra.gmra.mrb[84].mxu0 %v23003_v25 }
0x2403   :  { %35614 = vmatpush3.bf16.msra.mxu0 %v39285_v9  ;;  %35644 = vmatpush3.bf16.msra.mxu1 %v38921_v4  ;;  %v30204_v4 = vld [vmem:[%s40105_s12 + $0x1] ss:$0 sm:$0xff]  ;;  %v45_v9 = vshrl.u32 %v44_v2, 7 }
0x2404   :  { %35615 = vmatprep.subr.bf16.mxu0 %v40173_v38  ;;  %35645 = vmatprep.subr.bf16.mxu1 %v40173_v38 }
0x2405   :  { %34122 = vmatprep.mubr.msk.f32.mxu0 %vm36438_vm1, %v40172_v30 }
0x2407   :  { %35617 = vmatpush3.bf16.msra.mxu0 %v39295_v7  ;;  %35647 = vmatpush3.bf16.msra.mxu1 %v38939_v24  ;;  %v47_v7 = vand.u32 127, %v44_v2 }
0x2408   :  { %35618 = vmatprep.subr.bf16.mxu0 %v40173_v38  ;;  %35648 = vmatprep.subr.bf16.mxu1 %v40173_v38 }
0x2409   :  { %vm48_vm9 = vcmp.eq.s32.totalorder %v45_v9, %v47_v7 }
0x240a   :  { %v39486_v55 = vsel %vm48_vm9, 1.0, %v40172_v30 }
0x240b   :  { %35620 = vmatpush3.bf16.msra.mxu0 %v39307_v47  ;;  %35650 = vmatpush3.bf16.msra.mxu1 %v38957_v62  ;;  %v23564_v27 = vadd.f32 %v39486_v55, %v40190_v54  ;;  %v30207_v54 = vld [vmem:[%s40094_s3 + $0x40] sm:$0xff] }
0x240c   :  { %35621 = vmatprep.subr.bf16.mxu0 %v40173_v38  ;;  %35651 = vmatprep.subr.bf16.mxu1 %v40173_v38 }
0x240d   :  { %v23566_v40 = vmul.f32 0.5, %v23564_v27  ;;  %v30208_v27 = vld [vmem:[%s40094_s3 + $0x48] sm:$0xff] }
0x240f   :  { %35623 = vmatpush3.bf16.msra.mxu0 %v39317_v60  ;;  %35653 = vmatpush3.bf16.msra.mxu1 %v38977_v63  ;;  %v23568_v35 = vsel %vm1992_vm4, %v23566_v40, 0.0 }
0x2410   :  { %35624 = vmatprep.subr.bf16.mxu0 %v40173_v38  ;;  %35654 = vmatprep.subr.bf16.mxu1 %v40173_v38 }
0x2413   :  { %35626 = vmatpush3.bf16.msra.mxu0 %v39327_v57  ;;  %35656 = vmatpush3.bf16.msra.mxu1 %v38983_v39 }
0x2414   :  { %v22518_v56 = vpop.f32.mrb[76].mxu1  ;;  %35627 = vmatprep.subr.bf16.mxu0 %v40173_v38  ;;  %35657 = vmatprep.subr.bf16.mxu1 %v40173_v38 }
0x2415   :  { %v33809_v36 = vpop.f32.mrb[77].mxu1 }
0x2417   :  { %35629 = vmatpush3.bf16.msra.mxu0 %v39337_v44  ;;  %35659 = vmatpush3.bf16.msra.mxu1 %v39004_v20  ;;  %v40191_v44 = vmin.f32 %v37003_v8, %v37100_v33 }
0x2418   :  { %35630 = vmatprep.subr.bf16.mxu0 %v40173_v38  ;;  %34190 = vmatprep.subr.mxu1 %v40172_v30 }
0x2419   :  { %v11804_v16 = vadd.f32 %v39486_v55, %v40191_v44 }
0x241a   :  { %34158 = vmatmul.mubr.f32.vlgmr.msra.gmra.mrb[86].mxu1 %v39400_v48 }
0x241b   :  { %35632 = vmatpush3.bf16.msra.mxu0 %v39347_v1  ;;  %34192 = vmatprep.mubr.msk.f32.mxu1 %vm36438_vm1, %v40172_v30  ;;  %v11806_v1 = vmul.f32 0.5, %v11804_v16  ;;  %v30209_v16 = vld [vmem:[%s40094_s3 + $0x50] sm:$0xff] }
0x241c   :  { %v22367_v24 = vpop.f32.mrb[76].mxu0  ;;  %35633 = vmatprep.subr.bf16.mxu0 %v40173_v38 }
0x241d   :  { %v22368_v62 = vadd.f32 %v30204_v4, %v22367_v24  ;;  %v33774_v20 = vpop.f32.mrb[77].mxu0  ;;  %v11808_v42 = vsel %vm1992_vm4, %v11806_v1, 0.0 }
0x241f   :  { %35635 = vmatpush3.bf16.msra.mxu0 %v39357_v50  ;;  %v22519_v63 = vadd.f32 %v22518_v56, %v22368_v62  ;;  %v40192_v56 = vmin.f32 %v38523_v21, %v38603_v46 }
0x2420   :  { %34160 = vmatprep.subr.mxu0 %v40172_v30 }
0x2421   :  { %v23565_v36 = vadd.f32 %v39486_v55, %v40192_v56 }
0x2422   :  { %34123 = vmatmul.mubr.f32.vlgmr.msra.gmra.mrb[86].mxu0 %v39400_v48 }
0x2423   :  { %34162 = vmatprep.mubr.msk.f32.mxu0 %vm36438_vm1, %v40172_v30  ;;  %v39514_v20 = vmul.f32 0.5, %v23565_v36 }
0x2425   :  { %v23571_v46 = vsel %vm1992_vm4, %v39514_v20, 0.0 }
0x2434   :  { %v22711_v39 = vpop.f32.mrb[78].mxu1 }
0x2435   :  { %v33879_v3 = vpop.f32.mrb[79].mxu1 }
0x243c   :  { %v22622_v17 = vpop.f32.mrb[78].mxu0 }
0x243d   :  { %v22623_v26 = vadd.f32 %v22622_v17, %v22519_v63  ;;  %v33844_v43 = vpop.f32.mrb[79].mxu0  ;;  %v40193_v63 = vmin.f32 %v37048_v45, %v37128_v53 }
0x243f   :  { %v22712_v13 = vadd.f32 %v22711_v39, %v22623_v26  ;;  %v11805_v39 = vadd.f32 %v39486_v55, %v40193_v63 }
0x2441   :  { %v39522_v3 = vmul.f32 0.5, %v11805_v39 }
0x2443   :  { %v11811_v43 = vsel %vm1992_vm4, %v39522_v3, 0.0 }
0x2454   :  { %v22917_v23 = vpop.f32.mrb[80].mxu1 }
0x2455   :  { %v33949_v29 = vpop.f32.mrb[81].mxu1 }
0x245c   :  { %v22830_v12 = vpop.f32.mrb[80].mxu0 }
0x245d   :  { %v22831_v47 = vadd.f32 %v22830_v12, %v22712_v13  ;;  %v33914_v51 = vpop.f32.mrb[81].mxu0 }
0x245f   :  { %v22918_v60 = vadd.f32 %v22917_v23, %v22831_v47 }
0x2461   :  { %v23562_v57 = vadd.f32 %v22918_v60, %v38750_v41 }
0x2463   :  { %v24484_v6 = vsel %vm55_vm0, %v23562_v57, 0.0 }
0x2464   :  { %24485 = vadd.xlane.f32.xlu0 %v24484_v6  ;;  %v24539_v6 = vand.u32 4294901760, %v30208_v27 }
0x2466   :  { %v24623_v44 = vsub.f32 %v30208_v27, %v24539_v6 }
0x2468   :  { %23569 = vadd.xlane.f32.xlu0 %v23568_v35  ;;  %v30210_v35 = vld [vmem:[%s40094_s3 + $0x58] sm:$0xff] }
0x246c   :  { %11809 = vadd.xlane.f32.xlu0 %v11808_v42  ;;  %v24545_v42 = vand.u32 4294901760, %v30210_v35 }
0x24ad   :  { %v23159_v59 = vpop.f32.mrb[82].mxu1 }
0x24ae   :  { %v34019_v61 = vpop.f32.mrb[83].mxu1 }
0x24af   :  { %v24624_v61 = vand.u32 4294901760, %v24623_v44 }
0x24b5   :  { %v23008_v18 = vpop.f32.mrb[82].mxu0 }
0x24b6   :  { %v23009_v41 = vadd.f32 %v30204_v4, %v23008_v18  ;;  %v33984_v50 = vpop.f32.mrb[83].mxu0 }
0x24b8   :  { %v23160_v14 = vadd.f32 %v23159_v59, %v23009_v41  ;;  %v24625_v41 = vsub.f32 %v24623_v44, %v24624_v61 }
0x24cd   :  { %v23352_v32 = vpop.f32.mrb[84].mxu1 }
0x24ce   :  { %v34089_v52 = vpop.f32.mrb[85].mxu1 }
0x24cf   :  { %v24626_v52 = vand.u32 4294901760, %v24625_v41 }
0x24d5   :  { %v23263_v0 = vpop.f32.mrb[84].mxu0 }
0x24d6   :  { %v23264_v8 = vadd.f32 %v23263_v0, %v23160_v14  ;;  %v34054_v33 = vpop.f32.mrb[85].mxu0  ;;  %v24637_v14 = vsub.f32 %v30210_v35, %v24545_v42 }
0x24d8   :  { %v23353_v15 = vadd.f32 %v23352_v32, %v23264_v8  ;;  %v24638_v8 = vand.u32 4294901760, %v24637_v14 }
0x24ed   :  { %v23558_v31 = vpop.f32.mrb[86].mxu1 }
0x24ee   :  { %v34159_v10 = vpop.f32.mrb[87].mxu1 }
0x24f1   :  { %v24486_v11 = vpop.xlane.xlu0 %24485 }
0x24f2   :  { %v24490_v49 = vmul.f32 0.03125, %v24486_v11 }
0x24f4   :  { %v39500_v28 = vsub.f32 %v23562_v57, %v24490_v49  ;;  %v24536_v57 = vand.u32 4294901760, %v30207_v54 }
0x24f5   :  { %v23570_v19 = vpop.xlane.xlu0 %23569  ;;  %v23471_v34 = vpop.f32.mrb[86].mxu0 }
0x24f6   :  { %36387 = vrcp.f32 %v23570_v19  ;;  %v23472_v48 = vadd.f32 %v23471_v34, %v23353_v15  ;;  %v34124_v25 = vpop.f32.mrb[87].mxu0  ;;  %v24494_v5 = vmul.f32 %v39500_v28, %v39500_v28 }
0x24f8   :  { %v23559_v37 = vadd.f32 %v23558_v31, %v23472_v48  ;;  %v24496_v22 = vsel %vm55_vm0, %v24494_v5, 0.0  ;;  %v24639_v31 = vsub.f32 %v24637_v14, %v24638_v8  ;;  %v39569_v48 = vpack.c.bf16 %v24539_v6, %v24536_v57 }
0x24f9   :  { %24497 = vadd.xlane.f32.xlu0 %v24496_v22  ;;  %v11810_v4 = vpop.xlane.xlu0 %11809 }
0x24fa   :  { %36389 = vrcp.f32 %v11810_v4  ;;  %v39510_v24 = vadd.f32 %v23559_v37, %v38761_v58  ;;  %v24640_v11 = vand.u32 4294901760, %v24639_v31 }
0x24fc   :  { %v24487_v62 = vsel %vm55_vm0, %v39510_v24, 0.0 }
0x24fd   :  { %24488 = vadd.xlane.f32.xlu1 %v24487_v62 }
0x2500   :  { %v36388_v21 = vpop.eup %36387 }
0x2501   :  { %v23575_v17 = vmul.f32 %v36388_v21, %v23566_v40  ;;  %23572 = vadd.xlane.f32.xlu1 %v23571_v46  ;;  %v24616_v40 = vsub.f32 %v30207_v54, %v24536_v57 }
0x2503   :  { %v23579_v58 = vsel %vm2017_vm6, %v23575_v17, 0  ;;  %v24617_v59 = vand.u32 4294901760, %v24616_v40  ;;  %v39564_v19 = vpack.c.bf16 %v24623_v44, %v24616_v40 }
0x2504   :  { %v36390_v26 = vpop.eup %36389  ;;  %v39527_v13 = vand.u32 4294901760, %v23579_v58 }
0x2505   :  { %11812 = vadd.xlane.f32.xlu1 %v11811_v43  ;;  %v11815_v45 = vmul.f32 %v36390_v26, %v11806_v1  ;;  %v24542_v1 = vand.u32 4294901760, %v30209_v16  ;;  %v24618_v18 = vsub.f32 %v24616_v40, %v24617_v59  ;;  %v39580_v5 = vpack.c.bf16 %v24624_v61, %v24617_v59  ;;  %v39593_v26 = vld [vmem:[%s40095_s1 + $0x2] ss:$0 sm:$0xff] }
0x2506   :  { %v23651_v53 = vsub.f32 %v23579_v58, %v39527_v13 }
0x2507   :  { %v23582_v2 = vsel %vm2021_vm5, %v11815_v45, 0  ;;  %v24630_v50 = vsub.f32 %v30209_v16, %v24542_v1  ;;  %v24619_v32 = vand.u32 4294901760, %v24618_v18  ;;  %v39573_v25 = vpack.c.bf16 %v24545_v42, %v24542_v1 }
0x2508   :  { %v23585_v23 = vand.u32 4294901760, %v23582_v2  ;;  %v23652_v29 = vand.u32 4294901760, %v23651_v53 }
0x2509   :  { %v24631_v0 = vand.u32 4294901760, %v24630_v50  ;;  %v39556_v33 = vpack.c.bf16 %v24626_v52, %v24619_v32  ;;  %v39567_v34 = vpack.c.bf16 %v24637_v14, %v24630_v50 }
0x250a   :  { %34161 = vmatpush3.msra.mxu0 %v23585_v23  ;;  %v23662_v9 = vsub.f32 %v23582_v2, %v23585_v23  ;;  %v23653_v7 = vsub.f32 %v23651_v53, %v23652_v29 }
0x250b   :  { %34165 = vmatprep.subr.mxu0 %v40172_v30  ;;  %v24632_v15 = vsub.f32 %v24630_v50, %v24631_v0  ;;  %v39582_v37 = vpack.c.bf16 %v24638_v8, %v24631_v0 }
0x250c   :  { %v23654_v12 = vand.u32 4294901760, %v23653_v7  ;;  %v23663_v47 = vand.u32 4294901760, %v23662_v9 }
0x250d   :  { %v24633_v10 = vand.u32 4294901760, %v24632_v15 }
0x250e   :  { %34163 = vmatmul.mubr.f32.vlgmr.msra.gmra.mrb[88].mxu0 %v23654_v12  ;;  %v23664_v51 = vsub.f32 %v23662_v9, %v23663_v47 }
0x250f   :  { %34167 = vmatprep.mubr.msk.f32.mxu0 %vm36438_vm1, %v40172_v30  ;;  %v39559_v49 = vpack.c.bf16 %v24640_v11, %v24633_v10 }
0x2510   :  { %v23665_v60 = vand.u32 4294901760, %v23664_v51 }
0x2512   :  { %34166 = vmatpush3.msra.mxu0 %v23665_v60 }
0x2513   :  { %34170 = vmatprep.subr.mxu0 %v40172_v30 }
0x2516   :  { %34168 = vmatmul.mubr.f32.vlgmr.msra.gmra.mrb[88].mxu0 %v39527_v13 }
0x2517   :  { %34171 = vmatpush3.msra.mxu0 %v23662_v9  ;;  %34172 = vmatprep.mubr.msk.f32.mxu0 %vm36438_vm1, %v40172_v30 }
0x2518   :  { %34175 = vmatprep.subr.mxu0 %v40172_v30 }
0x251e   :  { %34173 = vmatmul.mubr.f32.vlgmr.msra.gmra.mrb[88].mxu0 %v23651_v53 }
0x251f   :  { %34176 = vmatpush3.msra.mxu0 %v23585_v23  ;;  %34177 = vmatprep.mubr.msk.f32.mxu0 %vm36438_vm1, %v40172_v30 }
0x2520   :  { %34180 = vmatprep.subr.mxu0 %v40172_v30 }
0x2526   :  { %34178 = vmatmul.mubr.f32.vlgmr.msra.gmra.mrb[88].mxu0 %v23652_v29 }
0x2527   :  { %34181 = vmatpush3.msra.mxu0 %v23663_v47  ;;  %34182 = vmatprep.mubr.msk.f32.mxu0 %vm36438_vm1, %v40172_v30 }
0x2528   :  { %34185 = vmatprep.subr.mxu0 %v40172_v30 }
0x252e   :  { %34183 = vmatmul.mubr.f32.vlgmr.msra.gmra.mrb[88].mxu0 %v39527_v13 }
0x252f   :  { %34186 = vmatpush3.msra.mxu0 %v23585_v23  ;;  %34187 = vmatprep.mubr.msk.f32.mxu0 %vm36438_vm1, %v40172_v30 }
0x2530   :  { %35660 = vmatprep.subr.bf16.mxu0 %v40173_v38 }
0x2536   :  { %34188 = vmatmul.mubr.f32.vlgmr.msra.gmra.mrb[88].mxu0 %v39527_v13 }
0x2537   :  { %35662 = vmatpush3.bf16.msra.mxu0 %v39569_v48  ;;  %34228 = vmatprep.mubr.msk.f32.mxu0 %vm36438_vm1, %v40172_v30 }
0x2538   :  { %35663 = vmatprep.subr.bf16.mxu0 %v40173_v38 }
0x253b   :  { %35665 = vmatpush3.bf16.msra.mxu0 %v39573_v25 }
0x253c   :  { %35666 = vmatprep.subr.bf16.mxu0 %v40173_v38 }
0x2586   :  { %v24498_v22 = vpop.xlane.xlu0 %24497 }
0x2587   :  { %v24502_v56 = vmul.f32 0.03125, %v24498_v22 }
0x2589   :  { %v24504_v36 = vadd.f32 1e-06, %v24502_v56 }
0x258a   :  { %v24489_v4 = vpop.xlane.xlu1 %24488 }
0x258b   :  { %36391 = vrsqrt.f32 %v24504_v36  ;;  %v24491_v62 = vmul.f32 0.03125, %v24489_v4 }
0x258d   :  { %v39585_v63 = vsub.f32 %v39510_v24, %v24491_v62  ;;  %v39599_v24 = vld [vmem:[%s40096_s2 + $0x2] ss:$0 sm:$0xff] }
0x258e   :  { %v23573_v39 = vpop.xlane.xlu1 %23572 }
0x258f   :  { %36393 = vrcp.f32 %v23573_v39  ;;  %v24495_v21 = vmul.f32 %v39585_v63, %v39585_v63 }
0x2591   :  { %v24499_v46 = vsel %vm55_vm0, %v24495_v21, 0.0 }
0x2592   :  { %24500 = vadd.xlane.f32.xlu1 %v24499_v46  ;;  %v11813_v17 = vpop.xlane.xlu1 %11812 }
0x2593   :  { %36395 = vrcp.f32 %v11813_v17 }
0x2595   :  { %v36392_v58 = vpop.eup %36391 }
0x2596   :  { %v24508_v43 = vmul.f32 %v36392_v58, %v39500_v28 }
0x2598   :  { %v24514_v13 = vmul.f32 %v39593_v26, %v24508_v43 }
0x2599   :  { %v36394_v45 = vpop.eup %36393 }
0x259a   :  { %v23577_v53 = vmul.f32 %v36394_v45, %v39514_v20  ;;  %v24520_v2 = vadd.f32 %v39599_v24, %v24514_v13 }
0x259c   :  { %v24533_v23 = vsel %vm104_vm2, %v24520_v2, 0  ;;  %v24031_v29 = vsel %vm2017_vm6, %v23577_v53, 0 }
0x259d   :  { %v36396_v9 = vpop.eup %36395  ;;  %v39606_v7 = vand.u32 4294901760, %v24533_v23  ;;  %v39608_v28 = vand.u32 4294901760, %v24031_v29 }
0x259e   :  { %v11817_v12 = vmul.f32 %v36396_v9, %v39522_v3 }
0x259f   :  { %v24605_v47 = vsub.f32 %v24533_v23, %v39606_v7  ;;  %v24103_v51 = vsub.f32 %v24031_v29, %v39608_v28 }
0x25a0   :  { %v24034_v60 = vsel %vm2021_vm5, %v11817_v12, 0 }
0x25a1   :  { %v24037_v20 = vand.u32 4294901760, %v24034_v60  ;;  %v24606_v54 = vand.u32 4294901760, %v24605_v47  ;;  %v24104_v27 = vand.u32 4294901760, %v24103_v51 }
0x25a3   :  { %34191 = vmatpush3.msra.mxu1 %v24037_v20  ;;  %v24114_v57 = vsub.f32 %v24034_v60, %v24037_v20  ;;  %v24607_v6 = vsub.f32 %v24605_v47, %v24606_v54  ;;  %v24105_v40 = vsub.f32 %v24103_v51, %v24104_v27 }
0x25a4   :  { %34195 = vmatprep.subr.mxu1 %v40172_v30 }
0x25a5   :  { %v24608_v44 = vand.u32 4294901760, %v24607_v6  ;;  %v24106_v16 = vand.u32 4294901760, %v24105_v40  ;;  %v24115_v35 = vand.u32 4294901760, %v24114_v57 }
0x25a7   :  { %34229 = vmatmul.mubr.f32.vlgmr.msra.gmra.mrb[90].mxu0 %v24608_v44  ;;  %34193 = vmatmul.mubr.f32.vlgmr.msra.gmra.mrb[88].mxu1 %v24106_v16  ;;  %v24116_v3 = vsub.f32 %v24114_v57, %v24115_v35 }
0x25a8   :  { %35668 = vmatpush3.bf16.msra.mxu0 %v39556_v33  ;;  %34239 = vmatprep.mubr.msk.f32.mxu0 %vm36438_vm1, %v40172_v30 }
0x25a9   :  { %35669 = vmatprep.subr.bf16.mxu0 %v40173_v38  ;;  %v24117_v1 = vand.u32 4294901760, %v24116_v3  ;;  %34197 = vmatprep.mubr.msk.f32.mxu1 %vm36438_vm1, %v40172_v30 }
0x25ab   :  { %34196 = vmatpush3.msra.mxu1 %v24117_v1 }
0x25ac   :  { %35671 = vmatpush3.bf16.msra.mxu0 %v39559_v49  ;;  %34200 = vmatprep.subr.mxu1 %v40172_v30 }
0x25ad   :  { %35672 = vmatprep.subr.bf16.mxu0 %v40173_v38 }
0x25af   :  { %34240 = vmatmul.mubr.f32.vlgmr.msra.gmra.mrb[90].mxu0 %v39606_v7  ;;  %34198 = vmatmul.mubr.f32.vlgmr.msra.gmra.mrb[88].mxu1 %v39608_v28 }
0x25b0   :  { %34201 = vmatpush3.msra.mxu1 %v24114_v57  ;;  %35674 = vmatpush3.bf16.msra.mxu0 %v39564_v19 }
0x25b1   :  { %35675 = vmatprep.subr.bf16.mxu0 %v40173_v38  ;;  %34250 = vmatprep.mubr.msk.f32.mxu0 %vm36438_vm1, %v40172_v30 }
0x25b2   :  { %34202 = vmatprep.mubr.msk.f32.mxu1 %vm36438_vm1, %v40172_v30  ;;  %34205 = vmatprep.subr.mxu1 %v40172_v30 }
0x25b4   :  { %35677 = vmatpush3.bf16.msra.mxu0 %v39567_v34 }
0x25b5   :  { %35678 = vmatprep.subr.bf16.mxu0 %v40173_v38 }
0x25b7   :  { %34251 = vmatmul.mubr.f32.vlgmr.msra.gmra.mrb[90].mxu0 %v24605_v47  ;;  %34203 = vmatmul.mubr.f32.vlgmr.msra.gmra.mrb[88].mxu1 %v24103_v51 }
0x25b8   :  { %34206 = vmatpush3.msra.mxu1 %v24037_v20  ;;  %35680 = vmatpush3.bf16.msra.mxu0 %v39569_v48 }
0x25b9   :  { %35681 = vmatprep.subr.bf16.mxu0 %v40173_v38  ;;  %34261 = vmatprep.mubr.msk.f32.mxu0 %vm36438_vm1, %v40172_v30 }
0x25ba   :  { %34207 = vmatprep.mubr.msk.f32.mxu1 %vm36438_vm1, %v40172_v30  ;;  %34210 = vmatprep.subr.mxu1 %v40172_v30 }
0x25bc   :  { %35683 = vmatpush3.bf16.msra.mxu0 %v39573_v25 }
0x25bd   :  { %35684 = vmatprep.subr.bf16.mxu0 %v40173_v38 }
0x25bf   :  { %34262 = vmatmul.mubr.f32.vlgmr.msra.gmra.mrb[90].mxu0 %v24606_v54  ;;  %34208 = vmatmul.mubr.f32.vlgmr.msra.gmra.mrb[88].mxu1 %v24104_v27 }
0x25c0   :  { %34211 = vmatpush3.msra.mxu1 %v24115_v35  ;;  %35686 = vmatpush3.bf16.msra.mxu0 %v39580_v5 }
0x25c1   :  { %35687 = vmatprep.subr.bf16.mxu0 %v40173_v38  ;;  %34272 = vmatprep.mubr.msk.f32.mxu0 %vm36438_vm1, %v40172_v30 }
0x25c2   :  { %34212 = vmatprep.mubr.msk.f32.mxu1 %vm36438_vm1, %v40172_v30  ;;  %34215 = vmatprep.subr.mxu1 %v40172_v30 }
0x25c4   :  { %35689 = vmatpush3.bf16.msra.mxu0 %v39582_v37 }
0x25c5   :  { %35690 = vmatprep.subr.bf16.mxu0 %v40173_v38 }
0x25c7   :  { %34273 = vmatmul.mubr.f32.vlgmr.msra.gmra.mrb[90].mxu0 %v39606_v7  ;;  %34213 = vmatmul.mubr.f32.vlgmr.msra.gmra.mrb[88].mxu1 %v39608_v28 }
0x25c8   :  { %34216 = vmatpush3.msra.mxu1 %v24037_v20  ;;  %35692 = vmatpush3.bf16.msra.mxu0 %v39569_v48 }
0x25c9   :  { %35693 = vmatprep.subr.bf16.mxu0 %v40173_v38  ;;  %34283 = vmatprep.mubr.msk.f32.mxu0 %vm36438_vm1, %v40172_v30 }
0x25ca   :  { %34217 = vmatprep.mubr.msk.f32.mxu1 %vm36438_vm1, %v40172_v30  ;;  %35696 = vmatprep.subr.bf16.mxu1 %v40173_v38 }
0x25cc   :  { %35695 = vmatpush3.bf16.msra.mxu0 %v39573_v25 }
0x25cd   :  { %34352 = vmatprep.subr.mxu0 %v40172_v30 }
0x25cf   :  { %34284 = vmatmul.mubr.f32.vlgmr.msra.gmra.mrb[90].mxu0 %v39606_v7  ;;  %34218 = vmatmul.mubr.f32.vlgmr.msra.gmra.mrb[88].mxu1 %v39608_v28 }
0x25d0   :  { %35698 = vmatpush3.bf16.msra.mxu1 %v39569_v48  ;;  %34294 = vmatprep.mubr.msk.f32.mxu1 %vm36438_vm1, %v40172_v30 }
0x25d1   :  { %35699 = vmatprep.subr.bf16.mxu1 %v40173_v38  ;;  %34354 = vmatprep.mubr.msk.f32.mxu0 %vm36438_vm1, %v40172_v30 }
0x25d4   :  { %35701 = vmatpush3.bf16.msra.mxu1 %v39573_v25 }
0x25d5   :  { %35702 = vmatprep.subr.bf16.mxu1 %v40173_v38 }
0x2609   :  { %v39674_v42 = vpop.f32.mrb[88].mxu0 }
0x260a   :  { %v34189_v59 = vpop.f32.mrb[89].mxu0 }
0x261f   :  { %v24501_v61 = vpop.xlane.xlu1 %24500 }
0x2620   :  { %v24503_v18 = vmul.f32 0.03125, %v24501_v61 }
0x2622   :  { %v24505_v41 = vadd.f32 1e-06, %v24503_v18 }
0x2624   :  { %36397 = vrsqrt.f32 %v24505_v41 }
0x262e   :  { %v36398_v50 = vpop.eup %36397 }
0x262f   :  { %v24509_v14 = vmul.f32 %v36398_v50, %v39585_v63 }
0x2631   :  { %v24515_v32 = vmul.f32 %v39593_v26, %v24509_v14 }
0x2633   :  { %v24521_v52 = vadd.f32 %v39599_v24, %v24515_v32 }
0x2635   :  { %v25021_v0 = vsel %vm104_vm2, %v24521_v52, 0 }
0x2636   :  { %v25092_v8 = vand.u32 4294901760, %v25021_v0 }
0x2638   :  { %v25093_v15 = vsub.f32 %v25021_v0, %v25092_v8 }
0x263a   :  { %v25094_v31 = vand.u32 4294901760, %v25093_v15 }
0x263c   :  { %v25095_v10 = vsub.f32 %v25093_v15, %v25094_v31 }
0x263e   :  { %v25096_v11 = vand.u32 4294901760, %v25095_v10 }
0x2640   :  { %34295 = vmatmul.mubr.f32.vlgmr.msra.gmra.mrb[90].mxu1 %v25096_v11 }
0x2641   :  { %35704 = vmatpush3.bf16.msra.mxu1 %v39556_v33  ;;  %34305 = vmatprep.mubr.msk.f32.mxu1 %vm36438_vm1, %v40172_v30  ;;  %v30211_v33 = vld [vmem:[%s40097_s4 + $0x2] ss:$0 sm:$0xff] }
0x2642   :  { %35705 = vmatprep.subr.bf16.mxu1 %v40173_v38 }
0x2645   :  { %35707 = vmatpush3.bf16.msra.mxu1 %v39559_v49 }
0x2646   :  { %35708 = vmatprep.subr.bf16.mxu1 %v40173_v38 }
0x2648   :  { %34306 = vmatmul.mubr.f32.vlgmr.msra.gmra.mrb[90].mxu1 %v25092_v8 }
0x2649   :  { %35710 = vmatpush3.bf16.msra.mxu1 %v39564_v19  ;;  %34316 = vmatprep.mubr.msk.f32.mxu1 %vm36438_vm1, %v40172_v30 }
0x264a   :  { %35711 = vmatprep.subr.bf16.mxu1 %v40173_v38 }
0x264d   :  { %35713 = vmatpush3.bf16.msra.mxu1 %v39567_v34 }
0x264e   :  { %35714 = vmatprep.subr.bf16.mxu1 %v40173_v38 }
0x2650   :  { %34317 = vmatmul.mubr.f32.vlgmr.msra.gmra.mrb[90].mxu1 %v25093_v15 }
0x2651   :  { %35716 = vmatpush3.bf16.msra.mxu1 %v39569_v48  ;;  %34327 = vmatprep.mubr.msk.f32.mxu1 %vm36438_vm1, %v40172_v30 }
0x2652   :  { %35717 = vmatprep.subr.bf16.mxu1 %v40173_v38 }
0x2655   :  { %35719 = vmatpush3.bf16.msra.mxu1 %v39573_v25 }
0x2656   :  { %35720 = vmatprep.subr.bf16.mxu1 %v40173_v38 }
0x2658   :  { %34328 = vmatmul.mubr.f32.vlgmr.msra.gmra.mrb[90].mxu1 %v25094_v31 }
0x2659   :  { %35722 = vmatpush3.bf16.msra.mxu1 %v39580_v5  ;;  %34338 = vmatprep.mubr.msk.f32.mxu1 %vm36438_vm1, %v40172_v30 }
0x265a   :  { %35723 = vmatprep.subr.bf16.mxu1 %v40173_v38 }
0x265d   :  { %35725 = vmatpush3.bf16.msra.mxu1 %v39582_v37 }
0x265e   :  { %35726 = vmatprep.subr.bf16.mxu1 %v40173_v38 }
0x2660   :  { %34339 = vmatmul.mubr.f32.vlgmr.msra.gmra.mrb[90].mxu1 %v25092_v8 }
0x2661   :  { %35728 = vmatpush3.bf16.msra.mxu1 %v39569_v48  ;;  %34349 = vmatprep.mubr.msk.f32.mxu1 %vm36438_vm1, %v40172_v30 }
0x2662   :  { %35729 = vmatprep.subr.bf16.mxu1 %v40173_v38 }
0x2665   :  { %35731 = vmatpush3.bf16.msra.mxu1 %v39573_v25 }
0x2666   :  { %34382 = vmatprep.subr.mxu1 %v40172_v30 }
0x2668   :  { %34350 = vmatmul.mubr.f32.vlgmr.msra.gmra.mrb[90].mxu1 %v25092_v8 }
0x2669   :  { %34384 = vmatprep.mubr.msk.f32.mxu1 %vm36438_vm1, %v40172_v30 }
0x26a2   :  { %v25016_v49 = vpop.f32.mrb[90].mxu0  ;;  %v39715_v19 = vpop.f32.mrb[88].mxu1 }
0x26a3   :  { %v35740_v34 = vadd.f32 %v30211_v33, %v25016_v49  ;;  %v34285_v48 = vpop.f32.mrb[91].mxu0  ;;  %v34219_v5 = vpop.f32.mrb[89].mxu1 }
0x26a5   :  { %25511 = vrot.lane.b32.xlu0 %v35740_v34, %s36440_s26  ;;  %v25508_v38 = vmul.f32 0.35355338, %v35740_v34 }
0x26a7   :  { %v25514_v25 = vsel %vm1086_vm3, %v25508_v38, 0 }
0x26a8   :  { %v25584_v37 = vand.u32 4294901760, %v25514_v25 }
0x26a9   :  { %26442 = vrot.lane.b32.xlu0 %v35740_v34, %s36442_s28 }
0x26aa   :  { %v25585_v22 = vsub.f32 %v25514_v25, %v25584_v37 }
0x26ac   :  { %v25586_v56 = vand.u32 4294901760, %v25585_v22 }
0x26ad   :  { %27372 = vrot.lane.b32.xlu0 %v25508_v38, %s36444_s30 }
0x26ae   :  { %v25587_v62 = vsub.f32 %v25585_v22, %v25586_v56 }
0x26b0   :  { %v25588_v21 = vand.u32 4294901760, %v25587_v62 }
0x26b1   :  { %27374 = vrot.lane.b32.xlu0 %v35740_v34, %s36446_s15 }
0x26b5   :  { %28304 = vrot.lane.b32.xlu0 %v25508_v38, %s36447_s16 }
0x26b9   :  { %28306 = vrot.lane.b32.xlu0 %v35740_v34, %s40166_s27 }
0x2717   :  { %v25512_v36 = vpop.permute.xlu0 %25511 }
0x2718   :  { %v25516_v4 = vsel %vm1086_vm3, %v25512_v36, 0 }
0x2719   :  { %v25519_v63 = vand.u32 4294901760, %v25516_v4 }
0x271b   :  { %v25596_v39 = vsub.f32 %v25516_v4, %v25519_v63  ;;  %34353 = vmatpush3.xpose.msra.mxu0 %v25519_v63  ;;  %v26443_v13 = vpop.permute.xlu0 %26442 }
0x271c   :  { %34357 = vmatprep.subr.mxu0 %v40172_v30  ;;  %v26446_v45 = vsel %vm1086_vm3, %v26443_v13, 0 }
0x271d   :  { %v25597_v46 = vand.u32 4294901760, %v25596_v39  ;;  %v39744_v2 = vand.u32 4294901760, %v26446_v45 }
0x271e   :  { %34355 = vmatmul.mubr.f32.vlgmr.msra.gmra.mrb[92].mxu0 %v25588_v21 }
0x271f   :  { %v25598_v17 = vsub.f32 %v25596_v39, %v25597_v46  ;;  %34359 = vmatprep.mubr.msk.f32.mxu0 %vm36438_vm1, %v40172_v30  ;;  %v26526_v60 = vsub.f32 %v26446_v45, %v39744_v2  ;;  %v27373_v52 = vpop.permute.xlu0 %27372 }
0x2721   :  { %v25599_v58 = vand.u32 4294901760, %v25598_v17  ;;  %v26527_v44 = vand.u32 4294901760, %v26526_v60 }
0x2723   :  { %34358 = vmatpush3.xpose.msra.mxu0 %v25599_v58  ;;  %v26528_v59 = vsub.f32 %v26526_v60, %v26527_v44  ;;  %v27375_v31 = vpop.permute.xlu0 %27374 }
0x2724   :  { %34362 = vmatprep.subr.mxu0 %v40172_v30  ;;  %v27378_v49 = vsel %vm1086_vm3, %v27375_v31, 0 }
0x2725   :  { %v26529_v41 = vand.u32 4294901760, %v26528_v59 }
0x2726   :  { %34360 = vmatmul.mubr.f32.vlgmr.msra.gmra.mrb[92].mxu0 %v25584_v37 }
0x2727   :  { %34363 = vmatpush3.xpose.msra.mxu0 %v25596_v39  ;;  %34364 = vmatprep.mubr.msk.f32.mxu0 %vm36438_vm1, %v40172_v30 }
0x2728   :  { %34367 = vmatprep.subr.mxu0 %v40172_v30 }
0x272e   :  { %34365 = vmatmul.mubr.f32.vlgmr.msra.gmra.mrb[92].mxu0 %v25585_v22 }
0x272f   :  { %34368 = vmatpush3.xpose.msra.mxu0 %v25519_v63  ;;  %34369 = vmatprep.mubr.msk.f32.mxu0 %vm36438_vm1, %v40172_v30 }
0x2730   :  { %34372 = vmatprep.subr.mxu0 %v40172_v30 }
0x2736   :  { %34370 = vmatmul.mubr.f32.vlgmr.msra.gmra.mrb[92].mxu0 %v25586_v56 }
0x2737   :  { %34373 = vmatpush3.xpose.msra.mxu0 %v25597_v46  ;;  %34374 = vmatprep.mubr.msk.f32.mxu0 %vm36438_vm1, %v40172_v30 }
0x2738   :  { %34377 = vmatprep.subr.mxu0 %v40172_v30 }
0x273b   :  { %v25504_v26 = vpop.f32.mrb[90].mxu1 }
0x273c   :  { %v35741_v43 = vadd.f32 %v30211_v33, %v25504_v26  ;;  %v34351_v24 = vpop.f32.mrb[91].mxu1  ;;  %v27376_v33 = vsel %vm1086_vm3, %v27373_v52, 0 }
0x273d   :  { %v39809_v48 = vand.u32 4294901760, %v27376_v33  ;;  %v28305_v24 = vpop.permute.xlu0 %28304 }
0x273e   :  { %34375 = vmatmul.mubr.f32.vlgmr.msra.gmra.mrb[92].mxu0 %v25584_v37  ;;  %25965 = vrot.lane.b32.xlu1 %v35741_v43, %s36440_s26  ;;  %v25509_v53 = vmul.f32 0.35355338, %v35741_v43 }
0x273f   :  { %34378 = vmatpush3.xpose.msra.mxu0 %v25519_v63  ;;  %34379 = vmatprep.mubr.msk.f32.mxu0 %vm36438_vm1, %v40172_v30 }
0x2740   :  { %34412 = vmatprep.subr.mxu0 %v40172_v30  ;;  %v25968_v23 = vsel %vm1086_vm3, %v25509_v53, 0 }
0x2741   :  { %v39757_v29 = vand.u32 4294901760, %v25968_v23 }
0x2742   :  { %26440 = vrot.lane.b32.xlu1 %v25508_v38, %s36443_s29  ;;  %v39815_v38 = vand.u32 4294901760, %v27378_v49 }
0x2743   :  { %v26039_v9 = vsub.f32 %v25968_v23, %v39757_v29 }
0x2744   :  { %v39824_v56 = vsub.f32 %v27378_v49, %v39815_v38 }
0x2745   :  { %v26040_v7 = vand.u32 4294901760, %v26039_v9 }
0x2746   :  { %34380 = vmatmul.mubr.f32.vlgmr.msra.gmra.mrb[92].mxu0 %v25584_v37  ;;  %26894 = vrot.lane.b32.xlu1 %v25509_v53, %s36443_s29  ;;  %v39820_v37 = vsub.f32 %v27376_v33, %v39809_v48  ;;  %v27459_v63 = vand.u32 4294901760, %v39824_v56 }
0x2747   :  { %34413 = vmatpush3.xpose.msra.mxu0 %v39744_v2  ;;  %34414 = vmatprep.mubr.msk.f32.mxu0 %vm36438_vm1, %v40172_v30  ;;  %v26041_v47 = vsub.f32 %v26039_v9, %v26040_v7 }
0x2748   :  { %34417 = vmatprep.subr.mxu0 %v40172_v30  ;;  %v27448_v4 = vand.u32 4294901760, %v39820_v37  ;;  %v27460_v21 = vsub.f32 %v39824_v56, %v27459_v63 }
0x2749   :  { %v26042_v57 = vand.u32 4294901760, %v26041_v47 }
0x274a   :  { %26896 = vrot.lane.b32.xlu1 %v35741_v43, %s36442_s28  ;;  %v27449_v39 = vsub.f32 %v39820_v37, %v27448_v4  ;;  %v27461_v17 = vand.u32 4294901760, %v27460_v21 }
0x274c   :  { %v27450_v46 = vand.u32 4294901760, %v27449_v39 }
0x274e   :  { %27826 = vrot.lane.b32.xlu1 %v25509_v53, %s36444_s30 }
0x2752   :  { %27828 = vrot.lane.b32.xlu1 %v35741_v43, %s36446_s15 }
0x2756   :  { %28758 = vrot.lane.b32.xlu1 %v25509_v53, %s36447_s16 }
0x275a   :  { %28760 = vrot.lane.b32.xlu1 %v35741_v43, %s40166_s27 }
0x27b0   :  { %v25966_v28 = vpop.permute.xlu1 %25965 }
0x27b1   :  { %v25970_v12 = vsel %vm1086_vm3, %v25966_v28, 0 }
0x27b2   :  { %v25973_v51 = vand.u32 4294901760, %v25970_v12 }
0x27b4   :  { %v26050_v20 = vsub.f32 %v25970_v12, %v25973_v51  ;;  %34383 = vmatpush3.xpose.msra.mxu1 %v25973_v51  ;;  %v26441_v54 = vpop.permute.xlu1 %26440 }
0x27b5   :  { %v26444_v27 = vsel %vm1086_vm3, %v26441_v54, 0  ;;  %34387 = vmatprep.subr.mxu1 %v40172_v30 }
0x27b6   :  { %v26051_v6 = vand.u32 4294901760, %v26050_v20  ;;  %v39764_v40 = vand.u32 4294901760, %v26444_v27 }
0x27b7   :  { %34385 = vmatmul.mubr.f32.vlgmr.msra.gmra.mrb[92].mxu1 %v26042_v57 }
0x27b8   :  { %v26052_v16 = vsub.f32 %v26050_v20, %v26051_v6  ;;  %v26515_v35 = vsub.f32 %v26444_v27, %v39764_v40  ;;  %34389 = vmatprep.mubr.msk.f32.mxu1 %vm36438_vm1, %v40172_v30  ;;  %v26895_v50 = vpop.permute.xlu1 %26894 }
0x27b9   :  { %v26898_v32 = vsel %vm1086_vm3, %v26895_v50, 0 }
0x27ba   :  { %v26053_v3 = vand.u32 4294901760, %v26052_v16  ;;  %v26516_v1 = vand.u32 4294901760, %v26515_v35  ;;  %v39786_v8 = vand.u32 4294901760, %v26898_v32 }
0x27bc   :  { %v26517_v61 = vsub.f32 %v26515_v35, %v26516_v1  ;;  %34388 = vmatpush3.xpose.msra.mxu1 %v26053_v3  ;;  %v26897_v14 = vpop.permute.xlu1 %26896  ;;  %v39798_v10 = vsub.f32 %v26898_v32, %v39786_v8 }
0x27bd   :  { %34392 = vmatprep.subr.mxu1 %v40172_v30  ;;  %v26900_v0 = vsel %vm1086_vm3, %v26897_v14, 0 }
0x27be   :  { %v26518_v18 = vand.u32 4294901760, %v26517_v61  ;;  %v39791_v15 = vand.u32 4294901760, %v26900_v0  ;;  %v26970_v34 = vand.u32 4294901760, %v39798_v10 }
0x27bf   :  { %34390 = vmatmul.mubr.f32.vlgmr.msra.gmra.mrb[92].mxu1 %v39757_v29 }
0x27c0   :  { %34393 = vmatpush3.xpose.msra.mxu1 %v26050_v20  ;;  %34415 = vmatmul.mubr.f32.vlgmr.msra.gmra.mrb[94].mxu0 %v26518_v18  ;;  %v39801_v11 = vsub.f32 %v26900_v0, %v39791_v15  ;;  %v26971_v25 = vsub.f32 %v39798_v10, %v26970_v34  ;;  %v27827_v58 = vpop.permute.xlu1 %27826 }
0x27c1   :  { %34418 = vmatpush3.xpose.msra.mxu0 %v26529_v41  ;;  %34394 = vmatprep.mubr.msk.f32.mxu1 %vm36438_vm1, %v40172_v30  ;;  %v27830_v43 = vsel %vm1086_vm3, %v27827_v58, 0 }
0x27c2   :  { %34397 = vmatprep.subr.mxu1 %v40172_v30  ;;  %34419 = vmatprep.mubr.msk.f32.mxu0 %vm36438_vm1, %v40172_v30  ;;  %v26981_v5 = vand.u32 4294901760, %v39801_v11  ;;  %v26972_v36 = vand.u32 4294901760, %v26971_v25  ;;  %v39869_v45 = vand.u32 4294901760, %v27830_v43 }
0x27c3   :  { %34422 = vmatprep.subr.mxu0 %v40172_v30 }
0x27c4   :  { %v26982_v22 = vsub.f32 %v39801_v11, %v26981_v5  ;;  %v27829_v26 = vpop.permute.xlu1 %27828  ;;  %v39881_v23 = vsub.f32 %v27830_v43, %v39869_v45 }
0x27c5   :  { %v27832_v13 = vsel %vm1086_vm3, %v27829_v26, 0 }
0x27c6   :  { %v26983_v62 = vand.u32 4294901760, %v26982_v22  ;;  %v39874_v53 = vand.u32 4294901760, %v27832_v13  ;;  %v27902_v28 = vand.u32 4294901760, %v39881_v23 }
0x27c7   :  { %34395 = vmatmul.mubr.f32.vlgmr.msra.gmra.mrb[92].mxu1 %v26039_v9  ;;  %v28308_v9 = vsel %vm1086_vm3, %v28305_v24, 0 }
0x27c8   :  { %34398 = vmatpush3.xpose.msra.mxu1 %v25973_v51  ;;  %34420 = vmatmul.mubr.f32.vlgmr.msra.gmra.mrb[94].mxu0 %v39764_v40  ;;  %v39893_v12 = vand.u32 4294901760, %v28308_v9  ;;  %v28759_v41 = vpop.permute.xlu1 %28758 }
0x27c9   :  { %34423 = vmatpush3.xpose.msra.mxu0 %v26526_v60  ;;  %34399 = vmatprep.mubr.msk.f32.mxu1 %vm36438_vm1, %v40172_v30  ;;  %v27903_v60 = vsub.f32 %v39881_v23, %v27902_v28  ;;  %v28762_v14 = vsel %vm1086_vm3, %v28759_v41, 0 }
0x27ca   :  { %34402 = vmatprep.subr.mxu1 %v40172_v30  ;;  %34424 = vmatprep.mubr.msk.f32.mxu0 %vm36438_vm1, %v40172_v30  ;;  %v39904_v20 = vsub.f32 %v28308_v9, %v39893_v12  ;;  %v28832_v52 = vand.u32 4294901760, %v28762_v14 }
0x27cb   :  { %34427 = vmatprep.subr.mxu0 %v40172_v30  ;;  %v27904_v57 = vand.u32 4294901760, %v27903_v60 }
0x27cc   :  { %v28761_v50 = vpop.permute.xlu1 %28760 }
0x27cd   :  { %v28764_v32 = vsel %vm1086_vm3, %v28761_v50, 0 }
0x27ce   :  { %v28767_v0 = vand.u32 4294901760, %v28764_v32 }
0x27cf   :  { %34400 = vmatmul.mubr.f32.vlgmr.msra.gmra.mrb[92].mxu1 %v26040_v7 }
0x27d0   :  { %34403 = vmatpush3.xpose.msra.mxu1 %v26051_v6  ;;  %34425 = vmatmul.mubr.f32.vlgmr.msra.gmra.mrb[94].mxu0 %v26515_v35  ;;  %v28380_v6 = vand.u32 4294901760, %v39904_v20 }
0x27d1   :  { %34428 = vmatpush3.xpose.msra.mxu0 %v39744_v2  ;;  %34404 = vmatprep.mubr.msk.f32.mxu1 %vm36438_vm1, %v40172_v30 }
0x27d2   :  { %34407 = vmatprep.subr.mxu1 %v40172_v30  ;;  %34429 = vmatprep.mubr.msk.f32.mxu0 %vm36438_vm1, %v40172_v30  ;;  %v28381_v16 = vsub.f32 %v39904_v20, %v28380_v6 }
0x27d3   :  { %34432 = vmatprep.subr.mxu0 %v40172_v30 }
0x27d4   :  { %v28382_v3 = vand.u32 4294901760, %v28381_v16 }
0x27d7   :  { %34405 = vmatmul.mubr.f32.vlgmr.msra.gmra.mrb[92].mxu1 %v39757_v29 }
0x27d8   :  { %34408 = vmatpush3.xpose.msra.mxu1 %v25973_v51  ;;  %34430 = vmatmul.mubr.f32.vlgmr.msra.gmra.mrb[94].mxu0 %v26516_v1 }
0x27d9   :  { %34433 = vmatpush3.xpose.msra.mxu0 %v26527_v44  ;;  %34409 = vmatprep.mubr.msk.f32.mxu1 %vm36438_vm1, %v40172_v30 }
0x27da   :  { %34442 = vmatprep.subr.mxu1 %v40172_v30  ;;  %34434 = vmatprep.mubr.msk.f32.mxu0 %vm36438_vm1, %v40172_v30 }
0x27db   :  { %34437 = vmatprep.subr.mxu0 %v40172_v30 }
0x27df   :  { %34410 = vmatmul.mubr.f32.vlgmr.msra.gmra.mrb[92].mxu1 %v39757_v29  ;;  %v39884_v29 = vsub.f32 %v27832_v13, %v39874_v53 }
0x27e0   :  { %34443 = vmatpush3.xpose.msra.mxu1 %v39791_v15  ;;  %34435 = vmatmul.mubr.f32.vlgmr.msra.gmra.mrb[94].mxu0 %v39764_v40 }
0x27e1   :  { %34438 = vmatpush3.xpose.msra.mxu0 %v39744_v2  ;;  %34444 = vmatprep.mubr.msk.f32.mxu1 %vm36438_vm1, %v40172_v30  ;;  %v28307_v2 = vpop.permute.xlu0 %28306  ;;  %v27913_v47 = vand.u32 4294901760, %v39884_v29 }
0x27e2   :  { %34447 = vmatprep.subr.mxu1 %v40172_v30  ;;  %34439 = vmatprep.mubr.msk.f32.mxu0 %vm36438_vm1, %v40172_v30  ;;  %v28310_v7 = vsel %vm1086_vm3, %v28307_v2, 0 }
0x27e3   :  { %34445 = vmatmul.mubr.f32.vlgmr.msra.gmra.mrb[94].mxu1 %v26972_v36  ;;  %34472 = vmatprep.subr.mxu0 %v40172_v30  ;;  %v39899_v51 = vand.u32 4294901760, %v28310_v7  ;;  %v27914_v54 = vsub.f32 %v39884_v29, %v27913_v47 }
0x27e4   :  { %34448 = vmatpush3.xpose.msra.mxu1 %v26983_v62  ;;  %34449 = vmatprep.mubr.msk.f32.mxu1 %vm36438_vm1, %v40172_v30 }
0x27e5   :  { %34452 = vmatprep.subr.mxu1 %v40172_v30  ;;  %v39908_v27 = vsub.f32 %v28310_v7, %v39899_v51 }
0x27e7   :  { %v28391_v44 = vand.u32 4294901760, %v39908_v27 }
0x27e8   :  { %34440 = vmatmul.mubr.f32.vlgmr.msra.gmra.mrb[94].mxu0 %v39764_v40  ;;  %v27915_v40 = vand.u32 4294901760, %v27914_v54 }
0x27e9   :  { %34473 = vmatpush3.xpose.msra.mxu0 %v39815_v38  ;;  %34474 = vmatprep.mubr.msk.f32.mxu0 %vm36438_vm1, %v40172_v30  ;;  %v28392_v35 = vsub.f32 %v39908_v27, %v28391_v44 }
0x27ea   :  { %34477 = vmatprep.subr.mxu0 %v40172_v30 }
0x27eb   :  { %34450 = vmatmul.mubr.f32.vlgmr.msra.gmra.mrb[94].mxu1 %v39786_v8  ;;  %v28393_v1 = vand.u32 4294901760, %v28392_v35 }
0x27ec   :  { %34453 = vmatpush3.xpose.msra.mxu1 %v39801_v11  ;;  %34475 = vmatmul.mubr.f32.vlgmr.msra.gmra.mrb[96].mxu0 %v27450_v46 }
0x27ed   :  { %34478 = vmatpush3.xpose.msra.mxu0 %v27461_v17  ;;  %34454 = vmatprep.mubr.msk.f32.mxu1 %vm36438_vm1, %v40172_v30 }
0x27ee   :  { %34457 = vmatprep.subr.mxu1 %v40172_v30  ;;  %34479 = vmatprep.mubr.msk.f32.mxu0 %vm36438_vm1, %v40172_v30 }
0x27ef   :  { %34482 = vmatprep.subr.mxu0 %v40172_v30 }
0x27f3   :  { %34455 = vmatmul.mubr.f32.vlgmr.msra.gmra.mrb[94].mxu1 %v39798_v10 }
0x27f4   :  { %34458 = vmatpush3.xpose.msra.mxu1 %v39791_v15  ;;  %34480 = vmatmul.mubr.f32.vlgmr.msra.gmra.mrb[96].mxu0 %v39809_v48 }
0x27f5   :  { %34483 = vmatpush3.xpose.msra.mxu0 %v39824_v56  ;;  %34459 = vmatprep.mubr.msk.f32.mxu1 %vm36438_vm1, %v40172_v30 }
0x27f6   :  { %34462 = vmatprep.subr.mxu1 %v40172_v30  ;;  %34484 = vmatprep.mubr.msk.f32.mxu0 %vm36438_vm1, %v40172_v30 }
0x27f7   :  { %34487 = vmatprep.subr.mxu0 %v40172_v30 }
0x27fb   :  { %34460 = vmatmul.mubr.f32.vlgmr.msra.gmra.mrb[94].mxu1 %v26970_v34 }
0x27fc   :  { %34463 = vmatpush3.xpose.msra.mxu1 %v26981_v5  ;;  %34485 = vmatmul.mubr.f32.vlgmr.msra.gmra.mrb[96].mxu0 %v39820_v37 }
0x27fd   :  { %34488 = vmatpush3.xpose.msra.mxu0 %v39815_v38  ;;  %34464 = vmatprep.mubr.msk.f32.mxu1 %vm36438_vm1, %v40172_v30 }
0x27fe   :  { %34467 = vmatprep.subr.mxu1 %v40172_v30  ;;  %34489 = vmatprep.mubr.msk.f32.mxu0 %vm36438_vm1, %v40172_v30 }
0x27ff   :  { %34492 = vmatprep.subr.mxu0 %v40172_v30 }
0x2803   :  { %34465 = vmatmul.mubr.f32.vlgmr.msra.gmra.mrb[94].mxu1 %v39786_v8 }
0x2804   :  { %34468 = vmatpush3.xpose.msra.mxu1 %v39791_v15  ;;  %34490 = vmatmul.mubr.f32.vlgmr.msra.gmra.mrb[96].mxu0 %v27448_v4  ;;  %v28844_v15 = vsub.f32 %v28764_v32, %v28767_v0 }
0x2805   :  { %34493 = vmatpush3.xpose.msra.mxu0 %v27459_v63  ;;  %34469 = vmatprep.mubr.msk.f32.mxu1 %vm36438_vm1, %v40172_v30 }
0x2806   :  { %34502 = vmatprep.subr.mxu1 %v40172_v30  ;;  %34494 = vmatprep.mubr.msk.f32.mxu0 %vm36438_vm1, %v40172_v30  ;;  %v28845_v10 = vand.u32 4294901760, %v28844_v15 }
0x2807   :  { %34497 = vmatprep.subr.mxu0 %v40172_v30 }
0x2808   :  { %v28846_v33 = vsub.f32 %v28844_v15, %v28845_v10 }
0x280a   :  { %v28847_v34 = vand.u32 4294901760, %v28846_v33 }
0x280b   :  { %34470 = vmatmul.mubr.f32.vlgmr.msra.gmra.mrb[94].mxu1 %v39786_v8  ;;  %v28833_v8 = vsub.f32 %v28762_v14, %v28832_v52 }
0x280c   :  { %34503 = vmatpush3.xpose.msra.mxu1 %v39874_v53  ;;  %34495 = vmatmul.mubr.f32.vlgmr.msra.gmra.mrb[96].mxu0 %v39809_v48 }
0x280d   :  { %34498 = vmatpush3.xpose.msra.mxu0 %v39815_v38  ;;  %34504 = vmatprep.mubr.msk.f32.mxu1 %vm36438_vm1, %v40172_v30  ;;  %v28834_v31 = vand.u32 4294901760, %v28833_v8 }
0x280e   :  { %34507 = vmatprep.subr.mxu1 %v40172_v30  ;;  %34499 = vmatprep.mubr.msk.f32.mxu0 %vm36438_vm1, %v40172_v30 }
0x280f   :  { %34505 = vmatmul.mubr.f32.vlgmr.msra.gmra.mrb[96].mxu1 %v27904_v57  ;;  %34532 = vmatprep.subr.mxu0 %v40172_v30  ;;  %v28835_v11 = vsub.f32 %v28833_v8, %v28834_v31 }
0x2810   :  { %34508 = vmatpush3.xpose.msra.mxu1 %v27915_v40  ;;  %34509 = vmatprep.mubr.msk.f32.mxu1 %vm36438_vm1, %v40172_v30 }
0x2811   :  { %34512 = vmatprep.subr.mxu1 %v40172_v30  ;;  %v28836_v49 = vand.u32 4294901760, %v28835_v11 }
0x2814   :  { %34500 = vmatmul.mubr.f32.vlgmr.msra.gmra.mrb[96].mxu0 %v39809_v48  ;;  %v39983_v48 = vsel %vm2021_vm5, %v39674_v42, 0  ;;  %v40010_v42 = vsel %vm2021_vm5, %v39715_v19, 0 }
0x2815   :  { %34533 = vmatpush3.xpose.msra.mxu0 %v39899_v51  ;;  %34534 = vmatprep.mubr.msk.f32.mxu0 %vm36438_vm1, %v40172_v30  ;;  %v39989_v5 = vand.u32 4294901760, %v39983_v48  ;;  %v40013_v38 = vand.u32 4294901760, %v40010_v42 }
0x2816   :  { %34537 = vmatprep.subr.mxu0 %v40172_v30 }
0x2817   :  { %34510 = vmatmul.mubr.f32.vlgmr.msra.gmra.mrb[96].mxu1 %v39869_v45 }
0x2818   :  { %34513 = vmatpush3.xpose.msra.mxu1 %v39884_v29  ;;  %34535 = vmatmul.mubr.f32.vlgmr.msra.gmra.mrb[98].mxu0 %v28382_v3 }
0x2819   :  { %v39934_v59 = vpop.f32.mrb[92].mxu0  ;;  %34538 = vmatpush3.xpose.msra.mxu0 %v28393_v1  ;;  %34514 = vmatprep.mubr.msk.f32.mxu1 %vm36438_vm1, %v40172_v30 }
0x281a   :  { %v34381_v61 = vpop.f32.mrb[93].mxu0  ;;  %v26418_v18 = vsel %vm1992_vm4, %v39934_v59, -inf  ;;  %34517 = vmatprep.subr.mxu1 %v40172_v30  ;;  %34539 = vmatprep.mubr.msk.f32.mxu0 %vm36438_vm1, %v40172_v30 }
0x281b   :  { %26419 = vmax.xlane.f32.xlu0 %v26418_v18  ;;  %34542 = vmatprep.subr.mxu0 %v40172_v30 }
0x281f   :  { %34515 = vmatmul.mubr.f32.vlgmr.msra.gmra.mrb[96].mxu1 %v39881_v23 }
0x2820   :  { %34518 = vmatpush3.xpose.msra.mxu1 %v39874_v53  ;;  %34540 = vmatmul.mubr.f32.vlgmr.msra.gmra.mrb[98].mxu0 %v39893_v12 }
0x2821   :  { %34543 = vmatpush3.xpose.msra.mxu0 %v39908_v27  ;;  %34519 = vmatprep.mubr.msk.f32.mxu1 %vm36438_vm1, %v40172_v30 }
0x2822   :  { %34522 = vmatprep.subr.mxu1 %v40172_v30  ;;  %34544 = vmatprep.mubr.msk.f32.mxu0 %vm36438_vm1, %v40172_v30 }
0x2823   :  { %34547 = vmatprep.subr.mxu0 %v40172_v30 }
0x2827   :  { %34520 = vmatmul.mubr.f32.vlgmr.msra.gmra.mrb[96].mxu1 %v27902_v28 }
0x2828   :  { %34523 = vmatpush3.xpose.msra.mxu1 %v27913_v47  ;;  %34545 = vmatmul.mubr.f32.vlgmr.msra.gmra.mrb[98].mxu0 %v39904_v20 }
0x2829   :  { %34548 = vmatpush3.xpose.msra.mxu0 %v39899_v51  ;;  %34524 = vmatprep.mubr.msk.f32.mxu1 %vm36438_vm1, %v40172_v30 }
0x282a   :  { %34527 = vmatprep.subr.mxu1 %v40172_v30  ;;  %34549 = vmatprep.mubr.msk.f32.mxu0 %vm36438_vm1, %v40172_v30 }
0x282b   :  { %34552 = vmatprep.subr.mxu0 %v40172_v30 }
0x282f   :  { %34525 = vmatmul.mubr.f32.vlgmr.msra.gmra.mrb[96].mxu1 %v39869_v45 }
0x2830   :  { %34528 = vmatpush3.xpose.msra.mxu1 %v39874_v53  ;;  %34550 = vmatmul.mubr.f32.vlgmr.msra.gmra.mrb[98].mxu0 %v28380_v6 }
0x2831   :  { %34553 = vmatpush3.xpose.msra.mxu0 %v28391_v44  ;;  %34529 = vmatprep.mubr.msk.f32.mxu1 %vm36438_vm1, %v40172_v30 }
0x2832   :  { %34562 = vmatprep.subr.mxu1 %v40172_v30  ;;  %34554 = vmatprep.mubr.msk.f32.mxu0 %vm36438_vm1, %v40172_v30 }
0x2833   :  { %34557 = vmatprep.subr.mxu0 %v40172_v30 }
0x2837   :  { %34530 = vmatmul.mubr.f32.vlgmr.msra.gmra.mrb[96].mxu1 %v39869_v45 }
0x2838   :  { %34563 = vmatpush3.xpose.msra.mxu1 %v28767_v0  ;;  %34555 = vmatmul.mubr.f32.vlgmr.msra.gmra.mrb[98].mxu0 %v39893_v12 }
0x2839   :  { %34558 = vmatpush3.xpose.msra.mxu0 %v39899_v51  ;;  %34564 = vmatprep.mubr.msk.f32.mxu1 %vm36438_vm1, %v40172_v30 }
0x283a   :  { %34567 = vmatprep.subr.mxu1 %v40172_v30  ;;  %34559 = vmatprep.mubr.msk.f32.mxu0 %vm36438_vm1, %v40172_v30 }
0x283b   :  { %34565 = vmatmul.mubr.f32.vlgmr.msra.gmra.mrb[98].mxu1 %v28836_v49  ;;  %34592 = vmatprep.subr.mxu0 %v40172_v30 }
0x283c   :  { %34568 = vmatpush3.xpose.msra.mxu1 %v28847_v34  ;;  %34569 = vmatprep.mubr.msk.f32.mxu1 %vm36438_vm1, %v40172_v30 }
0x283d   :  { %34572 = vmatprep.subr.mxu1 %v40172_v30 }
0x2840   :  { %34560 = vmatmul.mubr.f32.vlgmr.msra.gmra.mrb[98].mxu0 %v39893_v12 }
0x2841   :  { %34593 = vmatpush3.msra.mxu0 %v39989_v5  ;;  %34594 = vmatprep.mubr.msk.f32.mxu0 %vm36438_vm1, %v40172_v30 }
0x2842   :  { %34597 = vmatprep.subr.mxu0 %v40172_v30 }
0x2843   :  { %34570 = vmatmul.mubr.f32.vlgmr.msra.gmra.mrb[98].mxu1 %v28832_v52 }
0x2844   :  { %34573 = vmatpush3.xpose.msra.mxu1 %v28844_v15  ;;  %34574 = vmatprep.mubr.msk.f32.mxu1 %vm36438_vm1, %v40172_v30 }
0x2845   :  { %34577 = vmatprep.subr.mxu1 %v40172_v30 }
0x284b   :  { %34575 = vmatmul.mubr.f32.vlgmr.msra.gmra.mrb[98].mxu1 %v28833_v8 }
0x284c   :  { %34578 = vmatpush3.xpose.msra.mxu1 %v28767_v0  ;;  %34579 = vmatprep.mubr.msk.f32.mxu1 %vm36438_vm1, %v40172_v30 }
0x284d   :  { %34582 = vmatprep.subr.mxu1 %v40172_v30 }
0x2853   :  { %34580 = vmatmul.mubr.f32.vlgmr.msra.gmra.mrb[98].mxu1 %v28834_v31 }
0x2854   :  { %34583 = vmatpush3.xpose.msra.mxu1 %v28845_v10  ;;  %34584 = vmatprep.mubr.msk.f32.mxu1 %vm36438_vm1, %v40172_v30 }
0x2855   :  { %34587 = vmatprep.subr.mxu1 %v40172_v30 }
0x285b   :  { %34585 = vmatmul.mubr.f32.vlgmr.msra.gmra.mrb[98].mxu1 %v28832_v52 }
0x285c   :  { %34588 = vmatpush3.xpose.msra.mxu1 %v28767_v0  ;;  %34589 = vmatprep.mubr.msk.f32.mxu1 %vm36438_vm1, %v40172_v30 }
0x285d   :  { %34622 = vmatprep.subr.mxu1 %v40172_v30 }
0x2863   :  { %34590 = vmatmul.mubr.f32.vlgmr.msra.gmra.mrb[98].mxu1 %v28832_v52 }
0x2864   :  { %34623 = vmatpush3.msra.mxu1 %v40013_v38  ;;  %34624 = vmatprep.mubr.msk.f32.mxu1 %vm36438_vm1, %v40172_v30 }
0x2865   :  { %34627 = vmatprep.subr.mxu1 %v40172_v30 }
0x28a8   :  { %v26420_v17 = vpop.xlane.xlu0 %26419 }
0x28a9   :  { %v26424_v58 = vsub.f32 %v39934_v59, %v26420_v17 }
0x28ab   :  { %v26426_v26 = vmul.f32 1.442695, %v26424_v58 }
0x28ad   :  { %36399 = vpow2.f32 %v26426_v26 }
0x28b2   :  { %v26414_v25 = vpop.f32.mrb[92].mxu1 }
0x28b3   :  { %v34411_v37 = vpop.f32.mrb[93].mxu1  ;;  %v26421_v22 = vsel %vm1992_vm4, %v26414_v25, -inf }
0x28b4   :  { %26422 = vmax.xlane.f32.xlu1 %v26421_v22 }
0x28b7   :  { %v40026_v23 = vpop.eup %36399 }
0x28b8   :  { %v26430_v29 = vsel %vm1992_vm4, %v40026_v23, 0.0 }
0x28bb   :  { %v26890_v56 = vpop.f32.mrb[94].mxu0 }
0x28bc   :  { %v34441_v36 = vpop.f32.mrb[95].mxu0  ;;  %v27348_v19 = vsel %vm1992_vm4, %v26890_v56, -inf }
0x28bd   :  { %27349 = vmax.xlane.f32.xlu0 %v27348_v19 }
0x28de   :  { %v27344_v4 = vpop.f32.mrb[94].mxu1 }
0x28df   :  { %v34471_v62 = vpop.f32.mrb[95].mxu1  ;;  %v27351_v46 = vsel %vm1992_vm4, %v27344_v4, -inf }
0x28e7   :  { %v27822_v63 = vpop.f32.mrb[96].mxu0 }
0x28e8   :  { %v34501_v39 = vpop.f32.mrb[97].mxu0  ;;  %v28280_v21 = vsel %vm1992_vm4, %v27822_v63, -inf }
0x28e9   :  { %28281 = vmax.xlane.f32.xlu0 %v28280_v21 }
0x28ed   :  { %27352 = vmax.xlane.f32.xlu0 %v27351_v46 }
0x290a   :  { %v28276_v43 = vpop.f32.mrb[96].mxu1 }
0x290b   :  { %v34531_v24 = vpop.f32.mrb[97].mxu1  ;;  %v28283_v13 = vsel %vm1992_vm4, %v28276_v43, -inf }
0x290c   :  { %28284 = vmax.xlane.f32.xlu1 %v28283_v13 }
0x2913   :  { %v28754_v45 = vpop.f32.mrb[98].mxu0 }
0x2914   :  { %v34561_v53 = vpop.f32.mrb[99].mxu0  ;;  %v29212_v2 = vsel %vm1992_vm4, %v28754_v45, -inf }
0x2915   :  { %29213 = vmax.xlane.f32.xlu0 %v29212_v2 }
0x2919   :  { %26431 = vadd.xlane.f32.xlu0 %v26430_v29 }
0x2936   :  { %v29208_v9 = vpop.f32.mrb[98].mxu1 }
0x2937   :  { %v34591_v7 = vpop.f32.mrb[99].mxu1  ;;  %v29215_v28 = vsel %vm1992_vm4, %v29208_v9, -inf }
0x2938   :  { %29216 = vmax.xlane.f32.xlu1 %v29215_v28 }
0x2941   :  { %v26423_v12 = vpop.xlane.xlu1 %26422 }
0x2942   :  { %v26425_v47 = vsub.f32 %v26414_v25, %v26423_v12 }
0x2944   :  { %v26428_v51 = vmul.f32 1.442695, %v26425_v47 }
0x2946   :  { %36401 = vpow2.f32 %v26428_v51 }
0x294a   :  { %v27350_v60 = vpop.xlane.xlu0 %27349 }
0x294b   :  { %v27354_v20 = vsub.f32 %v26890_v56, %v27350_v60 }
0x294d   :  { %v27356_v54 = vmul.f32 1.442695, %v27354_v20 }
0x294f   :  { %36403 = vpow2.f32 %v27356_v54 }
0x2950   :  { %v40031_v27 = vpop.eup %36401 }
0x2951   :  { %v26433_v57 = vsel %vm1992_vm4, %v40031_v27, 0.0 }
0x2952   :  { %26434 = vadd.xlane.f32.xlu1 %v26433_v57 }
0x2959   :  { %v36404_v6 = vpop.eup %36403 }
0x295a   :  { %v27360_v40 = vsel %vm1992_vm4, %v36404_v6, 0.0 }
0x295b   :  { %27361 = vadd.xlane.f32.xlu0 %v27360_v40 }
0x2976   :  { %v28282_v44 = vpop.xlane.xlu0 %28281 }
0x2977   :  { %v28286_v16 = vsub.f32 %v27822_v63, %v28282_v44 }
0x2979   :  { %v28288_v35 = vmul.f32 1.442695, %v28286_v16 }
0x297a   :  { %v27353_v3 = vpop.xlane.xlu0 %27352 }
0x297b   :  { %36405 = vpow2.f32 %v28288_v35  ;;  %v27355_v1 = vsub.f32 %v27344_v4, %v27353_v3 }
0x297d   :  { %v27358_v59 = vmul.f32 1.442695, %v27355_v1 }
0x297f   :  { %36407 = vpow2.f32 %v27358_v59 }
0x2985   :  { %v36406_v61 = vpop.eup %36405 }
0x2986   :  { %v28292_v18 = vsel %vm1992_vm4, %v36406_v61, 0.0 }
0x2987   :  { %28293 = vadd.xlane.f32.xlu0 %v28292_v18 }
0x2989   :  { %v36408_v41 = vpop.eup %36407 }
0x298a   :  { %v27363_v50 = vsel %vm1992_vm4, %v36408_v41, 0.0 }
0x298b   :  { %27364 = vadd.xlane.f32.xlu1 %v27363_v50 }
0x2999   :  { %v28285_v14 = vpop.xlane.xlu1 %28284 }
0x299a   :  { %v28287_v32 = vsub.f32 %v28276_v43, %v28285_v14 }
0x299c   :  { %v28290_v52 = vmul.f32 1.442695, %v28287_v32 }
0x299e   :  { %36409 = vpow2.f32 %v28290_v52 }
0x29a2   :  { %v29214_v0 = vpop.xlane.xlu0 %29213 }
0x29a3   :  { %v29218_v8 = vsub.f32 %v28754_v45, %v29214_v0 }
0x29a5   :  { %v29220_v15 = vmul.f32 1.442695, %v29218_v8 }
0x29a6   :  { %v26432_v56 = vpop.xlane.xlu0 %26431 }
0x29a7   :  { %36411 = vpow2.f32 %v29220_v15 }
0x29a8   :  { %v36410_v31 = vpop.eup %36409 }
0x29a9   :  { %v28295_v10 = vsel %vm1992_vm4, %v36410_v31, 0.0 }
0x29aa   :  { %28296 = vadd.xlane.f32.xlu1 %v28295_v10 }
0x29b1   :  { %v36412_v11 = vpop.eup %36411 }
0x29b2   :  { %v29224_v33 = vsel %vm1992_vm4, %v36412_v11, 0.0 }
0x29b3   :  { %29225 = vadd.xlane.f32.xlu0 %v29224_v33 }
0x29c5   :  { %v29217_v49 = vpop.xlane.xlu1 %29216 }
0x29c6   :  { %v29219_v34 = vsub.f32 %v29208_v9, %v29217_v49 }
0x29c8   :  { %v29222_v25 = vmul.f32 1.442695, %v29219_v34 }
0x29ca   :  { %36413 = vpow2.f32 %v29222_v25 }
0x29d4   :  { %v36414_v37 = vpop.eup %36413 }
0x29d5   :  { %v29227_v22 = vsel %vm1992_vm4, %v36414_v37, 0.0 }
0x29d6   :  { %29228 = vadd.xlane.f32.xlu1 %v29227_v22 }
0x29df   :  { %v26435_v2 = vpop.xlane.xlu1 %26434 }
0x29e8   :  { %v27362_v36 = vpop.xlane.xlu0 %27361 }
0x29e9   :  { %36415 = vrcp.f32 %v27362_v36 }
0x29ea   :  { %36417 = vrcp.f32 %v26432_v56 }
0x29f3   :  { %v36416_v62 = vpop.eup %36415 }
0x29f4   :  { %v36418_v63 = vpop.eup %36417  ;;  %v27368_v21 = vmul.f32 %v36416_v62, %v36404_v6 }
0x29f5   :  { %v26438_v46 = vmul.f32 %v36418_v63, %v40026_v23 }
0x29f7   :  { %v27370_v58 = vmin.f32 %v26438_v46, %v27368_v21 }
0x2a14   :  { %v28294_v19 = vpop.xlane.xlu0 %28293 }
0x2a15   :  { %36419 = vrcp.f32 %v28294_v19 }
0x2a18   :  { %v27365_v9 = vpop.xlane.xlu1 %27364 }
0x2a1f   :  { %v36420_v39 = vpop.eup %36419 }
0x2a20   :  { %v28300_v17 = vmul.f32 %v36420_v39, %v36406_v61  ;;  %v29334_v61 = vsub.f32 %v39983_v48, %v39989_v5 }
0x2a22   :  { %v28302_v43 = vmin.f32 %v27370_v58, %v28300_v17  ;;  %v29335_v50 = vand.u32 4294901760, %v29334_v61 }
0x2a24   :  { %v29336_v52 = vsub.f32 %v29334_v61, %v29335_v50 }
0x2a26   :  { %v29337_v8 = vand.u32 4294901760, %v29336_v52 }
0x2a37   :  { %v28297_v7 = vpop.xlane.xlu1 %28296 }
0x2a40   :  { %v29226_v4 = vpop.xlane.xlu0 %29225 }
0x2a41   :  { %36421 = vrcp.f32 %v29226_v4 }
0x2a42   :  { %36423 = vrcp.f32 %v27365_v9 }
0x2a43   :  { %36425 = vrcp.f32 %v26435_v2 }
0x2a44   :  { %36427 = vrcp.f32 %v28297_v7 }
0x2a4b   :  { %v36422_v26 = vpop.eup %36421 }
0x2a4c   :  { %v29232_v24 = vmul.f32 %v36422_v26, %v36412_v11  ;;  %v36424_v23 = vpop.eup %36423 }
0x2a4d   :  { %v36426_v12 = vpop.eup %36425  ;;  %v27369_v51 = vmul.f32 %v36424_v23, %v36408_v41 }
0x2a4e   :  { %v29234_v13 = vmin.f32 %v28302_v43, %v29232_v24  ;;  %v36428_v47 = vpop.eup %36427  ;;  %v26439_v60 = vmul.f32 %v36426_v12, %v40031_v27 }
0x2a4f   :  { %v28301_v20 = vmul.f32 %v36428_v47, %v36410_v31  ;;  %v29786_v31 = vsub.f32 %v40010_v42, %v40013_v38 }
0x2a50   :  { %v29236_v45 = vadd.f32 %v39486_v55, %v29234_v13  ;;  %v27371_v54 = vmin.f32 %v26439_v60, %v27369_v51 }
0x2a51   :  { %v29787_v49 = vand.u32 4294901760, %v29786_v31 }
0x2a52   :  { %v29238_v53 = vmul.f32 0.5, %v29236_v45  ;;  %v28303_v6 = vmin.f32 %v27371_v54, %v28301_v20 }
0x2a54   :  { %v29240_v29 = vsel %vm1992_vm4, %v29238_v53, 0.0 }
0x2a55   :  { %29241 = vadd.xlane.f32.xlu0 %v29240_v29 }
0x2a63   :  { %v29229_v28 = vpop.xlane.xlu1 %29228 }
0x2a64   :  { %36429 = vrcp.f32 %v29229_v28 }
0x2a6e   :  { %v36430_v57 = vpop.eup %36429 }
0x2a6f   :  { %v29233_v40 = vmul.f32 %v36430_v57, %v36414_v37  ;;  %v29788_v37 = vsub.f32 %v29786_v31, %v29787_v49 }
0x2a71   :  { %v29235_v44 = vmin.f32 %v28303_v6, %v29233_v40  ;;  %v29789_v56 = vand.u32 4294901760, %v29788_v37 }
0x2a73   :  { %v29237_v16 = vadd.f32 %v39486_v55, %v29235_v44 }
0x2a75   :  { %v29239_v35 = vmul.f32 0.5, %v29237_v16 }
0x2a77   :  { %v29243_v3 = vsel %vm1992_vm4, %v29239_v35, 0.0 }
0x2a78   :  { %29244 = vadd.xlane.f32.xlu1 %v29243_v3 }
0x2ae2   :  { %v29242_v1 = vpop.xlane.xlu0 %29241 }
0x2ae3   :  { %36431 = vrcp.f32 %v29242_v1 }
0x2aed   :  { %v36432_v59 = vpop.eup %36431 }
0x2aee   :  { %v29247_v18 = vmul.f32 %v36432_v59, %v29238_v53 }
0x2af0   :  { %v29251_v27 = vsel %vm2017_vm6, %v29247_v18, 0 }
0x2af1   :  { %v29322_v41 = vand.u32 4294901760, %v29251_v27 }
0x2af3   :  { %v29323_v14 = vsub.f32 %v29251_v27, %v29322_v41 }
0x2af5   :  { %v29324_v32 = vand.u32 4294901760, %v29323_v14 }
0x2af7   :  { %v29325_v0 = vsub.f32 %v29323_v14, %v29324_v32 }
0x2af9   :  { %v29326_v55 = vand.u32 4294901760, %v29325_v0 }
0x2afb   :  { %34595 = vmatmul.mubr.f32.vlgmr.msra.gmra.mrb[100].mxu0 %v29326_v55 }
0x2afc   :  { %34598 = vmatpush3.msra.mxu0 %v29337_v8  ;;  %34599 = vmatprep.mubr.msk.f32.mxu0 %vm36438_vm1, %v40172_v30 }
0x2afd   :  { %34602 = vmatprep.subr.mxu0 %v40172_v30 }
0x2b03   :  { %34600 = vmatmul.mubr.f32.vlgmr.msra.gmra.mrb[100].mxu0 %v29322_v41 }
0x2b04   :  { %34603 = vmatpush3.msra.mxu0 %v29334_v61  ;;  %34604 = vmatprep.mubr.msk.f32.mxu0 %vm36438_vm1, %v40172_v30 }
0x2b05   :  { %v29245_v48 = vpop.xlane.xlu1 %29244  ;;  %34607 = vmatprep.subr.mxu0 %v40172_v30 }
0x2b06   :  { %36433 = vrcp.f32 %v29245_v48 }
0x2b0b   :  { %34605 = vmatmul.mubr.f32.vlgmr.msra.gmra.mrb[100].mxu0 %v29323_v14 }
0x2b0c   :  { %34608 = vmatpush3.msra.mxu0 %v39989_v5  ;;  %34609 = vmatprep.mubr.msk.f32.mxu0 %vm36438_vm1, %v40172_v30 }
0x2b0d   :  { %34612 = vmatprep.subr.mxu0 %v40172_v30 }
0x2b10   :  { %v36434_v15 = vpop.eup %36433 }
0x2b11   :  { %v29249_v10 = vmul.f32 %v36434_v15, %v29239_v35 }
0x2b13   :  { %v29703_v11 = vsel %vm2017_vm6, %v29249_v10, 0  ;;  %34610 = vmatmul.mubr.f32.vlgmr.msra.gmra.mrb[100].mxu0 %v29324_v32 }
0x2b14   :  { %v29774_v33 = vand.u32 4294901760, %v29703_v11  ;;  %34613 = vmatpush3.msra.mxu0 %v29335_v50  ;;  %34614 = vmatprep.mubr.msk.f32.mxu0 %vm36438_vm1, %v40172_v30 }
0x2b15   :  { %34617 = vmatprep.subr.mxu0 %v40172_v30 }
0x2b16   :  { %v29775_v34 = vsub.f32 %v29703_v11, %v29774_v33 }
0x2b18   :  { %v29776_v25 = vand.u32 4294901760, %v29775_v34 }
0x2b1a   :  { %v29777_v22 = vsub.f32 %v29775_v34, %v29776_v25 }
0x2b1b   :  { %34615 = vmatmul.mubr.f32.vlgmr.msra.gmra.mrb[100].mxu0 %v29322_v41 }
0x2b1c   :  { %34618 = vmatpush3.msra.mxu0 %v39989_v5  ;;  %v29778_v42 = vand.u32 4294901760, %v29777_v22  ;;  %34619 = vmatprep.mubr.msk.f32.mxu0 %vm36438_vm1, %v40172_v30 }
0x2b1e   :  { %34625 = vmatmul.mubr.f32.vlgmr.msra.gmra.mrb[100].mxu1 %v29778_v42 }
0x2b1f   :  { %34628 = vmatpush3.msra.mxu1 %v29789_v56  ;;  %34629 = vmatprep.mubr.msk.f32.mxu1 %vm36438_vm1, %v40172_v30 }
0x2b20   :  { %34632 = vmatprep.subr.mxu1 %v40172_v30 }
0x2b23   :  { %34620 = vmatmul.mubr.f32.vlgmr.msra.gmra.mrb[100].mxu0 %v29322_v41 }
0x2b26   :  { %34630 = vmatmul.mubr.f32.vlgmr.msra.gmra.mrb[100].mxu1 %v29774_v33 }
0x2b27   :  { %34633 = vmatpush3.msra.mxu1 %v29786_v31  ;;  %34634 = vmatprep.mubr.msk.f32.mxu1 %vm36438_vm1, %v40172_v30 }
0x2b28   :  { %34637 = vmatprep.subr.mxu1 %v40172_v30 }
0x2b2e   :  { %34635 = vmatmul.mubr.f32.vlgmr.msra.gmra.mrb[100].mxu1 %v29775_v34 }
0x2b2f   :  { %34638 = vmatpush3.msra.mxu1 %v40013_v38  ;;  %34639 = vmatprep.mubr.msk.f32.mxu1 %vm36438_vm1, %v40172_v30 }
0x2b30   :  { %34642 = vmatprep.subr.mxu1 %v40172_v30 }
0x2b36   :  { %34640 = vmatmul.mubr.f32.vlgmr.msra.gmra.mrb[100].mxu1 %v29776_v25 }
0x2b37   :  { %34643 = vmatpush3.msra.mxu1 %v29787_v49  ;;  %34644 = vmatprep.mubr.msk.f32.mxu1 %vm36438_vm1, %v40172_v30 }
0x2b38   :  { %34647 = vmatprep.subr.mxu1 %v40172_v30 }
0x2b3e   :  { %34645 = vmatmul.mubr.f32.vlgmr.msra.gmra.mrb[100].mxu1 %v29774_v33 }
0x2b3f   :  { %34648 = vmatpush3.msra.mxu1 %v40013_v38  ;;  %34649 = vmatprep.mubr.msk.f32.mxu1 %vm36438_vm1, %v40172_v30 }
0x2b46   :  { %34650 = vmatmul.mubr.f32.vlgmr.msra.gmra.mrb[100].mxu1 %v29774_v33 }
0x2bf6   :  { %v29698_v5 = vpop.f32.mrb[100].mxu0 }
0x2bf7   :  { %30154 = vst.msk [vmem:[%s40106_s13] sm:$0x1f] %vm1992_vm4, %v29698_v5  ;;  %v34621_v36 = vpop.f32.mrb[101].mxu0 }
0x2c19   :  { %v30150_v19 = vpop.f32.mrb[100].mxu1 }
0x2c1a   :  { %30155 = vst.msk [vmem:[%s40106_s13 + $0x8] sm:$0x1f] %vm1992_vm4, %v30150_v19  ;;  %v34651_v4 = vpop.f32.mrb[101].mxu1 }

</bundles_post_ra>
